<compile_context>
chip_gen: v6e
topology: v6e:2x2x1
jax: 0.10.0
libtpu: 0.0.40
codegen_flags: <defaults>
</compile_context>

<pallas_src>
import jax
import jax.numpy as jnp
from jax import lax
from jax.experimental import pallas as pl
from jax.experimental.pallas import tpu as pltpu

LANE = 128
NEG = -1e30  # bias for padded logit lanes (finite -> no inf arithmetic)


def _round_up(x, m):
    return (x + m - 1) // m * m


def _pad_axis(x, axis, new_size):
    pad = new_size - x.shape[axis]
    if pad == 0:
        return x
    widths = [(0, 0)] * x.ndim
    widths[axis] = (0, pad)
    return jnp.pad(x, widths)


def _pad_gate_cols(w, H, Hp):
    """Zero-pad the 4H gate axis block-wise (PyTorch gate order [i, f, g, o])."""
    lead = w.shape[:-1]
    w4 = w.reshape(lead + (4, H))
    w4 = _pad_axis(w4, w4.ndim - 1, Hp)
    return w4.reshape(lead + (4 * Hp,))


def make_kernel(B, S, Ep, Hp, Vp, num_outputs, bos_idx):
    def kernel(enc_emb_ref, w_enc_ref, b_e_ref, w_dec_ref, w_p_ref, b_p_ref,
               out_ref, xh_enc, xh_dec):
        f32 = jnp.float32
        w_enc = w_enc_ref[...]
        w_dec = w_dec_ref[...]
        w_p = w_p_ref[...]
        # hoisted bias broadcasts (JAX does not CSE broadcast_in_dim)
        b_e = jnp.broadcast_to(b_e_ref[...], (B, 4 * Hp))
        b_p = jnp.broadcast_to(b_p_ref[...], (B, Vp))

        def cell(gates, c):
            # gate slices are exact 128-lane stripes (Hp is a multiple of 128)
            i = jax.nn.sigmoid(gates[:, 0 * Hp:1 * Hp])
            f = jax.nn.sigmoid(gates[:, 1 * Hp:2 * Hp])
            g = jnp.tanh(gates[:, 2 * Hp:3 * Hp])
            o = jax.nn.sigmoid(gates[:, 3 * Hp:4 * Hp])
            c_new = f * c + i * g
            h_new = o * jnp.tanh(c_new)
            return h_new, c_new

        h = jnp.zeros((B, Hp), f32)
        c = jnp.zeros((B, Hp), f32)

        # ---- encoder: fused [x | h] @ [W_ih ; W_hh] over the short source seq ----
        for t in range(S):                      # S is tiny (input token pair)
            xh_enc[:, 0:Ep] = enc_emb_ref[t]              # (B, Ep), lane-aligned
            xh_enc[:, Ep:Ep + Hp] = h
            gates = jnp.dot(xh_enc[...], w_enc, preferred_element_type=f32) + b_e
            h, c = cell(gates, c)

        # ---- autoregressive greedy decoder with max-pooled logits ----
        lane_ids = lax.broadcasted_iota(jnp.int32, (B, Vp), 1)
        token = jnp.full((B, 1), bos_idx, jnp.int32)
        running_max = jnp.full((B, Vp), -jnp.inf, f32)
        for _ in range(num_outputs):
            onehot = (lane_ids == token).astype(f32)
            xh_dec[:, 0:Vp] = onehot
            xh_dec[:, Vp:Vp + Hp] = h
            # single gate matmul: embedding lookup, W_ih_d and b_d are all
            # pre-folded into w_dec in the wrapper
            gates = jnp.dot(xh_dec[...], w_dec, preferred_element_type=f32)
            h, c = cell(gates, c)
            logit = jnp.dot(h, w_p, preferred_element_type=f32) + b_p
            running_max = jnp.maximum(running_max, logit)
            # greedy argmax (first max index, matches torch.argmax tie-break);
            # padded lanes carry NEG bias so they are never selected
            max_val = jnp.max(logit, axis=-1, keepdims=True)
            cand = jnp.where(logit == max_val, lane_ids, Vp)
            token = jnp.min(cand, axis=-1, keepdims=True)

        out_ref[...] = running_max              # lane-dense (B, Vp) store

    return kernel


def init_params(key, V_src, V_tgt, E, H, pad_idx, bos_idx):
    ks = jax.random.split(key, 12)
    bound = 1.0 / (H ** 0.5)

    def unif(k, shape):
        return jax.random.uniform(k, shape, jnp.float32, -bound, bound)

    src_embed = jax.random.normal(ks[0], (V_src, E), jnp.float32)
    src_embed = src_embed.at[pad_idx].set(0.0)          # padding_idx (source PAD)
    tgt_embed = jax.random.normal(ks[1], (V_tgt, E), jnp.float32)
    tgt_embed = tgt_embed.at[bos_idx].set(0.0)          # padding_idx (target BOS)

    # encoder LSTM (PyTorch layout: W_ih (4H,E), W_hh (4H,H)) -> transposed
    w_ih_e = unif(ks[2], (4 * H, E)).T
    w_hh_e = unif(ks[3], (4 * H, H)).T
    b_e = (unif(ks[4], (4 * H,)) + unif(ks[5], (4 * H,))).reshape(1, 4 * H)

    # decoder LSTM
    w_ih_d = unif(ks[6], (4 * H, E)).T
    w_hh_d = unif(ks[7], (4 * H, H)).T
    b_d = (unif(ks[8], (4 * H,)) + unif(ks[9], (4 * H,))).reshape(1, 4 * H)

    # projection Linear(H, V_tgt)
    w_p = unif(ks[10], (V_tgt, H)).T
    b_p = unif(ks[11], (V_tgt,)).reshape(1, V_tgt)

    return dict(src_embed=src_embed, tgt_embed=tgt_embed,
                w_ih_e=w_ih_e, w_hh_e=w_hh_e, b_e=b_e,
                w_ih_d=w_ih_d, w_hh_d=w_hh_d, b_d=b_d,
                w_p=w_p, b_p=b_p)


def prepare_fused_params(params):
    """Pad to 128-lane multiples and pre-fuse weights for the kernel."""
    E = params["src_embed"].shape[1]
    V = params["tgt_embed"].shape[0]
    H = params["w_hh_e"].shape[0]
    Ep, Hp, Vp = _round_up(E, LANE), _round_up(H, LANE), _round_up(V, LANE)

    # encoder: [W_ih ; W_hh] -> (Ep+Hp, 4Hp), zero-padded (keeps padded h lanes 0)
    w_ih_e = _pad_axis(_pad_gate_cols(params["w_ih_e"], H, Hp), 0, Ep)
    w_hh_e = _pad_axis(_pad_gate_cols(params["w_hh_e"], H, Hp), 0, Hp)
    w_enc = jnp.concatenate([w_ih_e, w_hh_e], axis=0)
    b_e = _pad_gate_cols(params["b_e"], H, Hp)                       # (1, 4Hp)

    # decoder: fold embedding table + both biases into the input-gate weights,
    # then concat with W_hh -> (Vp+Hp, 4Hp).  (onehot rows sum to 1, so adding
    # b_d per table row is exactly tok_emb @ W_ih_d + b_ih_d + b_hh_d.)
    tbl = jnp.dot(params["tgt_embed"], params["w_ih_d"],
                  preferred_element_type=jnp.float32) + params["b_d"]  # (V, 4H)
    tbl = _pad_axis(_pad_gate_cols(tbl, H, Hp), 0, Vp)
    w_hh_d = _pad_axis(_pad_gate_cols(params["w_hh_d"], H, Hp), 0, Hp)
    w_dec = jnp.concatenate([tbl, w_hh_d], axis=0)

    # projection: zero-pad H rows and V cols; padded logit lanes biased to NEG
    w_p = _pad_axis(_pad_axis(params["w_p"], 0, Hp), 1, Vp)
    if Vp > V:
        b_p = jnp.concatenate(
            [params["b_p"], jnp.full((1, Vp - V), NEG, jnp.float32)], axis=1)
    else:
        b_p = params["b_p"]

    return dict(w_enc=w_enc, b_e=b_e, w_dec=w_dec, w_p=w_p, b_p=b_p,
                Ep=Ep, Hp=Hp, Vp=Vp)


def lstm_set_decoder_forward(src, params, fused, *, num_outputs, bos_idx):
    """src: (B, S) int32 token ids -> logits (B, V_tgt) float32."""
    B, S = src.shape
    V_tgt = params["tgt_embed"].shape[0]
    Ep, Hp, Vp = fused["Ep"], fused["Hp"], fused["Vp"]

    # glue: source embedding lookup + eval-mode dropout (identity); put the
    # sequence axis first so the kernel slices time steps on axis 0; pad E.
    enc_emb = jnp.transpose(params["src_embed"][src], (1, 0, 2))     # (S, B, E)
    enc_emb = _pad_axis(enc_emb, 2, Ep)                              # (S, B, Ep)

    kernel = make_kernel(B, S, Ep, Hp, Vp, num_outputs, bos_idx)
    vmem = pltpu.MemorySpace.VMEM
    out = pl.pallas_call(
        kernel,
        out_shape=jax.ShapeDtypeStruct((B, Vp), jnp.float32),
        in_specs=[pl.BlockSpec(memory_space=vmem)] * 6,
        out_specs=pl.BlockSpec(memory_space=vmem),
        scratch_shapes=[pltpu.VMEM((B, Ep + Hp), jnp.float32),   # encoder [x|h]
                        pltpu.VMEM((B, Vp + Hp), jnp.float32)],  # decoder [1hot|h]
    )(enc_emb, fused["w_enc"], fused["b_e"], fused["w_dec"],
      fused["w_p"], fused["b_p"])
    # drop padded logit lanes
    return out[:, :V_tgt]


if __name__ == "__main__":
    B, S = 8, 2              # batch, source pair length
    E, H = 32, 64            # emb_dim, hid_dim (padded to 128 in the wrapper)
    V_src, V_tgt = 32, 32    # vocab sizes (include PAD/BOS)
    num_outputs = 9
    pad_idx, bos_idx = 0, 1

    key = jax.random.PRNGKey(0)
    pkey, skey = jax.random.split(key)
    params = init_params(pkey, V_src, V_tgt, E, H, pad_idx, bos_idx)
    fused = prepare_fused_params(params)
    src = jax.random.randint(skey, (B, S), 2, V_src, dtype=jnp.int32)

    logits = lstm_set_decoder_forward(src, params, fused,
                                      num_outputs=num_outputs, bos_idx=bos_idx)
    jax.block_until_ready(logits)
    assert logits.shape == (B, V_tgt) and logits.dtype == jnp.float32
    assert bool(jnp.all(jnp.isfinite(logits)))
    print("KERNEL_OK")
</pallas_src>

<mosaic_0001>
module attributes {stable_mosaic.version = 11 : i64} {
  func.func @kernel(%arg0: memref<2x8x128xf32, #tpu.memory_space<vmem>>, %arg1: memref<256x512xf32, #tpu.memory_space<vmem>>, %arg2: memref<1x512xf32, #tpu.memory_space<vmem>>, %arg3: memref<256x512xf32, #tpu.memory_space<vmem>>, %arg4: memref<128x128xf32, #tpu.memory_space<vmem>>, %arg5: memref<1x128xf32, #tpu.memory_space<vmem>>, %arg6: memref<8x128xf32, #tpu.memory_space<vmem>>, %arg7: memref<8x256xf32, #tpu.memory_space<vmem>>, %arg8: memref<8x256xf32, #tpu.memory_space<vmem>>) attributes {dimension_semantics = [], scalar_prefetch = 0 : i64, scratch_operands = 2 : i64, tpu.core_type = #tpu.core_type<tc>} {
    %c0 = arith.constant 0 : index
    %c0_0 = arith.constant 0 : index
    %0 = vector.load %arg1[%c0, %c0_0] : memref<256x512xf32, #tpu.memory_space<vmem>>, vector<256x512xf32>
    %c0_1 = arith.constant 0 : index
    %c0_2 = arith.constant 0 : index
    %1 = vector.load %arg3[%c0_1, %c0_2] : memref<256x512xf32, #tpu.memory_space<vmem>>, vector<256x512xf32>
    %c0_3 = arith.constant 0 : index
    %c0_4 = arith.constant 0 : index
    %2 = vector.load %arg4[%c0_3, %c0_4] : memref<128x128xf32, #tpu.memory_space<vmem>>, vector<128x128xf32>
    %c0_5 = arith.constant 0 : index
    %c0_6 = arith.constant 0 : index
    %3 = vector.load %arg2[%c0_5, %c0_6] : memref<1x512xf32, #tpu.memory_space<vmem>>, vector<1x512xf32>
    %4 = vector.shape_cast %3 : vector<1x512xf32> to vector<1x512xf32>
    %5 = vector.broadcast %4 : vector<1x512xf32> to vector<8x512xf32>
    %c0_7 = arith.constant 0 : index
    %c0_8 = arith.constant 0 : index
    %6 = vector.load %arg5[%c0_7, %c0_8] : memref<1x128xf32, #tpu.memory_space<vmem>>, vector<1x128xf32>
    %7 = vector.shape_cast %6 : vector<1x128xf32> to vector<1x128xf32>
    %8 = vector.broadcast %7 : vector<1x128xf32> to vector<8x128xf32>
    %cst = arith.constant 0.000000e+00 : f32
    %9 = vector.broadcast %cst : f32 to vector<8x128xf32>
    %cst_9 = arith.constant 0.000000e+00 : f32
    %10 = vector.broadcast %cst_9 : f32 to vector<8x128xf32>
    %c0_10 = arith.constant 0 : index
    %c0_11 = arith.constant 0 : index
    %c0_12 = arith.constant 0 : index
    %11 = vector.load %arg0[%c0_10, %c0_11, %c0_12] : memref<2x8x128xf32, #tpu.memory_space<vmem>>, vector<1x8x128xf32>
    %12 = vector.shape_cast %11 : vector<1x8x128xf32> to vector<8x128xf32>
    %c0_13 = arith.constant 0 : index
    %c0_14 = arith.constant 0 : index
    %13 = vector.load %arg7[%c0_13, %c0_14] : memref<8x256xf32, #tpu.memory_space<vmem>>, vector<8x128xf32>
    tpu.vector_store %arg7[%c0_13, %c0_14], %12 {strides = array<i32>} : memref<8x256xf32, #tpu.memory_space<vmem>>, vector<8x128xf32>,
    %c0_15 = arith.constant 0 : index
    %c128 = arith.constant 128 : index
    %14 = vector.load %arg7[%c0_15, %c128] : memref<8x256xf32, #tpu.memory_space<vmem>>, vector<8x128xf32>
    tpu.vector_store %arg7[%c0_15, %c128], %9 {strides = array<i32>} : memref<8x256xf32, #tpu.memory_space<vmem>>, vector<8x128xf32>,
    %c0_16 = arith.constant 0 : index
    %c0_17 = arith.constant 0 : index
    %15 = vector.load %arg7[%c0_16, %c0_17] : memref<8x256xf32, #tpu.memory_space<vmem>>, vector<8x256xf32>
    %cst_18 = arith.constant dense<0.000000e+00> : vector<8x512xf32>
    %16 = tpu.matmul %15, %0, %cst_18 {dimension_numbers = #tpu.dot_dimension_numbers<[1], [0], [0], [1], [0, 0, 1, 1], [], []>} : vector<8x256xf32>, vector<256x512xf32>, vector<8x512xf32> -> vector<8x512xf32>
    %17 = arith.addf %16, %5 : vector<8x512xf32>
    %18 = vector.extract_strided_slice %17 {offsets = [0, 0], sizes = [8, 128], strides = [1, 1]} : vector<8x512xf32> to vector<8x128xf32>
    %19 = arith.negf %18 : vector<8x128xf32>
    %20 = math.exp %19 : vector<8x128xf32>
    %cst_19 = arith.constant 1.000000e+00 : f32
    %21 = vector.broadcast %cst_19 : f32 to vector<8x128xf32>
    %22 = arith.addf %21, %20 : vector<8x128xf32>
    %23 = arith.divf %21, %22 : vector<8x128xf32>
    %24 = vector.extract_strided_slice %17 {offsets = [0, 128], sizes = [8, 128], strides = [1, 1]} : vector<8x512xf32> to vector<8x128xf32>
    %25 = arith.negf %24 : vector<8x128xf32>
    %26 = math.exp %25 : vector<8x128xf32>
    %cst_20 = arith.constant 1.000000e+00 : f32
    %27 = vector.broadcast %cst_20 : f32 to vector<8x128xf32>
    %28 = arith.addf %27, %26 : vector<8x128xf32>
    %29 = arith.divf %27, %28 : vector<8x128xf32>
    %30 = vector.extract_strided_slice %17 {offsets = [0, 256], sizes = [8, 128], strides = [1, 1]} : vector<8x512xf32> to vector<8x128xf32>
    %31 = math.tanh %30 : vector<8x128xf32>
    %32 = vector.extract_strided_slice %17 {offsets = [0, 384], sizes = [8, 128], strides = [1, 1]} : vector<8x512xf32> to vector<8x128xf32>
    %33 = arith.negf %32 : vector<8x128xf32>
    %34 = math.exp %33 : vector<8x128xf32>
    %cst_21 = arith.constant 1.000000e+00 : f32
    %35 = vector.broadcast %cst_21 : f32 to vector<8x128xf32>
    %36 = arith.addf %35, %34 : vector<8x128xf32>
    %37 = arith.divf %35, %36 : vector<8x128xf32>
    %38 = arith.mulf %29, %10 : vector<8x128xf32>
    %39 = arith.mulf %23, %31 : vector<8x128xf32>
    %40 = arith.addf %38, %39 : vector<8x128xf32>
    %41 = math.tanh %40 : vector<8x128xf32>
    %42 = arith.mulf %37, %41 : vector<8x128xf32>
    %c1 = arith.constant 1 : index
    %c0_22 = arith.constant 0 : index
    %c0_23 = arith.constant 0 : index
    %43 = vector.load %arg0[%c1, %c0_22, %c0_23] : memref<2x8x128xf32, #tpu.memory_space<vmem>>, vector<1x8x128xf32>
    %44 = vector.shape_cast %43 : vector<1x8x128xf32> to vector<8x128xf32>
    %c0_24 = arith.constant 0 : index
    %c0_25 = arith.constant 0 : index
    %45 = vector.load %arg7[%c0_24, %c0_25] : memref<8x256xf32, #tpu.memory_space<vmem>>, vector<8x128xf32>
    tpu.vector_store %arg7[%c0_24, %c0_25], %44 {strides = array<i32>} : memref<8x256xf32, #tpu.memory_space<vmem>>, vector<8x128xf32>,
    %c0_26 = arith.constant 0 : index
    %c128_27 = arith.constant 128 : index
    %46 = vector.load %arg7[%c0_26, %c128_27] : memref<8x256xf32, #tpu.memory_space<vmem>>, vector<8x128xf32>
    tpu.vector_store %arg7[%c0_26, %c128_27], %42 {strides = array<i32>} : memref<8x256xf32, #tpu.memory_space<vmem>>, vector<8x128xf32>,
    %c0_28 = arith.constant 0 : index
    %c0_29 = arith.constant 0 : index
    %47 = vector.load %arg7[%c0_28, %c0_29] : memref<8x256xf32, #tpu.memory_space<vmem>>, vector<8x256xf32>
    %cst_30 = arith.constant dense<0.000000e+00> : vector<8x512xf32>
    %48 = tpu.matmul %47, %0, %cst_30 {dimension_numbers = #tpu.dot_dimension_numbers<[1], [0], [0], [1], [0, 0, 1, 1], [], []>} : vector<8x256xf32>, vector<256x512xf32>, vector<8x512xf32> -> vector<8x512xf32>
    %49 = arith.addf %48, %5 : vector<8x512xf32>
    %50 = vector.extract_strided_slice %49 {offsets = [0, 0], sizes = [8, 128], strides = [1, 1]} : vector<8x512xf32> to vector<8x128xf32>
    %51 = arith.negf %50 : vector<8x128xf32>
    %52 = math.exp %51 : vector<8x128xf32>
    %cst_31 = arith.constant 1.000000e+00 : f32
    %53 = vector.broadcast %cst_31 : f32 to vector<8x128xf32>
    %54 = arith.addf %53, %52 : vector<8x128xf32>
    %55 = arith.divf %53, %54 : vector<8x128xf32>
    %56 = vector.extract_strided_slice %49 {offsets = [0, 128], sizes = [8, 128], strides = [1, 1]} : vector<8x512xf32> to vector<8x128xf32>
    %57 = arith.negf %56 : vector<8x128xf32>
    %58 = math.exp %57 : vector<8x128xf32>
    %cst_32 = arith.constant 1.000000e+00 : f32
    %59 = vector.broadcast %cst_32 : f32 to vector<8x128xf32>
    %60 = arith.addf %59, %58 : vector<8x128xf32>
    %61 = arith.divf %59, %60 : vector<8x128xf32>
    %62 = vector.extract_strided_slice %49 {offsets = [0, 256], sizes = [8, 128], strides = [1, 1]} : vector<8x512xf32> to vector<8x128xf32>
    %63 = math.tanh %62 : vector<8x128xf32>
    %64 = vector.extract_strided_slice %49 {offsets = [0, 384], sizes = [8, 128], strides = [1, 1]} : vector<8x512xf32> to vector<8x128xf32>
    %65 = arith.negf %64 : vector<8x128xf32>
    %66 = math.exp %65 : vector<8x128xf32>
    %cst_33 = arith.constant 1.000000e+00 : f32
    %67 = vector.broadcast %cst_33 : f32 to vector<8x128xf32>
    %68 = arith.addf %67, %66 : vector<8x128xf32>
    %69 = arith.divf %67, %68 : vector<8x128xf32>
    %70 = arith.mulf %61, %40 : vector<8x128xf32>
    %71 = arith.mulf %55, %63 : vector<8x128xf32>
    %72 = arith.addf %70, %71 : vector<8x128xf32>
    %73 = math.tanh %72 : vector<8x128xf32>
    %74 = arith.mulf %69, %73 : vector<8x128xf32>
    %75 = tpu.iota {dimensions = array<i32: 1>} : vector<8x128xi32>
    %c1_i32 = arith.constant 1 : i32
    %76 = vector.broadcast %c1_i32 : i32 to vector<8x1xi32>
    %cst_34 = arith.constant 0xFF800000 : f32
    %77 = vector.broadcast %cst_34 : f32 to vector<8x128xf32>
    %78 = vector.broadcast %76 : vector<8x1xi32> to vector<8x128xi32>
    %79 = arith.cmpi eq, %75, %78 : vector<8x128xi32>
    %80 = arith.extui %79 : vector<8x128xi1> to vector<8x128xi32>
    %81 = arith.sitofp %80 : vector<8x128xi32> to vector<8x128xf32>
    %c0_35 = arith.constant 0 : index
    %c0_36 = arith.constant 0 : index
    %82 = vector.load %arg8[%c0_35, %c0_36] : memref<8x256xf32, #tpu.memory_space<vmem>>, vector<8x128xf32>
    tpu.vector_store %arg8[%c0_35, %c0_36], %81 {strides = array<i32>} : memref<8x256xf32, #tpu.memory_space<vmem>>, vector<8x128xf32>,
    %c0_37 = arith.constant 0 : index
    %c128_38 = arith.constant 128 : index
    %83 = vector.load %arg8[%c0_37, %c128_38] : memref<8x256xf32, #tpu.memory_space<vmem>>, vector<8x128xf32>
    tpu.vector_store %arg8[%c0_37, %c128_38], %74 {strides = array<i32>} : memref<8x256xf32, #tpu.memory_space<vmem>>, vector<8x128xf32>,
    %c0_39 = arith.constant 0 : index
    %c0_40 = arith.constant 0 : index
    %84 = vector.load %arg8[%c0_39, %c0_40] : memref<8x256xf32, #tpu.memory_space<vmem>>, vector<8x256xf32>
    %cst_41 = arith.constant dense<0.000000e+00> : vector<8x512xf32>
    %85 = tpu.matmul %84, %1, %cst_41 {dimension_numbers = #tpu.dot_dimension_numbers<[1], [0], [0], [1], [0, 0, 1, 1], [], []>} : vector<8x256xf32>, vector<256x512xf32>, vector<8x512xf32> -> vector<8x512xf32>
    %86 = vector.extract_strided_slice %85 {offsets = [0, 0], sizes = [8, 128], strides = [1, 1]} : vector<8x512xf32> to vector<8x128xf32>
    %87 = arith.negf %86 : vector<8x128xf32>
    %88 = math.exp %87 : vector<8x128xf32>
    %cst_42 = arith.constant 1.000000e+00 : f32
    %89 = vector.broadcast %cst_42 : f32 to vector<8x128xf32>
    %90 = arith.addf %89, %88 : vector<8x128xf32>
    %91 = arith.divf %89, %90 : vector<8x128xf32>
    %92 = vector.extract_strided_slice %85 {offsets = [0, 128], sizes = [8, 128], strides = [1, 1]} : vector<8x512xf32> to vector<8x128xf32>
    %93 = arith.negf %92 : vector<8x128xf32>
    %94 = math.exp %93 : vector<8x128xf32>
    %cst_43 = arith.constant 1.000000e+00 : f32
    %95 = vector.broadcast %cst_43 : f32 to vector<8x128xf32>
    %96 = arith.addf %95, %94 : vector<8x128xf32>
    %97 = arith.divf %95, %96 : vector<8x128xf32>
    %98 = vector.extract_strided_slice %85 {offsets = [0, 256], sizes = [8, 128], strides = [1, 1]} : vector<8x512xf32> to vector<8x128xf32>
    %99 = math.tanh %98 : vector<8x128xf32>
    %100 = vector.extract_strided_slice %85 {offsets = [0, 384], sizes = [8, 128], strides = [1, 1]} : vector<8x512xf32> to vector<8x128xf32>
    %101 = arith.negf %100 : vector<8x128xf32>
    %102 = math.exp %101 : vector<8x128xf32>
    %cst_44 = arith.constant 1.000000e+00 : f32
    %103 = vector.broadcast %cst_44 : f32 to vector<8x128xf32>
    %104 = arith.addf %103, %102 : vector<8x128xf32>
    %105 = arith.divf %103, %104 : vector<8x128xf32>
    %106 = arith.mulf %97, %72 : vector<8x128xf32>
    %107 = arith.mulf %91, %99 : vector<8x128xf32>
    %108 = arith.addf %106, %107 : vector<8x128xf32>
    %109 = math.tanh %108 : vector<8x128xf32>
    %110 = arith.mulf %105, %109 : vector<8x128xf32>
    %cst_45 = arith.constant dense<0.000000e+00> : vector<8x128xf32>
    %111 = tpu.matmul %110, %2, %cst_45 {dimension_numbers = #tpu.dot_dimension_numbers<[1], [0], [0], [1], [0, 0, 1, 1], [], []>} : vector<8x128xf32>, vector<128x128xf32>, vector<8x128xf32> -> vector<8x128xf32>
    %112 = arith.addf %111, %8 : vector<8x128xf32>
    %113 = arith.maximumf %77, %112 : vector<8x128xf32>
    %cst_46 = arith.constant dense<0xFF800000> : vector<8xf32>
    %114 = vector.multi_reduction <maximumf>, %112, %cst_46 [1] : vector<8x128xf32> to vector<8xf32>
    %115 = vector.shape_cast %114 : vector<8xf32> to vector<8x1xf32>
    %116 = vector.broadcast %115 : vector<8x1xf32> to vector<8x128xf32>
    %117 = arith.cmpf oeq, %112, %116 : vector<8x128xf32>
    %c128_i32 = arith.constant 128 : i32
    %118 = vector.broadcast %c128_i32 : i32 to vector<8x128xi32>
    %119 = arith.select %117, %75, %118 : vector<8x128xi1>, vector<8x128xi32>
    %cst_47 = arith.constant dense<2147483647> : vector<8xi32>
    %120 = vector.multi_reduction <minsi>, %119, %cst_47 [1] : vector<8x128xi32> to vector<8xi32>
    %121 = vector.shape_cast %120 : vector<8xi32> to vector<8x1xi32>
    %122 = vector.broadcast %121 : vector<8x1xi32> to vector<8x128xi32>
    %123 = arith.cmpi eq, %75, %122 : vector<8x128xi32>
    %124 = arith.extui %123 : vector<8x128xi1> to vector<8x128xi32>
    %125 = arith.sitofp %124 : vector<8x128xi32> to vector<8x128xf32>
    %c0_48 = arith.constant 0 : index
    %c0_49 = arith.constant 0 : index
    %126 = vector.load %arg8[%c0_48, %c0_49] : memref<8x256xf32, #tpu.memory_space<vmem>>, vector<8x128xf32>
    tpu.vector_store %arg8[%c0_48, %c0_49], %125 {strides = array<i32>} : memref<8x256xf32, #tpu.memory_space<vmem>>, vector<8x128xf32>,
    %c0_50 = arith.constant 0 : index
    %c128_51 = arith.constant 128 : index
    %127 = vector.load %arg8[%c0_50, %c128_51] : memref<8x256xf32, #tpu.memory_space<vmem>>, vector<8x128xf32>
    tpu.vector_store %arg8[%c0_50, %c128_51], %110 {strides = array<i32>} : memref<8x256xf32, #tpu.memory_space<vmem>>, vector<8x128xf32>,
    %c0_52 = arith.constant 0 : index
    %c0_53 = arith.constant 0 : index
    %128 = vector.load %arg8[%c0_52, %c0_53] : memref<8x256xf32, #tpu.memory_space<vmem>>, vector<8x256xf32>
    %cst_54 = arith.constant dense<0.000000e+00> : vector<8x512xf32>
    %129 = tpu.matmul %128, %1, %cst_54 {dimension_numbers = #tpu.dot_dimension_numbers<[1], [0], [0], [1], [0, 0, 1, 1], [], []>} : vector<8x256xf32>, vector<256x512xf32>, vector<8x512xf32> -> vector<8x512xf32>
    %130 = vector.extract_strided_slice %129 {offsets = [0, 0], sizes = [8, 128], strides = [1, 1]} : vector<8x512xf32> to vector<8x128xf32>
    %131 = arith.negf %130 : vector<8x128xf32>
    %132 = math.exp %131 : vector<8x128xf32>
    %cst_55 = arith.constant 1.000000e+00 : f32
    %133 = vector.broadcast %cst_55 : f32 to vector<8x128xf32>
    %134 = arith.addf %133, %132 : vector<8x128xf32>
    %135 = arith.divf %133, %134 : vector<8x128xf32>
    %136 = vector.extract_strided_slice %129 {offsets = [0, 128], sizes = [8, 128], strides = [1, 1]} : vector<8x512xf32> to vector<8x128xf32>
    %137 = arith.negf %136 : vector<8x128xf32>
    %138 = math.exp %137 : vector<8x128xf32>
    %cst_56 = arith.constant 1.000000e+00 : f32
    %139 = vector.broadcast %cst_56 : f32 to vector<8x128xf32>
    %140 = arith.addf %139, %138 : vector<8x128xf32>
    %141 = arith.divf %139, %140 : vector<8x128xf32>
    %142 = vector.extract_strided_slice %129 {offsets = [0, 256], sizes = [8, 128], strides = [1, 1]} : vector<8x512xf32> to vector<8x128xf32>
    %143 = math.tanh %142 : vector<8x128xf32>
    %144 = vector.extract_strided_slice %129 {offsets = [0, 384], sizes = [8, 128], strides = [1, 1]} : vector<8x512xf32> to vector<8x128xf32>
    %145 = arith.negf %144 : vector<8x128xf32>
    %146 = math.exp %145 : vector<8x128xf32>
    %cst_57 = arith.constant 1.000000e+00 : f32
    %147 = vector.broadcast %cst_57 : f32 to vector<8x128xf32>
    %148 = arith.addf %147, %146 : vector<8x128xf32>
    %149 = arith.divf %147, %148 : vector<8x128xf32>
    %150 = arith.mulf %141, %108 : vector<8x128xf32>
    %151 = arith.mulf %135, %143 : vector<8x128xf32>
    %152 = arith.addf %150, %151 : vector<8x128xf32>
    %153 = math.tanh %152 : vector<8x128xf32>
    %154 = arith.mulf %149, %153 : vector<8x128xf32>
    %cst_58 = arith.constant dense<0.000000e+00> : vector<8x128xf32>
    %155 = tpu.matmul %154, %2, %cst_58 {dimension_numbers = #tpu.dot_dimension_numbers<[1], [0], [0], [1], [0, 0, 1, 1], [], []>} : vector<8x128xf32>, vector<128x128xf32>, vector<8x128xf32> -> vector<8x128xf32>
    %156 = arith.addf %155, %8 : vector<8x128xf32>
    %157 = arith.maximumf %113, %156 : vector<8x128xf32>
    %cst_59 = arith.constant dense<0xFF800000> : vector<8xf32>
    %158 = vector.multi_reduction <maximumf>, %156, %cst_59 [1] : vector<8x128xf32> to vector<8xf32>
    %159 = vector.shape_cast %158 : vector<8xf32> to vector<8x1xf32>
    %160 = vector.broadcast %159 : vector<8x1xf32> to vector<8x128xf32>
    %161 = arith.cmpf oeq, %156, %160 : vector<8x128xf32>
    %c128_i32_60 = arith.constant 128 : i32
    %162 = vector.broadcast %c128_i32_60 : i32 to vector<8x128xi32>
    %163 = arith.select %161, %75, %162 : vector<8x128xi1>, vector<8x128xi32>
    %cst_61 = arith.constant dense<2147483647> : vector<8xi32>
    %164 = vector.multi_reduction <minsi>, %163, %cst_61 [1] : vector<8x128xi32> to vector<8xi32>
    %165 = vector.shape_cast %164 : vector<8xi32> to vector<8x1xi32>
    %166 = vector.broadcast %165 : vector<8x1xi32> to vector<8x128xi32>
    %167 = arith.cmpi eq, %75, %166 : vector<8x128xi32>
    %168 = arith.extui %167 : vector<8x128xi1> to vector<8x128xi32>
    %169 = arith.sitofp %168 : vector<8x128xi32> to vector<8x128xf32>
    %c0_62 = arith.constant 0 : index
    %c0_63 = arith.constant 0 : index
    %170 = vector.load %arg8[%c0_62, %c0_63] : memref<8x256xf32, #tpu.memory_space<vmem>>, vector<8x128xf32>
    tpu.vector_store %arg8[%c0_62, %c0_63], %169 {strides = array<i32>} : memref<8x256xf32, #tpu.memory_space<vmem>>, vector<8x128xf32>,
    %c0_64 = arith.constant 0 : index
    %c128_65 = arith.constant 128 : index
    %171 = vector.load %arg8[%c0_64, %c128_65] : memref<8x256xf32, #tpu.memory_space<vmem>>, vector<8x128xf32>
    tpu.vector_store %arg8[%c0_64, %c128_65], %154 {strides = array<i32>} : memref<8x256xf32, #tpu.memory_space<vmem>>, vector<8x128xf32>,
    %c0_66 = arith.constant 0 : index
    %c0_67 = arith.constant 0 : index
    %172 = vector.load %arg8[%c0_66, %c0_67] : memref<8x256xf32, #tpu.memory_space<vmem>>, vector<8x256xf32>
    %cst_68 = arith.constant dense<0.000000e+00> : vector<8x512xf32>
    %173 = tpu.matmul %172, %1, %cst_68 {dimension_numbers = #tpu.dot_dimension_numbers<[1], [0], [0], [1], [0, 0, 1, 1], [], []>} : vector<8x256xf32>, vector<256x512xf32>, vector<8x512xf32> -> vector<8x512xf32>
    %174 = vector.extract_strided_slice %173 {offsets = [0, 0], sizes = [8, 128], strides = [1, 1]} : vector<8x512xf32> to vector<8x128xf32>
    %175 = arith.negf %174 : vector<8x128xf32>
    %176 = math.exp %175 : vector<8x128xf32>
    %cst_69 = arith.constant 1.000000e+00 : f32
    %177 = vector.broadcast %cst_69 : f32 to vector<8x128xf32>
    %178 = arith.addf %177, %176 : vector<8x128xf32>
    %179 = arith.divf %177, %178 : vector<8x128xf32>
    %180 = vector.extract_strided_slice %173 {offsets = [0, 128], sizes = [8, 128], strides = [1, 1]} : vector<8x512xf32> to vector<8x128xf32>
    %181 = arith.negf %180 : vector<8x128xf32>
    %182 = math.exp %181 : vector<8x128xf32>
    %cst_70 = arith.constant 1.000000e+00 : f32
    %183 = vector.broadcast %cst_70 : f32 to vector<8x128xf32>
    %184 = arith.addf %183, %182 : vector<8x128xf32>
    %185 = arith.divf %183, %184 : vector<8x128xf32>
    %186 = vector.extract_strided_slice %173 {offsets = [0, 256], sizes = [8, 128], strides = [1, 1]} : vector<8x512xf32> to vector<8x128xf32>
    %187 = math.tanh %186 : vector<8x128xf32>
    %188 = vector.extract_strided_slice %173 {offsets = [0, 384], sizes = [8, 128], strides = [1, 1]} : vector<8x512xf32> to vector<8x128xf32>
    %189 = arith.negf %188 : vector<8x128xf32>
    %190 = math.exp %189 : vector<8x128xf32>
    %cst_71 = arith.constant 1.000000e+00 : f32
    %191 = vector.broadcast %cst_71 : f32 to vector<8x128xf32>
    %192 = arith.addf %191, %190 : vector<8x128xf32>
    %193 = arith.divf %191, %192 : vector<8x128xf32>
    %194 = arith.mulf %185, %152 : vector<8x128xf32>
    %195 = arith.mulf %179, %187 : vector<8x128xf32>
    %196 = arith.addf %194, %195 : vector<8x128xf32>
    %197 = math.tanh %196 : vector<8x128xf32>
    %198 = arith.mulf %193, %197 : vector<8x128xf32>
    %cst_72 = arith.constant dense<0.000000e+00> : vector<8x128xf32>
    %199 = tpu.matmul %198, %2, %cst_72 {dimension_numbers = #tpu.dot_dimension_numbers<[1], [0], [0], [1], [0, 0, 1, 1], [], []>} : vector<8x128xf32>, vector<128x128xf32>, vector<8x128xf32> -> vector<8x128xf32>
    %200 = arith.addf %199, %8 : vector<8x128xf32>
    %201 = arith.maximumf %157, %200 : vector<8x128xf32>
    %cst_73 = arith.constant dense<0xFF800000> : vector<8xf32>
    %202 = vector.multi_reduction <maximumf>, %200, %cst_73 [1] : vector<8x128xf32> to vector<8xf32>
    %203 = vector.shape_cast %202 : vector<8xf32> to vector<8x1xf32>
    %204 = vector.broadcast %203 : vector<8x1xf32> to vector<8x128xf32>
    %205 = arith.cmpf oeq, %200, %204 : vector<8x128xf32>
    %c128_i32_74 = arith.constant 128 : i32
    %206 = vector.broadcast %c128_i32_74 : i32 to vector<8x128xi32>
    %207 = arith.select %205, %75, %206 : vector<8x128xi1>, vector<8x128xi32>
    %cst_75 = arith.constant dense<2147483647> : vector<8xi32>
    %208 = vector.multi_reduction <minsi>, %207, %cst_75 [1] : vector<8x128xi32> to vector<8xi32>
    %209 = vector.shape_cast %208 : vector<8xi32> to vector<8x1xi32>
    %210 = vector.broadcast %209 : vector<8x1xi32> to vector<8x128xi32>
    %211 = arith.cmpi eq, %75, %210 : vector<8x128xi32>
    %212 = arith.extui %211 : vector<8x128xi1> to vector<8x128xi32>
    %213 = arith.sitofp %212 : vector<8x128xi32> to vector<8x128xf32>
    %c0_76 = arith.constant 0 : index
    %c0_77 = arith.constant 0 : index
    %214 = vector.load %arg8[%c0_76, %c0_77] : memref<8x256xf32, #tpu.memory_space<vmem>>, vector<8x128xf32>
    tpu.vector_store %arg8[%c0_76, %c0_77], %213 {strides = array<i32>} : memref<8x256xf32, #tpu.memory_space<vmem>>, vector<8x128xf32>,
    %c0_78 = arith.constant 0 : index
    %c128_79 = arith.constant 128 : index
    %215 = vector.load %arg8[%c0_78, %c128_79] : memref<8x256xf32, #tpu.memory_space<vmem>>, vector<8x128xf32>
    tpu.vector_store %arg8[%c0_78, %c128_79], %198 {strides = array<i32>} : memref<8x256xf32, #tpu.memory_space<vmem>>, vector<8x128xf32>,
    %c0_80 = arith.constant 0 : index
    %c0_81 = arith.constant 0 : index
    %216 = vector.load %arg8[%c0_80, %c0_81] : memref<8x256xf32, #tpu.memory_space<vmem>>, vector<8x256xf32>
    %cst_82 = arith.constant dense<0.000000e+00> : vector<8x512xf32>
    %217 = tpu.matmul %216, %1, %cst_82 {dimension_numbers = #tpu.dot_dimension_numbers<[1], [0], [0], [1], [0, 0, 1, 1], [], []>} : vector<8x256xf32>, vector<256x512xf32>, vector<8x512xf32> -> vector<8x512xf32>
    %218 = vector.extract_strided_slice %217 {offsets = [0, 0], sizes = [8, 128], strides = [1, 1]} : vector<8x512xf32> to vector<8x128xf32>
    %219 = arith.negf %218 : vector<8x128xf32>
    %220 = math.exp %219 : vector<8x128xf32>
    %cst_83 = arith.constant 1.000000e+00 : f32
    %221 = vector.broadcast %cst_83 : f32 to vector<8x128xf32>
    %222 = arith.addf %221, %220 : vector<8x128xf32>
    %223 = arith.divf %221, %222 : vector<8x128xf32>
    %224 = vector.extract_strided_slice %217 {offsets = [0, 128], sizes = [8, 128], strides = [1, 1]} : vector<8x512xf32> to vector<8x128xf32>
    %225 = arith.negf %224 : vector<8x128xf32>
    %226 = math.exp %225 : vector<8x128xf32>
    %cst_84 = arith.constant 1.000000e+00 : f32
    %227 = vector.broadcast %cst_84 : f32 to vector<8x128xf32>
    %228 = arith.addf %227, %226 : vector<8x128xf32>
    %229 = arith.divf %227, %228 : vector<8x128xf32>
    %230 = vector.extract_strided_slice %217 {offsets = [0, 256], sizes = [8, 128], strides = [1, 1]} : vector<8x512xf32> to vector<8x128xf32>
    %231 = math.tanh %230 : vector<8x128xf32>
    %232 = vector.extract_strided_slice %217 {offsets = [0, 384], sizes = [8, 128], strides = [1, 1]} : vector<8x512xf32> to vector<8x128xf32>
    %233 = arith.negf %232 : vector<8x128xf32>
    %234 = math.exp %233 : vector<8x128xf32>
    %cst_85 = arith.constant 1.000000e+00 : f32
    %235 = vector.broadcast %cst_85 : f32 to vector<8x128xf32>
    %236 = arith.addf %235, %234 : vector<8x128xf32>
    %237 = arith.divf %235, %236 : vector<8x128xf32>
    %238 = arith.mulf %229, %196 : vector<8x128xf32>
    %239 = arith.mulf %223, %231 : vector<8x128xf32>
    %240 = arith.addf %238, %239 : vector<8x128xf32>
    %241 = math.tanh %240 : vector<8x128xf32>
    %242 = arith.mulf %237, %241 : vector<8x128xf32>
    %cst_86 = arith.constant dense<0.000000e+00> : vector<8x128xf32>
    %243 = tpu.matmul %242, %2, %cst_86 {dimension_numbers = #tpu.dot_dimension_numbers<[1], [0], [0], [1], [0, 0, 1, 1], [], []>} : vector<8x128xf32>, vector<128x128xf32>, vector<8x128xf32> -> vector<8x128xf32>
    %244 = arith.addf %243, %8 : vector<8x128xf32>
    %245 = arith.maximumf %201, %244 : vector<8x128xf32>
    %cst_87 = arith.constant dense<0xFF800000> : vector<8xf32>
    %246 = vector.multi_reduction <maximumf>, %244, %cst_87 [1] : vector<8x128xf32> to vector<8xf32>
    %247 = vector.shape_cast %246 : vector<8xf32> to vector<8x1xf32>
    %248 = vector.broadcast %247 : vector<8x1xf32> to vector<8x128xf32>
    %249 = arith.cmpf oeq, %244, %248 : vector<8x128xf32>
    %c128_i32_88 = arith.constant 128 : i32
    %250 = vector.broadcast %c128_i32_88 : i32 to vector<8x128xi32>
    %251 = arith.select %249, %75, %250 : vector<8x128xi1>, vector<8x128xi32>
    %cst_89 = arith.constant dense<2147483647> : vector<8xi32>
    %252 = vector.multi_reduction <minsi>, %251, %cst_89 [1] : vector<8x128xi32> to vector<8xi32>
    %253 = vector.shape_cast %252 : vector<8xi32> to vector<8x1xi32>
    %254 = vector.broadcast %253 : vector<8x1xi32> to vector<8x128xi32>
    %255 = arith.cmpi eq, %75, %254 : vector<8x128xi32>
    %256 = arith.extui %255 : vector<8x128xi1> to vector<8x128xi32>
    %257 = arith.sitofp %256 : vector<8x128xi32> to vector<8x128xf32>
    %c0_90 = arith.constant 0 : index
    %c0_91 = arith.constant 0 : index
    %258 = vector.load %arg8[%c0_90, %c0_91] : memref<8x256xf32, #tpu.memory_space<vmem>>, vector<8x128xf32>
    tpu.vector_store %arg8[%c0_90, %c0_91], %257 {strides = array<i32>} : memref<8x256xf32, #tpu.memory_space<vmem>>, vector<8x128xf32>,
    %c0_92 = arith.constant 0 : index
    %c128_93 = arith.constant 128 : index
    %259 = vector.load %arg8[%c0_92, %c128_93] : memref<8x256xf32, #tpu.memory_space<vmem>>, vector<8x128xf32>
    tpu.vector_store %arg8[%c0_92, %c128_93], %242 {strides = array<i32>} : memref<8x256xf32, #tpu.memory_space<vmem>>, vector<8x128xf32>,
    %c0_94 = arith.constant 0 : index
    %c0_95 = arith.constant 0 : index
    %260 = vector.load %arg8[%c0_94, %c0_95] : memref<8x256xf32, #tpu.memory_space<vmem>>, vector<8x256xf32>
    %cst_96 = arith.constant dense<0.000000e+00> : vector<8x512xf32>
    %261 = tpu.matmul %260, %1, %cst_96 {dimension_numbers = #tpu.dot_dimension_numbers<[1], [0], [0], [1], [0, 0, 1, 1], [], []>} : vector<8x256xf32>, vector<256x512xf32>, vector<8x512xf32> -> vector<8x512xf32>
    %262 = vector.extract_strided_slice %261 {offsets = [0, 0], sizes = [8, 128], strides = [1, 1]} : vector<8x512xf32> to vector<8x128xf32>
    %263 = arith.negf %262 : vector<8x128xf32>
    %264 = math.exp %263 : vector<8x128xf32>
    %cst_97 = arith.constant 1.000000e+00 : f32
    %265 = vector.broadcast %cst_97 : f32 to vector<8x128xf32>
    %266 = arith.addf %265, %264 : vector<8x128xf32>
    %267 = arith.divf %265, %266 : vector<8x128xf32>
    %268 = vector.extract_strided_slice %261 {offsets = [0, 128], sizes = [8, 128], strides = [1, 1]} : vector<8x512xf32> to vector<8x128xf32>
    %269 = arith.negf %268 : vector<8x128xf32>
    %270 = math.exp %269 : vector<8x128xf32>
    %cst_98 = arith.constant 1.000000e+00 : f32
    %271 = vector.broadcast %cst_98 : f32 to vector<8x128xf32>
    %272 = arith.addf %271, %270 : vector<8x128xf32>
    %273 = arith.divf %271, %272 : vector<8x128xf32>
    %274 = vector.extract_strided_slice %261 {offsets = [0, 256], sizes = [8, 128], strides = [1, 1]} : vector<8x512xf32> to vector<8x128xf32>
    %275 = math.tanh %274 : vector<8x128xf32>
    %276 = vector.extract_strided_slice %261 {offsets = [0, 384], sizes = [8, 128], strides = [1, 1]} : vector<8x512xf32> to vector<8x128xf32>
    %277 = arith.negf %276 : vector<8x128xf32>
    %278 = math.exp %277 : vector<8x128xf32>
    %cst_99 = arith.constant 1.000000e+00 : f32
    %279 = vector.broadcast %cst_99 : f32 to vector<8x128xf32>
    %280 = arith.addf %279, %278 : vector<8x128xf32>
    %281 = arith.divf %279, %280 : vector<8x128xf32>
    %282 = arith.mulf %273, %240 : vector<8x128xf32>
    %283 = arith.mulf %267, %275 : vector<8x128xf32>
    %284 = arith.addf %282, %283 : vector<8x128xf32>
    %285 = math.tanh %284 : vector<8x128xf32>
    %286 = arith.mulf %281, %285 : vector<8x128xf32>
    %cst_100 = arith.constant dense<0.000000e+00> : vector<8x128xf32>
    %287 = tpu.matmul %286, %2, %cst_100 {dimension_numbers = #tpu.dot_dimension_numbers<[1], [0], [0], [1], [0, 0, 1, 1], [], []>} : vector<8x128xf32>, vector<128x128xf32>, vector<8x128xf32> -> vector<8x128xf32>
    %288 = arith.addf %287, %8 : vector<8x128xf32>
    %289 = arith.maximumf %245, %288 : vector<8x128xf32>
    %cst_101 = arith.constant dense<0xFF800000> : vector<8xf32>
    %290 = vector.multi_reduction <maximumf>, %288, %cst_101 [1] : vector<8x128xf32> to vector<8xf32>
    %291 = vector.shape_cast %290 : vector<8xf32> to vector<8x1xf32>
    %292 = vector.broadcast %291 : vector<8x1xf32> to vector<8x128xf32>
    %293 = arith.cmpf oeq, %288, %292 : vector<8x128xf32>
    %c128_i32_102 = arith.constant 128 : i32
    %294 = vector.broadcast %c128_i32_102 : i32 to vector<8x128xi32>
    %295 = arith.select %293, %75, %294 : vector<8x128xi1>, vector<8x128xi32>
    %cst_103 = arith.constant dense<2147483647> : vector<8xi32>
    %296 = vector.multi_reduction <minsi>, %295, %cst_103 [1] : vector<8x128xi32> to vector<8xi32>
    %297 = vector.shape_cast %296 : vector<8xi32> to vector<8x1xi32>
    %298 = vector.broadcast %297 : vector<8x1xi32> to vector<8x128xi32>
    %299 = arith.cmpi eq, %75, %298 : vector<8x128xi32>
    %300 = arith.extui %299 : vector<8x128xi1> to vector<8x128xi32>
    %301 = arith.sitofp %300 : vector<8x128xi32> to vector<8x128xf32>
    %c0_104 = arith.constant 0 : index
    %c0_105 = arith.constant 0 : index
    %302 = vector.load %arg8[%c0_104, %c0_105] : memref<8x256xf32, #tpu.memory_space<vmem>>, vector<8x128xf32>
    tpu.vector_store %arg8[%c0_104, %c0_105], %301 {strides = array<i32>} : memref<8x256xf32, #tpu.memory_space<vmem>>, vector<8x128xf32>,
    %c0_106 = arith.constant 0 : index
    %c128_107 = arith.constant 128 : index
    %303 = vector.load %arg8[%c0_106, %c128_107] : memref<8x256xf32, #tpu.memory_space<vmem>>, vector<8x128xf32>
    tpu.vector_store %arg8[%c0_106, %c128_107], %286 {strides = array<i32>} : memref<8x256xf32, #tpu.memory_space<vmem>>, vector<8x128xf32>,
    %c0_108 = arith.constant 0 : index
    %c0_109 = arith.constant 0 : index
    %304 = vector.load %arg8[%c0_108, %c0_109] : memref<8x256xf32, #tpu.memory_space<vmem>>, vector<8x256xf32>
    %cst_110 = arith.constant dense<0.000000e+00> : vector<8x512xf32>
    %305 = tpu.matmul %304, %1, %cst_110 {dimension_numbers = #tpu.dot_dimension_numbers<[1], [0], [0], [1], [0, 0, 1, 1], [], []>} : vector<8x256xf32>, vector<256x512xf32>, vector<8x512xf32> -> vector<8x512xf32>
    %306 = vector.extract_strided_slice %305 {offsets = [0, 0], sizes = [8, 128], strides = [1, 1]} : vector<8x512xf32> to vector<8x128xf32>
    %307 = arith.negf %306 : vector<8x128xf32>
    %308 = math.exp %307 : vector<8x128xf32>
    %cst_111 = arith.constant 1.000000e+00 : f32
    %309 = vector.broadcast %cst_111 : f32 to vector<8x128xf32>
    %310 = arith.addf %309, %308 : vector<8x128xf32>
    %311 = arith.divf %309, %310 : vector<8x128xf32>
    %312 = vector.extract_strided_slice %305 {offsets = [0, 128], sizes = [8, 128], strides = [1, 1]} : vector<8x512xf32> to vector<8x128xf32>
    %313 = arith.negf %312 : vector<8x128xf32>
    %314 = math.exp %313 : vector<8x128xf32>
    %cst_112 = arith.constant 1.000000e+00 : f32
    %315 = vector.broadcast %cst_112 : f32 to vector<8x128xf32>
    %316 = arith.addf %315, %314 : vector<8x128xf32>
    %317 = arith.divf %315, %316 : vector<8x128xf32>
    %318 = vector.extract_strided_slice %305 {offsets = [0, 256], sizes = [8, 128], strides = [1, 1]} : vector<8x512xf32> to vector<8x128xf32>
    %319 = math.tanh %318 : vector<8x128xf32>
    %320 = vector.extract_strided_slice %305 {offsets = [0, 384], sizes = [8, 128], strides = [1, 1]} : vector<8x512xf32> to vector<8x128xf32>
    %321 = arith.negf %320 : vector<8x128xf32>
    %322 = math.exp %321 : vector<8x128xf32>
    %cst_113 = arith.constant 1.000000e+00 : f32
    %323 = vector.broadcast %cst_113 : f32 to vector<8x128xf32>
    %324 = arith.addf %323, %322 : vector<8x128xf32>
    %325 = arith.divf %323, %324 : vector<8x128xf32>
    %326 = arith.mulf %317, %284 : vector<8x128xf32>
    %327 = arith.mulf %311, %319 : vector<8x128xf32>
    %328 = arith.addf %326, %327 : vector<8x128xf32>
    %329 = math.tanh %328 : vector<8x128xf32>
    %330 = arith.mulf %325, %329 : vector<8x128xf32>
    %cst_114 = arith.constant dense<0.000000e+00> : vector<8x128xf32>
    %331 = tpu.matmul %330, %2, %cst_114 {dimension_numbers = #tpu.dot_dimension_numbers<[1], [0], [0], [1], [0, 0, 1, 1], [], []>} : vector<8x128xf32>, vector<128x128xf32>, vector<8x128xf32> -> vector<8x128xf32>
    %332 = arith.addf %331, %8 : vector<8x128xf32>
    %333 = arith.maximumf %289, %332 : vector<8x128xf32>
    %cst_115 = arith.constant dense<0xFF800000> : vector<8xf32>
    %334 = vector.multi_reduction <maximumf>, %332, %cst_115 [1] : vector<8x128xf32> to vector<8xf32>
    %335 = vector.shape_cast %334 : vector<8xf32> to vector<8x1xf32>
    %336 = vector.broadcast %335 : vector<8x1xf32> to vector<8x128xf32>
    %337 = arith.cmpf oeq, %332, %336 : vector<8x128xf32>
    %c128_i32_116 = arith.constant 128 : i32
    %338 = vector.broadcast %c128_i32_116 : i32 to vector<8x128xi32>
    %339 = arith.select %337, %75, %338 : vector<8x128xi1>, vector<8x128xi32>
    %cst_117 = arith.constant dense<2147483647> : vector<8xi32>
    %340 = vector.multi_reduction <minsi>, %339, %cst_117 [1] : vector<8x128xi32> to vector<8xi32>
    %341 = vector.shape_cast %340 : vector<8xi32> to vector<8x1xi32>
    %342 = vector.broadcast %341 : vector<8x1xi32> to vector<8x128xi32>
    %343 = arith.cmpi eq, %75, %342 : vector<8x128xi32>
    %344 = arith.extui %343 : vector<8x128xi1> to vector<8x128xi32>
    %345 = arith.sitofp %344 : vector<8x128xi32> to vector<8x128xf32>
    %c0_118 = arith.constant 0 : index
    %c0_119 = arith.constant 0 : index
    %346 = vector.load %arg8[%c0_118, %c0_119] : memref<8x256xf32, #tpu.memory_space<vmem>>, vector<8x128xf32>
    tpu.vector_store %arg8[%c0_118, %c0_119], %345 {strides = array<i32>} : memref<8x256xf32, #tpu.memory_space<vmem>>, vector<8x128xf32>,
    %c0_120 = arith.constant 0 : index
    %c128_121 = arith.constant 128 : index
    %347 = vector.load %arg8[%c0_120, %c128_121] : memref<8x256xf32, #tpu.memory_space<vmem>>, vector<8x128xf32>
    tpu.vector_store %arg8[%c0_120, %c128_121], %330 {strides = array<i32>} : memref<8x256xf32, #tpu.memory_space<vmem>>, vector<8x128xf32>,
    %c0_122 = arith.constant 0 : index
    %c0_123 = arith.constant 0 : index
    %348 = vector.load %arg8[%c0_122, %c0_123] : memref<8x256xf32, #tpu.memory_space<vmem>>, vector<8x256xf32>
    %cst_124 = arith.constant dense<0.000000e+00> : vector<8x512xf32>
    %349 = tpu.matmul %348, %1, %cst_124 {dimension_numbers = #tpu.dot_dimension_numbers<[1], [0], [0], [1], [0, 0, 1, 1], [], []>} : vector<8x256xf32>, vector<256x512xf32>, vector<8x512xf32> -> vector<8x512xf32>
    %350 = vector.extract_strided_slice %349 {offsets = [0, 0], sizes = [8, 128], strides = [1, 1]} : vector<8x512xf32> to vector<8x128xf32>
    %351 = arith.negf %350 : vector<8x128xf32>
    %352 = math.exp %351 : vector<8x128xf32>
    %cst_125 = arith.constant 1.000000e+00 : f32
    %353 = vector.broadcast %cst_125 : f32 to vector<8x128xf32>
    %354 = arith.addf %353, %352 : vector<8x128xf32>
    %355 = arith.divf %353, %354 : vector<8x128xf32>
    %356 = vector.extract_strided_slice %349 {offsets = [0, 128], sizes = [8, 128], strides = [1, 1]} : vector<8x512xf32> to vector<8x128xf32>
    %357 = arith.negf %356 : vector<8x128xf32>
    %358 = math.exp %357 : vector<8x128xf32>
    %cst_126 = arith.constant 1.000000e+00 : f32
    %359 = vector.broadcast %cst_126 : f32 to vector<8x128xf32>
    %360 = arith.addf %359, %358 : vector<8x128xf32>
    %361 = arith.divf %359, %360 : vector<8x128xf32>
    %362 = vector.extract_strided_slice %349 {offsets = [0, 256], sizes = [8, 128], strides = [1, 1]} : vector<8x512xf32> to vector<8x128xf32>
    %363 = math.tanh %362 : vector<8x128xf32>
    %364 = vector.extract_strided_slice %349 {offsets = [0, 384], sizes = [8, 128], strides = [1, 1]} : vector<8x512xf32> to vector<8x128xf32>
    %365 = arith.negf %364 : vector<8x128xf32>
    %366 = math.exp %365 : vector<8x128xf32>
    %cst_127 = arith.constant 1.000000e+00 : f32
    %367 = vector.broadcast %cst_127 : f32 to vector<8x128xf32>
    %368 = arith.addf %367, %366 : vector<8x128xf32>
    %369 = arith.divf %367, %368 : vector<8x128xf32>
    %370 = arith.mulf %361, %328 : vector<8x128xf32>
    %371 = arith.mulf %355, %363 : vector<8x128xf32>
    %372 = arith.addf %370, %371 : vector<8x128xf32>
    %373 = math.tanh %372 : vector<8x128xf32>
    %374 = arith.mulf %369, %373 : vector<8x128xf32>
    %cst_128 = arith.constant dense<0.000000e+00> : vector<8x128xf32>
    %375 = tpu.matmul %374, %2, %cst_128 {dimension_numbers = #tpu.dot_dimension_numbers<[1], [0], [0], [1], [0, 0, 1, 1], [], []>} : vector<8x128xf32>, vector<128x128xf32>, vector<8x128xf32> -> vector<8x128xf32>
    %376 = arith.addf %375, %8 : vector<8x128xf32>
    %377 = arith.maximumf %333, %376 : vector<8x128xf32>
    %cst_129 = arith.constant dense<0xFF800000> : vector<8xf32>
    %378 = vector.multi_reduction <maximumf>, %376, %cst_129 [1] : vector<8x128xf32> to vector<8xf32>
    %379 = vector.shape_cast %378 : vector<8xf32> to vector<8x1xf32>
    %380 = vector.broadcast %379 : vector<8x1xf32> to vector<8x128xf32>
    %381 = arith.cmpf oeq, %376, %380 : vector<8x128xf32>
    %c128_i32_130 = arith.constant 128 : i32
    %382 = vector.broadcast %c128_i32_130 : i32 to vector<8x128xi32>
    %383 = arith.select %381, %75, %382 : vector<8x128xi1>, vector<8x128xi32>
    %cst_131 = arith.constant dense<2147483647> : vector<8xi32>
    %384 = vector.multi_reduction <minsi>, %383, %cst_131 [1] : vector<8x128xi32> to vector<8xi32>
    %385 = vector.shape_cast %384 : vector<8xi32> to vector<8x1xi32>
    %386 = vector.broadcast %385 : vector<8x1xi32> to vector<8x128xi32>
    %387 = arith.cmpi eq, %75, %386 : vector<8x128xi32>
    %388 = arith.extui %387 : vector<8x128xi1> to vector<8x128xi32>
    %389 = arith.sitofp %388 : vector<8x128xi32> to vector<8x128xf32>
    %c0_132 = arith.constant 0 : index
    %c0_133 = arith.constant 0 : index
    %390 = vector.load %arg8[%c0_132, %c0_133] : memref<8x256xf32, #tpu.memory_space<vmem>>, vector<8x128xf32>
    tpu.vector_store %arg8[%c0_132, %c0_133], %389 {strides = array<i32>} : memref<8x256xf32, #tpu.memory_space<vmem>>, vector<8x128xf32>,
    %c0_134 = arith.constant 0 : index
    %c128_135 = arith.constant 128 : index
    %391 = vector.load %arg8[%c0_134, %c128_135] : memref<8x256xf32, #tpu.memory_space<vmem>>, vector<8x128xf32>
    tpu.vector_store %arg8[%c0_134, %c128_135], %374 {strides = array<i32>} : memref<8x256xf32, #tpu.memory_space<vmem>>, vector<8x128xf32>,
    %c0_136 = arith.constant 0 : index
    %c0_137 = arith.constant 0 : index
    %392 = vector.load %arg8[%c0_136, %c0_137] : memref<8x256xf32, #tpu.memory_space<vmem>>, vector<8x256xf32>
    %cst_138 = arith.constant dense<0.000000e+00> : vector<8x512xf32>
    %393 = tpu.matmul %392, %1, %cst_138 {dimension_numbers = #tpu.dot_dimension_numbers<[1], [0], [0], [1], [0, 0, 1, 1], [], []>} : vector<8x256xf32>, vector<256x512xf32>, vector<8x512xf32> -> vector<8x512xf32>
    %394 = vector.extract_strided_slice %393 {offsets = [0, 0], sizes = [8, 128], strides = [1, 1]} : vector<8x512xf32> to vector<8x128xf32>
    %395 = arith.negf %394 : vector<8x128xf32>
    %396 = math.exp %395 : vector<8x128xf32>
    %cst_139 = arith.constant 1.000000e+00 : f32
    %397 = vector.broadcast %cst_139 : f32 to vector<8x128xf32>
    %398 = arith.addf %397, %396 : vector<8x128xf32>
    %399 = arith.divf %397, %398 : vector<8x128xf32>
    %400 = vector.extract_strided_slice %393 {offsets = [0, 128], sizes = [8, 128], strides = [1, 1]} : vector<8x512xf32> to vector<8x128xf32>
    %401 = arith.negf %400 : vector<8x128xf32>
    %402 = math.exp %401 : vector<8x128xf32>
    %cst_140 = arith.constant 1.000000e+00 : f32
    %403 = vector.broadcast %cst_140 : f32 to vector<8x128xf32>
    %404 = arith.addf %403, %402 : vector<8x128xf32>
    %405 = arith.divf %403, %404 : vector<8x128xf32>
    %406 = vector.extract_strided_slice %393 {offsets = [0, 256], sizes = [8, 128], strides = [1, 1]} : vector<8x512xf32> to vector<8x128xf32>
    %407 = math.tanh %406 : vector<8x128xf32>
    %408 = vector.extract_strided_slice %393 {offsets = [0, 384], sizes = [8, 128], strides = [1, 1]} : vector<8x512xf32> to vector<8x128xf32>
    %409 = arith.negf %408 : vector<8x128xf32>
    %410 = math.exp %409 : vector<8x128xf32>
    %cst_141 = arith.constant 1.000000e+00 : f32
    %411 = vector.broadcast %cst_141 : f32 to vector<8x128xf32>
    %412 = arith.addf %411, %410 : vector<8x128xf32>
    %413 = arith.divf %411, %412 : vector<8x128xf32>
    %414 = arith.mulf %405, %372 : vector<8x128xf32>
    %415 = arith.mulf %399, %407 : vector<8x128xf32>
    %416 = arith.addf %414, %415 : vector<8x128xf32>
    %417 = math.tanh %416 : vector<8x128xf32>
    %418 = arith.mulf %413, %417 : vector<8x128xf32>
    %cst_142 = arith.constant dense<0.000000e+00> : vector<8x128xf32>
    %419 = tpu.matmul %418, %2, %cst_142 {dimension_numbers = #tpu.dot_dimension_numbers<[1], [0], [0], [1], [0, 0, 1, 1], [], []>} : vector<8x128xf32>, vector<128x128xf32>, vector<8x128xf32> -> vector<8x128xf32>
    %420 = arith.addf %419, %8 : vector<8x128xf32>
    %421 = arith.maximumf %377, %420 : vector<8x128xf32>
    %cst_143 = arith.constant dense<0xFF800000> : vector<8xf32>
    %422 = vector.multi_reduction <maximumf>, %420, %cst_143 [1] : vector<8x128xf32> to vector<8xf32>
    %423 = vector.shape_cast %422 : vector<8xf32> to vector<8x1xf32>
    %424 = vector.broadcast %423 : vector<8x1xf32> to vector<8x128xf32>
    %425 = arith.cmpf oeq, %420, %424 : vector<8x128xf32>
    %c128_i32_144 = arith.constant 128 : i32
    %426 = vector.broadcast %c128_i32_144 : i32 to vector<8x128xi32>
    %427 = arith.select %425, %75, %426 : vector<8x128xi1>, vector<8x128xi32>
    %cst_145 = arith.constant dense<2147483647> : vector<8xi32>
    %428 = vector.multi_reduction <minsi>, %427, %cst_145 [1] : vector<8x128xi32> to vector<8xi32>
    %429 = vector.shape_cast %428 : vector<8xi32> to vector<8x1xi32>
    %430 = vector.broadcast %429 : vector<8x1xi32> to vector<8x128xi32>
    %431 = arith.cmpi eq, %75, %430 : vector<8x128xi32>
    %432 = arith.extui %431 : vector<8x128xi1> to vector<8x128xi32>
    %433 = arith.sitofp %432 : vector<8x128xi32> to vector<8x128xf32>
    %c0_146 = arith.constant 0 : index
    %c0_147 = arith.constant 0 : index
    %434 = vector.load %arg8[%c0_146, %c0_147] : memref<8x256xf32, #tpu.memory_space<vmem>>, vector<8x128xf32>
    tpu.vector_store %arg8[%c0_146, %c0_147], %433 {strides = array<i32>} : memref<8x256xf32, #tpu.memory_space<vmem>>, vector<8x128xf32>,
    %c0_148 = arith.constant 0 : index
    %c128_149 = arith.constant 128 : index
    %435 = vector.load %arg8[%c0_148, %c128_149] : memref<8x256xf32, #tpu.memory_space<vmem>>, vector<8x128xf32>
    tpu.vector_store %arg8[%c0_148, %c128_149], %418 {strides = array<i32>} : memref<8x256xf32, #tpu.memory_space<vmem>>, vector<8x128xf32>,
    %c0_150 = arith.constant 0 : index
    %c0_151 = arith.constant 0 : index
    %436 = vector.load %arg8[%c0_150, %c0_151] : memref<8x256xf32, #tpu.memory_space<vmem>>, vector<8x256xf32>
    %cst_152 = arith.constant dense<0.000000e+00> : vector<8x512xf32>
    %437 = tpu.matmul %436, %1, %cst_152 {dimension_numbers = #tpu.dot_dimension_numbers<[1], [0], [0], [1], [0, 0, 1, 1], [], []>} : vector<8x256xf32>, vector<256x512xf32>, vector<8x512xf32> -> vector<8x512xf32>
    %438 = vector.extract_strided_slice %437 {offsets = [0, 0], sizes = [8, 128], strides = [1, 1]} : vector<8x512xf32> to vector<8x128xf32>
    %439 = arith.negf %438 : vector<8x128xf32>
    %440 = math.exp %439 : vector<8x128xf32>
    %cst_153 = arith.constant 1.000000e+00 : f32
    %441 = vector.broadcast %cst_153 : f32 to vector<8x128xf32>
    %442 = arith.addf %441, %440 : vector<8x128xf32>
    %443 = arith.divf %441, %442 : vector<8x128xf32>
    %444 = vector.extract_strided_slice %437 {offsets = [0, 128], sizes = [8, 128], strides = [1, 1]} : vector<8x512xf32> to vector<8x128xf32>
    %445 = arith.negf %444 : vector<8x128xf32>
    %446 = math.exp %445 : vector<8x128xf32>
    %cst_154 = arith.constant 1.000000e+00 : f32
    %447 = vector.broadcast %cst_154 : f32 to vector<8x128xf32>
    %448 = arith.addf %447, %446 : vector<8x128xf32>
    %449 = arith.divf %447, %448 : vector<8x128xf32>
    %450 = vector.extract_strided_slice %437 {offsets = [0, 256], sizes = [8, 128], strides = [1, 1]} : vector<8x512xf32> to vector<8x128xf32>
    %451 = math.tanh %450 : vector<8x128xf32>
    %452 = vector.extract_strided_slice %437 {offsets = [0, 384], sizes = [8, 128], strides = [1, 1]} : vector<8x512xf32> to vector<8x128xf32>
    %453 = arith.negf %452 : vector<8x128xf32>
    %454 = math.exp %453 : vector<8x128xf32>
    %cst_155 = arith.constant 1.000000e+00 : f32
    %455 = vector.broadcast %cst_155 : f32 to vector<8x128xf32>
    %456 = arith.addf %455, %454 : vector<8x128xf32>
    %457 = arith.divf %455, %456 : vector<8x128xf32>
    %458 = arith.mulf %449, %416 : vector<8x128xf32>
    %459 = arith.mulf %443, %451 : vector<8x128xf32>
    %460 = arith.addf %458, %459 : vector<8x128xf32>
    %461 = math.tanh %460 : vector<8x128xf32>
    %462 = arith.mulf %457, %461 : vector<8x128xf32>
    %cst_156 = arith.constant dense<0.000000e+00> : vector<8x128xf32>
    %463 = tpu.matmul %462, %2, %cst_156 {dimension_numbers = #tpu.dot_dimension_numbers<[1], [0], [0], [1], [0, 0, 1, 1], [], []>} : vector<8x128xf32>, vector<128x128xf32>, vector<8x128xf32> -> vector<8x128xf32>
    %464 = arith.addf %463, %8 : vector<8x128xf32>
    %465 = arith.maximumf %421, %464 : vector<8x128xf32>
    %c0_157 = arith.constant 0 : index
    %c0_158 = arith.constant 0 : index
    %466 = vector.load %arg6[%c0_157, %c0_158] : memref<8x128xf32, #tpu.memory_space<vmem>>, vector<8x128xf32>
    tpu.vector_store %arg6[%c0_157, %c0_158], %465 {strides = array<i32>} : memref<8x128xf32, #tpu.memory_space<vmem>>, vector<8x128xf32>,
    return
  }
}

</mosaic_0001>

<bundles_post_ra>
// kernel: tpu_custom_call.1
= control target key start
LH: loop header
LB: loop body
LE: loop exit
PB: predicated region body
PF: predicated region fallthrough
CT: control target
= control target key end

     0   :  { %11 = vsyncpa [#allocation5], 0  ;;  %s7290_s0 = inlined_call_operand.hbm [shape: f32[2,8,128], index: 0, kind: input, shape index: {}]   ;;  %s7291_s1 = inlined_call_operand.hbm [shape: f32[256,512], index: 1, kind: input, shape index: {}]   ;;  %s7292_s2 = inlined_call_operand.hbm [shape: f32[1,512], index: 2, kind: input, shape index: {}]   ;;  %s7293_s3 = inlined_call_operand.hbm [shape: f32[256,512], index: 3, kind: input, shape index: {}]   ;;  %s7294_s4 = inlined_call_operand.hbm [shape: f32[128,128], index: 4, kind: input, shape index: {}]   ;;  %s7295_s5 = inlined_call_operand.vmem [shape: f32[1,128], index: 5, kind: input, shape index: {}]   ;;  %s7296_s6 = inlined_call_operand.hbm [shape: f32[8,128], index: 6, kind: output, shape index: {}]  }
   0x1   :  { %12 = vsyncpa [#allocation8], 0 }
   0x2   :  { %13 = vsyncpa [#allocation11], 0 }
   0x3   :  { %14 = vsyncpa [#allocation6], 0  ;;  %s4300_s21 = smov [#allocation7]  }
   0x4   :  { %s32_s22 = sshll.u32 %s4300_s21, 4  ;;  %s33_s22 = int_to_ptr.vmem [resolvable:$true] %s32_s22 }
   0x5   :  { %s4180_s23 = scalar_lea.vmem %s33_s22, 16384  ;;  %p4185_p1 = scmp.lt.s32.totalorder %s33_s22, %s33_s22 }
   0x6   :  { %p4181_p0 = scmp.ne.s32.totalorder %s33_s22, %s4180_s23  ;;  %p4186_p2 = scmp.lt.s32.totalorder %s4180_s23, %s4180_s23 }
   0x8   :  { %p4187_p3 = por %p4186_p2, %p4185_p1 }
   0xa   :  { %p4188_p4 = pnand %p4187_p3, %p4181_p0 }
   0xc   :  { %4191 = shalt.err (!%p4188_p4)
}
   0xd   :  { %s4301_s24 = smov 512   ;;  %s4302_s25 = smov 32  }
   0xe   :  { %38 = dma.hbm_to_vmem [thread:$0]  %s7291_s1, 16384, %s33_s22, [#allocation8], %s4301_s24, %s4301_s24, %s4302_s25  }
   0xf   :  { %s4303_s28 = smov [#allocation10]   ;;  %s4304_s30 = smov [#allocation4]  }
  0x10   :  { %s54_s29 = sshll.u32 %s4303_s28, 4  ;;  %s20_s7 = sshll.u32 %s4304_s30, 4  ;;  %s55_s29 = int_to_ptr.vmem [resolvable:$true] %s54_s29  ;;  %s21_s7 = int_to_ptr.vmem [resolvable:$true] %s20_s7 }
  0x11   :  { %s4200_s8 = scalar_lea.vmem %s55_s29, 16384  ;;  %p4205_p6 = scmp.lt.s32.totalorder %s55_s29, %s55_s29 }
  0x12   :  { %p4201_p5 = scmp.ne.s32.totalorder %s55_s29, %s4200_s8  ;;  %p4206_p7 = scmp.lt.s32.totalorder %s4200_s8, %s4200_s8 }
  0x14   :  { %p4207_p8 = por %p4206_p7, %p4205_p6 }
  0x16   :  { %p4208_p9 = pnand %p4207_p8, %p4201_p5 }
  0x18   :  { %4211 = shalt.err (!%p4208_p9)
}
  0x19   :  { %60 = dma.hbm_to_vmem [thread:$0]  %s7293_s3, 16384, %s55_s29, [#allocation11], %s4301_s24, %s4301_s24, %s4302_s25  }
  0x1a   :  { %s4220_s11 = scalar_lea.vmem %s21_s7, 256  ;;  %p4225_p11 = scmp.lt.s32.totalorder %s21_s7, %s21_s7 }
  0x1b   :  { %p4221_p10 = scmp.ne.s32.totalorder %s21_s7, %s4220_s11  ;;  %p4226_p12 = scmp.lt.s32.totalorder %s4220_s11, %s4220_s11 }
  0x1d   :  { %p4227_p13 = por %p4226_p12, %p4225_p11 }
  0x1f   :  { %p4228_p0 = pnand %p4227_p13, %p4221_p10 }
  0x21   :  { %4231 = shalt.err (!%p4228_p0)
}
  0x22   :  { %s4305_s1 = smov 128   ;;  %s4306_s12 = smov 8  }
  0x23   :  { %26 = dma.hbm_to_vmem [thread:$0]  %s7290_s0, 256, %s21_s7, [#allocation5], %s4305_s1, %s4305_s1, %s4306_s12  }
  0x24   :  { %s4307_s15 = smov [#allocation9]   ;;  %s4308_s17 = smov [#allocation12]  }
  0x25   :  { %s45_s16 = sshll.u32 %s4307_s15, 4  ;;  %s66_s18 = sshll.u32 %s4308_s17, 4  ;;  %s46_s16 = int_to_ptr.vmem [resolvable:$true] %s45_s16  ;;  %s67_s18 = int_to_ptr.vmem [resolvable:$true] %s66_s18 }
  0x26   :  { %s4240_s3 = scalar_lea.vmem %s46_s16, 64  ;;  %p4245_p2 = scmp.lt.s32.totalorder %s46_s16, %s46_s16 }
  0x27   :  { %p4241_p1 = scmp.ne.s32.totalorder %s46_s16, %s4240_s3  ;;  %p4246_p3 = scmp.lt.s32.totalorder %s4240_s3, %s4240_s3 }
  0x29   :  { %p4247_p4 = por %p4246_p3, %p4245_p2 }
  0x2b   :  { %p4248_p5 = pnand %p4247_p4, %p4241_p1 }
  0x2d   :  { %4251 = shalt.err (!%p4248_p5)
}
  0x2e   :  { %48 = dma.hbm_to_vmem [thread:$0]  %s7292_s2, 64, %s46_s16, [#allocation8]  }
  0x2f   :  { %s4260_s21 = scalar_lea.vmem %s67_s18, 2048  ;;  %p4265_p7 = scmp.lt.s32.totalorder %s67_s18, %s67_s18 }
  0x30   :  { %p4261_p6 = scmp.ne.s32.totalorder %s67_s18, %s4260_s21  ;;  %p4266_p8 = scmp.lt.s32.totalorder %s4260_s21, %s4260_s21 }
  0x32   :  { %p4267_p9 = por %p4266_p8, %p4265_p7 }
  0x34   :  { %p4268_p10 = pnand %p4267_p9, %p4261_p6 }
  0x36   :  { %4271 = shalt.err (!%p4268_p10)
}
  0x37   :  { %72 = dma.hbm_to_vmem [thread:$0]  %s7294_s4, 2048, %s67_s18, [#allocation11], %s4305_s1, %s4305_s1, %s4306_s12  }
  0x38   :  { %4292 = dma.done.wait [#allocation5], 256  }
  0x39   :  { %4293 = vsyncadd [#allocation5], 4294967040 }
  0x3a   :  { %4294 = dma.done.wait [#allocation8], 16448  }
  0x3b   :  { %4295 = vsyncadd [#allocation8], 4294950848 }
  0x3c   :  { %4296 = dma.done.wait [#allocation11], 18432  }
  0x3d   :  { %4297 = vsyncadd [#allocation11], 4294948864  ;;  %v7297_v0 = vmov 0.0   ;;  %v4365_v1 = vld [vmem:[#allocation7 + $0x1e8] sm:$0xff]  ;;  %v4367_v2 = vld [vmem:[#allocation7 + $0x1e0] sm:$0xff]  ;;  %vm4311_vm1 = vmmov 0  }
  0x3e   :  { %460 = vmatprep.mubr.f32.mxu0 %v7297_v0  ;;  %531 = vmatprep.mubr.f32.mxu1 %v7297_v0  ;;  %v4369_v3 = vld [vmem:[#allocation7 + $0x1c8] sm:$0xff]  ;;  %v4372_v4 = vld [vmem:[#allocation7 + $0x1c0] sm:$0xff]  ;;  %v4386_v9 = vld [vmem:[#allocation7 + $0x1f8] sm:$0xff] }
  0x3f   :  { %396 = vmatprep.subr.mxu0 %v4365_v1  ;;  %v4375_v5 = vld [vmem:[#allocation7 + $0x1a8] sm:$0xff]  ;;  %v4378_v6 = vld [vmem:[#allocation7 + $0x1a0] sm:$0xff]  ;;  %467 = vmatprep.subr.mxu1 %v4386_v9  ;;  %v4392_v11 = vld [vmem:[#allocation7 + $0x1f0] sm:$0xff] }
  0x40   :  { %397 = vmatpush1.msra.mxu0 %v4367_v2  ;;  %v4381_v7 = vld [vmem:[#allocation7 + $0x188] sm:$0xff]  ;;  %v4384_v8 = vld [vmem:[#allocation7 + $0x180] sm:$0xff]  ;;  %468 = vmatpush1.msra.mxu1 %v4392_v11  ;;  %v4398_v13 = vld [vmem:[#allocation7 + $0x1d8] sm:$0xff] }
  0x41   :  { %398 = vmatprep.subr.mxu0 %v4369_v3  ;;  %v4389_v10 = vld [vmem:[#allocation7 + $0x168] sm:$0xff]  ;;  %v4395_v12 = vld [vmem:[#allocation7 + $0x160] sm:$0xff]  ;;  %v4400_v14 = vld [vmem:[#allocation7 + $0x1d0] sm:$0xff]  ;;  %469 = vmatprep.subr.mxu1 %v4398_v13 }
  0x42   :  { %399 = vmatpush1.msra.mxu0 %v4372_v4  ;;  %v4403_v15 = vld [vmem:[#allocation7 + $0x148] sm:$0xff]  ;;  %v4406_v16 = vld [vmem:[#allocation7 + $0x1b8] sm:$0xff]  ;;  %v4409_v17 = vld [vmem:[#allocation7 + $0x140] sm:$0xff]  ;;  %470 = vmatpush1.msra.mxu1 %v4400_v14 }
  0x43   :  { %400 = vmatprep.subr.mxu0 %v4375_v5  ;;  %v4412_v18 = vld [vmem:[#allocation7 + $0x1b0] sm:$0xff]  ;;  %v4414_v19 = vld [vmem:[#allocation7 + $0x198] sm:$0xff]  ;;  %v4417_v20 = vld [vmem:[#allocation7 + $0x128] sm:$0xff]  ;;  %471 = vmatprep.subr.mxu1 %v4406_v16 }
  0x44   :  { %401 = vmatpush1.msra.mxu0 %v4378_v6  ;;  %v4420_v21 = vld [vmem:[#allocation7 + $0x190] sm:$0xff]  ;;  %v4423_v22 = vld [vmem:[#allocation7 + $0x120] sm:$0xff]  ;;  %472 = vmatpush1.msra.mxu1 %v4412_v18  ;;  %v4426_v23 = vld [vmem:[#allocation7 + $0x178] sm:$0xff] }
  0x45   :  { %402 = vmatprep.subr.mxu0 %v4381_v7  ;;  %v4429_v24 = vld [vmem:[#allocation7 + $0x108] sm:$0xff]  ;;  %473 = vmatprep.subr.mxu1 %v4414_v19  ;;  %v4432_v25 = vld [vmem:[#allocation7 + $0x170] sm:$0xff]  ;;  %v4435_v26 = vld [vmem:[#allocation7 + $0x100] sm:$0xff] }
  0x46   :  { %403 = vmatpush1.msra.mxu0 %v4384_v8  ;;  %474 = vmatpush1.msra.mxu1 %v4420_v21  ;;  %v4438_v27 = vld [vmem:[#allocation7 + $0x158] sm:$0xff]  ;;  %v4441_v28 = vld [vmem:[#allocation7 + $0xe8] sm:$0xff]  ;;  %v4444_v29 = vld [vmem:[#allocation7 + $0x150] sm:$0xff] }
  0x47   :  { %404 = vmatprep.subr.mxu0 %v4389_v10  ;;  %475 = vmatprep.subr.mxu1 %v4426_v23  ;;  %v4447_v30 = vld [vmem:[#allocation7 + $0xe0] sm:$0xff]  ;;  %v4450_v31 = vld [vmem:[#allocation7 + $0x138] sm:$0xff]  ;;  %v4453_v32 = vld [vmem:[#allocation7 + $0xc8] sm:$0xff] }
  0x48   :  { %405 = vmatpush1.msra.mxu0 %v4395_v12  ;;  %476 = vmatpush1.msra.mxu1 %v4432_v25  ;;  %v4456_v33 = vld [vmem:[#allocation7 + $0x130] sm:$0xff]  ;;  %v4459_v34 = vld [vmem:[#allocation7 + $0xc0] sm:$0xff]  ;;  %v4462_v35 = vld [vmem:[#allocation7 + $0x118] sm:$0xff] }
  0x49   :  { %406 = vmatprep.subr.mxu0 %v4403_v15  ;;  %477 = vmatprep.subr.mxu1 %v4438_v27  ;;  %v4465_v36 = vld [vmem:[#allocation7 + $0xa8] sm:$0xff]  ;;  %v4468_v37 = vld [vmem:[#allocation7 + $0x110] sm:$0xff]  ;;  %v4471_v38 = vld [vmem:[#allocation7 + $0xa0] sm:$0xff] }
  0x4a   :  { %407 = vmatpush1.msra.mxu0 %v4409_v17  ;;  %478 = vmatpush1.msra.mxu1 %v4444_v29  ;;  %v4474_v39 = vld [vmem:[#allocation7 + $0xf8] sm:$0xff]  ;;  %v4477_v40 = vld [vmem:[#allocation7 + $0x88] sm:$0xff]  ;;  %v4480_v41 = vld [vmem:[#allocation7 + $0xf0] sm:$0xff] }
  0x4b   :  { %408 = vmatprep.subr.mxu0 %v4417_v20  ;;  %479 = vmatprep.subr.mxu1 %v4450_v31  ;;  %v4483_v42 = vld [vmem:[#allocation7 + $0x80] sm:$0xff]  ;;  %v4486_v43 = vld [vmem:[#allocation7 + $0xd8] sm:$0xff]  ;;  %v4489_v44 = vld [vmem:[#allocation7 + $0x68] sm:$0xff] }
  0x4c   :  { %409 = vmatpush1.msra.mxu0 %v4423_v22  ;;  %480 = vmatpush1.msra.mxu1 %v4456_v33  ;;  %v4492_v45 = vld [vmem:[#allocation7 + $0xd0] sm:$0xff]  ;;  %v4495_v46 = vld [vmem:[#allocation7 + $0x60] sm:$0xff]  ;;  %v4498_v47 = vld [vmem:[#allocation7 + $0xb8] sm:$0xff] }
  0x4d   :  { %410 = vmatprep.subr.mxu0 %v4429_v24  ;;  %481 = vmatprep.subr.mxu1 %v4462_v35  ;;  %v4501_v48 = vld [vmem:[#allocation7 + $0x48] sm:$0xff]  ;;  %v4504_v49 = vld [vmem:[#allocation7 + $0xb0] sm:$0xff]  ;;  %v4507_v50 = vld [vmem:[#allocation7 + $0x40] sm:$0xff] }
  0x4e   :  { %411 = vmatpush1.msra.mxu0 %v4435_v26  ;;  %482 = vmatpush1.msra.mxu1 %v4468_v37  ;;  %v4510_v51 = vld [vmem:[#allocation7 + $0x98] sm:$0xff]  ;;  %v4513_v52 = vld [vmem:[#allocation7 + $0x28] sm:$0xff]  ;;  %v4516_v53 = vld [vmem:[#allocation7 + $0x90] sm:$0xff] }
  0x4f   :  { %412 = vmatprep.subr.mxu0 %v4441_v28  ;;  %483 = vmatprep.subr.mxu1 %v4474_v39  ;;  %v4519_v54 = vld [vmem:[#allocation7 + $0x20] sm:$0xff]  ;;  %v4522_v55 = vld [vmem:[#allocation7 + $0x78] sm:$0xff]  ;;  %v4525_v56 = vld [vmem:[#allocation7 + $0x8] sm:$0xff] }
  0x50   :  { %413 = vmatpush1.msra.mxu0 %v4447_v30  ;;  %484 = vmatpush1.msra.mxu1 %v4480_v41  ;;  %7909 = vst [vmem:[#allocation18_spill] sm:$0xff] %v4519_v54  ;;  %7910 = vst [vmem:[#allocation19_spill] sm:$0xff] %v4522_v55  ;;  %v4528_v57 = vld [vmem:[#allocation7 + $0x70] sm:$0xff]  ;;  %v4531_v58 = vld [vmem:[#allocation7] sm:$0xff] }
  0x51   :  { %414 = vmatprep.subr.mxu0 %v4453_v32  ;;  %485 = vmatprep.subr.mxu1 %v4486_v43  ;;  %7911 = vst [vmem:[#allocation20_spill] sm:$0xff] %v4525_v56  ;;  %7912 = vst [vmem:[#allocation21_spill] sm:$0xff] %v4528_v57  ;;  %v4534_v59 = vld [vmem:[#allocation7 + $0x58] sm:$0xff]  ;;  %v4537_v60 = vld [vmem:[#allocation7 + $0x3e8] sm:$0xff] }
  0x52   :  { %415 = vmatpush1.msra.mxu0 %v4459_v34  ;;  %486 = vmatpush1.msra.mxu1 %v4492_v45  ;;  %7913 = vst [vmem:[#allocation22_spill] sm:$0xff] %v4531_v58  ;;  %7914 = vst [vmem:[#allocation23_spill] sm:$0xff] %v4534_v59  ;;  %v4540_v61 = vld [vmem:[#allocation7 + $0x50] sm:$0xff]  ;;  %v4543_v62 = vld [vmem:[#allocation7 + $0x3e0] sm:$0xff] }
  0x53   :  { %416 = vmatprep.subr.mxu0 %v4465_v36  ;;  %487 = vmatprep.subr.mxu1 %v4498_v47  ;;  %7915 = vst [vmem:[#allocation24_spill] sm:$0xff] %v4537_v60  ;;  %7916 = vst [vmem:[#allocation25_spill] sm:$0xff] %v4540_v61  ;;  %v4546_v63 = vld [vmem:[#allocation7 + $0x38] sm:$0xff]  ;;  %v4549_v0 = vld [vmem:[#allocation7 + $0x3c8] sm:$0xff] }
  0x54   :  { %417 = vmatpush1.msra.mxu0 %v4471_v38  ;;  %488 = vmatpush1.msra.mxu1 %v4504_v49  ;;  %7917 = vst [vmem:[#allocation26_spill] sm:$0xff] %v4543_v62  ;;  %7918 = vst [vmem:[#allocation27_spill] sm:$0xff] %v4546_v63 }
  0x55   :  { %418 = vmatprep.subr.mxu0 %v4477_v40  ;;  %489 = vmatprep.subr.mxu1 %v4510_v51  ;;  %7919 = vst [vmem:[#allocation28_spill] sm:$0xff] %v4549_v0 }
  0x56   :  { %419 = vmatpush1.msra.mxu0 %v4483_v42  ;;  %490 = vmatpush1.msra.mxu1 %v4516_v53 }
  0x57   :  { %420 = vmatprep.subr.mxu0 %v4489_v44  ;;  %491 = vmatprep.subr.mxu1 %v4522_v55  ;;  %v4555_v55 = vld [vmem:[#allocation7 + $0x3c0] sm:$0xff] }
  0x58   :  { %421 = vmatpush1.msra.mxu0 %v4495_v46  ;;  %492 = vmatpush1.msra.mxu1 %v4528_v57  ;;  %7921 = vst [vmem:[#allocation30_spill] sm:$0xff] %v4555_v55  ;;  %v4561_v57 = vld [vmem:[#allocation7 + $0x3a8] sm:$0xff] }
  0x59   :  { %422 = vmatprep.subr.mxu0 %v4501_v48  ;;  %493 = vmatprep.subr.mxu1 %v4534_v59  ;;  %7923 = vst [vmem:[#allocation32_spill] sm:$0xff] %v4561_v57  ;;  %v4567_v59 = vld [vmem:[#allocation7 + $0x3a0] sm:$0xff] }
  0x5a   :  { %423 = vmatpush1.msra.mxu0 %v4507_v50  ;;  %494 = vmatpush1.msra.mxu1 %v4540_v61  ;;  %7925 = vst [vmem:[#allocation34_spill] sm:$0xff] %v4567_v59  ;;  %v4573_v61 = vld [vmem:[#allocation7 + $0x388] sm:$0xff] }
  0x5b   :  { %424 = vmatprep.subr.mxu0 %v4513_v52  ;;  %495 = vmatprep.subr.mxu1 %v4546_v63  ;;  %7927 = vst [vmem:[#allocation36_spill] sm:$0xff] %v4573_v61  ;;  %v4579_v63 = vld [vmem:[#allocation7 + $0x380] sm:$0xff] }
  0x5c   :  { %425 = vmatpush1.msra.mxu0 %v4519_v54  ;;  %v4552_v54 = vld [vmem:[#allocation7 + $0x30] sm:$0xff]  ;;  %7929 = vst [vmem:[#allocation38_spill] sm:$0xff] %v4579_v63 }
  0x5d   :  { %426 = vmatprep.subr.mxu0 %v4525_v56  ;;  %7920 = vst [vmem:[#allocation29_spill] sm:$0xff] %v4552_v54  ;;  %v4558_v56 = vld [vmem:[#allocation7 + $0x18] sm:$0xff]  ;;  %496 = vmatpush1.msra.mxu1 %v4552_v54  ;;  %v4585_v54 = vld [vmem:[#allocation7 + $0x368] sm:$0xff] }
  0x5e   :  { %427 = vmatpush1.msra.mxu0 %v4531_v58  ;;  %7922 = vst [vmem:[#allocation31_spill] sm:$0xff] %v4558_v56  ;;  %v4564_v58 = vld [vmem:[#allocation7 + $0x10] sm:$0xff]  ;;  %497 = vmatprep.subr.mxu1 %v4558_v56  ;;  %7931 = vst [vmem:[#allocation40_spill] sm:$0xff] %v4585_v54  ;;  %v4591_v56 = vld [vmem:[#allocation7 + $0x360] sm:$0xff] }
  0x5f   :  { %428 = vmatprep.subr.mxu0 %v4537_v60  ;;  %7924 = vst [vmem:[#allocation33_spill] sm:$0xff] %v4564_v58  ;;  %v4570_v60 = vld [vmem:[#allocation7 + $0x3f8] sm:$0xff]  ;;  %498 = vmatpush1.msra.mxu1 %v4564_v58  ;;  %7933 = vst [vmem:[#allocation42_spill] sm:$0xff] %v4591_v56  ;;  %v4597_v58 = vld [vmem:[#allocation7 + $0x348] sm:$0xff] }
  0x60   :  { %429 = vmatpush2.msra.mxu0 %v4543_v62  ;;  %7926 = vst [vmem:[#allocation35_spill] sm:$0xff] %v4570_v60  ;;  %v4576_v62 = vld [vmem:[#allocation7 + $0x3f0] sm:$0xff]  ;;  %499 = vmatprep.subr.mxu1 %v4570_v60  ;;  %7935 = vst [vmem:[#allocation44_spill] sm:$0xff] %v4597_v58  ;;  %v4603_v60 = vld [vmem:[#allocation7 + $0x340] sm:$0xff] }
  0x61   :  { %430 = vmatprep.subr.mxu0 %v4549_v0  ;;  %7928 = vst [vmem:[#allocation37_spill] sm:$0xff] %v4576_v62  ;;  %v4582_v0 = vld [vmem:[#allocation7 + $0x3d8] sm:$0xff]  ;;  %500 = vmatpush2.msra.mxu1 %v4576_v62  ;;  %7937 = vst [vmem:[#allocation46_spill] sm:$0xff] %v4603_v60  ;;  %v4609_v62 = vld [vmem:[#allocation7 + $0x328] sm:$0xff] }
  0x62   :  { %431 = vmatpush2.msra.mxu0 %v4555_v55  ;;  %7930 = vst [vmem:[#allocation39_spill] sm:$0xff] %v4582_v0  ;;  %v4588_v55 = vld [vmem:[#allocation7 + $0x3d0] sm:$0xff]  ;;  %501 = vmatprep.subr.mxu1 %v4582_v0  ;;  %7939 = vst [vmem:[#allocation48_spill] sm:$0xff] %v4609_v62  ;;  %v4615_v0 = vld [vmem:[#allocation7 + $0x320] sm:$0xff] }
  0x63   :  { %432 = vmatprep.subr.mxu0 %v4561_v57  ;;  %7932 = vst [vmem:[#allocation41_spill] sm:$0xff] %v4588_v55  ;;  %v4594_v57 = vld [vmem:[#allocation7 + $0x3b8] sm:$0xff]  ;;  %502 = vmatpush2.msra.mxu1 %v4588_v55  ;;  %7941 = vst [vmem:[#allocation50_spill] sm:$0xff] %v4615_v0  ;;  %v4621_v55 = vld [vmem:[#allocation7 + $0x308] sm:$0xff] }
  0x64   :  { %433 = vmatpush2.msra.mxu0 %v4567_v59  ;;  %7934 = vst [vmem:[#allocation43_spill] sm:$0xff] %v4594_v57  ;;  %v4600_v59 = vld [vmem:[#allocation7 + $0x3b0] sm:$0xff]  ;;  %503 = vmatprep.subr.mxu1 %v4594_v57  ;;  %7943 = vst [vmem:[#allocation52_spill] sm:$0xff] %v4621_v55  ;;  %v4627_v57 = vld [vmem:[#allocation7 + $0x300] sm:$0xff] }
  0x65   :  { %434 = vmatprep.subr.mxu0 %v4573_v61  ;;  %7936 = vst [vmem:[#allocation45_spill] sm:$0xff] %v4600_v59  ;;  %v4606_v61 = vld [vmem:[#allocation7 + $0x398] sm:$0xff]  ;;  %504 = vmatpush2.msra.mxu1 %v4600_v59  ;;  %7945 = vst [vmem:[#allocation54_spill] sm:$0xff] %v4627_v57  ;;  %v4633_v59 = vld [vmem:[#allocation7 + $0x2e8] sm:$0xff] }
  0x66   :  { %435 = vmatpush2.msra.mxu0 %v4579_v63  ;;  %7938 = vst [vmem:[#allocation47_spill] sm:$0xff] %v4606_v61  ;;  %v4612_v63 = vld [vmem:[#allocation7 + $0x390] sm:$0xff]  ;;  %505 = vmatprep.subr.mxu1 %v4606_v61  ;;  %7947 = vst [vmem:[#allocation56_spill] sm:$0xff] %v4633_v59  ;;  %v4639_v61 = vld [vmem:[#allocation7 + $0x2e0] sm:$0xff] }
  0x67   :  { %436 = vmatprep.subr.mxu0 %v4585_v54  ;;  %7940 = vst [vmem:[#allocation49_spill] sm:$0xff] %v4612_v63  ;;  %v4618_v54 = vld [vmem:[#allocation7 + $0x378] sm:$0xff]  ;;  %506 = vmatpush2.msra.mxu1 %v4612_v63  ;;  %7949 = vst [vmem:[#allocation58_spill] sm:$0xff] %v4639_v61  ;;  %v4645_v63 = vld [vmem:[#allocation7 + $0x2c8] sm:$0xff] }
  0x68   :  { %437 = vmatpush2.msra.mxu0 %v4591_v56  ;;  %7942 = vst [vmem:[#allocation51_spill] sm:$0xff] %v4618_v54  ;;  %v4624_v56 = vld [vmem:[#allocation7 + $0x370] sm:$0xff]  ;;  %507 = vmatprep.subr.mxu1 %v4618_v54  ;;  %7951 = vst [vmem:[#allocation60_spill] sm:$0xff] %v4645_v63  ;;  %v4651_v54 = vld [vmem:[#allocation7 + $0x2c0] sm:$0xff] }
  0x69   :  { %438 = vmatprep.subr.mxu0 %v4597_v58  ;;  %7944 = vst [vmem:[#allocation53_spill] sm:$0xff] %v4624_v56  ;;  %v4630_v58 = vld [vmem:[#allocation7 + $0x358] sm:$0xff]  ;;  %508 = vmatpush2.msra.mxu1 %v4624_v56  ;;  %7953 = vst [vmem:[#allocation62_spill] sm:$0xff] %v4651_v54  ;;  %v4657_v56 = vld [vmem:[#allocation7 + $0x2a8] sm:$0xff] }
  0x6a   :  { %439 = vmatpush2.msra.mxu0 %v4603_v60  ;;  %7946 = vst [vmem:[#allocation55_spill] sm:$0xff] %v4630_v58  ;;  %v4636_v60 = vld [vmem:[#allocation7 + $0x350] sm:$0xff]  ;;  %509 = vmatprep.subr.mxu1 %v4630_v58  ;;  %7955 = vst [vmem:[#allocation64_spill] sm:$0xff] %v4657_v56  ;;  %v4663_v58 = vld [vmem:[#allocation7 + $0x2a0] sm:$0xff] }
  0x6b   :  { %440 = vmatprep.subr.mxu0 %v4609_v62  ;;  %7948 = vst [vmem:[#allocation57_spill] sm:$0xff] %v4636_v60  ;;  %v4642_v62 = vld [vmem:[#allocation7 + $0x338] sm:$0xff]  ;;  %510 = vmatpush2.msra.mxu1 %v4636_v60  ;;  %7957 = vst [vmem:[#allocation66_spill] sm:$0xff] %v4663_v58  ;;  %v4669_v60 = vld [vmem:[#allocation7 + $0x288] sm:$0xff] }
  0x6c   :  { %441 = vmatpush2.msra.mxu0 %v4615_v0  ;;  %7950 = vst [vmem:[#allocation59_spill] sm:$0xff] %v4642_v62  ;;  %v4648_v0 = vld [vmem:[#allocation7 + $0x330] sm:$0xff]  ;;  %511 = vmatprep.subr.mxu1 %v4642_v62  ;;  %7959 = vst [vmem:[#allocation68_spill] sm:$0xff] %v4669_v60  ;;  %v4675_v62 = vld [vmem:[#allocation7 + $0x280] sm:$0xff] }
  0x6d   :  { %442 = vmatprep.subr.mxu0 %v4621_v55  ;;  %7952 = vst [vmem:[#allocation61_spill] sm:$0xff] %v4648_v0  ;;  %v4654_v55 = vld [vmem:[#allocation7 + $0x318] sm:$0xff]  ;;  %512 = vmatpush2.msra.mxu1 %v4648_v0  ;;  %7961 = vst [vmem:[#allocation70_spill] sm:$0xff] %v4675_v62  ;;  %v4681_v0 = vld [vmem:[#allocation7 + $0x268] sm:$0xff] }
  0x6e   :  { %443 = vmatpush2.msra.mxu0 %v4627_v57  ;;  %7954 = vst [vmem:[#allocation63_spill] sm:$0xff] %v4654_v55  ;;  %v4660_v57 = vld [vmem:[#allocation7 + $0x310] sm:$0xff]  ;;  %513 = vmatprep.subr.mxu1 %v4654_v55  ;;  %7963 = vst [vmem:[#allocation72_spill] sm:$0xff] %v4681_v0  ;;  %v4687_v55 = vld [vmem:[#allocation7 + $0x260] sm:$0xff] }
  0x6f   :  { %444 = vmatprep.subr.mxu0 %v4633_v59  ;;  %7956 = vst [vmem:[#allocation65_spill] sm:$0xff] %v4660_v57  ;;  %v4666_v59 = vld [vmem:[#allocation7 + $0x2f8] sm:$0xff]  ;;  %514 = vmatpush2.msra.mxu1 %v4660_v57  ;;  %7965 = vst [vmem:[#allocation74_spill] sm:$0xff] %v4687_v55  ;;  %v4693_v57 = vld [vmem:[#allocation7 + $0x248] sm:$0xff] }
  0x70   :  { %445 = vmatpush2.msra.mxu0 %v4639_v61  ;;  %7958 = vst [vmem:[#allocation67_spill] sm:$0xff] %v4666_v59  ;;  %v4672_v61 = vld [vmem:[#allocation7 + $0x2f0] sm:$0xff]  ;;  %515 = vmatprep.subr.mxu1 %v4666_v59  ;;  %7967 = vst [vmem:[#allocation76_spill] sm:$0xff] %v4693_v57  ;;  %v4699_v59 = vld [vmem:[#allocation7 + $0x240] sm:$0xff] }
  0x71   :  { %446 = vmatprep.subr.mxu0 %v4645_v63  ;;  %7960 = vst [vmem:[#allocation69_spill] sm:$0xff] %v4672_v61  ;;  %v4678_v63 = vld [vmem:[#allocation7 + $0x2d8] sm:$0xff]  ;;  %516 = vmatpush2.msra.mxu1 %v4672_v61  ;;  %7969 = vst [vmem:[#allocation78_spill] sm:$0xff] %v4699_v59  ;;  %v4705_v61 = vld [vmem:[#allocation7 + $0x228] sm:$0xff] }
  0x72   :  { %447 = vmatpush2.msra.mxu0 %v4651_v54  ;;  %7962 = vst [vmem:[#allocation71_spill] sm:$0xff] %v4678_v63  ;;  %v4684_v54 = vld [vmem:[#allocation7 + $0x2d0] sm:$0xff]  ;;  %517 = vmatprep.subr.mxu1 %v4678_v63  ;;  %v4711_v63 = vld [vmem:[#allocation7 + $0x220] sm:$0xff] }
  0x73   :  { %448 = vmatprep.subr.mxu0 %v4657_v56  ;;  %7964 = vst [vmem:[#allocation73_spill] sm:$0xff] %v4684_v54  ;;  %v4690_v56 = vld [vmem:[#allocation7 + $0x2b8] sm:$0xff]  ;;  %518 = vmatpush2.msra.mxu1 %v4684_v54  ;;  %7972 = vst [vmem:[#allocation81_spill] sm:$0xff] %v4711_v63  ;;  %v4717_v54 = vld [vmem:[#allocation7 + $0x208] sm:$0xff] }
  0x74   :  { %449 = vmatpush2.msra.mxu0 %v4663_v58  ;;  %7966 = vst [vmem:[#allocation75_spill] sm:$0xff] %v4690_v56  ;;  %v4696_v58 = vld [vmem:[#allocation7 + $0x2b0] sm:$0xff]  ;;  %519 = vmatprep.subr.mxu1 %v4690_v56  ;;  %v4723_v56 = vld [vmem:[#allocation7 + $0x200] sm:$0xff] }
  0x75   :  { %450 = vmatprep.subr.mxu0 %v4669_v60  ;;  %7968 = vst [vmem:[#allocation77_spill] sm:$0xff] %v4696_v58  ;;  %v4702_v60 = vld [vmem:[#allocation7 + $0x298] sm:$0xff]  ;;  %520 = vmatpush2.msra.mxu1 %v4696_v58  ;;  %v391_v58 = vld [vmem:[#allocation4] sm:$0xff] }
  0x76   :  { %451 = vmatpush2.msra.mxu0 %v4675_v62  ;;  %7970 = vst [vmem:[#allocation79_spill] sm:$0xff] %v4702_v60  ;;  %v4708_v62 = vld [vmem:[#allocation7 + $0x290] sm:$0xff]  ;;  %521 = vmatprep.subr.mxu1 %v4702_v60  ;;  %v4734_v60 = vld [vmem:[#allocation7 + $0x238] sm:$0xff] }
  0x77   :  { %452 = vmatprep.subr.mxu0 %v4681_v0  ;;  %7971 = vst [vmem:[#allocation80_spill] sm:$0xff] %v4708_v62  ;;  %v4714_v0 = vld [vmem:[#allocation7 + $0x278] sm:$0xff]  ;;  %522 = vmatpush2.msra.mxu1 %v4708_v62  ;;  %v4738_v62 = vld [vmem:[#allocation7 + $0x230] sm:$0xff] }
  0x78   :  { %453 = vmatpush2.msra.mxu0 %v4687_v55  ;;  %7973 = vst [vmem:[#allocation82_spill] sm:$0xff] %v4714_v0  ;;  %v4720_v55 = vld [vmem:[#allocation7 + $0x270] sm:$0xff]  ;;  %523 = vmatprep.subr.mxu1 %v4714_v0 }
  0x79   :  { %454 = vmatprep.subr.mxu0 %v4693_v57  ;;  %v4726_v57 = vld [vmem:[#allocation7 + $0x258] sm:$0xff]  ;;  %524 = vmatpush2.msra.mxu1 %v4720_v55  ;;  %v4744_v0 = vld [vmem:[#allocation7 + $0x210] sm:$0xff] }
  0x7a   :  { %455 = vmatpush2.msra.mxu0 %v4699_v59  ;;  %v4730_v59 = vld [vmem:[#allocation7 + $0x250] sm:$0xff]  ;;  %525 = vmatprep.subr.mxu1 %v4726_v57 }
  0x7b   :  { %456 = vmatprep.subr.mxu0 %v4705_v61  ;;  %526 = vmatpush2.msra.mxu1 %v4730_v59 }
  0x7c   :  { %457 = vmatpush2.msra.mxu0 %v4711_v63  ;;  %v4741_v63 = vld [vmem:[#allocation7 + $0x218] sm:$0xff]  ;;  %527 = vmatprep.subr.mxu1 %v4734_v60 }
  0x7d   :  { %458 = vmatprep.subr.mxu0 %v4717_v54  ;;  %528 = vmatpush2.msra.mxu1 %v4738_v62 }
  0x7e   :  { %459 = vmatpush2.msra.mxu0 %v4723_v56  ;;  %529 = vmatprep.subr.mxu1 %v4741_v63 }
  0x7f   :  { %461 = vmatmul.mubr.f32.vlgmr.msra.gmra.mxu0 %v391_v58  ;;  %568 = vmatprep.subr.mxu0 %v4365_v1  ;;  %v7974_v1 = vld [vmem:[#allocation18_spill] sm:$0xff] }
  0x80   :  { %569 = vmatpush1.msra.mxu0 %v4367_v2  ;;  %530 = vmatpush2.msra.mxu1 %v4744_v0  ;;  %v7975_v2 = vld [vmem:[#allocation19_spill] sm:$0xff] }
  0x81   :  { %570 = vmatprep.subr.mxu0 %v4369_v3  ;;  %532 = vmatmul.mubr.f32.vlgmr.msra.gmra.mxu1 %v391_v58  ;;  %v7976_v3 = vld [vmem:[#allocation20_spill] sm:$0xff]  ;;  %v8027_v58 = vld [vmem:[#allocation71_spill] sm:$0xff] }
  0x82   :  { %571 = vmatpush1.msra.mxu0 %v4372_v4  ;;  %639 = vmatprep.subr.mxu1 %v4386_v9  ;;  %v7977_v4 = vld [vmem:[#allocation21_spill] sm:$0xff]  ;;  %v7982_v9 = vld [vmem:[#allocation26_spill] sm:$0xff] }
  0x83   :  { %572 = vmatprep.subr.mxu0 %v4375_v5  ;;  %640 = vmatpush1.msra.mxu1 %v4392_v11  ;;  %v7978_v5 = vld [vmem:[#allocation22_spill] sm:$0xff]  ;;  %v7984_v11 = vld [vmem:[#allocation28_spill] sm:$0xff] }
  0x84   :  { %573 = vmatpush1.msra.mxu0 %v4378_v6  ;;  %641 = vmatprep.subr.mxu1 %v4398_v13  ;;  %v7979_v6 = vld [vmem:[#allocation23_spill] sm:$0xff]  ;;  %v7986_v13 = vld [vmem:[#allocation30_spill] sm:$0xff] }
  0x85   :  { %574 = vmatprep.subr.mxu0 %v4381_v7  ;;  %642 = vmatpush1.msra.mxu1 %v4400_v14  ;;  %v7980_v7 = vld [vmem:[#allocation24_spill] sm:$0xff]  ;;  %v7987_v14 = vld [vmem:[#allocation31_spill] sm:$0xff] }
  0x86   :  { %575 = vmatpush1.msra.mxu0 %v4384_v8  ;;  %643 = vmatprep.subr.mxu1 %v4406_v16  ;;  %v7981_v8 = vld [vmem:[#allocation25_spill] sm:$0xff] }
  0x87   :  { %576 = vmatprep.subr.mxu0 %v4389_v10  ;;  %644 = vmatpush1.msra.mxu1 %v4412_v18  ;;  %v7983_v10 = vld [vmem:[#allocation27_spill] sm:$0xff]  ;;  %v7989_v16 = vld [vmem:[#allocation33_spill] sm:$0xff] }
  0x88   :  { %577 = vmatpush1.msra.mxu0 %v4395_v12  ;;  %645 = vmatprep.subr.mxu1 %v4414_v19  ;;  %v7985_v12 = vld [vmem:[#allocation29_spill] sm:$0xff]  ;;  %v7991_v18 = vld [vmem:[#allocation35_spill] sm:$0xff]  ;;  %v7992_v19 = vld [vmem:[#allocation36_spill] sm:$0xff] }
  0x89   :  { %578 = vmatprep.subr.mxu0 %v4403_v15  ;;  %646 = vmatpush1.msra.mxu1 %v4420_v21  ;;  %v7988_v15 = vld [vmem:[#allocation32_spill] sm:$0xff]  ;;  %v7994_v21 = vld [vmem:[#allocation38_spill] sm:$0xff] }
  0x8a   :  { %579 = vmatpush1.msra.mxu0 %v4409_v17  ;;  %647 = vmatprep.subr.mxu1 %v4426_v23  ;;  %v7990_v17 = vld [vmem:[#allocation34_spill] sm:$0xff]  ;;  %v7996_v23 = vld [vmem:[#allocation40_spill] sm:$0xff] }
  0x8b   :  { %580 = vmatprep.subr.mxu0 %v4417_v20  ;;  %648 = vmatpush1.msra.mxu1 %v4432_v25  ;;  %v7993_v20 = vld [vmem:[#allocation37_spill] sm:$0xff]  ;;  %v7998_v25 = vld [vmem:[#allocation42_spill] sm:$0xff] }
  0x8c   :  { %581 = vmatpush1.msra.mxu0 %v4423_v22  ;;  %649 = vmatprep.subr.mxu1 %v4438_v27  ;;  %v7995_v22 = vld [vmem:[#allocation39_spill] sm:$0xff]  ;;  %v8000_v27 = vld [vmem:[#allocation44_spill] sm:$0xff] }
  0x8d   :  { %582 = vmatprep.subr.mxu0 %v4429_v24  ;;  %650 = vmatpush1.msra.mxu1 %v4444_v29  ;;  %v7997_v24 = vld [vmem:[#allocation41_spill] sm:$0xff]  ;;  %v8002_v29 = vld [vmem:[#allocation46_spill] sm:$0xff] }
  0x8e   :  { %583 = vmatpush1.msra.mxu0 %v4435_v26  ;;  %651 = vmatprep.subr.mxu1 %v4450_v31  ;;  %v7999_v26 = vld [vmem:[#allocation43_spill] sm:$0xff]  ;;  %v8004_v31 = vld [vmem:[#allocation48_spill] sm:$0xff] }
  0x8f   :  { %584 = vmatprep.subr.mxu0 %v4441_v28  ;;  %652 = vmatpush1.msra.mxu1 %v4456_v33  ;;  %v8001_v28 = vld [vmem:[#allocation45_spill] sm:$0xff]  ;;  %v8006_v33 = vld [vmem:[#allocation50_spill] sm:$0xff] }
  0x90   :  { %585 = vmatpush1.msra.mxu0 %v4447_v30  ;;  %653 = vmatprep.subr.mxu1 %v4462_v35  ;;  %v8003_v30 = vld [vmem:[#allocation47_spill] sm:$0xff]  ;;  %v8008_v35 = vld [vmem:[#allocation52_spill] sm:$0xff] }
  0x91   :  { %586 = vmatprep.subr.mxu0 %v4453_v32  ;;  %654 = vmatpush1.msra.mxu1 %v4468_v37  ;;  %v8005_v32 = vld [vmem:[#allocation49_spill] sm:$0xff]  ;;  %v8010_v37 = vld [vmem:[#allocation54_spill] sm:$0xff] }
  0x92   :  { %587 = vmatpush1.msra.mxu0 %v4459_v34  ;;  %655 = vmatprep.subr.mxu1 %v4474_v39  ;;  %v8007_v34 = vld [vmem:[#allocation51_spill] sm:$0xff]  ;;  %v8012_v39 = vld [vmem:[#allocation56_spill] sm:$0xff] }
  0x93   :  { %588 = vmatprep.subr.mxu0 %v4465_v36  ;;  %656 = vmatpush1.msra.mxu1 %v4480_v41  ;;  %v8009_v36 = vld [vmem:[#allocation53_spill] sm:$0xff]  ;;  %v8014_v41 = vld [vmem:[#allocation58_spill] sm:$0xff] }
  0x94   :  { %589 = vmatpush1.msra.mxu0 %v4471_v38  ;;  %657 = vmatprep.subr.mxu1 %v4486_v43  ;;  %v8011_v38 = vld [vmem:[#allocation55_spill] sm:$0xff]  ;;  %v8016_v43 = vld [vmem:[#allocation60_spill] sm:$0xff] }
  0x95   :  { %590 = vmatprep.subr.mxu0 %v4477_v40  ;;  %658 = vmatpush1.msra.mxu1 %v4492_v45  ;;  %v8013_v40 = vld [vmem:[#allocation57_spill] sm:$0xff]  ;;  %v8018_v45 = vld [vmem:[#allocation62_spill] sm:$0xff] }
  0x96   :  { %591 = vmatpush1.msra.mxu0 %v4483_v42  ;;  %659 = vmatprep.subr.mxu1 %v4498_v47  ;;  %v8015_v42 = vld [vmem:[#allocation59_spill] sm:$0xff]  ;;  %v8020_v47 = vld [vmem:[#allocation64_spill] sm:$0xff] }
  0x97   :  { %592 = vmatprep.subr.mxu0 %v4489_v44  ;;  %660 = vmatpush1.msra.mxu1 %v4504_v49  ;;  %v8017_v44 = vld [vmem:[#allocation61_spill] sm:$0xff]  ;;  %v8022_v49 = vld [vmem:[#allocation66_spill] sm:$0xff] }
  0x98   :  { %593 = vmatpush1.msra.mxu0 %v4495_v46  ;;  %661 = vmatprep.subr.mxu1 %v4510_v51  ;;  %v8019_v46 = vld [vmem:[#allocation63_spill] sm:$0xff]  ;;  %v8024_v51 = vld [vmem:[#allocation68_spill] sm:$0xff] }
  0x99   :  { %594 = vmatprep.subr.mxu0 %v4501_v48  ;;  %662 = vmatpush1.msra.mxu1 %v4516_v53  ;;  %v8021_v48 = vld [vmem:[#allocation65_spill] sm:$0xff]  ;;  %v8026_v53 = vld [vmem:[#allocation70_spill] sm:$0xff] }
  0x9a   :  { %595 = vmatpush1.msra.mxu0 %v4507_v50  ;;  %663 = vmatprep.subr.mxu1 %v7975_v2  ;;  %v8023_v50 = vld [vmem:[#allocation67_spill] sm:$0xff]  ;;  %v8029_v2 = vld [vmem:[#allocation73_spill] sm:$0xff] }
  0x9b   :  { %596 = vmatprep.subr.mxu0 %v4513_v52  ;;  %664 = vmatpush1.msra.mxu1 %v7977_v4  ;;  %v8025_v52 = vld [vmem:[#allocation69_spill] sm:$0xff]  ;;  %v8031_v4 = vld [vmem:[#allocation75_spill] sm:$0xff] }
  0x9c   :  { %597 = vmatpush1.msra.mxu0 %v7974_v1  ;;  %665 = vmatprep.subr.mxu1 %v7979_v6  ;;  %v8028_v1 = vld [vmem:[#allocation72_spill] sm:$0xff]  ;;  %v8033_v6 = vld [vmem:[#allocation77_spill] sm:$0xff] }
  0x9d   :  { %598 = vmatprep.subr.mxu0 %v7976_v3  ;;  %666 = vmatpush1.msra.mxu1 %v7981_v8  ;;  %v8030_v3 = vld [vmem:[#allocation74_spill] sm:$0xff]  ;;  %v8035_v8 = vld [vmem:[#allocation79_spill] sm:$0xff] }
  0x9e   :  { %599 = vmatpush1.msra.mxu0 %v7978_v5  ;;  %667 = vmatprep.subr.mxu1 %v7983_v10  ;;  %v8032_v5 = vld [vmem:[#allocation76_spill] sm:$0xff]  ;;  %v8037_v10 = vld [vmem:[#allocation81_spill] sm:$0xff] }
  0x9f   :  { %600 = vmatprep.subr.mxu0 %v7980_v7  ;;  %668 = vmatpush1.msra.mxu1 %v7985_v12  ;;  %v8034_v7 = vld [vmem:[#allocation78_spill] sm:$0xff]  ;;  %v362_v12 = vld [vmem:[#allocation9] sm:$0xf] }
  0xa0   :  { %601 = vmatpush2.msra.mxu0 %v7982_v9  ;;  %669 = vmatprep.subr.mxu1 %v7987_v14  ;;  %v8036_v9 = vld [vmem:[#allocation80_spill] sm:$0xff] }
  0xa1   :  { %602 = vmatprep.subr.mxu0 %v7984_v11  ;;  %670 = vmatpush1.msra.mxu1 %v7989_v16  ;;  %v8038_v11 = vld [vmem:[#allocation82_spill] sm:$0xff] }
  0xa2   :  { %603 = vmatpush2.msra.mxu0 %v7986_v13  ;;  %671 = vmatprep.subr.mxu1 %v7991_v18 }
  0xa3   :  { %604 = vmatprep.subr.mxu0 %v7988_v15  ;;  %672 = vmatpush2.msra.mxu1 %v7993_v20 }
  0xa4   :  { %605 = vmatpush2.msra.mxu0 %v7990_v17  ;;  %673 = vmatprep.subr.mxu1 %v7995_v22 }
  0xa5   :  { %606 = vmatprep.subr.mxu0 %v7992_v19  ;;  %674 = vmatpush2.msra.mxu1 %v7997_v24 }
  0xa6   :  { %607 = vmatpush2.msra.mxu0 %v7994_v21  ;;  %675 = vmatprep.subr.mxu1 %v7999_v26 }
  0xa7   :  { %608 = vmatprep.subr.mxu0 %v7996_v23  ;;  %676 = vmatpush2.msra.mxu1 %v8001_v28 }
  0xa8   :  { %609 = vmatpush2.msra.mxu0 %v7998_v25  ;;  %677 = vmatprep.subr.mxu1 %v8003_v30 }
  0xa9   :  { %610 = vmatprep.subr.mxu0 %v8000_v27  ;;  %678 = vmatpush2.msra.mxu1 %v8005_v32 }
  0xaa   :  { %611 = vmatpush2.msra.mxu0 %v8002_v29  ;;  %679 = vmatprep.subr.mxu1 %v8007_v34 }
  0xab   :  { %612 = vmatprep.subr.mxu0 %v8004_v31  ;;  %680 = vmatpush2.msra.mxu1 %v8009_v36 }
  0xac   :  { %613 = vmatpush2.msra.mxu0 %v8006_v33  ;;  %681 = vmatprep.subr.mxu1 %v8011_v38 }
  0xad   :  { %614 = vmatprep.subr.mxu0 %v8008_v35  ;;  %682 = vmatpush2.msra.mxu1 %v8013_v40  ;;  %v563_v40 = vld [vmem:[#allocation4 + $0x8] sm:$0xff] }
  0xae   :  { %615 = vmatpush2.msra.mxu0 %v8010_v37  ;;  %683 = vmatprep.subr.mxu1 %v8015_v42  ;;  %v4898_v42 = vld [vmem:[#allocation10 + $0x1c8] sm:$0xff] }
  0xaf   :  { %616 = vmatprep.subr.mxu0 %v8012_v39  ;;  %684 = vmatpush2.msra.mxu1 %v8017_v44  ;;  %v4903_v44 = vld [vmem:[#allocation10 + $0x1a8] sm:$0xff] }
  0xb0   :  { %617 = vmatpush2.msra.mxu0 %v8014_v41  ;;  %685 = vmatprep.subr.mxu1 %v8019_v46  ;;  %v4896_v41 = vld [vmem:[#allocation10 + $0x1e0] sm:$0xff]  ;;  %v4911_v46 = vld [vmem:[#allocation10 + $0x188] sm:$0xff] }
  0xb1   :  { %618 = vmatprep.subr.mxu0 %v8016_v43  ;;  %686 = vmatpush2.msra.mxu1 %v8021_v48  ;;  %v4900_v43 = vld [vmem:[#allocation10 + $0x1c0] sm:$0xff]  ;;  %v4917_v48 = vld [vmem:[#allocation10 + $0x168] sm:$0xff] }
  0xb2   :  { %619 = vmatpush2.msra.mxu0 %v8018_v45  ;;  %687 = vmatprep.subr.mxu1 %v8023_v50  ;;  %v4906_v45 = vld [vmem:[#allocation10 + $0x1a0] sm:$0xff]  ;;  %v4923_v50 = vld [vmem:[#allocation10 + $0x148] sm:$0xff] }
  0xb3   :  { %620 = vmatprep.subr.mxu0 %v8020_v47  ;;  %688 = vmatpush2.msra.mxu1 %v8025_v52  ;;  %v4914_v47 = vld [vmem:[#allocation10 + $0x180] sm:$0xff]  ;;  %v4929_v52 = vld [vmem:[#allocation10 + $0x128] sm:$0xff] }
  0xb4   :  { %621 = vmatpush2.msra.mxu0 %v8022_v49  ;;  %689 = vmatprep.subr.mxu1 %v8027_v58  ;;  %v4920_v49 = vld [vmem:[#allocation10 + $0x160] sm:$0xff]  ;;  %v4935_v58 = vld [vmem:[#allocation10 + $0x108] sm:$0xff] }
  0xb5   :  { %622 = vmatprep.subr.mxu0 %v8024_v51  ;;  %690 = vmatpush2.msra.mxu1 %v8029_v2  ;;  %v4926_v51 = vld [vmem:[#allocation10 + $0x140] sm:$0xff]  ;;  %v4941_v2 = vld [vmem:[#allocation10 + $0xe8] sm:$0xff] }
  0xb6   :  { %623 = vmatpush2.msra.mxu0 %v8026_v53  ;;  %691 = vmatprep.subr.mxu1 %v8031_v4  ;;  %v4932_v53 = vld [vmem:[#allocation10 + $0x120] sm:$0xff] }
  0xb7   :  { %624 = vmatprep.subr.mxu0 %v8028_v1  ;;  %692 = vmatpush2.msra.mxu1 %v8033_v6  ;;  %v4938_v1 = vld [vmem:[#allocation10 + $0x100] sm:$0xff]  ;;  %v4953_v6 = vld [vmem:[#allocation10 + $0xc8] sm:$0xff] }
  0xb8   :  { %625 = vmatpush2.msra.mxu0 %v8030_v3  ;;  %693 = vmatprep.subr.mxu1 %v8035_v8  ;;  %v4943_v3 = vld [vmem:[#allocation10 + $0x1f8] sm:$0xff]  ;;  %v4947_v4 = vld [vmem:[#allocation10 + $0xe0] sm:$0xff] }
  0xb9   :  { %626 = vmatprep.subr.mxu0 %v8032_v5  ;;  %694 = vmatpush2.msra.mxu1 %v8036_v9  ;;  %8039 = vst [vmem:[#allocation18_spill] sm:$0xff] %v4943_v3  ;;  %v4949_v5 = vld [vmem:[#allocation10 + $0x1f0] sm:$0xff]  ;;  %v4959_v8 = vld [vmem:[#allocation10 + $0xc0] sm:$0xff] }
  0xba   :  { %627 = vmatpush2.msra.mxu0 %v8034_v7  ;;  %695 = vmatprep.subr.mxu1 %v8038_v11  ;;  %8040 = vst [vmem:[#allocation19_spill] sm:$0xff] %v4949_v5  ;;  %v4955_v7 = vld [vmem:[#allocation10 + $0x1d8] sm:$0xff]  ;;  %v4961_v9 = vld [vmem:[#allocation10 + $0x1d0] sm:$0xff] }
  0xbb   :  { %628 = vmatprep.subr.mxu0 %v4705_v61  ;;  %696 = vmatpush2.msra.mxu1 %v4720_v55  ;;  %v4877_v61 = vld [vmem:[#allocation10 + $0x1e8] sm:$0xff]  ;;  %8041 = vst [vmem:[#allocation20_spill] sm:$0xff] %v4955_v7  ;;  %8042 = vst [vmem:[#allocation21_spill] sm:$0xff] %v4961_v9  ;;  %v4967_v11 = vld [vmem:[#allocation10 + $0x1b8] sm:$0xff] }
  0xbc   :  { %629 = vmatpush2.msra.mxu0 %v8037_v10  ;;  %697 = vmatprep.subr.mxu1 %v4726_v57  ;;  %v4965_v10 = vld [vmem:[#allocation10 + $0xa8] sm:$0xff]  ;;  %8043 = vst [vmem:[#allocation22_spill] sm:$0xff] %v4967_v11 }
  0xbd   :  { %630 = vmatprep.subr.mxu0 %v4717_v54  ;;  %698 = vmatpush2.msra.mxu1 %v4730_v59  ;;  %v7364_v54 = vlaneseq }
  0xbe   :  { %631 = vmatpush2.msra.mxu0 %v4723_v56  ;;  %699 = vmatprep.subr.mxu1 %v4734_v60 }
  0xbf   :  { %700 = vmatpush2.msra.mxu1 %v4738_v62  ;;  %743 = vmatprep.subr.mxu0 %v4877_v61  ;;  %v365_v55 = vshrl.u32 %v7364_v54, 7  ;;  %v5067_v54 = vld [vmem:[#allocation10 + $0x3a0] sm:$0xff] }
  0xc0   :  { %701 = vmatprep.subr.mxu1 %v4741_v63 }
  0xc1   :  { %702 = vmatpush2.msra.mxu1 %v4744_v0  ;;  %v366_v56 = vsub.s32 0, %v365_v55  ;;  %v370_v57 = vsub.s32 1, %v365_v55  ;;  %v378_v15 = vsub.s32 3, %v365_v55  ;;  %v374_v18 = vsub.s32 2, %v365_v55  ;;  %v4971_v55 = vld [vmem:[#allocation10 + $0xa0] sm:$0xff] }
  0xc2   :  { %814 = vmatprep.subr.mxu1 %v4943_v3  ;;  %v5159_v3 = vld [vmem:[#allocation10 + $0x2a0] sm:$0xff] }
  0xc3   :  { %v4881_v13 = vrot.slane %v362_v12, %v366_v56  ;;  %v4883_v59 = vrot.slane %v362_v12, %v370_v57  ;;  %v4887_v19 = vrot.slane %v362_v12, %v378_v15  ;;  %v4889_v21 = vrot.slane %v362_v12, %v374_v18  ;;  %v4973_v56 = vld [vmem:[#allocation10 + $0x1b0] sm:$0xff]  ;;  %v4977_v12 = vld [vmem:[#allocation10 + $0x88] sm:$0xff]  ;;  %v4979_v57 = vld [vmem:[#allocation10 + $0x198] sm:$0xff]  ;;  %8083 = vst [vmem:[#allocation62_spill] sm:$0xff] %v5159_v3 }
  0xc4   :  { %8044 = vst [vmem:[#allocation23_spill] sm:$0xff] %v4973_v56  ;;  %8045 = vst [vmem:[#allocation24_spill] sm:$0xff] %v4979_v57  ;;  %v4997_v15 = vld [vmem:[#allocation10 + $0x170] sm:$0xff]  ;;  %v5007_v18 = vld [vmem:[#allocation10 + $0x40] sm:$0xff] }
  0xc5   :  { %8048 = vst [vmem:[#allocation27_spill] sm:$0xff] %v4997_v15 }
 0x13f   :  { %v462_v60 = vpop.f32.mrf.mxu0 }
 0x140   :  { %v463_v62 = vadd.f32 %v462_v60, %v4881_v13  ;;  %v4983_v60 = vld [vmem:[#allocation10 + $0x80] sm:$0xff] }
 0x141   :  { %v464_v63 = vpop.f32.mrf.mxu0  ;;  %v533_v17 = vpop.f32.mrf.mxu1 }
 0x142   :  { %v3094_v14 = vmul.f32 -1.442695, %v463_v62  ;;  %v465_v0 = vadd.f32 %v464_v63, %v4883_v59  ;;  %v534_v23 = vadd.f32 %v533_v17, %v4889_v21  ;;  %v4985_v62 = vld [vmem:[#allocation10 + $0x190] sm:$0xff]  ;;  %v4989_v63 = vld [vmem:[#allocation10 + $0x68] sm:$0xff]  ;;  %v5003_v17 = vld [vmem:[#allocation10 + $0x158] sm:$0xff] }
 0x143   :  { %v535_v20 = vpop.f32.mrf.mxu1  ;;  %8046 = vst [vmem:[#allocation25_spill] sm:$0xff] %v4985_v62  ;;  %8049 = vst [vmem:[#allocation28_spill] sm:$0xff] %v5003_v17 }
 0x144   :  { %3635 = vpow2.f32 %v3094_v14  ;;  %v3095_v16 = vmul.f32 -1.442695, %v465_v0  ;;  %v536_v22 = vadd.f32 %v535_v20, %v4887_v19  ;;  %v4991_v14 = vld [vmem:[#allocation10 + $0x178] sm:$0xff]  ;;  %v4995_v0 = vld [vmem:[#allocation10 + $0x60] sm:$0xff]  ;;  %v5009_v20 = vld [vmem:[#allocation10 + $0x150] sm:$0xff] }
 0x145   :  { %8047 = vst [vmem:[#allocation26_spill] sm:$0xff] %v4991_v14  ;;  %8050 = vst [vmem:[#allocation29_spill] sm:$0xff] %v5009_v20 }
 0x146   :  { %3637 = vpow2.f32 %v3095_v16  ;;  %v3096_v24 = vmul.f32 -1.442695, %v536_v22  ;;  %v5001_v16 = vld [vmem:[#allocation10 + $0x48] sm:$0xff] }
 0x147   :  { %3639 = vtanh.f32 %v534_v23  ;;  %v5013_v22 = vld [vmem:[#allocation10 + $0x28] sm:$0xff]  ;;  %v5015_v23 = vld [vmem:[#allocation10 + $0x138] sm:$0xff] }
 0x148   :  { %3641 = vpow2.f32 %v3096_v24  ;;  %8051 = vst [vmem:[#allocation30_spill] sm:$0xff] %v5015_v23  ;;  %v5019_v24 = vld [vmem:[#allocation10 + $0x20] sm:$0xff] }
 0x151   :  { %v3636_v25 = vpop.eup %3635 }
 0x152   :  { %v541_v26 = vadd.f32 1.0, %v3636_v25  ;;  %v5021_v25 = vld [vmem:[#allocation10 + $0x130] sm:$0xff] }
 0x153   :  { %v3638_v27 = vpop.eup %3637  ;;  %8052 = vst [vmem:[#allocation31_spill] sm:$0xff] %v5021_v25 }
 0x154   :  { %3643 = vrcp.f32 %v541_v26  ;;  %v547_v28 = vadd.f32 1.0, %v3638_v27  ;;  %v3640_v29 = vpop.eup %3639  ;;  %v5025_v26 = vld [vmem:[#allocation10 + $0x8] sm:$0xff]  ;;  %v5027_v27 = vld [vmem:[#allocation10 + $0x118] sm:$0xff] }
 0x155   :  { %v3642_v30 = vpop.eup %3641  ;;  %8053 = vst [vmem:[#allocation32_spill] sm:$0xff] %v5027_v27 }
 0x156   :  { %3645 = vrcp.f32 %v547_v28  ;;  %v554_v33 = vadd.f32 1.0, %v3642_v30  ;;  %v5031_v28 = vld [vmem:[#allocation10] sm:$0xff]  ;;  %v5037_v30 = vld [vmem:[#allocation10 + $0x3e8] sm:$0xff] }
 0x158   :  { %3647 = vrcp.f32 %v554_v33  ;;  %v5045_v33 = vld [vmem:[#allocation10 + $0xf0] sm:$0xff] }
 0x159   :  { %8056 = vst [vmem:[#allocation35_spill] sm:$0xff] %v5045_v33 }
 0x161   :  { %v3644_v31 = vpop.eup %3643 }
 0x162   :  { %v558_v35 = vmul.f32 %v3644_v31, %v3640_v29  ;;  %v5033_v29 = vld [vmem:[#allocation10 + $0x110] sm:$0xff]  ;;  %v5039_v31 = vld [vmem:[#allocation10 + $0xf8] sm:$0xff] }
 0x163   :  { %v3646_v32 = vpop.eup %3645  ;;  %8054 = vst [vmem:[#allocation33_spill] sm:$0xff] %v5033_v29  ;;  %8055 = vst [vmem:[#allocation34_spill] sm:$0xff] %v5039_v31 }
 0x164   :  { %v557_v34 = vmul.f32 0.0, %v3646_v32  ;;  %v5043_v32 = vld [vmem:[#allocation10 + $0x3e0] sm:$0xff] }
 0x165   :  { %v3648_v37 = vpop.eup %3647 }
 0x166   :  { %v4893_v36 = vadd.f32 %v558_v35, %v557_v34  ;;  %v5049_v34 = vld [vmem:[#allocation10 + $0x3c8] sm:$0xff]  ;;  %v5051_v35 = vld [vmem:[#allocation10 + $0xd8] sm:$0xff] }
 0x167   :  { %8057 = vst [vmem:[#allocation36_spill] sm:$0xff] %v5051_v35 }
 0x168   :  { %3649 = vtanh.f32 %v4893_v36 }
 0x175   :  { %v3650_v38 = vpop.eup %3649 }
 0x176   :  { %v561_v39 = vmul.f32 %v3650_v38, %v3648_v37  ;;  %v5055_v37 = vld [vmem:[#allocation10 + $0x3c0] sm:$0xff]  ;;  %v5057_v38 = vld [vmem:[#allocation10 + $0xd0] sm:$0xff] }
 0x177   :  { %8058 = vst [vmem:[#allocation37_spill] sm:$0xff] %v5057_v38 }
 0x178   :  { %632 = vmatprep.mubr.f32.mxu0 %v561_v39  ;;  %703 = vmatprep.mubr.f32.mxu1 %v561_v39  ;;  %v5061_v39 = vld [vmem:[#allocation10 + $0x3a8] sm:$0xff] }
 0x179   :  { %633 = vmatmul.mubr.f32.vlgmr.msra.gmra.mxu0 %v563_v40  ;;  %704 = vmatmul.mubr.f32.vlgmr.msra.gmra.mxu1 %v563_v40  ;;  %v5063_v40 = vld [vmem:[#allocation10 + $0xb8] sm:$0xff] }
 0x17a   :  { %744 = vmatpush1.msra.mxu0 %v4896_v41  ;;  %815 = vmatpush1.msra.mxu1 %v4949_v5  ;;  %8059 = vst [vmem:[#allocation38_spill] sm:$0xff] %v5063_v40  ;;  %v5155_v5 = vld [vmem:[#allocation10 + $0x3b8] sm:$0xff] }
 0x17b   :  { %745 = vmatprep.subr.mxu0 %v4898_v42  ;;  %816 = vmatprep.subr.mxu1 %v4955_v7  ;;  %v5149_v7 = vld [vmem:[#allocation10 + $0x3d0] sm:$0xff]  ;;  %8082 = vst [vmem:[#allocation61_spill] sm:$0xff] %v5155_v5 }
 0x17c   :  { %746 = vmatpush1.msra.mxu0 %v4900_v43  ;;  %817 = vmatpush1.msra.mxu1 %v4961_v9  ;;  %v5147_v9 = vld [vmem:[#allocation10 + $0x2c0] sm:$0xff]  ;;  %8080 = vst [vmem:[#allocation59_spill] sm:$0xff] %v5149_v7 }
 0x17d   :  { %747 = vmatprep.subr.mxu0 %v4903_v44  ;;  %818 = vmatprep.subr.mxu1 %v4967_v11  ;;  %v5141_v11 = vld [vmem:[#allocation10 + $0x2c8] sm:$0xff]  ;;  %8079 = vst [vmem:[#allocation58_spill] sm:$0xff] %v5147_v9 }
 0x17e   :  { %748 = vmatpush1.msra.mxu0 %v4906_v45  ;;  %819 = vmatpush1.msra.mxu1 %v4973_v56  ;;  %v5139_v56 = vld [vmem:[#allocation10 + $0x3f0] sm:$0xff]  ;;  %8077 = vst [vmem:[#allocation56_spill] sm:$0xff] %v5141_v11 }
 0x17f   :  { %749 = vmatprep.subr.mxu0 %v4911_v46  ;;  %820 = vmatprep.subr.mxu1 %v4979_v57  ;;  %v5133_v57 = vld [vmem:[#allocation10 + $0x3f8] sm:$0xff]  ;;  %8076 = vst [vmem:[#allocation55_spill] sm:$0xff] %v5139_v56 }
 0x180   :  { %750 = vmatpush1.msra.mxu0 %v4914_v47  ;;  %821 = vmatpush1.msra.mxu1 %v4985_v62  ;;  %v5129_v62 = vld [vmem:[#allocation10 + $0x10] sm:$0xff]  ;;  %8074 = vst [vmem:[#allocation53_spill] sm:$0xff] %v5133_v57 }
 0x181   :  { %751 = vmatprep.subr.mxu0 %v4917_v48  ;;  %822 = vmatprep.subr.mxu1 %v4991_v14  ;;  %v5123_v14 = vld [vmem:[#allocation10 + $0x18] sm:$0xff]  ;;  %8072 = vst [vmem:[#allocation51_spill] sm:$0xff] %v5129_v62 }
 0x182   :  { %752 = vmatpush1.msra.mxu0 %v4920_v49  ;;  %823 = vmatpush1.msra.mxu1 %v4997_v15  ;;  %v5117_v15 = vld [vmem:[#allocation10 + $0x30] sm:$0xff]  ;;  %8070 = vst [vmem:[#allocation49_spill] sm:$0xff] %v5123_v14 }
 0x183   :  { %753 = vmatprep.subr.mxu0 %v4923_v50  ;;  %824 = vmatprep.subr.mxu1 %v5003_v17  ;;  %v5111_v17 = vld [vmem:[#allocation10 + $0x38] sm:$0xff]  ;;  %8068 = vst [vmem:[#allocation47_spill] sm:$0xff] %v5117_v15 }
 0x184   :  { %754 = vmatpush1.msra.mxu0 %v4926_v51  ;;  %825 = vmatpush1.msra.mxu1 %v5009_v20  ;;  %v5105_v20 = vld [vmem:[#allocation10 + $0x50] sm:$0xff]  ;;  %8067 = vst [vmem:[#allocation46_spill] sm:$0xff] %v5111_v17 }
 0x185   :  { %755 = vmatprep.subr.mxu0 %v4929_v52  ;;  %826 = vmatprep.subr.mxu1 %v5015_v23  ;;  %v5099_v23 = vld [vmem:[#allocation10 + $0x58] sm:$0xff]  ;;  %8066 = vst [vmem:[#allocation45_spill] sm:$0xff] %v5105_v20 }
 0x186   :  { %756 = vmatpush1.msra.mxu0 %v4932_v53  ;;  %827 = vmatpush1.msra.mxu1 %v5021_v25  ;;  %v5093_v25 = vld [vmem:[#allocation10 + $0x70] sm:$0xff]  ;;  %8065 = vst [vmem:[#allocation44_spill] sm:$0xff] %v5099_v23 }
 0x187   :  { %757 = vmatprep.subr.mxu0 %v4935_v58  ;;  %828 = vmatprep.subr.mxu1 %v5027_v27  ;;  %v5087_v27 = vld [vmem:[#allocation10 + $0x78] sm:$0xff]  ;;  %8064 = vst [vmem:[#allocation43_spill] sm:$0xff] %v5093_v25 }
 0x188   :  { %758 = vmatpush1.msra.mxu0 %v4938_v1  ;;  %829 = vmatpush1.msra.mxu1 %v5033_v29  ;;  %v5081_v29 = vld [vmem:[#allocation10 + $0x90] sm:$0xff]  ;;  %8063 = vst [vmem:[#allocation42_spill] sm:$0xff] %v5087_v27 }
 0x189   :  { %759 = vmatprep.subr.mxu0 %v4941_v2  ;;  %830 = vmatprep.subr.mxu1 %v5039_v31  ;;  %v5075_v31 = vld [vmem:[#allocation10 + $0x98] sm:$0xff]  ;;  %8062 = vst [vmem:[#allocation41_spill] sm:$0xff] %v5081_v29 }
 0x18a   :  { %760 = vmatpush1.msra.mxu0 %v4947_v4  ;;  %831 = vmatpush1.msra.mxu1 %v5045_v33  ;;  %v5069_v33 = vld [vmem:[#allocation10 + $0xb0] sm:$0xff]  ;;  %8061 = vst [vmem:[#allocation40_spill] sm:$0xff] %v5075_v31 }
 0x18b   :  { %761 = vmatprep.subr.mxu0 %v4953_v6  ;;  %832 = vmatprep.subr.mxu1 %v5051_v35  ;;  %8060 = vst [vmem:[#allocation39_spill] sm:$0xff] %v5069_v33  ;;  %v5073_v35 = vld [vmem:[#allocation10 + $0x388] sm:$0xff] }
 0x18c   :  { %762 = vmatpush1.msra.mxu0 %v4959_v8  ;;  %833 = vmatpush1.msra.mxu1 %v5057_v38  ;;  %v5079_v38 = vld [vmem:[#allocation10 + $0x380] sm:$0xff] }
 0x18d   :  { %763 = vmatprep.subr.mxu0 %v4965_v10  ;;  %834 = vmatprep.subr.mxu1 %v5063_v40  ;;  %v5085_v40 = vld [vmem:[#allocation10 + $0x368] sm:$0xff] }
 0x18e   :  { %764 = vmatpush1.msra.mxu0 %v4971_v55  ;;  %835 = vmatpush1.msra.mxu1 %v5069_v33  ;;  %v5091_v33 = vld [vmem:[#allocation10 + $0x360] sm:$0xff] }
 0x18f   :  { %765 = vmatprep.subr.mxu0 %v4977_v12  ;;  %836 = vmatprep.subr.mxu1 %v5075_v31  ;;  %v5097_v31 = vld [vmem:[#allocation10 + $0x348] sm:$0xff] }
 0x190   :  { %766 = vmatpush1.msra.mxu0 %v4983_v60  ;;  %837 = vmatpush1.msra.mxu1 %v5081_v29  ;;  %v5103_v29 = vld [vmem:[#allocation10 + $0x340] sm:$0xff] }
 0x191   :  { %767 = vmatprep.subr.mxu0 %v4989_v63  ;;  %838 = vmatprep.subr.mxu1 %v5087_v27  ;;  %v5109_v27 = vld [vmem:[#allocation10 + $0x328] sm:$0xff] }
 0x192   :  { %768 = vmatpush1.msra.mxu0 %v4995_v0  ;;  %839 = vmatpush1.msra.mxu1 %v5093_v25  ;;  %v5115_v25 = vld [vmem:[#allocation10 + $0x320] sm:$0xff] }
 0x193   :  { %769 = vmatprep.subr.mxu0 %v5001_v16  ;;  %840 = vmatprep.subr.mxu1 %v5099_v23  ;;  %v5121_v23 = vld [vmem:[#allocation10 + $0x308] sm:$0xff] }
 0x194   :  { %770 = vmatpush1.msra.mxu0 %v5007_v18  ;;  %841 = vmatpush1.msra.mxu1 %v5105_v20  ;;  %8069 = vst [vmem:[#allocation48_spill] sm:$0xff] %v5121_v23  ;;  %v5125_v20 = vld [vmem:[#allocation10 + $0x300] sm:$0xff] }
 0x195   :  { %771 = vmatprep.subr.mxu0 %v5013_v22  ;;  %842 = vmatprep.subr.mxu1 %v5111_v17  ;;  %8071 = vst [vmem:[#allocation50_spill] sm:$0xff] %v5125_v20  ;;  %v5131_v17 = vld [vmem:[#allocation10 + $0x2e8] sm:$0xff] }
 0x196   :  { %772 = vmatpush1.msra.mxu0 %v5019_v24  ;;  %843 = vmatpush1.msra.mxu1 %v5117_v15  ;;  %8073 = vst [vmem:[#allocation52_spill] sm:$0xff] %v5131_v17  ;;  %v5137_v15 = vld [vmem:[#allocation10 + $0x2e0] sm:$0xff] }
 0x197   :  { %773 = vmatprep.subr.mxu0 %v5025_v26  ;;  %844 = vmatprep.subr.mxu1 %v5123_v14  ;;  %8075 = vst [vmem:[#allocation54_spill] sm:$0xff] %v5137_v15  ;;  %v5145_v14 = vld [vmem:[#allocation10 + $0x3d8] sm:$0xff] }
 0x198   :  { %774 = vmatpush1.msra.mxu0 %v5031_v28  ;;  %845 = vmatpush1.msra.mxu1 %v5129_v62  ;;  %8078 = vst [vmem:[#allocation57_spill] sm:$0xff] %v5145_v14  ;;  %v5153_v62 = vld [vmem:[#allocation10 + $0x2a8] sm:$0xff] }
 0x199   :  { %775 = vmatprep.subr.mxu0 %v5037_v30  ;;  %846 = vmatprep.subr.mxu1 %v5133_v57  ;;  %8081 = vst [vmem:[#allocation60_spill] sm:$0xff] %v5153_v62  ;;  %v5161_v57 = vld [vmem:[#allocation10 + $0x3b0] sm:$0xff] }
 0x19a   :  { %776 = vmatpush2.msra.mxu0 %v5043_v32  ;;  %847 = vmatpush2.msra.mxu1 %v5139_v56  ;;  %8084 = vst [vmem:[#allocation63_spill] sm:$0xff] %v5161_v57  ;;  %v5171_v56 = vld [vmem:[#allocation10 + $0x280] sm:$0xff] }
 0x19b   :  { %777 = vmatprep.subr.mxu0 %v5049_v34  ;;  %848 = vmatprep.subr.mxu1 %v5145_v14  ;;  %8087 = vst [vmem:[#allocation66_spill] sm:$0xff] %v5171_v56  ;;  %v5177_v14 = vld [vmem:[#allocation10 + $0x268] sm:$0xff] }
 0x19c   :  { %778 = vmatpush2.msra.mxu0 %v5055_v37  ;;  %849 = vmatpush2.msra.mxu1 %v5149_v7  ;;  %8089 = vst [vmem:[#allocation68_spill] sm:$0xff] %v5177_v14  ;;  %v5183_v7 = vld [vmem:[#allocation10 + $0x260] sm:$0xff] }
 0x19d   :  { %779 = vmatprep.subr.mxu0 %v5061_v39  ;;  %850 = vmatprep.subr.mxu1 %v5155_v5  ;;  %8091 = vst [vmem:[#allocation70_spill] sm:$0xff] %v5183_v7  ;;  %v5189_v5 = vld [vmem:[#allocation10 + $0x248] sm:$0xff] }
 0x19e   :  { %780 = vmatpush2.msra.mxu0 %v5067_v54  ;;  %851 = vmatpush2.msra.mxu1 %v5161_v57  ;;  %8093 = vst [vmem:[#allocation72_spill] sm:$0xff] %v5189_v5  ;;  %v5195_v57 = vld [vmem:[#allocation10 + $0x240] sm:$0xff] }
 0x19f   :  { %781 = vmatprep.subr.mxu0 %v5073_v35  ;;  %8095 = vst [vmem:[#allocation74_spill] sm:$0xff] %v5195_v57 }
 0x1a0   :  { %782 = vmatpush2.msra.mxu0 %v5079_v38 }
 0x1a1   :  { %783 = vmatprep.subr.mxu0 %v5085_v40 }
 0x1a2   :  { %784 = vmatpush2.msra.mxu0 %v5091_v33 }
 0x1a3   :  { %785 = vmatprep.subr.mxu0 %v5097_v31 }
 0x1a4   :  { %786 = vmatpush2.msra.mxu0 %v5103_v29 }
 0x1a5   :  { %787 = vmatprep.subr.mxu0 %v5109_v27 }
 0x1a6   :  { %788 = vmatpush2.msra.mxu0 %v5115_v25 }
 0x1a7   :  { %789 = vmatprep.subr.mxu0 %v5121_v23 }
 0x1a8   :  { %790 = vmatpush2.msra.mxu0 %v5125_v20 }
 0x1a9   :  { %791 = vmatprep.subr.mxu0 %v5131_v17  ;;  %v5165_v17 = vld [vmem:[#allocation10 + $0x288] sm:$0xff] }
 0x1aa   :  { %792 = vmatpush2.msra.mxu0 %v5137_v15  ;;  %8085 = vst [vmem:[#allocation64_spill] sm:$0xff] %v5165_v17  ;;  %v5167_v15 = vld [vmem:[#allocation10 + $0x398] sm:$0xff] }
 0x1ab   :  { %793 = vmatprep.subr.mxu0 %v5141_v11  ;;  %8086 = vst [vmem:[#allocation65_spill] sm:$0xff] %v5167_v15  ;;  %v5173_v11 = vld [vmem:[#allocation10 + $0x390] sm:$0xff]  ;;  %852 = vmatprep.subr.mxu1 %v5167_v15  ;;  %v5201_v15 = vld [vmem:[#allocation10 + $0x228] sm:$0xff] }
 0x1ac   :  { %794 = vmatpush2.msra.mxu0 %v5147_v9  ;;  %8088 = vst [vmem:[#allocation67_spill] sm:$0xff] %v5173_v11  ;;  %v5179_v9 = vld [vmem:[#allocation10 + $0x378] sm:$0xff]  ;;  %853 = vmatpush2.msra.mxu1 %v5173_v11  ;;  %8097 = vst [vmem:[#allocation76_spill] sm:$0xff] %v5201_v15  ;;  %v5207_v11 = vld [vmem:[#allocation10 + $0x220] sm:$0xff] }
 0x1ad   :  { %795 = vmatprep.subr.mxu0 %v5153_v62  ;;  %8090 = vst [vmem:[#allocation69_spill] sm:$0xff] %v5179_v9  ;;  %v5185_v62 = vld [vmem:[#allocation10 + $0x370] sm:$0xff]  ;;  %854 = vmatprep.subr.mxu1 %v5179_v9  ;;  %8099 = vst [vmem:[#allocation78_spill] sm:$0xff] %v5207_v11  ;;  %v5213_v9 = vld [vmem:[#allocation10 + $0x208] sm:$0xff] }
 0x1ae   :  { %796 = vmatpush2.msra.mxu0 %v5159_v3  ;;  %8092 = vst [vmem:[#allocation71_spill] sm:$0xff] %v5185_v62  ;;  %v5191_v3 = vld [vmem:[#allocation10 + $0x358] sm:$0xff]  ;;  %855 = vmatpush2.msra.mxu1 %v5185_v62  ;;  %8101 = vst [vmem:[#allocation80_spill] sm:$0xff] %v5213_v9  ;;  %v5219_v62 = vld [vmem:[#allocation10 + $0x200] sm:$0xff] }
 0x1af   :  { %797 = vmatprep.subr.mxu0 %v5165_v17  ;;  %8094 = vst [vmem:[#allocation73_spill] sm:$0xff] %v5191_v3  ;;  %v5197_v17 = vld [vmem:[#allocation10 + $0x350] sm:$0xff]  ;;  %856 = vmatprep.subr.mxu1 %v5191_v3  ;;  %8103 = vst [vmem:[#allocation82_spill] sm:$0xff] %v5219_v62 }
 0x1b0   :  { %798 = vmatpush2.msra.mxu0 %v5171_v56  ;;  %8096 = vst [vmem:[#allocation75_spill] sm:$0xff] %v5197_v17  ;;  %v5203_v56 = vld [vmem:[#allocation10 + $0x338] sm:$0xff]  ;;  %857 = vmatpush2.msra.mxu1 %v5197_v17  ;;  %v5225_v3 = vld [vmem:[#allocation10 + $0x310] sm:$0xff] }
 0x1b1   :  { %799 = vmatprep.subr.mxu0 %v5177_v14  ;;  %8098 = vst [vmem:[#allocation77_spill] sm:$0xff] %v5203_v56  ;;  %v5209_v14 = vld [vmem:[#allocation10 + $0x330] sm:$0xff]  ;;  %858 = vmatprep.subr.mxu1 %v5203_v56  ;;  %8104 = vst [vmem:[#allocation83_spill] sm:$0xff] %v5225_v3  ;;  %v5229_v17 = vld [vmem:[#allocation10 + $0x2f8] sm:$0xff] }
 0x1b2   :  { %800 = vmatpush2.msra.mxu0 %v5183_v7  ;;  %8100 = vst [vmem:[#allocation79_spill] sm:$0xff] %v5209_v14  ;;  %v5215_v7 = vld [vmem:[#allocation10 + $0x318] sm:$0xff]  ;;  %859 = vmatpush2.msra.mxu1 %v5209_v14  ;;  %8105 = vst [vmem:[#allocation84_spill] sm:$0xff] %v5229_v17  ;;  %v5232_v56 = vld [vmem:[#allocation10 + $0x2f0] sm:$0xff]  ;;  %v8109_v14 = vmov 0.0  }
 0x1b3   :  { %801 = vmatprep.subr.mxu0 %v5189_v5  ;;  %8102 = vst [vmem:[#allocation81_spill] sm:$0xff] %v5215_v7  ;;  %860 = vmatprep.subr.mxu1 %v5215_v7  ;;  %8106 = vst [vmem:[#allocation85_spill] sm:$0xff] %v5232_v56  ;;  %v5240_v7 = vld [vmem:[#allocation10 + $0x2b8] sm:$0xff] }
 0x1b4   :  { %802 = vmatpush2.msra.mxu0 %v5195_v57  ;;  %861 = vmatpush2.msra.mxu1 %v5225_v3  ;;  %8110 = vst [vmem:[#allocation88_spill] sm:$0xff] %v5240_v7  ;;  %v5246_v3 = vld [vmem:[#allocation10 + $0x298] sm:$0xff] }
 0x1b5   :  { %803 = vmatprep.subr.mxu0 %v5201_v15  ;;  %862 = vmatprep.subr.mxu1 %v5229_v17  ;;  %v5234_v15 = vld [vmem:[#allocation10 + $0x2d8] sm:$0xff]  ;;  %8112 = vst [vmem:[#allocation90_spill] sm:$0xff] %v5246_v3  ;;  %v5249_v17 = vld [vmem:[#allocation10 + $0x290] sm:$0xff] }
 0x1b6   :  { %804 = vmatpush2.msra.mxu0 %v5207_v11  ;;  %8107 = vst [vmem:[#allocation86_spill] sm:$0xff] %v5234_v15  ;;  %v5236_v11 = vld [vmem:[#allocation10 + $0x2d0] sm:$0xff]  ;;  %863 = vmatpush2.msra.mxu1 %v5232_v56  ;;  %8113 = vst [vmem:[#allocation91_spill] sm:$0xff] %v5249_v17 }
 0x1b7   :  { %805 = vmatprep.subr.mxu0 %v5213_v9  ;;  %8108 = vst [vmem:[#allocation87_spill] sm:$0xff] %v5236_v11  ;;  %864 = vmatprep.subr.mxu1 %v5234_v15  ;;  %v5252_v9 = vld [vmem:[#allocation10 + $0x278] sm:$0xff]  ;;  %v5255_v56 = vld [vmem:[#allocation10 + $0x270] sm:$0xff] }
 0x1b8   :  { %806 = vmatpush2.msra.mxu0 %v5219_v62  ;;  %v5243_v62 = vld [vmem:[#allocation10 + $0x2b0] sm:$0xff]  ;;  %865 = vmatpush2.msra.mxu1 %v5236_v11  ;;  %8114 = vst [vmem:[#allocation92_spill] sm:$0xff] %v5252_v9  ;;  %8115 = vst [vmem:[#allocation93_spill] sm:$0xff] %v5255_v56  ;;  %v5258_v15 = vld [vmem:[#allocation10 + $0x258] sm:$0xff] }
 0x1b9   :  { %3307 = vmatprep.subr.mxu0 %v8109_v14  ;;  %8111 = vst [vmem:[#allocation89_spill] sm:$0xff] %v5243_v62  ;;  %866 = vmatprep.subr.mxu1 %v5240_v7  ;;  %8116 = vst [vmem:[#allocation94_spill] sm:$0xff] %v5258_v15  ;;  %v5261_v11 = vld [vmem:[#allocation10 + $0x250] sm:$0xff]  ;;  %v5264_v7 = vld [vmem:[#allocation10 + $0x238] sm:$0xff] }
 0x1ba   :  { %867 = vmatpush2.msra.mxu1 %v5243_v62  ;;  %8117 = vst [vmem:[#allocation95_spill] sm:$0xff] %v5261_v11  ;;  %8118 = vst [vmem:[#allocation96_spill] sm:$0xff] %v5264_v7  ;;  %v5267_v62 = vld [vmem:[#allocation10 + $0x230] sm:$0xff] }
 0x1bb   :  { %868 = vmatprep.subr.mxu1 %v5246_v3  ;;  %8119 = vst [vmem:[#allocation97_spill] sm:$0xff] %v5267_v62  ;;  %v5270_v3 = vld [vmem:[#allocation10 + $0x218] sm:$0xff] }
 0x1bc   :  { %869 = vmatpush2.msra.mxu1 %v5249_v17  ;;  %8120 = vst [vmem:[#allocation98_spill] sm:$0xff] %v5270_v3  ;;  %v5273_v17 = vld [vmem:[#allocation10 + $0x210] sm:$0xff] }
 0x1bd   :  { %870 = vmatprep.subr.mxu1 %v5252_v9  ;;  %8121 = vst [vmem:[#allocation99_spill] sm:$0xff] %v5273_v17 }
 0x1be   :  { %871 = vmatpush2.msra.mxu1 %v5255_v56 }
 0x1bf   :  { %872 = vmatprep.subr.mxu1 %v5258_v15 }
 0x1c0   :  { %873 = vmatpush2.msra.mxu1 %v5261_v11 }
 0x1c1   :  { %874 = vmatprep.subr.mxu1 %v5264_v7 }
 0x1c2   :  { %875 = vmatpush2.msra.mxu1 %v5267_v62 }
 0x1c3   :  { %876 = vmatprep.subr.mxu1 %v5270_v3 }
 0x1c4   :  { %877 = vmatpush2.msra.mxu1 %v5273_v17 }
 0x1c5   :  { %1004 = vmatprep.subr.mxu1 %v4877_v61 }
 0x239   :  { %v634_v56 = vpop.f32.mrf.mxu0  ;;  %v705_v7 = vpop.f32.mrf.mxu1 }
 0x23a   :  { %v635_v15 = vadd.f32 %v634_v56, %v4881_v13  ;;  %v706_v3 = vadd.f32 %v705_v7, %v4889_v21  ;;  %v8122_v21 = vlaneseq }
 0x23b   :  { %v636_v9 = vpop.f32.mrf.mxu0  ;;  %v707_v5 = vpop.f32.mrf.mxu1 }
 0x23c   :  { %v3097_v14 = vmul.f32 -1.442695, %v635_v15  ;;  %v637_v11 = vadd.f32 %v636_v9, %v4883_v59  ;;  %v708_v62 = vadd.f32 %v707_v5, %v4887_v19 }
 0x23e   :  { %3651 = vpow2.f32 %v3097_v14  ;;  %v3098_v57 = vmul.f32 -1.442695, %v637_v11  ;;  %v3099_v20 = vmul.f32 -1.442695, %v708_v62 }
 0x240   :  { %3653 = vpow2.f32 %v3098_v57 }
 0x241   :  { %3655 = vtanh.f32 %v706_v3  ;;  %v5288_v3 = vand.u32 127, %v8122_v21 }
 0x242   :  { %3657 = vpow2.f32 %v3099_v20  ;;  %v5391_v20 = vld [vmem:[#allocation12 + $0x30] sm:$0xff] }
 0x243   :  { %vm736_vm0 = vcmp.eq.s32.totalorder %v5288_v3, 1 }
 0x24b   :  { %v3652_v17 = vpop.eup %3651 }
 0x24c   :  { %v713_v23 = vadd.f32 1.0, %v3652_v17  ;;  %v7487_v17 = vmov 1.0  }
 0x24d   :  { %v3654_v61 = vpop.eup %3653 }
 0x24e   :  { %3659 = vrcp.f32 %v713_v23  ;;  %v719_v13 = vadd.f32 1.0, %v3654_v61  ;;  %v3656_v56 = vpop.eup %3655  ;;  %v5401_v23 = vld [vmem:[#allocation12 + $0x20] sm:$0xff]  ;;  %v5405_v61 = vld [vmem:[#allocation12 + $0x18] sm:$0xff] }
 0x24f   :  { %v3658_v59 = vpop.eup %3657 }
 0x250   :  { %3661 = vrcp.f32 %v719_v13  ;;  %v726_v14 = vadd.f32 1.0, %v3658_v59  ;;  %v5409_v13 = vld [vmem:[#allocation12 + $0x10] sm:$0xff]  ;;  %v5417_v59 = vld [vmem:[#allocation12] sm:$0xff] }
 0x252   :  { %3663 = vrcp.f32 %v726_v14 }
 0x25b   :  { %v3660_v9 = vpop.eup %3659 }
 0x25c   :  { %v730_v15 = vmul.f32 %v3660_v9, %v3656_v56  ;;  %v5413_v56 = vld [vmem:[#allocation12 + $0x8] sm:$0xff] }
 0x25d   :  { %v3662_v11 = vpop.eup %3661  ;;  %v8142_v9 = vld [vmem:[#allocation18_spill] sm:$0xff] }
 0x25e   :  { %v729_v57 = vmul.f32 %v3662_v11, %v4893_v36  ;;  %v8123_v36 = vld [vmem:[#allocation48_spill] sm:$0xff] }
 0x25f   :  { %v3664_v5 = vpop.eup %3663 }
 0x260   :  { %v5284_v19 = vadd.f32 %v730_v15, %v729_v57 }
 0x262   :  { %3665 = vtanh.f32 %v5284_v19 }
 0x26f   :  { %v3666_v7 = vpop.eup %3665 }
 0x270   :  { %v733_v62 = vmul.f32 %v3666_v7, %v3664_v5 }
 0x272   :  { %807 = vmatprep.mubr.f32.mxu0 %v733_v62  ;;  %878 = vmatprep.mubr.f32.mxu1 %v733_v62 }
 0x273   :  { %3136 = vmatmul.mubr.msk.f32.vlgmr.msra.gmra.mxu0 %vm736_vm0, %v7487_v17  ;;  %3137 = vmatmul.mubr.msk.f32.vlgmr.msra.gmra.mxu1 %vm736_vm0, %v7487_v17 }
 0x274   :  { %1005 = vmatpush1.msra.mxu1 %v4896_v41  ;;  %v8124_v41 = vld [vmem:[#allocation50_spill] sm:$0xff] }
 0x275   :  { %1006 = vmatprep.subr.mxu1 %v4898_v42  ;;  %v8125_v42 = vld [vmem:[#allocation52_spill] sm:$0xff] }
 0x276   :  { %1007 = vmatpush1.msra.mxu1 %v4900_v43  ;;  %v8126_v43 = vld [vmem:[#allocation54_spill] sm:$0xff] }
 0x277   :  { %1008 = vmatprep.subr.mxu1 %v4903_v44  ;;  %v8127_v44 = vld [vmem:[#allocation56_spill] sm:$0xff] }
 0x278   :  { %1009 = vmatpush1.msra.mxu1 %v4906_v45  ;;  %v8128_v45 = vld [vmem:[#allocation58_spill] sm:$0xff] }
 0x279   :  { %1010 = vmatprep.subr.mxu1 %v4911_v46  ;;  %v8129_v46 = vld [vmem:[#allocation60_spill] sm:$0xff] }
 0x27a   :  { %1011 = vmatpush1.msra.mxu1 %v4914_v47  ;;  %v8130_v47 = vld [vmem:[#allocation62_spill] sm:$0xff] }
 0x27b   :  { %1012 = vmatprep.subr.mxu1 %v4917_v48  ;;  %v8131_v48 = vld [vmem:[#allocation64_spill] sm:$0xff] }
 0x27c   :  { %1013 = vmatpush1.msra.mxu1 %v4920_v49  ;;  %v8132_v49 = vld [vmem:[#allocation66_spill] sm:$0xff] }
 0x27d   :  { %1014 = vmatprep.subr.mxu1 %v4923_v50  ;;  %v8133_v50 = vld [vmem:[#allocation68_spill] sm:$0xff] }
 0x27e   :  { %1015 = vmatpush1.msra.mxu1 %v4926_v51  ;;  %v8134_v51 = vld [vmem:[#allocation70_spill] sm:$0xff] }
 0x27f   :  { %1016 = vmatprep.subr.mxu1 %v4929_v52  ;;  %v8135_v52 = vld [vmem:[#allocation72_spill] sm:$0xff] }
 0x280   :  { %1017 = vmatpush1.msra.mxu1 %v4932_v53  ;;  %v8136_v53 = vld [vmem:[#allocation74_spill] sm:$0xff] }
 0x281   :  { %1018 = vmatprep.subr.mxu1 %v4935_v58  ;;  %v8137_v58 = vld [vmem:[#allocation76_spill] sm:$0xff] }
 0x282   :  { %1019 = vmatpush1.msra.mxu1 %v4938_v1  ;;  %v8138_v1 = vld [vmem:[#allocation78_spill] sm:$0xff] }
 0x283   :  { %1020 = vmatprep.subr.mxu1 %v4941_v2  ;;  %v8139_v2 = vld [vmem:[#allocation80_spill] sm:$0xff] }
 0x284   :  { %1021 = vmatpush1.msra.mxu1 %v4947_v4  ;;  %v8140_v4 = vld [vmem:[#allocation82_spill] sm:$0xff] }
 0x285   :  { %1022 = vmatprep.subr.mxu1 %v4953_v6  ;;  %v8141_v6 = vmov 0.0  }
 0x286   :  { %1023 = vmatpush1.msra.mxu1 %v4959_v8  ;;  %v5357_v8 = vld [vmem:[#allocation12 + $0x78] sm:$0xff]  ;;  %3339 = vmatprep.mubr.msk.f32.mxu0 %vm4311_vm1, %v8141_v6 }
 0x287   :  { %1024 = vmatprep.subr.mxu1 %v4965_v10  ;;  %3308 = vmatpush3.msra.mxu0 %v5357_v8  ;;  %v5361_v10 = vld [vmem:[#allocation12 + $0x70] sm:$0xff] }
 0x288   :  { %1025 = vmatpush1.msra.mxu1 %v4971_v55  ;;  %3309 = vmatprep.subr.mxu0 %v8141_v6  ;;  %v5365_v55 = vld [vmem:[#allocation12 + $0x68] sm:$0xff] }
 0x289   :  { %1026 = vmatprep.subr.mxu1 %v4977_v12  ;;  %3310 = vmatpush3.msra.mxu0 %v5361_v10  ;;  %v5369_v12 = vld [vmem:[#allocation12 + $0x60] sm:$0xff] }
 0x28a   :  { %1027 = vmatpush1.msra.mxu1 %v4983_v60  ;;  %3311 = vmatprep.subr.mxu0 %v8141_v6  ;;  %v5373_v60 = vld [vmem:[#allocation12 + $0x58] sm:$0xff] }
 0x28b   :  { %1028 = vmatprep.subr.mxu1 %v4989_v63  ;;  %3312 = vmatpush3.msra.mxu0 %v5365_v55  ;;  %v5377_v63 = vld [vmem:[#allocation12 + $0x50] sm:$0xff] }
 0x28c   :  { %1029 = vmatpush1.msra.mxu1 %v4995_v0  ;;  %3313 = vmatprep.subr.mxu0 %v8141_v6  ;;  %v5381_v0 = vld [vmem:[#allocation12 + $0x48] sm:$0xff] }
 0x28d   :  { %1030 = vmatprep.subr.mxu1 %v5001_v16  ;;  %3314 = vmatpush3.msra.mxu0 %v5369_v12  ;;  %v5385_v16 = vld [vmem:[#allocation12 + $0x40] sm:$0xff] }
 0x28e   :  { %1031 = vmatpush1.msra.mxu1 %v5007_v18  ;;  %3315 = vmatprep.subr.mxu0 %v8141_v6  ;;  %v5389_v18 = vld [vmem:[#allocation12 + $0x38] sm:$0xff] }
 0x28f   :  { %1032 = vmatprep.subr.mxu1 %v5013_v22  ;;  %3316 = vmatpush3.msra.mxu0 %v5373_v60  ;;  %v5397_v22 = vld [vmem:[#allocation12 + $0x28] sm:$0xff] }
 0x290   :  { %1033 = vmatpush1.msra.mxu1 %v5019_v24  ;;  %3317 = vmatprep.subr.mxu0 %v8141_v6 }
 0x291   :  { %1034 = vmatprep.subr.mxu1 %v5025_v26  ;;  %3318 = vmatpush3.msra.mxu0 %v5377_v63 }
 0x292   :  { %1035 = vmatpush1.msra.mxu1 %v5031_v28  ;;  %3319 = vmatprep.subr.mxu0 %v8141_v6 }
 0x293   :  { %1036 = vmatprep.subr.mxu1 %v5037_v30  ;;  %3320 = vmatpush3.msra.mxu0 %v5381_v0 }
 0x294   :  { %1037 = vmatpush2.msra.mxu1 %v5043_v32  ;;  %3321 = vmatprep.subr.mxu0 %v8141_v6 }
 0x295   :  { %1038 = vmatprep.subr.mxu1 %v5049_v34  ;;  %3322 = vmatpush3.msra.mxu0 %v5385_v16 }
 0x296   :  { %1039 = vmatpush2.msra.mxu1 %v5055_v37  ;;  %3323 = vmatprep.subr.mxu0 %v8141_v6 }
 0x297   :  { %1040 = vmatprep.subr.mxu1 %v5061_v39  ;;  %3324 = vmatpush3.msra.mxu0 %v5389_v18 }
 0x298   :  { %1041 = vmatpush2.msra.mxu1 %v5067_v54  ;;  %3325 = vmatprep.subr.mxu0 %v8141_v6 }
 0x299   :  { %1042 = vmatprep.subr.mxu1 %v5073_v35  ;;  %3326 = vmatpush3.msra.mxu0 %v5391_v20 }
 0x29a   :  { %1043 = vmatpush2.msra.mxu1 %v5079_v38  ;;  %3327 = vmatprep.subr.mxu0 %v8141_v6 }
 0x29b   :  { %1044 = vmatprep.subr.mxu1 %v5085_v40  ;;  %3328 = vmatpush3.msra.mxu0 %v5397_v22 }
 0x29c   :  { %1045 = vmatpush2.msra.mxu1 %v5091_v33  ;;  %3329 = vmatprep.subr.mxu0 %v8141_v6 }
 0x29d   :  { %1046 = vmatprep.subr.mxu1 %v5097_v31  ;;  %3330 = vmatpush3.msra.mxu0 %v5401_v23 }
 0x29e   :  { %1047 = vmatpush2.msra.mxu1 %v5103_v29  ;;  %3331 = vmatprep.subr.mxu0 %v8141_v6 }
 0x29f   :  { %1048 = vmatprep.subr.mxu1 %v5109_v27  ;;  %3332 = vmatpush3.msra.mxu0 %v5405_v61 }
 0x2a0   :  { %1049 = vmatpush2.msra.mxu1 %v5115_v25  ;;  %3333 = vmatprep.subr.mxu0 %v8141_v6 }
 0x2a1   :  { %1050 = vmatprep.subr.mxu1 %v8123_v36  ;;  %3334 = vmatpush3.msra.mxu0 %v5409_v13 }
 0x2a2   :  { %1051 = vmatpush2.msra.mxu1 %v8124_v41  ;;  %3335 = vmatprep.subr.mxu0 %v8141_v6 }
 0x2a3   :  { %1052 = vmatprep.subr.mxu1 %v8125_v42  ;;  %3336 = vmatpush3.msra.mxu0 %v5413_v56 }
 0x2a4   :  { %1053 = vmatpush2.msra.mxu1 %v8126_v43  ;;  %3337 = vmatprep.subr.mxu0 %v8141_v6 }
 0x2a5   :  { %1054 = vmatprep.subr.mxu1 %v8127_v44  ;;  %3338 = vmatpush3.msra.mxu0 %v5417_v59 }
 0x2a6   :  { %1055 = vmatpush2.msra.mxu1 %v8128_v45  ;;  %1075 = vmatprep.subr.mxu0 %v8142_v9 }
 0x2a7   :  { %1056 = vmatprep.subr.mxu1 %v8129_v46 }
 0x2a8   :  { %1057 = vmatpush2.msra.mxu1 %v8130_v47 }
 0x2a9   :  { %1058 = vmatprep.subr.mxu1 %v8131_v48 }
 0x2aa   :  { %1059 = vmatpush2.msra.mxu1 %v8132_v49 }
 0x2ab   :  { %1060 = vmatprep.subr.mxu1 %v8133_v50 }
 0x2ac   :  { %1061 = vmatpush2.msra.mxu1 %v8134_v51 }
 0x2ad   :  { %1062 = vmatprep.subr.mxu1 %v8135_v52 }
 0x2ae   :  { %1063 = vmatpush2.msra.mxu1 %v8136_v53 }
 0x2af   :  { %1064 = vmatprep.subr.mxu1 %v8137_v58 }
 0x2b0   :  { %1065 = vmatpush2.msra.mxu1 %v8138_v1 }
 0x2b1   :  { %1066 = vmatprep.subr.mxu1 %v8139_v2 }
 0x2b2   :  { %1067 = vmatpush2.msra.mxu1 %v8140_v4 }
 0x2b3   :  { %3342 = vmatprep.subr.mxu1 %v8141_v6 }
 0x333   :  { %v809_v11 = vpop.f32.mrf.mxu0  ;;  %v880_v21 = vpop.f32.mrf.mxu1 }
 0x334   :  { %v3101_v14 = vmul.f32 -1.442695, %v809_v11 }
 0x335   :  { %v811_v57 = vpop.f32.mrf.mxu0  ;;  %v882_v5 = vpop.f32.mrf.mxu1 }
 0x336   :  { %3667 = vpow2.f32 %v3101_v14  ;;  %v3102_v15 = vmul.f32 -1.442695, %v811_v57  ;;  %v3103_v7 = vmul.f32 -1.442695, %v882_v5 }
 0x338   :  { %3669 = vpow2.f32 %v3102_v15 }
 0x339   :  { %3671 = vtanh.f32 %v880_v21 }
 0x33a   :  { %3673 = vpow2.f32 %v3103_v7  ;;  %v8150_v7 = vld [vmem:[#allocation26_spill] sm:$0xff] }
 0x343   :  { %v3668_v62 = vpop.eup %3667 }
 0x344   :  { %v888_v17 = vadd.f32 1.0, %v3668_v62 }
 0x345   :  { %v3670_v4 = vpop.eup %3669 }
 0x346   :  { %3675 = vrcp.f32 %v888_v17  ;;  %v894_v2 = vadd.f32 1.0, %v3670_v4  ;;  %v3672_v1 = vpop.eup %3671  ;;  %v8143_v17 = vld [vmem:[#allocation19_spill] sm:$0xff]  ;;  %v8145_v4 = vld [vmem:[#allocation21_spill] sm:$0xff] }
 0x347   :  { %v3674_v58 = vpop.eup %3673 }
 0x348   :  { %3677 = vrcp.f32 %v894_v2  ;;  %v901_v11 = vadd.f32 1.0, %v3674_v58  ;;  %v8144_v2 = vld [vmem:[#allocation20_spill] sm:$0xff]  ;;  %v8146_v58 = vld [vmem:[#allocation22_spill] sm:$0xff] }
 0x34a   :  { %3679 = vrcp.f32 %v901_v11  ;;  %v8152_v11 = vld [vmem:[#allocation28_spill] sm:$0xff] }
 0x353   :  { %v3676_v9 = vpop.eup %3675 }
 0x354   :  { %v905_v57 = vmul.f32 %v3676_v9, %v3672_v1  ;;  %v8149_v1 = vld [vmem:[#allocation25_spill] sm:$0xff]  ;;  %v8151_v9 = vld [vmem:[#allocation27_spill] sm:$0xff] }
 0x355   :  { %v3678_v53 = vpop.eup %3677 }
 0x356   :  { %v904_v14 = vmul.f32 %v3678_v53, %v5284_v19  ;;  %v8147_v19 = vld [vmem:[#allocation23_spill] sm:$0xff]  ;;  %v8148_v53 = vld [vmem:[#allocation24_spill] sm:$0xff] }
 0x357   :  { %v3680_v5 = vpop.eup %3679 }
 0x358   :  { %v5424_v15 = vadd.f32 %v905_v57, %v904_v14  ;;  %v8153_v14 = vld [vmem:[#allocation29_spill] sm:$0xff]  ;;  %v8154_v57 = vld [vmem:[#allocation30_spill] sm:$0xff] }
 0x35a   :  { %3681 = vtanh.f32 %v5424_v15 }
 0x367   :  { %v3682_v21 = vpop.eup %3681 }
 0x368   :  { %v908_v62 = vmul.f32 %v3682_v21, %v3680_v5  ;;  %v8155_v5 = vld [vmem:[#allocation31_spill] sm:$0xff]  ;;  %v8156_v21 = vld [vmem:[#allocation32_spill] sm:$0xff] }
 0x36a   :  { %3340 = vmatmul.mubr.f32.vlgmr.msra.gmra.mxu0 %v908_v62  ;;  %1068 = vmatprep.mubr.f32.mxu1 %v908_v62 }
 0x36b   :  { %1139 = vmatprep.mubr.f32.mxu0 %v908_v62  ;;  %1076 = vmatpush1.msra.mxu0 %v8143_v17  ;;  %v8157_v62 = vld [vmem:[#allocation33_spill] sm:$0xff]  ;;  %v8158_v17 = vld [vmem:[#allocation34_spill] sm:$0xff] }
 0x36c   :  { %1077 = vmatprep.subr.mxu0 %v8144_v2  ;;  %v8159_v2 = vld [vmem:[#allocation35_spill] sm:$0xff] }
 0x36d   :  { %1078 = vmatpush1.msra.mxu0 %v8145_v4  ;;  %v8160_v4 = vld [vmem:[#allocation36_spill] sm:$0xff] }
 0x36e   :  { %1079 = vmatprep.subr.mxu0 %v8146_v58  ;;  %v8161_v58 = vld [vmem:[#allocation37_spill] sm:$0xff] }
 0x36f   :  { %1080 = vmatpush1.msra.mxu0 %v8147_v19  ;;  %v8162_v19 = vld [vmem:[#allocation38_spill] sm:$0xff] }
 0x370   :  { %1081 = vmatprep.subr.mxu0 %v8148_v53  ;;  %v8163_v53 = vld [vmem:[#allocation39_spill] sm:$0xff] }
 0x371   :  { %1082 = vmatpush1.msra.mxu0 %v8149_v1  ;;  %v8164_v1 = vld [vmem:[#allocation40_spill] sm:$0xff] }
 0x372   :  { %1083 = vmatprep.subr.mxu0 %v8150_v7  ;;  %v8165_v7 = vld [vmem:[#allocation41_spill] sm:$0xff] }
 0x373   :  { %1084 = vmatpush1.msra.mxu0 %v8151_v9  ;;  %v8166_v9 = vld [vmem:[#allocation42_spill] sm:$0xff] }
 0x374   :  { %1085 = vmatprep.subr.mxu0 %v8152_v11  ;;  %v8167_v11 = vld [vmem:[#allocation43_spill] sm:$0xff] }
 0x375   :  { %1086 = vmatpush1.msra.mxu0 %v8153_v14  ;;  %v8168_v14 = vld [vmem:[#allocation44_spill] sm:$0xff] }
 0x376   :  { %1087 = vmatprep.subr.mxu0 %v8154_v57  ;;  %v8169_v57 = vld [vmem:[#allocation45_spill] sm:$0xff] }
 0x377   :  { %1088 = vmatpush1.msra.mxu0 %v8155_v5  ;;  %v8170_v5 = vld [vmem:[#allocation46_spill] sm:$0xff] }
 0x378   :  { %1089 = vmatprep.subr.mxu0 %v8156_v21  ;;  %v8171_v21 = vld [vmem:[#allocation47_spill] sm:$0xff] }
 0x379   :  { %1090 = vmatpush1.msra.mxu0 %v8157_v62  ;;  %v8172_v62 = vld [vmem:[#allocation49_spill] sm:$0xff] }
 0x37a   :  { %1091 = vmatprep.subr.mxu0 %v8158_v17  ;;  %v8173_v17 = vld [vmem:[#allocation51_spill] sm:$0xff] }
 0x37b   :  { %1092 = vmatpush1.msra.mxu0 %v8159_v2  ;;  %v8174_v2 = vld [vmem:[#allocation53_spill] sm:$0xff] }
 0x37c   :  { %1093 = vmatprep.subr.mxu0 %v8160_v4  ;;  %v8175_v4 = vld [vmem:[#allocation55_spill] sm:$0xff] }
 0x37d   :  { %1094 = vmatpush1.msra.mxu0 %v8161_v58  ;;  %v8176_v58 = vld [vmem:[#allocation57_spill] sm:$0xff] }
 0x37e   :  { %1095 = vmatprep.subr.mxu0 %v8162_v19  ;;  %v8177_v19 = vld [vmem:[#allocation59_spill] sm:$0xff] }
 0x37f   :  { %1096 = vmatpush1.msra.mxu0 %v8163_v53  ;;  %v8178_v53 = vld [vmem:[#allocation61_spill] sm:$0xff] }
 0x380   :  { %1097 = vmatprep.subr.mxu0 %v8164_v1  ;;  %v8179_v1 = vld [vmem:[#allocation63_spill] sm:$0xff] }
 0x381   :  { %1098 = vmatpush1.msra.mxu0 %v8165_v7  ;;  %v8180_v7 = vld [vmem:[#allocation65_spill] sm:$0xff] }
 0x382   :  { %1099 = vmatprep.subr.mxu0 %v8166_v9  ;;  %v8181_v9 = vld [vmem:[#allocation67_spill] sm:$0xff] }
 0x383   :  { %1100 = vmatpush1.msra.mxu0 %v8167_v11  ;;  %v8182_v11 = vld [vmem:[#allocation69_spill] sm:$0xff] }
 0x384   :  { %1101 = vmatprep.subr.mxu0 %v8168_v14  ;;  %v8183_v14 = vld [vmem:[#allocation71_spill] sm:$0xff] }
 0x385   :  { %1102 = vmatpush1.msra.mxu0 %v8169_v57  ;;  %v8184_v57 = vld [vmem:[#allocation73_spill] sm:$0xff] }
 0x386   :  { %1103 = vmatprep.subr.mxu0 %v8170_v5  ;;  %v8185_v5 = vld [vmem:[#allocation75_spill] sm:$0xff] }
 0x387   :  { %1104 = vmatpush1.msra.mxu0 %v8171_v21  ;;  %v8186_v21 = vld [vmem:[#allocation77_spill] sm:$0xff] }
 0x388   :  { %1105 = vmatprep.subr.mxu0 %v8172_v62  ;;  %v8187_v62 = vld [vmem:[#allocation79_spill] sm:$0xff] }
 0x389   :  { %1106 = vmatpush1.msra.mxu0 %v8173_v17  ;;  %v8188_v17 = vld [vmem:[#allocation81_spill] sm:$0xff] }
 0x38a   :  { %1107 = vmatprep.subr.mxu0 %v8174_v2  ;;  %v8189_v2 = vld [vmem:[#allocation83_spill] sm:$0xff] }
 0x38b   :  { %1108 = vmatpush2.msra.mxu0 %v8175_v4  ;;  %v8190_v4 = vld [vmem:[#allocation84_spill] sm:$0xff] }
 0x38c   :  { %1109 = vmatprep.subr.mxu0 %v8176_v58  ;;  %v8191_v58 = vld [vmem:[#allocation85_spill] sm:$0xff] }
 0x38d   :  { %1110 = vmatpush2.msra.mxu0 %v8177_v19  ;;  %v8192_v19 = vld [vmem:[#allocation86_spill] sm:$0xff] }
 0x38e   :  { %1111 = vmatprep.subr.mxu0 %v8178_v53  ;;  %v8193_v53 = vld [vmem:[#allocation87_spill] sm:$0xff] }
 0x38f   :  { %1112 = vmatpush2.msra.mxu0 %v8179_v1  ;;  %v8194_v1 = vld [vmem:[#allocation88_spill] sm:$0xff] }
 0x390   :  { %1113 = vmatprep.subr.mxu0 %v8180_v7  ;;  %v8195_v7 = vld [vmem:[#allocation89_spill] sm:$0xff] }
 0x391   :  { %1114 = vmatpush2.msra.mxu0 %v8181_v9  ;;  %v8196_v9 = vld [vmem:[#allocation90_spill] sm:$0xff] }
 0x392   :  { %1115 = vmatprep.subr.mxu0 %v8182_v11  ;;  %v8197_v11 = vld [vmem:[#allocation91_spill] sm:$0xff] }
 0x393   :  { %1116 = vmatpush2.msra.mxu0 %v8183_v14  ;;  %v8198_v14 = vld [vmem:[#allocation92_spill] sm:$0xff] }
 0x394   :  { %1117 = vmatprep.subr.mxu0 %v8184_v57  ;;  %v8209_v57 = vmov 1.0  }
 0x395   :  { %1118 = vmatpush2.msra.mxu0 %v8185_v5 }
 0x396   :  { %1119 = vmatprep.subr.mxu0 %v8186_v21 }
 0x397   :  { %1120 = vmatpush2.msra.mxu0 %v8187_v62 }
 0x398   :  { %1121 = vmatprep.subr.mxu0 %v8188_v17  ;;  %v8199_v17 = vld [vmem:[#allocation93_spill] sm:$0xff] }
 0x399   :  { %1122 = vmatpush2.msra.mxu0 %v8189_v2  ;;  %v8200_v2 = vld [vmem:[#allocation94_spill] sm:$0xff] }
 0x39a   :  { %1123 = vmatprep.subr.mxu0 %v8190_v4  ;;  %v8201_v4 = vld [vmem:[#allocation95_spill] sm:$0xff] }
 0x39b   :  { %1124 = vmatpush2.msra.mxu0 %v8191_v58  ;;  %v8202_v58 = vld [vmem:[#allocation96_spill] sm:$0xff] }
 0x39c   :  { %1125 = vmatprep.subr.mxu0 %v8192_v19  ;;  %v8203_v19 = vld [vmem:[#allocation97_spill] sm:$0xff] }
 0x39d   :  { %1126 = vmatpush2.msra.mxu0 %v8193_v53  ;;  %v8204_v53 = vld [vmem:[#allocation98_spill] sm:$0xff] }
 0x39e   :  { %1127 = vmatprep.subr.mxu0 %v8194_v1  ;;  %v8205_v1 = vld [vmem:[#allocation99_spill] sm:$0xff] }
 0x39f   :  { %1128 = vmatpush2.msra.mxu0 %v8195_v7  ;;  %v5490_v7 = vld [vmem:[#allocation10 + $0x1e8] sm:$0xff] }
 0x3a0   :  { %1129 = vmatprep.subr.mxu0 %v8196_v9  ;;  %8206 = vst [vmem:[#allocation48_spill] sm:$0xff] %v5490_v7 }
 0x3a1   :  { %1130 = vmatpush2.msra.mxu0 %v8197_v11 }
 0x3a2   :  { %1131 = vmatprep.subr.mxu0 %v8198_v14 }
 0x3a3   :  { %1132 = vmatpush2.msra.mxu0 %v8199_v17  ;;  %v5496_v17 = vld [vmem:[%s7295_s5] ss:$0 sm:$0xff] }
 0x3a4   :  { %1133 = vmatprep.subr.mxu0 %v8200_v2  ;;  %8207 = vst [vmem:[#allocation50_spill] sm:$0xff] %v5496_v17 }
 0x3a5   :  { %1134 = vmatpush2.msra.mxu0 %v8201_v4 }
 0x3a6   :  { %1135 = vmatprep.subr.mxu0 %v8202_v58 }
 0x3a7   :  { %1136 = vmatpush2.msra.mxu0 %v8203_v19 }
 0x3a8   :  { %1137 = vmatprep.subr.mxu0 %v8204_v53 }
 0x3a9   :  { %1138 = vmatpush2.msra.mxu0 %v8205_v1 }
 0x3aa   :  { %1266 = vmatprep.subr.mxu0 %v5490_v7 }
 0x42a   :  { %v975_v2 = vpop.f32.mrf.mxu0 }
 0x42b   :  { %v5499_v4 = vadd.f32 %v5496_v17, %v975_v2 }
 0x42c   :  { %v3341_v58 = vpop.f32.mrf.mxu0 }
 0x42d   :  { %8208 = vst [vmem:[#allocation52_spill] sm:$0xff] %v5499_v4  ;;  %979 = vmax.xlane.f32.xlu0 %v5499_v4 }
 0x4b6   :  { %v980_v19 = vpop.xlane.xlu0 %979 }
 0x4b7   :  { %vm981_vm2 = vcmp.eq.f32.partialorder %v5499_v4, %v980_v19  ;;  %v5511_v19 = vld [vmem:[#allocation10 + $0x1e0] sm:$0xff]  ;;  %v5563_v4 = vld [vmem:[#allocation10 + $0x108] sm:$0xff] }
 0x4b8   :  { %v982_v1 = vsel %vm981_vm2, %v5288_v3, 128  ;;  %8213 = vst [vmem:[#allocation60_spill] sm:$0xff] %v5563_v4 }
 0x4b9   :  { %v984_v53 = vshra.s32 %v982_v1, 16  ;;  %v983_v7 = vand.u32 65535, %v982_v1  ;;  %v5535_v1 = vld [vmem:[#allocation10 + $0x180] sm:$0xff] }
 0x4bb   :  { %v986_v14 = vcvt.s32.f32 %v984_v53  ;;  %v985_v9 = vcvt.s32.f32 %v983_v7  ;;  %v5531_v53 = vld [vmem:[#allocation10 + $0x188] sm:$0xff] }
 0x4bc   :  { %v5539_v7 = vld [vmem:[#allocation10 + $0x168] sm:$0xff] }
 0x4bd   :  { %987 = vmin.xlane.f32.xlu0 %v986_v14 }
 0x546   :  { %v988_v11 = vpop.xlane.xlu0 %987 }
 0x547   :  { %vm989_vm3 = vcmp.eq.f32.partialorder %v986_v14, %v988_v11  ;;  %v994_v21 = vcvt.f32.s32 %v988_v11  ;;  %v5547_v11 = vld [vmem:[#allocation10 + $0x148] sm:$0xff]  ;;  %v5551_v14 = vld [vmem:[#allocation10 + $0x140] sm:$0xff] }
 0x548   :  { %v990_v62 = vsel %vm989_vm3, %v985_v9, inf  ;;  %v5543_v9 = vld [vmem:[#allocation10 + $0x160] sm:$0xff]  ;;  %8210 = vst [vmem:[#allocation54_spill] sm:$0xff] %v5551_v14 }
 0x549   :  { %991 = vmin.xlane.f32.xlu1 %v990_v62  ;;  %v995_v17 = vshll.u32 %v994_v21, 16  ;;  %v5515_v21 = vld [vmem:[#allocation10 + $0x1c8] sm:$0xff] }
 0x54a   :  { %v5523_v62 = vld [vmem:[#allocation10 + $0x1a8] sm:$0xff] }
 0x5d2   :  { %v992_v2 = vpop.xlane.xlu1 %991 }
 0x5d3   :  { %v993_v58 = vcvt.f32.s32 %v992_v2  ;;  %v5555_v2 = vld [vmem:[#allocation10 + $0x128] sm:$0xff] }
 0x5d4   :  { %8211 = vst [vmem:[#allocation56_spill] sm:$0xff] %v5555_v2 }
 0x5d5   :  { %v996_v5 = vadd.s32 %v995_v17, %v993_v58  ;;  %v5527_v17 = vld [vmem:[#allocation10 + $0x1a0] sm:$0xff] }
 0x5d6   :  { %v5559_v58 = vld [vmem:[#allocation10 + $0x120] sm:$0xff] }
 0x5d7   :  { %vm997_vm4 = vcmp.eq.s32.totalorder %v5288_v3, %v996_v5  ;;  %v5519_v5 = vld [vmem:[#allocation10 + $0x1c0] sm:$0xff]  ;;  %8212 = vst [vmem:[#allocation58_spill] sm:$0xff] %v5559_v58 }
 0x5d8   :  { %3138 = vmatmul.mubr.msk.f32.vlgmr.msra.gmra.mxu1 %vm997_vm4, %v8209_v57  ;;  %3139 = vmatmul.mubr.msk.f32.vlgmr.msra.gmra.mxu0 %vm997_vm4, %v8209_v57 }
 0x5d9   :  { %3343 = vmatpush3.msra.mxu1 %v5357_v8  ;;  %3374 = vmatprep.mubr.msk.f32.mxu1 %vm4311_vm1, %v8141_v6 }
 0x5da   :  { %3344 = vmatprep.subr.mxu1 %v8141_v6  ;;  %1267 = vmatpush1.msra.mxu0 %v5511_v19 }
 0x5db   :  { %3345 = vmatpush3.msra.mxu1 %v5361_v10  ;;  %1268 = vmatprep.subr.mxu0 %v5515_v21 }
 0x5dc   :  { %3346 = vmatprep.subr.mxu1 %v8141_v6  ;;  %1269 = vmatpush1.msra.mxu0 %v5519_v5 }
 0x5dd   :  { %3347 = vmatpush3.msra.mxu1 %v5365_v55  ;;  %1270 = vmatprep.subr.mxu0 %v5523_v62 }
 0x5de   :  { %3348 = vmatprep.subr.mxu1 %v8141_v6  ;;  %1271 = vmatpush1.msra.mxu0 %v5527_v17 }
 0x5df   :  { %3349 = vmatpush3.msra.mxu1 %v5369_v12  ;;  %1272 = vmatprep.subr.mxu0 %v5531_v53 }
 0x5e0   :  { %3350 = vmatprep.subr.mxu1 %v8141_v6  ;;  %1273 = vmatpush1.msra.mxu0 %v5535_v1 }
 0x5e1   :  { %3351 = vmatpush3.msra.mxu1 %v5373_v60  ;;  %1274 = vmatprep.subr.mxu0 %v5539_v7 }
 0x5e2   :  { %3352 = vmatprep.subr.mxu1 %v8141_v6  ;;  %1275 = vmatpush1.msra.mxu0 %v5543_v9 }
 0x5e3   :  { %3353 = vmatpush3.msra.mxu1 %v5377_v63  ;;  %1276 = vmatprep.subr.mxu0 %v5547_v11 }
 0x5e4   :  { %3354 = vmatprep.subr.mxu1 %v8141_v6  ;;  %1277 = vmatpush1.msra.mxu0 %v5551_v14  ;;  %v5567_v14 = vld [vmem:[#allocation10 + $0x100] sm:$0xff] }
 0x5e5   :  { %3355 = vmatpush3.msra.mxu1 %v5381_v0  ;;  %1278 = vmatprep.subr.mxu0 %v5555_v2  ;;  %8214 = vst [vmem:[#allocation62_spill] sm:$0xff] %v5567_v14  ;;  %v5571_v2 = vld [vmem:[#allocation10 + $0xe8] sm:$0xff] }
 0x5e6   :  { %3356 = vmatprep.subr.mxu1 %v8141_v6  ;;  %1279 = vmatpush1.msra.mxu0 %v5559_v58  ;;  %8215 = vst [vmem:[#allocation64_spill] sm:$0xff] %v5571_v2  ;;  %v5575_v58 = vld [vmem:[#allocation10 + $0xe0] sm:$0xff] }
 0x5e7   :  { %3357 = vmatpush3.msra.mxu1 %v5385_v16  ;;  %1280 = vmatprep.subr.mxu0 %v5563_v4  ;;  %8216 = vst [vmem:[#allocation66_spill] sm:$0xff] %v5575_v58  ;;  %v5579_v4 = vld [vmem:[#allocation10 + $0xc8] sm:$0xff] }
 0x5e8   :  { %3358 = vmatprep.subr.mxu1 %v8141_v6  ;;  %1281 = vmatpush1.msra.mxu0 %v5567_v14  ;;  %8217 = vst [vmem:[#allocation68_spill] sm:$0xff] %v5579_v4  ;;  %v5583_v14 = vld [vmem:[#allocation10 + $0xc0] sm:$0xff] }
 0x5e9   :  { %3359 = vmatpush3.msra.mxu1 %v5389_v18  ;;  %1282 = vmatprep.subr.mxu0 %v5571_v2  ;;  %8218 = vst [vmem:[#allocation70_spill] sm:$0xff] %v5583_v14  ;;  %v5587_v2 = vld [vmem:[#allocation10 + $0xa8] sm:$0xff] }
 0x5ea   :  { %3360 = vmatprep.subr.mxu1 %v8141_v6  ;;  %1283 = vmatpush1.msra.mxu0 %v5575_v58  ;;  %8219 = vst [vmem:[#allocation72_spill] sm:$0xff] %v5587_v2  ;;  %v5591_v58 = vld [vmem:[#allocation10 + $0xa0] sm:$0xff] }
 0x5eb   :  { %3361 = vmatpush3.msra.mxu1 %v5391_v20  ;;  %1284 = vmatprep.subr.mxu0 %v5579_v4  ;;  %8220 = vst [vmem:[#allocation18_spill] sm:$0xff] %v5591_v58  ;;  %v5595_v4 = vld [vmem:[#allocation10 + $0x88] sm:$0xff] }
 0x5ec   :  { %3362 = vmatprep.subr.mxu1 %v8141_v6  ;;  %1285 = vmatpush1.msra.mxu0 %v5583_v14  ;;  %8221 = vst [vmem:[#allocation19_spill] sm:$0xff] %v5595_v4  ;;  %v5599_v14 = vld [vmem:[#allocation10 + $0x80] sm:$0xff] }
 0x5ed   :  { %3363 = vmatpush3.msra.mxu1 %v5397_v22  ;;  %1286 = vmatprep.subr.mxu0 %v5587_v2  ;;  %8222 = vst [vmem:[#allocation20_spill] sm:$0xff] %v5599_v14  ;;  %v5603_v2 = vld [vmem:[#allocation10 + $0x68] sm:$0xff] }
 0x5ee   :  { %3364 = vmatprep.subr.mxu1 %v8141_v6  ;;  %1287 = vmatpush1.msra.mxu0 %v5591_v58  ;;  %8223 = vst [vmem:[#allocation21_spill] sm:$0xff] %v5603_v2  ;;  %v5607_v58 = vld [vmem:[#allocation10 + $0x60] sm:$0xff] }
 0x5ef   :  { %3365 = vmatpush3.msra.mxu1 %v5401_v23  ;;  %1288 = vmatprep.subr.mxu0 %v5595_v4  ;;  %v5611_v4 = vld [vmem:[#allocation10 + $0x48] sm:$0xff] }
 0x5f0   :  { %3366 = vmatprep.subr.mxu1 %v8141_v6  ;;  %1289 = vmatpush1.msra.mxu0 %v5599_v14  ;;  %8224 = vst [vmem:[#allocation22_spill] sm:$0xff] %v5611_v4  ;;  %v5615_v14 = vld [vmem:[#allocation10 + $0x40] sm:$0xff] }
 0x5f1   :  { %3367 = vmatpush3.msra.mxu1 %v5405_v61  ;;  %1290 = vmatprep.subr.mxu0 %v5603_v2  ;;  %v5619_v2 = vld [vmem:[#allocation10 + $0x28] sm:$0xff] }
 0x5f2   :  { %3368 = vmatprep.subr.mxu1 %v8141_v6  ;;  %1291 = vmatpush1.msra.mxu0 %v5607_v58 }
 0x5f3   :  { %3369 = vmatpush3.msra.mxu1 %v5409_v13  ;;  %1292 = vmatprep.subr.mxu0 %v5611_v4  ;;  %v5626_v4 = vld [vmem:[#allocation10 + $0x1f8] sm:$0xff] }
 0x5f4   :  { %3370 = vmatprep.subr.mxu1 %v8141_v6  ;;  %1293 = vmatpush1.msra.mxu0 %v5615_v14  ;;  %8225 = vst [vmem:[#allocation23_spill] sm:$0xff] %v5626_v4 }
 0x5f5   :  { %3371 = vmatpush3.msra.mxu1 %v5413_v56  ;;  %1294 = vmatprep.subr.mxu0 %v5619_v2 }
 0x5f6   :  { %3372 = vmatprep.subr.mxu1 %v8141_v6  ;;  %1295 = vmatpush1.msra.mxu0 %v5019_v24  ;;  %v8227_v24 = vld [vmem:[#allocation76_spill] sm:$0xff] }
 0x5f7   :  { %3373 = vmatpush3.msra.mxu1 %v5417_v59  ;;  %1296 = vmatprep.subr.mxu0 %v5025_v26  ;;  %v8229_v26 = vld [vmem:[#allocation80_spill] sm:$0xff] }
 0x5f8   :  { %1337 = vmatprep.subr.mxu1 %v5626_v4  ;;  %1297 = vmatpush1.msra.mxu0 %v5031_v28 }
 0x5f9   :  { %1298 = vmatprep.subr.mxu0 %v5037_v30 }
 0x5fa   :  { %1299 = vmatpush2.msra.mxu0 %v5043_v32 }
 0x5fb   :  { %1300 = vmatprep.subr.mxu0 %v5049_v34 }
 0x5fc   :  { %1301 = vmatpush2.msra.mxu0 %v5055_v37 }
 0x5fd   :  { %1302 = vmatprep.subr.mxu0 %v5061_v39 }
 0x5fe   :  { %1303 = vmatpush2.msra.mxu0 %v5067_v54  ;;  %v8226_v54 = vld [vmem:[#allocation74_spill] sm:$0xff] }
 0x5ff   :  { %1304 = vmatprep.subr.mxu0 %v5073_v35 }
 0x600   :  { %1305 = vmatpush2.msra.mxu0 %v5079_v38 }
 0x601   :  { %1306 = vmatprep.subr.mxu0 %v5085_v40 }
 0x602   :  { %1307 = vmatpush2.msra.mxu0 %v5091_v33 }
 0x603   :  { %1308 = vmatprep.subr.mxu0 %v5097_v31 }
 0x604   :  { %1309 = vmatpush2.msra.mxu0 %v5103_v29 }
 0x605   :  { %1310 = vmatprep.subr.mxu0 %v5109_v27  ;;  %v8230_v27 = vld [vmem:[#allocation82_spill] sm:$0xff] }
 0x606   :  { %1311 = vmatpush2.msra.mxu0 %v5115_v25  ;;  %v8228_v25 = vld [vmem:[#allocation78_spill] sm:$0xff] }
 0x607   :  { %1312 = vmatprep.subr.mxu0 %v8123_v36 }
 0x608   :  { %1313 = vmatpush2.msra.mxu0 %v8124_v41 }
 0x609   :  { %1314 = vmatprep.subr.mxu0 %v8125_v42 }
 0x60a   :  { %1315 = vmatpush2.msra.mxu0 %v8126_v43 }
 0x60b   :  { %1316 = vmatprep.subr.mxu0 %v8127_v44 }
 0x60c   :  { %1317 = vmatpush2.msra.mxu0 %v8128_v45 }
 0x60d   :  { %1318 = vmatprep.subr.mxu0 %v8129_v46 }
 0x60e   :  { %1319 = vmatpush2.msra.mxu0 %v8130_v47 }
 0x60f   :  { %1320 = vmatprep.subr.mxu0 %v8131_v48 }
 0x610   :  { %1321 = vmatpush2.msra.mxu0 %v8132_v49 }
 0x611   :  { %1322 = vmatprep.subr.mxu0 %v8133_v50  ;;  %v5667_v50 = vld [vmem:[#allocation10 + $0x1f0] sm:$0xff] }
 0x612   :  { %1323 = vmatpush2.msra.mxu0 %v8134_v51  ;;  %v5670_v51 = vld [vmem:[#allocation10 + $0x1d8] sm:$0xff] }
 0x613   :  { %1324 = vmatprep.subr.mxu0 %v8135_v52  ;;  %v5673_v52 = vld [vmem:[#allocation10 + $0x1d0] sm:$0xff] }
 0x614   :  { %1325 = vmatpush2.msra.mxu0 %v8226_v54  ;;  %v5679_v54 = vld [vmem:[#allocation10 + $0x1b0] sm:$0xff] }
 0x615   :  { %1326 = vmatprep.subr.mxu0 %v8227_v24  ;;  %v5682_v24 = vld [vmem:[#allocation10 + $0x198] sm:$0xff] }
 0x616   :  { %1327 = vmatpush2.msra.mxu0 %v8228_v25  ;;  %v5685_v25 = vld [vmem:[#allocation10 + $0x190] sm:$0xff] }
 0x617   :  { %1328 = vmatprep.subr.mxu0 %v8229_v26  ;;  %v5688_v26 = vld [vmem:[#allocation10 + $0x178] sm:$0xff] }
 0x618   :  { %1329 = vmatpush2.msra.mxu0 %v8230_v27  ;;  %v5691_v27 = vld [vmem:[#allocation10 + $0x170] sm:$0xff] }
 0x619   :  { %3377 = vmatprep.subr.mxu0 %v8141_v6 }
 0x698   :  { %v1070_v28 = vpop.f32.mrf.mxu1  ;;  %v1141_v32 = vpop.f32.mrf.mxu0 }
 0x699   :  { %v3105_v29 = vmul.f32 -1.442695, %v1070_v28  ;;  %v5694_v28 = vld [vmem:[#allocation10 + $0x158] sm:$0xff] }
 0x69a   :  { %v1072_v30 = vpop.f32.mrf.mxu1  ;;  %v1143_v33 = vpop.f32.mrf.mxu0 }
 0x69b   :  { %3683 = vpow2.f32 %v3105_v29  ;;  %v3106_v31 = vmul.f32 -1.442695, %v1072_v30  ;;  %v3107_v34 = vmul.f32 -1.442695, %v1143_v33  ;;  %v5697_v29 = vld [vmem:[#allocation10 + $0x150] sm:$0xff]  ;;  %v5700_v30 = vld [vmem:[#allocation10 + $0x138] sm:$0xff] }
 0x69c   :  { %v5709_v33 = vld [vmem:[#allocation10 + $0x110] sm:$0xff] }
 0x69d   :  { %3685 = vpow2.f32 %v3106_v31  ;;  %v5703_v31 = vld [vmem:[#allocation10 + $0x130] sm:$0xff] }
 0x69e   :  { %3687 = vpow2.f32 %v3107_v34  ;;  %v5712_v34 = vld [vmem:[#allocation10 + $0xf8] sm:$0xff] }
 0x6a8   :  { %v3684_v35 = vpop.eup %3683 }
 0x6a9   :  { %v1149_v37 = vadd.f32 1.0, %v3684_v35  ;;  %v5715_v35 = vld [vmem:[#allocation10 + $0xf0] sm:$0xff] }
 0x6aa   :  { %v3686_v38 = vpop.eup %3685  ;;  %8231 = vst [vmem:[#allocation24_spill] sm:$0xff] %v5715_v35 }
 0x6ab   :  { %3689 = vrcp.f32 %v1149_v37  ;;  %v1155_v39 = vadd.f32 1.0, %v3686_v38  ;;  %v3688_v40 = vpop.eup %3687  ;;  %v5718_v37 = vld [vmem:[#allocation10 + $0xd8] sm:$0xff]  ;;  %v5721_v38 = vld [vmem:[#allocation10 + $0xd0] sm:$0xff] }
 0x6ac   :  { %3691 = vtanh.f32 %v1141_v32  ;;  %v1162_v43 = vadd.f32 1.0, %v3688_v40  ;;  %v5706_v32 = vld [vmem:[#allocation10 + $0x118] sm:$0xff]  ;;  %8232 = vst [vmem:[#allocation25_spill] sm:$0xff] %v5718_v37  ;;  %8233 = vst [vmem:[#allocation26_spill] sm:$0xff] %v5721_v38  ;;  %v5727_v40 = vld [vmem:[#allocation10 + $0xb0] sm:$0xff] }
 0x6ad   :  { %3693 = vrcp.f32 %v1155_v39  ;;  %v5724_v39 = vld [vmem:[#allocation10 + $0xb8] sm:$0xff]  ;;  %8235 = vst [vmem:[#allocation28_spill] sm:$0xff] %v5727_v40 }
 0x6ae   :  { %3695 = vrcp.f32 %v1162_v43  ;;  %8234 = vst [vmem:[#allocation27_spill] sm:$0xff] %v5724_v39  ;;  %v5739_v43 = vld [vmem:[#allocation10 + $0x70] sm:$0xff] }
 0x6af   :  { %8239 = vst [vmem:[#allocation32_spill] sm:$0xff] %v5739_v43 }
 0x6b8   :  { %v3690_v36 = vpop.eup %3689 }
 0x6b9   :  { %v3692_v41 = vpop.eup %3691 }
 0x6ba   :  { %v3694_v42 = vpop.eup %3693  ;;  %v1166_v44 = vmul.f32 %v3692_v41, %v3690_v36  ;;  %v5730_v36 = vld [vmem:[#allocation10 + $0x98] sm:$0xff]  ;;  %v5733_v41 = vld [vmem:[#allocation10 + $0x90] sm:$0xff] }
 0x6bb   :  { %v1165_v45 = vmul.f32 %v3694_v42, %v5424_v15  ;;  %v3696_v47 = vpop.eup %3695  ;;  %v5676_v15 = vld [vmem:[#allocation10 + $0x1b8] sm:$0xff]  ;;  %8236 = vst [vmem:[#allocation29_spill] sm:$0xff] %v5730_v36  ;;  %8237 = vst [vmem:[#allocation30_spill] sm:$0xff] %v5733_v41 }
 0x6bc   :  { %v5736_v42 = vld [vmem:[#allocation10 + $0x78] sm:$0xff] }
 0x6bd   :  { %v5664_v46 = vadd.f32 %v1166_v44, %v1165_v45  ;;  %8238 = vst [vmem:[#allocation31_spill] sm:$0xff] %v5736_v42  ;;  %v5742_v44 = vld [vmem:[#allocation10 + $0x58] sm:$0xff]  ;;  %v5745_v45 = vld [vmem:[#allocation10 + $0x50] sm:$0xff] }
 0x6be   :  { %8240 = vst [vmem:[#allocation33_spill] sm:$0xff] %v5742_v44  ;;  %8241 = vst [vmem:[#allocation34_spill] sm:$0xff] %v5745_v45 }
 0x6bf   :  { %3697 = vtanh.f32 %v5664_v46 }
 0x6cc   :  { %v3698_v48 = vpop.eup %3697 }
 0x6cd   :  { %v1169_v49 = vmul.f32 %v3698_v48, %v3696_v47  ;;  %v5748_v47 = vld [vmem:[#allocation10 + $0x38] sm:$0xff]  ;;  %v5751_v48 = vld [vmem:[#allocation10 + $0x30] sm:$0xff] }
 0x6ce   :  { %8242 = vst [vmem:[#allocation35_spill] sm:$0xff] %v5748_v47  ;;  %8243 = vst [vmem:[#allocation36_spill] sm:$0xff] %v5751_v48 }
 0x6cf   :  { %3375 = vmatmul.mubr.f32.vlgmr.msra.gmra.mxu1 %v1169_v49  ;;  %1330 = vmatprep.mubr.f32.mxu0 %v1169_v49 }
 0x6d0   :  { %1401 = vmatprep.mubr.f32.mxu1 %v1169_v49  ;;  %1338 = vmatpush1.msra.mxu1 %v5667_v50  ;;  %v5754_v49 = vld [vmem:[#allocation10 + $0x18] sm:$0xff] }
 0x6d1   :  { %1339 = vmatprep.subr.mxu1 %v5670_v51  ;;  %8244 = vst [vmem:[#allocation37_spill] sm:$0xff] %v5754_v49 }
 0x6d2   :  { %1340 = vmatpush1.msra.mxu1 %v5673_v52 }
 0x6d3   :  { %1341 = vmatprep.subr.mxu1 %v5676_v15 }
 0x6d4   :  { %1342 = vmatpush1.msra.mxu1 %v5679_v54 }
 0x6d5   :  { %1343 = vmatprep.subr.mxu1 %v5682_v24 }
 0x6d6   :  { %1344 = vmatpush1.msra.mxu1 %v5685_v25 }
 0x6d7   :  { %1345 = vmatprep.subr.mxu1 %v5688_v26 }
 0x6d8   :  { %1346 = vmatpush1.msra.mxu1 %v5691_v27 }
 0x6d9   :  { %1347 = vmatprep.subr.mxu1 %v5694_v28 }
 0x6da   :  { %1348 = vmatpush1.msra.mxu1 %v5697_v29 }
 0x6db   :  { %1349 = vmatprep.subr.mxu1 %v5700_v30 }
 0x6dc   :  { %1350 = vmatpush1.msra.mxu1 %v5703_v31 }
 0x6dd   :  { %1351 = vmatprep.subr.mxu1 %v5706_v32 }
 0x6de   :  { %1352 = vmatpush1.msra.mxu1 %v5709_v33 }
 0x6df   :  { %1353 = vmatprep.subr.mxu1 %v5712_v34 }
 0x6e0   :  { %1354 = vmatpush1.msra.mxu1 %v5715_v35 }
 0x6e1   :  { %1355 = vmatprep.subr.mxu1 %v5718_v37 }
 0x6e2   :  { %1356 = vmatpush1.msra.mxu1 %v5721_v38 }
 0x6e3   :  { %1357 = vmatprep.subr.mxu1 %v5724_v39  ;;  %v8265_v39 = vld [vmem:[#allocation87_spill] sm:$0xff] }
 0x6e4   :  { %1358 = vmatpush1.msra.mxu1 %v5727_v40  ;;  %v8263_v40 = vld [vmem:[#allocation85_spill] sm:$0xff] }
 0x6e5   :  { %1359 = vmatprep.subr.mxu1 %v5730_v36  ;;  %v8261_v36 = vld [vmem:[#allocation83_spill] sm:$0xff] }
 0x6e6   :  { %1360 = vmatpush1.msra.mxu1 %v5733_v41  ;;  %v8259_v41 = vld [vmem:[#allocation79_spill] sm:$0xff] }
 0x6e7   :  { %1361 = vmatprep.subr.mxu1 %v5736_v42  ;;  %v8257_v42 = vld [vmem:[#allocation75_spill] sm:$0xff] }
 0x6e8   :  { %1362 = vmatpush1.msra.mxu1 %v5739_v43  ;;  %v5757_v43 = vld [vmem:[#allocation10 + $0x10] sm:$0xff] }
 0x6e9   :  { %1363 = vmatprep.subr.mxu1 %v5742_v44  ;;  %8245 = vst [vmem:[#allocation38_spill] sm:$0xff] %v5757_v43  ;;  %v5760_v44 = vld [vmem:[#allocation10 + $0x3f8] sm:$0xff] }
 0x6ea   :  { %1364 = vmatpush1.msra.mxu1 %v5745_v45  ;;  %8246 = vst [vmem:[#allocation39_spill] sm:$0xff] %v5760_v44  ;;  %v5763_v45 = vld [vmem:[#allocation10 + $0x3f0] sm:$0xff] }
 0x6eb   :  { %1365 = vmatprep.subr.mxu1 %v5748_v47  ;;  %8247 = vst [vmem:[#allocation40_spill] sm:$0xff] %v5763_v45  ;;  %v5766_v47 = vld [vmem:[#allocation10 + $0x3d8] sm:$0xff] }
 0x6ec   :  { %1366 = vmatpush1.msra.mxu1 %v5751_v48  ;;  %8248 = vst [vmem:[#allocation41_spill] sm:$0xff] %v5766_v47  ;;  %v5769_v48 = vld [vmem:[#allocation10 + $0x3d0] sm:$0xff] }
 0x6ed   :  { %1367 = vmatprep.subr.mxu1 %v5754_v49  ;;  %8249 = vst [vmem:[#allocation42_spill] sm:$0xff] %v5769_v48  ;;  %v5772_v49 = vld [vmem:[#allocation10 + $0x3b8] sm:$0xff] }
 0x6ee   :  { %1368 = vmatpush1.msra.mxu1 %v5757_v43  ;;  %8250 = vst [vmem:[#allocation43_spill] sm:$0xff] %v5772_v49  ;;  %v5775_v43 = vld [vmem:[#allocation10 + $0x3b0] sm:$0xff] }
 0x6ef   :  { %1369 = vmatprep.subr.mxu1 %v5760_v44  ;;  %8251 = vst [vmem:[#allocation44_spill] sm:$0xff] %v5775_v43  ;;  %v5778_v44 = vld [vmem:[#allocation10 + $0x398] sm:$0xff] }
 0x6f0   :  { %1370 = vmatpush2.msra.mxu1 %v5763_v45  ;;  %8252 = vst [vmem:[#allocation45_spill] sm:$0xff] %v5778_v44  ;;  %v5781_v45 = vld [vmem:[#allocation10 + $0x390] sm:$0xff] }
 0x6f1   :  { %1371 = vmatprep.subr.mxu1 %v5766_v47  ;;  %8253 = vst [vmem:[#allocation46_spill] sm:$0xff] %v5781_v45  ;;  %v5784_v47 = vld [vmem:[#allocation10 + $0x378] sm:$0xff] }
 0x6f2   :  { %1372 = vmatpush2.msra.mxu1 %v5769_v48  ;;  %8254 = vst [vmem:[#allocation47_spill] sm:$0xff] %v5784_v47  ;;  %v5787_v48 = vld [vmem:[#allocation10 + $0x370] sm:$0xff] }
 0x6f3   :  { %1373 = vmatprep.subr.mxu1 %v5772_v49  ;;  %8255 = vst [vmem:[#allocation49_spill] sm:$0xff] %v5787_v48  ;;  %v8256_v49 = vld [vmem:[#allocation73_spill] sm:$0xff] }
 0x6f4   :  { %1374 = vmatpush2.msra.mxu1 %v5775_v43  ;;  %v8258_v43 = vld [vmem:[#allocation77_spill] sm:$0xff] }
 0x6f5   :  { %1375 = vmatprep.subr.mxu1 %v5778_v44  ;;  %v8260_v44 = vld [vmem:[#allocation81_spill] sm:$0xff] }
 0x6f6   :  { %1376 = vmatpush2.msra.mxu1 %v5781_v45  ;;  %v8262_v45 = vld [vmem:[#allocation84_spill] sm:$0xff] }
 0x6f7   :  { %1377 = vmatprep.subr.mxu1 %v5784_v47  ;;  %v8264_v47 = vld [vmem:[#allocation86_spill] sm:$0xff] }
 0x6f8   :  { %1378 = vmatpush2.msra.mxu1 %v5787_v48  ;;  %v8266_v48 = vld [vmem:[#allocation88_spill] sm:$0xff] }
 0x6f9   :  { %1379 = vmatprep.subr.mxu1 %v8256_v49  ;;  %v8267_v49 = vld [vmem:[#allocation89_spill] sm:$0xff] }
 0x6fa   :  { %1380 = vmatpush2.msra.mxu1 %v8257_v42  ;;  %v8268_v42 = vld [vmem:[#allocation90_spill] sm:$0xff] }
 0x6fb   :  { %1381 = vmatprep.subr.mxu1 %v8258_v43  ;;  %v8269_v43 = vld [vmem:[#allocation91_spill] sm:$0xff] }
 0x6fc   :  { %1382 = vmatpush2.msra.mxu1 %v8259_v41  ;;  %v8270_v41 = vld [vmem:[#allocation92_spill] sm:$0xff] }
 0x6fd   :  { %1383 = vmatprep.subr.mxu1 %v8260_v44  ;;  %v8271_v44 = vld [vmem:[#allocation93_spill] sm:$0xff] }
 0x6fe   :  { %1384 = vmatpush2.msra.mxu1 %v8261_v36  ;;  %v8272_v36 = vld [vmem:[#allocation94_spill] sm:$0xff] }
 0x6ff   :  { %1385 = vmatprep.subr.mxu1 %v8262_v45  ;;  %v8273_v45 = vld [vmem:[#allocation95_spill] sm:$0xff] }
 0x700   :  { %1386 = vmatpush2.msra.mxu1 %v8263_v40  ;;  %v8274_v40 = vld [vmem:[#allocation96_spill] sm:$0xff] }
 0x701   :  { %1387 = vmatprep.subr.mxu1 %v8264_v47  ;;  %v8275_v47 = vld [vmem:[#allocation97_spill] sm:$0xff] }
 0x702   :  { %1388 = vmatpush2.msra.mxu1 %v8265_v39  ;;  %v8276_v39 = vld [vmem:[#allocation98_spill] sm:$0xff] }
 0x703   :  { %1389 = vmatprep.subr.mxu1 %v8266_v48  ;;  %v8277_v48 = vld [vmem:[#allocation99_spill] sm:$0xff] }
 0x704   :  { %1390 = vmatpush2.msra.mxu1 %v8267_v49  ;;  %v8278_v49 = vld [vmem:[#allocation48_spill] sm:$0xff] }
 0x705   :  { %1391 = vmatprep.subr.mxu1 %v8268_v42 }
 0x706   :  { %1392 = vmatpush2.msra.mxu1 %v8269_v43  ;;  %v8279_v43 = vld [vmem:[#allocation50_spill] sm:$0xff] }
 0x707   :  { %1393 = vmatprep.subr.mxu1 %v8270_v41 }
 0x708   :  { %1394 = vmatpush2.msra.mxu1 %v8271_v44 }
 0x709   :  { %1395 = vmatprep.subr.mxu1 %v8272_v36 }
 0x70a   :  { %1396 = vmatpush2.msra.mxu1 %v8273_v45 }
 0x70b   :  { %1397 = vmatprep.subr.mxu1 %v8274_v40 }
 0x70c   :  { %1398 = vmatpush2.msra.mxu1 %v8275_v47 }
 0x70d   :  { %1399 = vmatprep.subr.mxu1 %v8276_v39 }
 0x70e   :  { %1400 = vmatpush2.msra.mxu1 %v8277_v48 }
 0x70f   :  { %1528 = vmatprep.subr.mxu1 %v8278_v49 }
 0x78f   :  { %v1236_v42 = vpop.f32.mrf.mxu1 }
 0x790   :  { %v5814_v38 = vadd.f32 %v8279_v43, %v1236_v42 }
 0x791   :  { %v3376_v41 = vpop.f32.mrf.mxu1 }
 0x792   :  { %8280 = vst [vmem:[#allocation51_spill] sm:$0xff] %v5814_v38  ;;  %1241 = vmax.xlane.f32.xlu1 %v5814_v38 }
 0x81b   :  { %v1242_v44 = vpop.xlane.xlu1 %1241 }
 0x81c   :  { %vm1243_vm5 = vcmp.eq.f32.partialorder %v5814_v38, %v1242_v44  ;;  %v5896_v44 = vld [vmem:[#allocation10 + $0x3e0] sm:$0xff] }
 0x81d   :  { %v1244_v36 = vsel %vm1243_vm5, %v5288_v3, 128  ;;  %8300 = vst [vmem:[#allocation61_spill] sm:$0xff] %v5896_v44  ;;  %v5926_v38 = vld [vmem:[#allocation10 + $0x340] sm:$0xff] }
 0x81e   :  { %v1246_v45 = vshra.s32 %v1244_v36, 16  ;;  %v1245_v47 = vand.u32 65535, %v1244_v36  ;;  %v5899_v36 = vld [vmem:[#allocation10 + $0x3c8] sm:$0xff]  ;;  %8310 = vst [vmem:[#allocation82_spill] sm:$0xff] %v5926_v38 }
 0x81f   :  { %8301 = vst [vmem:[#allocation63_spill] sm:$0xff] %v5899_v36 }
 0x820   :  { %v1248_v40 = vcvt.s32.f32 %v1246_v45  ;;  %v1247_v48 = vcvt.s32.f32 %v1245_v47  ;;  %v5905_v45 = vld [vmem:[#allocation10 + $0x3a8] sm:$0xff] }
 0x821   :  { %8303 = vst [vmem:[#allocation67_spill] sm:$0xff] %v5905_v45  ;;  %v5911_v47 = vld [vmem:[#allocation10 + $0x388] sm:$0xff] }
 0x822   :  { %1249 = vmin.xlane.f32.xlu0 %v1248_v40  ;;  %8305 = vst [vmem:[#allocation71_spill] sm:$0xff] %v5911_v47 }
 0x8ab   :  { %v1250_v39 = vpop.xlane.xlu0 %1249 }
 0x8ac   :  { %vm1251_vm6 = vcmp.eq.f32.partialorder %v1248_v40, %v1250_v39  ;;  %v1256_v37 = vcvt.f32.s32 %v1250_v39  ;;  %v5908_v40 = vld [vmem:[#allocation10 + $0x3a0] sm:$0xff] }
 0x8ad   :  { %v1252_v49 = vsel %vm1251_vm6, %v1247_v48, inf  ;;  %8304 = vst [vmem:[#allocation69_spill] sm:$0xff] %v5908_v40  ;;  %v5914_v39 = vld [vmem:[#allocation10 + $0x380] sm:$0xff]  ;;  %v5917_v48 = vld [vmem:[#allocation10 + $0x368] sm:$0xff] }
 0x8ae   :  { %1253 = vmin.xlane.f32.xlu1 %v1252_v49  ;;  %v1257_v43 = vshll.u32 %v1256_v37, 16  ;;  %v8290_v37 = vld [vmem:[#allocation72_spill] sm:$0xff]  ;;  %v8292_v49 = vld [vmem:[#allocation19_spill] sm:$0xff]  ;;  %8306 = vst [vmem:[#allocation74_spill] sm:$0xff] %v5914_v39  ;;  %8307 = vst [vmem:[#allocation76_spill] sm:$0xff] %v5917_v48 }
 0x937   :  { %v1254_v42 = vpop.xlane.xlu1 %1253 }
 0x938   :  { %v1255_v41 = vcvt.f32.s32 %v1254_v42  ;;  %v5920_v42 = vld [vmem:[#allocation10 + $0x360] sm:$0xff] }
 0x939   :  { %8308 = vst [vmem:[#allocation78_spill] sm:$0xff] %v5920_v42 }
 0x93a   :  { %v1258_v35 = vadd.s32 %v1257_v43, %v1255_v41  ;;  %v8294_v43 = vld [vmem:[#allocation21_spill] sm:$0xff]  ;;  %v5923_v41 = vld [vmem:[#allocation10 + $0x348] sm:$0xff] }
 0x93b   :  { %8309 = vst [vmem:[#allocation80_spill] sm:$0xff] %v5923_v41 }
 0x93c   :  { %vm1259_vm7 = vcmp.eq.s32.totalorder %v5288_v3, %v1258_v35  ;;  %v8288_v35 = vld [vmem:[#allocation68_spill] sm:$0xff] }
 0x93d   :  { %3140 = vmatmul.mubr.msk.f32.vlgmr.msra.gmra.mxu0 %vm1259_vm7, %v8209_v57  ;;  %3141 = vmatmul.mubr.msk.f32.vlgmr.msra.gmra.mxu1 %vm1259_vm7, %v8209_v57 }
 0x93e   :  { %3378 = vmatpush3.msra.mxu0 %v5357_v8  ;;  %3409 = vmatprep.mubr.msk.f32.mxu0 %vm4311_vm1, %v8141_v6  ;;  %v8281_v8 = vld [vmem:[#allocation54_spill] sm:$0xff] }
 0x93f   :  { %3379 = vmatprep.subr.mxu0 %v8141_v6  ;;  %1529 = vmatpush1.msra.mxu1 %v5511_v19 }
 0x940   :  { %3380 = vmatpush3.msra.mxu0 %v5361_v10  ;;  %1530 = vmatprep.subr.mxu1 %v5515_v21  ;;  %v8282_v10 = vld [vmem:[#allocation56_spill] sm:$0xff] }
 0x941   :  { %3381 = vmatprep.subr.mxu0 %v8141_v6  ;;  %1531 = vmatpush1.msra.mxu1 %v5519_v5 }
 0x942   :  { %3382 = vmatpush3.msra.mxu0 %v5365_v55  ;;  %1532 = vmatprep.subr.mxu1 %v5523_v62  ;;  %v8283_v55 = vld [vmem:[#allocation58_spill] sm:$0xff] }
 0x943   :  { %3383 = vmatprep.subr.mxu0 %v8141_v6  ;;  %1533 = vmatpush1.msra.mxu1 %v5527_v17 }
 0x944   :  { %3384 = vmatpush3.msra.mxu0 %v5369_v12  ;;  %1534 = vmatprep.subr.mxu1 %v5531_v53  ;;  %v8284_v12 = vld [vmem:[#allocation60_spill] sm:$0xff] }
 0x945   :  { %3385 = vmatprep.subr.mxu0 %v8141_v6  ;;  %1535 = vmatpush1.msra.mxu1 %v5535_v1 }
 0x946   :  { %3386 = vmatpush3.msra.mxu0 %v5373_v60  ;;  %1536 = vmatprep.subr.mxu1 %v5539_v7  ;;  %v8285_v60 = vld [vmem:[#allocation62_spill] sm:$0xff] }
 0x947   :  { %3387 = vmatprep.subr.mxu0 %v8141_v6  ;;  %1537 = vmatpush1.msra.mxu1 %v5543_v9 }
 0x948   :  { %3388 = vmatpush3.msra.mxu0 %v5377_v63  ;;  %1538 = vmatprep.subr.mxu1 %v5547_v11  ;;  %v8286_v63 = vld [vmem:[#allocation64_spill] sm:$0xff] }
 0x949   :  { %3389 = vmatprep.subr.mxu0 %v8141_v6  ;;  %1539 = vmatpush1.msra.mxu1 %v8281_v8 }
 0x94a   :  { %3390 = vmatpush3.msra.mxu0 %v5381_v0  ;;  %1540 = vmatprep.subr.mxu1 %v8282_v10  ;;  %v8287_v0 = vld [vmem:[#allocation66_spill] sm:$0xff] }
 0x94b   :  { %3391 = vmatprep.subr.mxu0 %v8141_v6  ;;  %1541 = vmatpush1.msra.mxu1 %v8283_v55 }
 0x94c   :  { %3392 = vmatpush3.msra.mxu0 %v5385_v16  ;;  %1542 = vmatprep.subr.mxu1 %v8284_v12  ;;  %v8289_v16 = vld [vmem:[#allocation70_spill] sm:$0xff] }
 0x94d   :  { %3393 = vmatprep.subr.mxu0 %v8141_v6  ;;  %1543 = vmatpush1.msra.mxu1 %v8285_v60 }
 0x94e   :  { %3394 = vmatpush3.msra.mxu0 %v5389_v18  ;;  %1544 = vmatprep.subr.mxu1 %v8286_v63  ;;  %v8291_v18 = vld [vmem:[#allocation18_spill] sm:$0xff] }
 0x94f   :  { %3395 = vmatprep.subr.mxu0 %v8141_v6  ;;  %1545 = vmatpush1.msra.mxu1 %v8287_v0 }
 0x950   :  { %3396 = vmatpush3.msra.mxu0 %v5391_v20  ;;  %1546 = vmatprep.subr.mxu1 %v8288_v35  ;;  %v8293_v20 = vld [vmem:[#allocation20_spill] sm:$0xff] }
 0x951   :  { %3397 = vmatprep.subr.mxu0 %v8141_v6  ;;  %1547 = vmatpush1.msra.mxu1 %v8289_v16 }
 0x952   :  { %3398 = vmatpush3.msra.mxu0 %v5397_v22  ;;  %1548 = vmatprep.subr.mxu1 %v8290_v37  ;;  %v8295_v22 = vld [vmem:[#allocation22_spill] sm:$0xff] }
 0x953   :  { %3399 = vmatprep.subr.mxu0 %v8141_v6  ;;  %1549 = vmatpush1.msra.mxu1 %v8291_v18 }
 0x954   :  { %3400 = vmatpush3.msra.mxu0 %v5401_v23  ;;  %1550 = vmatprep.subr.mxu1 %v8292_v49  ;;  %v5882_v23 = vld [vmem:[#allocation10 + $0x20] sm:$0xff] }
 0x955   :  { %3401 = vmatprep.subr.mxu0 %v8141_v6  ;;  %1551 = vmatpush1.msra.mxu1 %v8293_v20  ;;  %8296 = vst [vmem:[#allocation53_spill] sm:$0xff] %v5882_v23 }
 0x956   :  { %3402 = vmatpush3.msra.mxu0 %v5405_v61  ;;  %1552 = vmatprep.subr.mxu1 %v8294_v43  ;;  %v5886_v61 = vld [vmem:[#allocation10 + $0x8] sm:$0xff] }
 0x957   :  { %3403 = vmatprep.subr.mxu0 %v8141_v6  ;;  %1553 = vmatpush1.msra.mxu1 %v5607_v58  ;;  %8297 = vst [vmem:[#allocation55_spill] sm:$0xff] %v5886_v61 }
 0x958   :  { %3404 = vmatpush3.msra.mxu0 %v5409_v13  ;;  %1554 = vmatprep.subr.mxu1 %v8295_v22  ;;  %v5890_v13 = vld [vmem:[#allocation10] sm:$0xff] }
 0x959   :  { %3405 = vmatprep.subr.mxu0 %v8141_v6  ;;  %1555 = vmatpush1.msra.mxu1 %v5615_v14  ;;  %8298 = vst [vmem:[#allocation57_spill] sm:$0xff] %v5890_v13 }
 0x95a   :  { %3406 = vmatpush3.msra.mxu0 %v5413_v56  ;;  %1556 = vmatprep.subr.mxu1 %v5619_v2  ;;  %v5893_v56 = vld [vmem:[#allocation10 + $0x3e8] sm:$0xff] }
 0x95b   :  { %3407 = vmatprep.subr.mxu0 %v8141_v6  ;;  %1557 = vmatpush1.msra.mxu1 %v5882_v23  ;;  %8299 = vst [vmem:[#allocation59_spill] sm:$0xff] %v5893_v56 }
 0x95c   :  { %3408 = vmatpush3.msra.mxu0 %v5417_v59  ;;  %1558 = vmatprep.subr.mxu1 %v5886_v61  ;;  %v5902_v59 = vld [vmem:[#allocation10 + $0x3c0] sm:$0xff] }
 0x95d   :  { %1599 = vmatprep.subr.mxu0 %v5626_v4  ;;  %1559 = vmatpush1.msra.mxu1 %v5890_v13  ;;  %8302 = vst [vmem:[#allocation65_spill] sm:$0xff] %v5902_v59 }
 0x95e   :  { %1560 = vmatprep.subr.mxu1 %v5893_v56 }
 0x95f   :  { %1561 = vmatpush2.msra.mxu1 %v5896_v44 }
 0x960   :  { %1562 = vmatprep.subr.mxu1 %v5899_v36 }
 0x961   :  { %1563 = vmatpush2.msra.mxu1 %v5902_v59 }
 0x962   :  { %1564 = vmatprep.subr.mxu1 %v5905_v45 }
 0x963   :  { %1565 = vmatpush2.msra.mxu1 %v5908_v40 }
 0x964   :  { %1566 = vmatprep.subr.mxu1 %v5911_v47  ;;  %v5929_v47 = vld [vmem:[#allocation10 + $0x328] sm:$0xff] }
 0x965   :  { %1567 = vmatpush2.msra.mxu1 %v5914_v39  ;;  %8311 = vst [vmem:[#allocation73_spill] sm:$0xff] %v5929_v47  ;;  %v5932_v39 = vld [vmem:[#allocation10 + $0x320] sm:$0xff] }
 0x966   :  { %1568 = vmatprep.subr.mxu1 %v5917_v48  ;;  %8312 = vst [vmem:[#allocation75_spill] sm:$0xff] %v5932_v39  ;;  %v5935_v48 = vld [vmem:[#allocation10 + $0x308] sm:$0xff] }
 0x967   :  { %1569 = vmatpush2.msra.mxu1 %v5920_v42  ;;  %8313 = vst [vmem:[#allocation77_spill] sm:$0xff] %v5935_v48  ;;  %v5938_v42 = vld [vmem:[#allocation10 + $0x300] sm:$0xff] }
 0x968   :  { %1570 = vmatprep.subr.mxu1 %v5923_v41  ;;  %8314 = vst [vmem:[#allocation79_spill] sm:$0xff] %v5938_v42  ;;  %v5941_v41 = vld [vmem:[#allocation10 + $0x2e8] sm:$0xff] }
 0x969   :  { %1571 = vmatpush2.msra.mxu1 %v5926_v38  ;;  %8315 = vst [vmem:[#allocation81_spill] sm:$0xff] %v5941_v41  ;;  %v5944_v38 = vld [vmem:[#allocation10 + $0x2e0] sm:$0xff] }
 0x96a   :  { %1572 = vmatprep.subr.mxu1 %v5929_v47  ;;  %8316 = vst [vmem:[#allocation83_spill] sm:$0xff] %v5944_v38  ;;  %v5947_v47 = vld [vmem:[#allocation10 + $0x2c8] sm:$0xff] }
 0x96b   :  { %1573 = vmatpush2.msra.mxu1 %v5932_v39  ;;  %8317 = vst [vmem:[#allocation84_spill] sm:$0xff] %v5947_v47  ;;  %v5950_v39 = vld [vmem:[#allocation10 + $0x2c0] sm:$0xff] }
 0x96c   :  { %1574 = vmatprep.subr.mxu1 %v5935_v48  ;;  %8318 = vst [vmem:[#allocation85_spill] sm:$0xff] %v5950_v39  ;;  %v5953_v48 = vld [vmem:[#allocation10 + $0x2a8] sm:$0xff] }
 0x96d   :  { %1575 = vmatpush2.msra.mxu1 %v5938_v42  ;;  %8319 = vst [vmem:[#allocation86_spill] sm:$0xff] %v5953_v48  ;;  %v5956_v42 = vld [vmem:[#allocation10 + $0x2a0] sm:$0xff] }
 0x96e   :  { %1576 = vmatprep.subr.mxu1 %v5941_v41  ;;  %8320 = vst [vmem:[#allocation87_spill] sm:$0xff] %v5956_v42  ;;  %v5959_v41 = vld [vmem:[#allocation10 + $0x288] sm:$0xff] }
 0x96f   :  { %1577 = vmatpush2.msra.mxu1 %v5944_v38  ;;  %8321 = vst [vmem:[#allocation88_spill] sm:$0xff] %v5959_v41  ;;  %v5962_v38 = vld [vmem:[#allocation10 + $0x280] sm:$0xff] }
 0x970   :  { %1578 = vmatprep.subr.mxu1 %v5947_v47  ;;  %8322 = vst [vmem:[#allocation89_spill] sm:$0xff] %v5962_v38  ;;  %v5965_v47 = vld [vmem:[#allocation10 + $0x268] sm:$0xff] }
 0x971   :  { %1579 = vmatpush2.msra.mxu1 %v5950_v39  ;;  %8323 = vst [vmem:[#allocation90_spill] sm:$0xff] %v5965_v47  ;;  %v5968_v39 = vld [vmem:[#allocation10 + $0x260] sm:$0xff] }
 0x972   :  { %1580 = vmatprep.subr.mxu1 %v5953_v48  ;;  %8324 = vst [vmem:[#allocation91_spill] sm:$0xff] %v5968_v39  ;;  %v5971_v48 = vld [vmem:[#allocation10 + $0x248] sm:$0xff] }
 0x973   :  { %1581 = vmatpush2.msra.mxu1 %v5956_v42  ;;  %8325 = vst [vmem:[#allocation92_spill] sm:$0xff] %v5971_v48  ;;  %v5974_v42 = vld [vmem:[#allocation10 + $0x240] sm:$0xff] }
 0x974   :  { %1582 = vmatprep.subr.mxu1 %v5959_v41  ;;  %8326 = vst [vmem:[#allocation93_spill] sm:$0xff] %v5974_v42  ;;  %v5977_v41 = vld [vmem:[#allocation10 + $0x228] sm:$0xff] }
 0x975   :  { %1583 = vmatpush2.msra.mxu1 %v5962_v38  ;;  %8327 = vst [vmem:[#allocation94_spill] sm:$0xff] %v5977_v41  ;;  %v5980_v38 = vld [vmem:[#allocation10 + $0x220] sm:$0xff] }
 0x976   :  { %1584 = vmatprep.subr.mxu1 %v5965_v47  ;;  %8328 = vst [vmem:[#allocation95_spill] sm:$0xff] %v5980_v38  ;;  %v5983_v47 = vld [vmem:[#allocation10 + $0x208] sm:$0xff] }
 0x977   :  { %1585 = vmatpush2.msra.mxu1 %v5968_v39  ;;  %8329 = vst [vmem:[#allocation96_spill] sm:$0xff] %v5983_v47  ;;  %v5986_v39 = vld [vmem:[#allocation10 + $0x200] sm:$0xff] }
 0x978   :  { %1586 = vmatprep.subr.mxu1 %v5971_v48  ;;  %8330 = vst [vmem:[#allocation97_spill] sm:$0xff] %v5986_v39 }
 0x979   :  { %1587 = vmatpush2.msra.mxu1 %v5974_v42 }
 0x97a   :  { %1588 = vmatprep.subr.mxu1 %v5977_v41 }
 0x97b   :  { %1589 = vmatpush2.msra.mxu1 %v5980_v38 }
 0x97c   :  { %1590 = vmatprep.subr.mxu1 %v5983_v47 }
 0x97d   :  { %1591 = vmatpush2.msra.mxu1 %v5986_v39 }
 0x97e   :  { %3412 = vmatprep.subr.mxu1 %v8141_v6 }
 0x9fd   :  { %v1332_v48 = vpop.f32.mrf.mxu0  ;;  %v1403_v41 = vpop.f32.mrf.mxu1 }
 0x9fe   :  { %v3109_v42 = vmul.f32 -1.442695, %v1332_v48 }
 0x9ff   :  { %v1334_v40 = vpop.f32.mrf.mxu0  ;;  %v1405_v59 = vpop.f32.mrf.mxu1 }
 0xa00   :  { %3699 = vpow2.f32 %v3109_v42  ;;  %v3110_v45 = vmul.f32 -1.442695, %v1334_v40  ;;  %v3111_v36 = vmul.f32 -1.442695, %v1405_v59  ;;  %v8340_v42 = vld [vmem:[#allocation33_spill] sm:$0xff] }
 0xa02   :  { %3701 = vpow2.f32 %v3110_v45 }
 0xa03   :  { %3703 = vpow2.f32 %v3111_v36 }
 0xa0d   :  { %v3700_v38 = vpop.eup %3699 }
 0xa0e   :  { %v1411_v44 = vadd.f32 1.0, %v3700_v38 }
 0xa0f   :  { %v3702_v56 = vpop.eup %3701 }
 0xa10   :  { %3705 = vrcp.f32 %v1411_v44  ;;  %v1417_v47 = vadd.f32 1.0, %v3702_v56  ;;  %v3704_v39 = vpop.eup %3703  ;;  %v8336_v56 = vld [vmem:[#allocation29_spill] sm:$0xff]  ;;  %v8337_v44 = vld [vmem:[#allocation30_spill] sm:$0xff] }
 0xa11   :  { %3707 = vtanh.f32 %v1403_v41  ;;  %v1424_v48 = vadd.f32 1.0, %v3704_v39  ;;  %v8339_v39 = vld [vmem:[#allocation32_spill] sm:$0xff]  ;;  %v8341_v41 = vld [vmem:[#allocation34_spill] sm:$0xff] }
 0xa12   :  { %3709 = vrcp.f32 %v1417_v47  ;;  %v8338_v47 = vld [vmem:[#allocation31_spill] sm:$0xff] }
 0xa13   :  { %3711 = vrcp.f32 %v1424_v48  ;;  %v8342_v48 = vld [vmem:[#allocation35_spill] sm:$0xff] }
 0xa1d   :  { %v3706_v13 = vpop.eup %3705 }
 0xa1e   :  { %v3708_v4 = vpop.eup %3707 }
 0xa1f   :  { %v3710_v61 = vpop.eup %3709  ;;  %v1428_v23 = vmul.f32 %v3708_v4, %v3706_v13  ;;  %v8331_v4 = vld [vmem:[#allocation24_spill] sm:$0xff] }
 0xa20   :  { %v1427_v40 = vmul.f32 %v3710_v61, %v5664_v46  ;;  %v3712_v38 = vpop.eup %3711  ;;  %v8332_v46 = vld [vmem:[#allocation25_spill] sm:$0xff]  ;;  %v8334_v61 = vld [vmem:[#allocation27_spill] sm:$0xff]  ;;  %v8335_v13 = vld [vmem:[#allocation28_spill] sm:$0xff] }
 0xa22   :  { %v5991_v45 = vadd.f32 %v1428_v23, %v1427_v40  ;;  %v8333_v23 = vld [vmem:[#allocation26_spill] sm:$0xff]  ;;  %v8343_v40 = vld [vmem:[#allocation36_spill] sm:$0xff] }
 0xa24   :  { %3713 = vtanh.f32 %v5991_v45 }
 0xa31   :  { %v3714_v59 = vpop.eup %3713 }
 0xa32   :  { %v1431_v36 = vmul.f32 %v3714_v59, %v3712_v38  ;;  %v8344_v38 = vld [vmem:[#allocation37_spill] sm:$0xff]  ;;  %v8345_v59 = vld [vmem:[#allocation38_spill] sm:$0xff] }
 0xa34   :  { %3410 = vmatmul.mubr.f32.vlgmr.msra.gmra.mxu0 %v1431_v36  ;;  %1592 = vmatprep.mubr.f32.mxu1 %v1431_v36 }
 0xa35   :  { %1663 = vmatprep.mubr.f32.mxu0 %v1431_v36  ;;  %1600 = vmatpush1.msra.mxu0 %v5667_v50  ;;  %v8346_v36 = vld [vmem:[#allocation39_spill] sm:$0xff] }
 0xa36   :  { %1601 = vmatprep.subr.mxu0 %v5670_v51 }
 0xa37   :  { %1602 = vmatpush1.msra.mxu0 %v5673_v52 }
 0xa38   :  { %1603 = vmatprep.subr.mxu0 %v5676_v15 }
 0xa39   :  { %1604 = vmatpush1.msra.mxu0 %v5679_v54 }
 0xa3a   :  { %1605 = vmatprep.subr.mxu0 %v5682_v24 }
 0xa3b   :  { %1606 = vmatpush1.msra.mxu0 %v5685_v25 }
 0xa3c   :  { %1607 = vmatprep.subr.mxu0 %v5688_v26 }
 0xa3d   :  { %1608 = vmatpush1.msra.mxu0 %v5691_v27 }
 0xa3e   :  { %1609 = vmatprep.subr.mxu0 %v5694_v28 }
 0xa3f   :  { %1610 = vmatpush1.msra.mxu0 %v5697_v29 }
 0xa40   :  { %1611 = vmatprep.subr.mxu0 %v5700_v30 }
 0xa41   :  { %1612 = vmatpush1.msra.mxu0 %v5703_v31 }
 0xa42   :  { %1613 = vmatprep.subr.mxu0 %v5706_v32 }
 0xa43   :  { %1614 = vmatpush1.msra.mxu0 %v5709_v33 }
 0xa44   :  { %1615 = vmatprep.subr.mxu0 %v5712_v34 }
 0xa45   :  { %1616 = vmatpush1.msra.mxu0 %v8331_v4 }
 0xa46   :  { %1617 = vmatprep.subr.mxu0 %v8332_v46 }
 0xa47   :  { %1618 = vmatpush1.msra.mxu0 %v8333_v23 }
 0xa48   :  { %1619 = vmatprep.subr.mxu0 %v8334_v61 }
 0xa49   :  { %1620 = vmatpush1.msra.mxu0 %v8335_v13 }
 0xa4a   :  { %1621 = vmatprep.subr.mxu0 %v8336_v56  ;;  %v8347_v56 = vld [vmem:[#allocation40_spill] sm:$0xff] }
 0xa4b   :  { %1622 = vmatpush1.msra.mxu0 %v8337_v44  ;;  %v8348_v44 = vld [vmem:[#allocation41_spill] sm:$0xff] }
 0xa4c   :  { %1623 = vmatprep.subr.mxu0 %v8338_v47  ;;  %v8349_v47 = vld [vmem:[#allocation42_spill] sm:$0xff] }
 0xa4d   :  { %1624 = vmatpush1.msra.mxu0 %v8339_v39  ;;  %v8350_v39 = vld [vmem:[#allocation43_spill] sm:$0xff] }
 0xa4e   :  { %1625 = vmatprep.subr.mxu0 %v8340_v42  ;;  %v8351_v42 = vld [vmem:[#allocation44_spill] sm:$0xff] }
 0xa4f   :  { %1626 = vmatpush1.msra.mxu0 %v8341_v41  ;;  %v8352_v41 = vld [vmem:[#allocation45_spill] sm:$0xff] }
 0xa50   :  { %1627 = vmatprep.subr.mxu0 %v8342_v48  ;;  %v8353_v48 = vld [vmem:[#allocation46_spill] sm:$0xff] }
 0xa51   :  { %1628 = vmatpush1.msra.mxu0 %v8343_v40  ;;  %v8354_v40 = vld [vmem:[#allocation47_spill] sm:$0xff] }
 0xa52   :  { %1629 = vmatprep.subr.mxu0 %v8344_v38  ;;  %v8355_v38 = vld [vmem:[#allocation49_spill] sm:$0xff] }
 0xa53   :  { %1630 = vmatpush1.msra.mxu0 %v8345_v59  ;;  %v6035_v59 = vld [vmem:[#allocation10 + $0x358] sm:$0xff] }
 0xa54   :  { %1631 = vmatprep.subr.mxu0 %v8346_v36  ;;  %8356 = vst [vmem:[#allocation98_spill] sm:$0xff] %v6035_v59 }
 0xa55   :  { %1632 = vmatpush2.msra.mxu0 %v8347_v56  ;;  %v6038_v56 = vld [vmem:[#allocation10 + $0x350] sm:$0xff] }
 0xa56   :  { %1633 = vmatprep.subr.mxu0 %v8348_v44  ;;  %8357 = vst [vmem:[#allocation99_spill] sm:$0xff] %v6038_v56 }
 0xa57   :  { %1634 = vmatpush2.msra.mxu0 %v8349_v47  ;;  %v6041_v47 = vld [vmem:[#allocation10 + $0x338] sm:$0xff] }
 0xa58   :  { %1635 = vmatprep.subr.mxu0 %v8350_v39  ;;  %8358 = vst [vmem:[#allocation54_spill] sm:$0xff] %v6041_v47 }
 0xa59   :  { %1636 = vmatpush2.msra.mxu0 %v8351_v42  ;;  %v6044_v42 = vld [vmem:[#allocation10 + $0x330] sm:$0xff] }
 0xa5a   :  { %1637 = vmatprep.subr.mxu0 %v8352_v41  ;;  %8359 = vst [vmem:[#allocation56_spill] sm:$0xff] %v6044_v42 }
 0xa5b   :  { %1638 = vmatpush2.msra.mxu0 %v8353_v48  ;;  %v6047_v48 = vld [vmem:[#allocation10 + $0x318] sm:$0xff] }
 0xa5c   :  { %1639 = vmatprep.subr.mxu0 %v8354_v40  ;;  %8360 = vst [vmem:[#allocation58_spill] sm:$0xff] %v6047_v48 }
 0xa5d   :  { %1640 = vmatpush2.msra.mxu0 %v8355_v38  ;;  %v6050_v38 = vld [vmem:[#allocation10 + $0x310] sm:$0xff] }
 0xa5e   :  { %1641 = vmatprep.subr.mxu0 %v6035_v59  ;;  %8361 = vst [vmem:[#allocation60_spill] sm:$0xff] %v6050_v38  ;;  %v6053_v59 = vld [vmem:[#allocation10 + $0x2f8] sm:$0xff] }
 0xa5f   :  { %1642 = vmatpush2.msra.mxu0 %v6038_v56  ;;  %8362 = vst [vmem:[#allocation62_spill] sm:$0xff] %v6053_v59  ;;  %v6056_v56 = vld [vmem:[#allocation10 + $0x2f0] sm:$0xff] }
 0xa60   :  { %1643 = vmatprep.subr.mxu0 %v6041_v47  ;;  %8363 = vst [vmem:[#allocation64_spill] sm:$0xff] %v6056_v56  ;;  %v6059_v47 = vld [vmem:[#allocation10 + $0x2d8] sm:$0xff] }
 0xa61   :  { %1644 = vmatpush2.msra.mxu0 %v6044_v42  ;;  %8364 = vst [vmem:[#allocation66_spill] sm:$0xff] %v6059_v47  ;;  %v6062_v42 = vld [vmem:[#allocation10 + $0x2d0] sm:$0xff] }
 0xa62   :  { %1645 = vmatprep.subr.mxu0 %v6047_v48  ;;  %8365 = vst [vmem:[#allocation68_spill] sm:$0xff] %v6062_v42  ;;  %v6065_v48 = vld [vmem:[#allocation10 + $0x2b8] sm:$0xff] }
 0xa63   :  { %1646 = vmatpush2.msra.mxu0 %v6050_v38  ;;  %8366 = vst [vmem:[#allocation70_spill] sm:$0xff] %v6065_v48  ;;  %v6068_v38 = vld [vmem:[#allocation10 + $0x2b0] sm:$0xff] }
 0xa64   :  { %1647 = vmatprep.subr.mxu0 %v6053_v59  ;;  %8367 = vst [vmem:[#allocation72_spill] sm:$0xff] %v6068_v38  ;;  %v6071_v59 = vld [vmem:[#allocation10 + $0x298] sm:$0xff] }
 0xa65   :  { %1648 = vmatpush2.msra.mxu0 %v6056_v56  ;;  %8368 = vst [vmem:[#allocation18_spill] sm:$0xff] %v6071_v59  ;;  %v6074_v56 = vld [vmem:[#allocation10 + $0x290] sm:$0xff] }
 0xa66   :  { %1649 = vmatprep.subr.mxu0 %v6059_v47  ;;  %8369 = vst [vmem:[#allocation19_spill] sm:$0xff] %v6074_v56  ;;  %v6077_v47 = vld [vmem:[#allocation10 + $0x278] sm:$0xff] }
 0xa67   :  { %1650 = vmatpush2.msra.mxu0 %v6062_v42  ;;  %8370 = vst [vmem:[#allocation20_spill] sm:$0xff] %v6077_v47  ;;  %v6080_v42 = vld [vmem:[#allocation10 + $0x270] sm:$0xff] }
 0xa68   :  { %1651 = vmatprep.subr.mxu0 %v6065_v48  ;;  %8371 = vst [vmem:[#allocation21_spill] sm:$0xff] %v6080_v42  ;;  %v6083_v48 = vld [vmem:[#allocation10 + $0x258] sm:$0xff] }
 0xa69   :  { %1652 = vmatpush2.msra.mxu0 %v6068_v38  ;;  %8372 = vst [vmem:[#allocation22_spill] sm:$0xff] %v6083_v48  ;;  %v6086_v38 = vld [vmem:[#allocation10 + $0x250] sm:$0xff] }
 0xa6a   :  { %1653 = vmatprep.subr.mxu0 %v6071_v59  ;;  %8373 = vst [vmem:[#allocation24_spill] sm:$0xff] %v6086_v38  ;;  %v6089_v59 = vld [vmem:[#allocation10 + $0x238] sm:$0xff] }
 0xa6b   :  { %1654 = vmatpush2.msra.mxu0 %v6074_v56  ;;  %8374 = vst [vmem:[#allocation25_spill] sm:$0xff] %v6089_v59  ;;  %v6092_v56 = vld [vmem:[#allocation10 + $0x230] sm:$0xff] }
 0xa6c   :  { %1655 = vmatprep.subr.mxu0 %v6077_v47  ;;  %8375 = vst [vmem:[#allocation100_spill] sm:$0xff] %v6092_v56  ;;  %v6095_v47 = vld [vmem:[#allocation10 + $0x218] sm:$0xff] }
 0xa6d   :  { %1656 = vmatpush2.msra.mxu0 %v6080_v42  ;;  %8376 = vst [vmem:[#allocation101_spill] sm:$0xff] %v6095_v47  ;;  %v6098_v42 = vld [vmem:[#allocation10 + $0x210] sm:$0xff] }
 0xa6e   :  { %1657 = vmatprep.subr.mxu0 %v6083_v48  ;;  %8377 = vst [vmem:[#allocation102_spill] sm:$0xff] %v6098_v42  ;;  %v8378_v48 = vld [vmem:[#allocation48_spill] sm:$0xff] }
 0xa6f   :  { %1658 = vmatpush2.msra.mxu0 %v6086_v38  ;;  %v8379_v38 = vld [vmem:[#allocation50_spill] sm:$0xff] }
 0xa70   :  { %1659 = vmatprep.subr.mxu0 %v6089_v59 }
 0xa71   :  { %1660 = vmatpush2.msra.mxu0 %v6092_v56 }
 0xa72   :  { %1661 = vmatprep.subr.mxu0 %v6095_v47 }
 0xa73   :  { %1662 = vmatpush2.msra.mxu0 %v6098_v42 }
 0xa74   :  { %1790 = vmatprep.subr.mxu0 %v8378_v48 }
 0xaf4   :  { %v1498_v40 = vpop.f32.mrf.mxu0 }
 0xaf5   :  { %v6103_v41 = vadd.f32 %v8379_v38, %v1498_v40 }
 0xaf6   :  { %v3411_v39 = vpop.f32.mrf.mxu0 }
 0xaf7   :  { %8380 = vst [vmem:[#allocation48_spill] sm:$0xff] %v6103_v41  ;;  %1503 = vmax.xlane.f32.xlu0 %v6103_v41 }
 0xb80   :  { %v1504_v59 = vpop.xlane.xlu0 %1503 }
 0xb81   :  { %vm1505_vm8 = vcmp.eq.f32.partialorder %v6103_v41, %v1504_v59  ;;  %v6111_v59 = vld [vmem:[#allocation12 + $0x78] sm:$0xff] }
 0xb82   :  { %v1506_v56 = vsel %vm1505_vm8, %v5288_v3, 128  ;;  %v8410_v41 = vld [vmem:[#allocation88_spill] sm:$0xff] }
 0xb83   :  { %v1508_v44 = vshra.s32 %v1506_v56, 16  ;;  %v1507_v36 = vand.u32 65535, %v1506_v56  ;;  %v8400_v56 = vld [vmem:[#allocation73_spill] sm:$0xff] }
 0xb85   :  { %v1510_v47 = vcvt.s32.f32 %v1508_v44  ;;  %v1509_v42 = vcvt.s32.f32 %v1507_v36  ;;  %v8401_v44 = vld [vmem:[#allocation75_spill] sm:$0xff]  ;;  %v8404_v36 = vld [vmem:[#allocation81_spill] sm:$0xff] }
 0xb87   :  { %1511 = vmin.xlane.f32.xlu1 %v1510_v47 }
 0xc10   :  { %v1512_v13 = vpop.xlane.xlu1 %1511 }
 0xc11   :  { %vm1513_vm9 = vcmp.eq.f32.partialorder %v1510_v47, %v1512_v13  ;;  %v1518_v61 = vcvt.f32.s32 %v1512_v13  ;;  %v8399_v13 = vld [vmem:[#allocation82_spill] sm:$0xff]  ;;  %v8402_v47 = vld [vmem:[#allocation77_spill] sm:$0xff] }
 0xc12   :  { %v1514_v48 = vsel %vm1513_vm9, %v1509_v42, inf  ;;  %v8403_v42 = vld [vmem:[#allocation79_spill] sm:$0xff] }
 0xc13   :  { %1515 = vmin.xlane.f32.xlu0 %v1514_v48  ;;  %v1519_v38 = vshll.u32 %v1518_v61, 16  ;;  %v6118_v61 = vld [vmem:[#allocation12 + $0x70] sm:$0xff] }
 0xc14   :  { %v8405_v48 = vld [vmem:[#allocation83_spill] sm:$0xff] }
 0xc9c   :  { %v1516_v40 = vpop.xlane.xlu0 %1515 }
 0xc9d   :  { %v1517_v39 = vcvt.f32.s32 %v1516_v40  ;;  %v8406_v40 = vld [vmem:[#allocation84_spill] sm:$0xff] }
 0xc9f   :  { %v1520_v23 = vadd.s32 %v1519_v38, %v1517_v39  ;;  %v8407_v38 = vld [vmem:[#allocation85_spill] sm:$0xff]  ;;  %v8408_v39 = vld [vmem:[#allocation86_spill] sm:$0xff] }
 0xca1   :  { %vm1521_vm10 = vcmp.eq.s32.totalorder %v5288_v3, %v1520_v23  ;;  %v6124_v23 = vld [vmem:[#allocation12 + $0x68] sm:$0xff] }
 0xca2   :  { %3142 = vmatmul.mubr.msk.f32.vlgmr.msra.gmra.mxu1 %vm1521_vm10, %v8209_v57  ;;  %3143 = vmatmul.mubr.msk.f32.vlgmr.msra.gmra.mxu0 %vm1521_vm10, %v8209_v57 }
 0xca3   :  { %3413 = vmatpush3.msra.mxu1 %v6111_v59  ;;  %3444 = vmatprep.mubr.msk.f32.mxu1 %vm4311_vm1, %v8141_v6 }
 0xca4   :  { %3414 = vmatprep.subr.mxu1 %v8141_v6  ;;  %1791 = vmatpush1.msra.mxu0 %v5511_v19  ;;  %v6130_v19 = vld [vmem:[#allocation12 + $0x60] sm:$0xff] }
 0xca5   :  { %3415 = vmatpush3.msra.mxu1 %v6118_v61  ;;  %1792 = vmatprep.subr.mxu0 %v5515_v21  ;;  %v6136_v21 = vld [vmem:[#allocation12 + $0x58] sm:$0xff] }
 0xca6   :  { %3416 = vmatprep.subr.mxu1 %v8141_v6  ;;  %1793 = vmatpush1.msra.mxu0 %v5519_v5  ;;  %v6142_v5 = vld [vmem:[#allocation12 + $0x50] sm:$0xff] }
 0xca7   :  { %3417 = vmatpush3.msra.mxu1 %v6124_v23  ;;  %1794 = vmatprep.subr.mxu0 %v5523_v62  ;;  %v6148_v62 = vld [vmem:[#allocation12 + $0x48] sm:$0xff] }
 0xca8   :  { %3418 = vmatprep.subr.mxu1 %v8141_v6  ;;  %1795 = vmatpush1.msra.mxu0 %v5527_v17  ;;  %v6154_v17 = vld [vmem:[#allocation12 + $0x40] sm:$0xff] }
 0xca9   :  { %3419 = vmatpush3.msra.mxu1 %v6130_v19  ;;  %1796 = vmatprep.subr.mxu0 %v5531_v53  ;;  %v6160_v53 = vld [vmem:[#allocation12 + $0x38] sm:$0xff] }
 0xcaa   :  { %3420 = vmatprep.subr.mxu1 %v8141_v6  ;;  %1797 = vmatpush1.msra.mxu0 %v5535_v1  ;;  %v6166_v1 = vld [vmem:[#allocation12 + $0x30] sm:$0xff] }
 0xcab   :  { %3421 = vmatpush3.msra.mxu1 %v6136_v21  ;;  %1798 = vmatprep.subr.mxu0 %v5539_v7  ;;  %v6172_v7 = vld [vmem:[#allocation12 + $0x28] sm:$0xff] }
 0xcac   :  { %3422 = vmatprep.subr.mxu1 %v8141_v6  ;;  %1799 = vmatpush1.msra.mxu0 %v5543_v9  ;;  %v6178_v9 = vld [vmem:[#allocation12 + $0x20] sm:$0xff] }
 0xcad   :  { %3423 = vmatpush3.msra.mxu1 %v6142_v5  ;;  %1800 = vmatprep.subr.mxu0 %v5547_v11  ;;  %v6184_v11 = vld [vmem:[#allocation12 + $0x18] sm:$0xff] }
 0xcae   :  { %3424 = vmatprep.subr.mxu1 %v8141_v6  ;;  %1801 = vmatpush1.msra.mxu0 %v8281_v8  ;;  %v6190_v8 = vld [vmem:[#allocation12 + $0x10] sm:$0xff] }
 0xcaf   :  { %3425 = vmatpush3.msra.mxu1 %v6148_v62  ;;  %1802 = vmatprep.subr.mxu0 %v8282_v10  ;;  %8381 = vst [vmem:[#allocation50_spill] sm:$0xff] %v6190_v8  ;;  %v6196_v10 = vld [vmem:[#allocation12 + $0x8] sm:$0xff] }
 0xcb0   :  { %3426 = vmatprep.subr.mxu1 %v8141_v6  ;;  %1803 = vmatpush1.msra.mxu0 %v8283_v55  ;;  %8382 = vst [vmem:[#allocation103_spill] sm:$0xff] %v6196_v10  ;;  %v8383_v55 = vld [vmem:[#allocation53_spill] sm:$0xff] }
 0xcb1   :  { %3427 = vmatpush3.msra.mxu1 %v6154_v17  ;;  %1804 = vmatprep.subr.mxu0 %v8284_v12  ;;  %v8385_v12 = vld [vmem:[#allocation55_spill] sm:$0xff] }
 0xcb2   :  { %3428 = vmatprep.subr.mxu1 %v8141_v6  ;;  %1805 = vmatpush1.msra.mxu0 %v8285_v60  ;;  %v8386_v60 = vld [vmem:[#allocation23_spill] sm:$0xff] }
 0xcb3   :  { %3429 = vmatpush3.msra.mxu1 %v6160_v53  ;;  %1806 = vmatprep.subr.mxu0 %v8286_v63  ;;  %v8387_v63 = vld [vmem:[#allocation57_spill] sm:$0xff] }
 0xcb4   :  { %3430 = vmatprep.subr.mxu1 %v8141_v6  ;;  %1807 = vmatpush1.msra.mxu0 %v8287_v0  ;;  %v8389_v0 = vld [vmem:[#allocation61_spill] sm:$0xff] }
 0xcb5   :  { %3431 = vmatpush3.msra.mxu1 %v6166_v1  ;;  %1808 = vmatprep.subr.mxu0 %v8288_v35  ;;  %v8390_v35 = vld [vmem:[#allocation63_spill] sm:$0xff] }
 0xcb6   :  { %3432 = vmatprep.subr.mxu1 %v8141_v6  ;;  %1809 = vmatpush1.msra.mxu0 %v8289_v16  ;;  %v8392_v16 = vld [vmem:[#allocation67_spill] sm:$0xff] }
 0xcb7   :  { %3433 = vmatpush3.msra.mxu1 %v6172_v7  ;;  %1810 = vmatprep.subr.mxu0 %v8290_v37  ;;  %v8393_v37 = vld [vmem:[#allocation69_spill] sm:$0xff] }
 0xcb8   :  { %3434 = vmatprep.subr.mxu1 %v8141_v6  ;;  %1811 = vmatpush1.msra.mxu0 %v8291_v18  ;;  %v8394_v18 = vld [vmem:[#allocation71_spill] sm:$0xff] }
 0xcb9   :  { %3435 = vmatpush3.msra.mxu1 %v6178_v9  ;;  %1812 = vmatprep.subr.mxu0 %v8292_v49  ;;  %v8395_v49 = vld [vmem:[#allocation74_spill] sm:$0xff] }
 0xcba   :  { %3436 = vmatprep.subr.mxu1 %v8141_v6  ;;  %1813 = vmatpush1.msra.mxu0 %v8293_v20  ;;  %v8396_v20 = vld [vmem:[#allocation76_spill] sm:$0xff] }
 0xcbb   :  { %3437 = vmatpush3.msra.mxu1 %v6184_v11  ;;  %1814 = vmatprep.subr.mxu0 %v8294_v43  ;;  %v8397_v43 = vld [vmem:[#allocation78_spill] sm:$0xff] }
 0xcbc   :  { %3438 = vmatprep.subr.mxu1 %v8141_v6  ;;  %1815 = vmatpush1.msra.mxu0 %v5607_v58  ;;  %v6202_v58 = vld [vmem:[#allocation12] sm:$0xff] }
 0xcbd   :  { %3439 = vmatpush3.msra.mxu1 %v6190_v8  ;;  %1816 = vmatprep.subr.mxu0 %v8295_v22  ;;  %8384 = vst [vmem:[#allocation53_spill] sm:$0xff] %v6202_v58  ;;  %v8398_v22 = vld [vmem:[#allocation80_spill] sm:$0xff] }
 0xcbe   :  { %3440 = vmatprep.subr.mxu1 %v8141_v6  ;;  %1817 = vmatpush1.msra.mxu0 %v5615_v14  ;;  %v8388_v14 = vld [vmem:[#allocation59_spill] sm:$0xff] }
 0xcbf   :  { %3441 = vmatpush3.msra.mxu1 %v6196_v10  ;;  %1818 = vmatprep.subr.mxu0 %v5619_v2  ;;  %v8391_v2 = vld [vmem:[#allocation65_spill] sm:$0xff] }
 0xcc0   :  { %3442 = vmatprep.subr.mxu1 %v8141_v6  ;;  %1819 = vmatpush1.msra.mxu0 %v8383_v55 }
 0xcc1   :  { %3443 = vmatpush3.msra.mxu1 %v6202_v58  ;;  %1820 = vmatprep.subr.mxu0 %v8385_v12 }
 0xcc2   :  { %1861 = vmatprep.subr.mxu1 %v8386_v60  ;;  %1821 = vmatpush1.msra.mxu0 %v8387_v63  ;;  %v8409_v60 = vld [vmem:[#allocation87_spill] sm:$0xff] }
 0xcc3   :  { %1822 = vmatprep.subr.mxu0 %v8388_v14 }
 0xcc4   :  { %1823 = vmatpush2.msra.mxu0 %v8389_v0 }
 0xcc5   :  { %1824 = vmatprep.subr.mxu0 %v8390_v35 }
 0xcc6   :  { %1825 = vmatpush2.msra.mxu0 %v8391_v2 }
 0xcc7   :  { %1826 = vmatprep.subr.mxu0 %v8392_v16 }
 0xcc8   :  { %1827 = vmatpush2.msra.mxu0 %v8393_v37 }
 0xcc9   :  { %1828 = vmatprep.subr.mxu0 %v8394_v18 }
 0xcca   :  { %1829 = vmatpush2.msra.mxu0 %v8395_v49 }
 0xccb   :  { %1830 = vmatprep.subr.mxu0 %v8396_v20 }
 0xccc   :  { %1831 = vmatpush2.msra.mxu0 %v8397_v43 }
 0xccd   :  { %1832 = vmatprep.subr.mxu0 %v8398_v22 }
 0xcce   :  { %1833 = vmatpush2.msra.mxu0 %v8399_v13 }
 0xccf   :  { %1834 = vmatprep.subr.mxu0 %v8400_v56  ;;  %v8411_v56 = vld [vmem:[#allocation89_spill] sm:$0xff] }
 0xcd0   :  { %1835 = vmatpush2.msra.mxu0 %v8401_v44  ;;  %v8412_v44 = vld [vmem:[#allocation90_spill] sm:$0xff] }
 0xcd1   :  { %1836 = vmatprep.subr.mxu0 %v8402_v47  ;;  %v8413_v47 = vld [vmem:[#allocation91_spill] sm:$0xff] }
 0xcd2   :  { %1837 = vmatpush2.msra.mxu0 %v8403_v42  ;;  %v8414_v42 = vld [vmem:[#allocation92_spill] sm:$0xff] }
 0xcd3   :  { %1838 = vmatprep.subr.mxu0 %v8404_v36  ;;  %v8415_v36 = vld [vmem:[#allocation93_spill] sm:$0xff] }
 0xcd4   :  { %1839 = vmatpush2.msra.mxu0 %v8405_v48  ;;  %v8416_v48 = vld [vmem:[#allocation94_spill] sm:$0xff] }
 0xcd5   :  { %1840 = vmatprep.subr.mxu0 %v8406_v40  ;;  %v8417_v40 = vld [vmem:[#allocation95_spill] sm:$0xff] }
 0xcd6   :  { %1841 = vmatpush2.msra.mxu0 %v8407_v38  ;;  %v8418_v38 = vld [vmem:[#allocation96_spill] sm:$0xff] }
 0xcd7   :  { %1842 = vmatprep.subr.mxu0 %v8408_v39  ;;  %v8419_v39 = vld [vmem:[#allocation97_spill] sm:$0xff] }
 0xcd8   :  { %1843 = vmatpush2.msra.mxu0 %v8409_v60 }
 0xcd9   :  { %1844 = vmatprep.subr.mxu0 %v8410_v41 }
 0xcda   :  { %1845 = vmatpush2.msra.mxu0 %v8411_v56 }
 0xcdb   :  { %1846 = vmatprep.subr.mxu0 %v8412_v44 }
 0xcdc   :  { %1847 = vmatpush2.msra.mxu0 %v8413_v47 }
 0xcdd   :  { %1848 = vmatprep.subr.mxu0 %v8414_v42 }
 0xcde   :  { %1849 = vmatpush2.msra.mxu0 %v8415_v36 }
 0xcdf   :  { %1850 = vmatprep.subr.mxu0 %v8416_v48 }
 0xce0   :  { %1851 = vmatpush2.msra.mxu0 %v8417_v40 }
 0xce1   :  { %1852 = vmatprep.subr.mxu0 %v8418_v38 }
 0xce2   :  { %1853 = vmatpush2.msra.mxu0 %v8419_v39 }
 0xce3   :  { %3447 = vmatprep.subr.mxu0 %v8141_v6 }
 0xd62   :  { %v1594_v41 = vpop.f32.mrf.mxu1  ;;  %v1665_v47 = vpop.f32.mrf.mxu0 }
 0xd63   :  { %v3113_v56 = vmul.f32 -1.442695, %v1594_v41 }
 0xd64   :  { %v1596_v60 = vpop.f32.mrf.mxu1  ;;  %v1667_v42 = vpop.f32.mrf.mxu0 }
 0xd65   :  { %3715 = vpow2.f32 %v3113_v56  ;;  %v3114_v44 = vmul.f32 -1.442695, %v1596_v60  ;;  %v3115_v13 = vmul.f32 -1.442695, %v1667_v42  ;;  %v8448_v60 = vld [vmem:[#allocation60_spill] sm:$0xff] }
 0xd67   :  { %3717 = vpow2.f32 %v3114_v44 }
 0xd68   :  { %3719 = vpow2.f32 %v3115_v13 }
 0xd72   :  { %v3716_v36 = vpop.eup %3715 }
 0xd73   :  { %v1673_v22 = vadd.f32 1.0, %v3716_v36 }
 0xd74   :  { %v3718_v48 = vpop.eup %3717 }
 0xd75   :  { %3721 = vrcp.f32 %v1673_v22  ;;  %v1679_v40 = vadd.f32 1.0, %v3718_v48  ;;  %v3720_v39 = vpop.eup %3719  ;;  %v8442_v22 = vld [vmem:[#allocation49_spill] sm:$0xff]  ;;  %v8444_v48 = vld [vmem:[#allocation99_spill] sm:$0xff] }
 0xd76   :  { %3723 = vtanh.f32 %v1665_v47  ;;  %v1686_v41 = vadd.f32 1.0, %v3720_v39  ;;  %v8443_v47 = vld [vmem:[#allocation98_spill] sm:$0xff] }
 0xd77   :  { %3725 = vrcp.f32 %v1679_v40  ;;  %v8445_v40 = vld [vmem:[#allocation54_spill] sm:$0xff] }
 0xd78   :  { %3727 = vrcp.f32 %v1686_v41  ;;  %v8447_v39 = vld [vmem:[#allocation58_spill] sm:$0xff] }
 0xd79   :  { %v8449_v41 = vld [vmem:[#allocation62_spill] sm:$0xff] }
 0xd82   :  { %v3722_v38 = vpop.eup %3721 }
 0xd83   :  { %v3724_v43 = vpop.eup %3723 }
 0xd84   :  { %v3726_v20 = vpop.eup %3725  ;;  %v1690_v49 = vmul.f32 %v3724_v43, %v3722_v38  ;;  %v8441_v43 = vld [vmem:[#allocation47_spill] sm:$0xff]  ;;  %v8446_v38 = vld [vmem:[#allocation56_spill] sm:$0xff] }
 0xd85   :  { %v1689_v56 = vmul.f32 %v3726_v20, %v5991_v45  ;;  %v3728_v42 = vpop.eup %3727  ;;  %v8436_v45 = vld [vmem:[#allocation42_spill] sm:$0xff] }
 0xd86   :  { %v8440_v20 = vld [vmem:[#allocation46_spill] sm:$0xff] }
 0xd87   :  { %v6242_v44 = vadd.f32 %v1690_v49, %v1689_v56  ;;  %v8439_v49 = vld [vmem:[#allocation45_spill] sm:$0xff]  ;;  %v8450_v56 = vld [vmem:[#allocation64_spill] sm:$0xff] }
 0xd89   :  { %3729 = vtanh.f32 %v6242_v44 }
 0xd96   :  { %v3730_v36 = vpop.eup %3729 }
 0xd97   :  { %v1693_v13 = vmul.f32 %v3730_v36, %v3728_v42  ;;  %v8451_v42 = vld [vmem:[#allocation66_spill] sm:$0xff]  ;;  %v8452_v36 = vld [vmem:[#allocation68_spill] sm:$0xff] }
 0xd99   :  { %3445 = vmatmul.mubr.f32.vlgmr.msra.gmra.mxu1 %v1693_v13  ;;  %1854 = vmatprep.mubr.f32.mxu0 %v1693_v13 }
 0xd9a   :  { %1925 = vmatprep.mubr.f32.mxu1 %v1693_v13  ;;  %1862 = vmatpush1.msra.mxu1 %v5667_v50  ;;  %v8420_v50 = vld [vmem:[#allocation26_spill] sm:$0xff] }
 0xd9b   :  { %1863 = vmatprep.subr.mxu1 %v5670_v51  ;;  %v8421_v51 = vld [vmem:[#allocation27_spill] sm:$0xff]  ;;  %v8453_v13 = vld [vmem:[#allocation70_spill] sm:$0xff] }
 0xd9c   :  { %1864 = vmatpush1.msra.mxu1 %v5673_v52  ;;  %v8422_v52 = vld [vmem:[#allocation28_spill] sm:$0xff] }
 0xd9d   :  { %1865 = vmatprep.subr.mxu1 %v5676_v15  ;;  %v8423_v15 = vld [vmem:[#allocation29_spill] sm:$0xff] }
 0xd9e   :  { %1866 = vmatpush1.msra.mxu1 %v5679_v54  ;;  %v8424_v54 = vld [vmem:[#allocation30_spill] sm:$0xff] }
 0xd9f   :  { %1867 = vmatprep.subr.mxu1 %v5682_v24  ;;  %v8425_v24 = vld [vmem:[#allocation31_spill] sm:$0xff] }
 0xda0   :  { %1868 = vmatpush1.msra.mxu1 %v5685_v25  ;;  %v8426_v25 = vld [vmem:[#allocation32_spill] sm:$0xff] }
 0xda1   :  { %1869 = vmatprep.subr.mxu1 %v5688_v26  ;;  %v8427_v26 = vld [vmem:[#allocation33_spill] sm:$0xff] }
 0xda2   :  { %1870 = vmatpush1.msra.mxu1 %v5691_v27  ;;  %v8428_v27 = vld [vmem:[#allocation34_spill] sm:$0xff] }
 0xda3   :  { %1871 = vmatprep.subr.mxu1 %v5694_v28  ;;  %v8429_v28 = vld [vmem:[#allocation35_spill] sm:$0xff] }
 0xda4   :  { %1872 = vmatpush1.msra.mxu1 %v5697_v29  ;;  %v8430_v29 = vld [vmem:[#allocation36_spill] sm:$0xff] }
 0xda5   :  { %1873 = vmatprep.subr.mxu1 %v5700_v30  ;;  %v8431_v30 = vld [vmem:[#allocation37_spill] sm:$0xff] }
 0xda6   :  { %1874 = vmatpush1.msra.mxu1 %v5703_v31  ;;  %v8432_v31 = vld [vmem:[#allocation38_spill] sm:$0xff] }
 0xda7   :  { %1875 = vmatprep.subr.mxu1 %v5706_v32  ;;  %v8433_v32 = vld [vmem:[#allocation39_spill] sm:$0xff] }
 0xda8   :  { %1876 = vmatpush1.msra.mxu1 %v5709_v33  ;;  %v8434_v33 = vld [vmem:[#allocation40_spill] sm:$0xff] }
 0xda9   :  { %1877 = vmatprep.subr.mxu1 %v5712_v34  ;;  %v8435_v34 = vld [vmem:[#allocation41_spill] sm:$0xff] }
 0xdaa   :  { %1878 = vmatpush1.msra.mxu1 %v8331_v4  ;;  %v8437_v4 = vld [vmem:[#allocation43_spill] sm:$0xff] }
 0xdab   :  { %1879 = vmatprep.subr.mxu1 %v8332_v46  ;;  %v8438_v46 = vld [vmem:[#allocation44_spill] sm:$0xff] }
 0xdac   :  { %1880 = vmatpush1.msra.mxu1 %v8420_v50  ;;  %v8454_v50 = vld [vmem:[#allocation72_spill] sm:$0xff] }
 0xdad   :  { %1881 = vmatprep.subr.mxu1 %v8421_v51  ;;  %v8455_v51 = vld [vmem:[#allocation18_spill] sm:$0xff] }
 0xdae   :  { %1882 = vmatpush1.msra.mxu1 %v8422_v52  ;;  %v8456_v52 = vld [vmem:[#allocation19_spill] sm:$0xff] }
 0xdaf   :  { %1883 = vmatprep.subr.mxu1 %v8423_v15  ;;  %v8457_v15 = vld [vmem:[#allocation20_spill] sm:$0xff] }
 0xdb0   :  { %1884 = vmatpush1.msra.mxu1 %v8424_v54  ;;  %v8458_v54 = vld [vmem:[#allocation21_spill] sm:$0xff] }
 0xdb1   :  { %1885 = vmatprep.subr.mxu1 %v8425_v24  ;;  %v8459_v24 = vld [vmem:[#allocation22_spill] sm:$0xff] }
 0xdb2   :  { %1886 = vmatpush1.msra.mxu1 %v8426_v25  ;;  %v8460_v25 = vld [vmem:[#allocation24_spill] sm:$0xff] }
 0xdb3   :  { %1887 = vmatprep.subr.mxu1 %v8427_v26  ;;  %v8461_v26 = vld [vmem:[#allocation25_spill] sm:$0xff] }
 0xdb4   :  { %1888 = vmatpush1.msra.mxu1 %v8428_v27  ;;  %v8462_v27 = vld [vmem:[#allocation100_spill] sm:$0xff] }
 0xdb5   :  { %1889 = vmatprep.subr.mxu1 %v8429_v28  ;;  %v8463_v28 = vld [vmem:[#allocation101_spill] sm:$0xff] }
 0xdb6   :  { %1890 = vmatpush1.msra.mxu1 %v8430_v29  ;;  %v8464_v29 = vld [vmem:[#allocation102_spill] sm:$0xff] }
 0xdb7   :  { %1891 = vmatprep.subr.mxu1 %v8431_v30  ;;  %v6308_v30 = vld [vmem:[#allocation10 + $0x1e8] sm:$0xff] }
 0xdb8   :  { %1892 = vmatpush1.msra.mxu1 %v8432_v31  ;;  %8465 = vst [vmem:[#allocation55_spill] sm:$0xff] %v6308_v30 }
 0xdb9   :  { %1893 = vmatprep.subr.mxu1 %v8433_v32  ;;  %v6314_v32 = vld [vmem:[%s7295_s5] ss:$0 sm:$0xff] }
 0xdba   :  { %1894 = vmatpush2.msra.mxu1 %v8434_v33  ;;  %8466 = vst [vmem:[#allocation23_spill] sm:$0xff] %v6314_v32 }
 0xdbb   :  { %1895 = vmatprep.subr.mxu1 %v8435_v34 }
 0xdbc   :  { %1896 = vmatpush2.msra.mxu1 %v8436_v45 }
 0xdbd   :  { %1897 = vmatprep.subr.mxu1 %v8437_v4 }
 0xdbe   :  { %1898 = vmatpush2.msra.mxu1 %v8438_v46 }
 0xdbf   :  { %1899 = vmatprep.subr.mxu1 %v8439_v49 }
 0xdc0   :  { %1900 = vmatpush2.msra.mxu1 %v8440_v20 }
 0xdc1   :  { %1901 = vmatprep.subr.mxu1 %v8441_v43 }
 0xdc2   :  { %1902 = vmatpush2.msra.mxu1 %v8442_v22 }
 0xdc3   :  { %1903 = vmatprep.subr.mxu1 %v8443_v47 }
 0xdc4   :  { %1904 = vmatpush2.msra.mxu1 %v8444_v48 }
 0xdc5   :  { %1905 = vmatprep.subr.mxu1 %v8445_v40 }
 0xdc6   :  { %1906 = vmatpush2.msra.mxu1 %v8446_v38 }
 0xdc7   :  { %1907 = vmatprep.subr.mxu1 %v8447_v39 }
 0xdc8   :  { %1908 = vmatpush2.msra.mxu1 %v8448_v60 }
 0xdc9   :  { %1909 = vmatprep.subr.mxu1 %v8449_v41 }
 0xdca   :  { %1910 = vmatpush2.msra.mxu1 %v8450_v56 }
 0xdcb   :  { %1911 = vmatprep.subr.mxu1 %v8451_v42 }
 0xdcc   :  { %1912 = vmatpush2.msra.mxu1 %v8452_v36 }
 0xdcd   :  { %1913 = vmatprep.subr.mxu1 %v8453_v13 }
 0xdce   :  { %1914 = vmatpush2.msra.mxu1 %v8454_v50 }
 0xdcf   :  { %1915 = vmatprep.subr.mxu1 %v8455_v51 }
 0xdd0   :  { %1916 = vmatpush2.msra.mxu1 %v8456_v52 }
 0xdd1   :  { %1917 = vmatprep.subr.mxu1 %v8457_v15 }
 0xdd2   :  { %1918 = vmatpush2.msra.mxu1 %v8458_v54 }
 0xdd3   :  { %1919 = vmatprep.subr.mxu1 %v8459_v24 }
 0xdd4   :  { %1920 = vmatpush2.msra.mxu1 %v8460_v25 }
 0xdd5   :  { %1921 = vmatprep.subr.mxu1 %v8461_v26 }
 0xdd6   :  { %1922 = vmatpush2.msra.mxu1 %v8462_v27 }
 0xdd7   :  { %1923 = vmatprep.subr.mxu1 %v8463_v28 }
 0xdd8   :  { %1924 = vmatpush2.msra.mxu1 %v8464_v29 }
 0xdd9   :  { %2052 = vmatprep.subr.mxu1 %v6308_v30 }
 0xe59   :  { %v1760_v31 = vpop.f32.mrf.mxu1 }
 0xe5a   :  { %v6317_v33 = vadd.f32 %v6314_v32, %v1760_v31 }
 0xe5b   :  { %v3446_v34 = vpop.f32.mrf.mxu1 }
 0xe5c   :  { %8467 = vst [vmem:[#allocation57_spill] sm:$0xff] %v6317_v33  ;;  %1765 = vmax.xlane.f32.xlu1 %v6317_v33 }
 0xee5   :  { %v1766_v45 = vpop.xlane.xlu1 %1765 }
 0xee6   :  { %vm1767_vm11 = vcmp.eq.f32.partialorder %v6317_v33, %v1766_v45  ;;  %v6329_v45 = vld [vmem:[#allocation10 + $0x1e0] sm:$0xff]  ;;  %v6381_v33 = vld [vmem:[#allocation10 + $0x108] sm:$0xff] }
 0xee7   :  { %v1768_v4 = vsel %vm1767_vm11, %v5288_v3, 128  ;;  %8471 = vst [vmem:[#allocation65_spill] sm:$0xff] %v6381_v33 }
 0xee8   :  { %v1770_v46 = vshra.s32 %v1768_v4, 16  ;;  %v1769_v20 = vand.u32 65535, %v1768_v4  ;;  %v6349_v4 = vld [vmem:[#allocation10 + $0x188] sm:$0xff] }
 0xeea   :  { %v1772_v49 = vcvt.s32.f32 %v1770_v46  ;;  %v1771_v22 = vcvt.s32.f32 %v1769_v20  ;;  %v6353_v46 = vld [vmem:[#allocation10 + $0x180] sm:$0xff] }
 0xeeb   :  { %v6361_v20 = vld [vmem:[#allocation10 + $0x160] sm:$0xff] }
 0xeec   :  { %1773 = vmin.xlane.f32.xlu0 %v1772_v49 }
 0xf75   :  { %v1774_v43 = vpop.xlane.xlu0 %1773 }
 0xf76   :  { %vm1775_vm12 = vcmp.eq.f32.partialorder %v1772_v49, %v1774_v43  ;;  %v1780_v29 = vcvt.f32.s32 %v1774_v43  ;;  %v6357_v49 = vld [vmem:[#allocation10 + $0x168] sm:$0xff] }
 0xf77   :  { %v1776_v30 = vsel %vm1775_vm12, %v1771_v22, inf  ;;  %v6365_v43 = vld [vmem:[#allocation10 + $0x148] sm:$0xff]  ;;  %v6369_v22 = vld [vmem:[#allocation10 + $0x140] sm:$0xff] }
 0xf78   :  { %1777 = vmin.xlane.f32.xlu1 %v1776_v30  ;;  %v1781_v32 = vshll.u32 %v1780_v29, 16  ;;  %v6333_v29 = vld [vmem:[#allocation10 + $0x1c8] sm:$0xff]  ;;  %8468 = vst [vmem:[#allocation59_spill] sm:$0xff] %v6369_v22 }
 0xf79   :  { %v6341_v30 = vld [vmem:[#allocation10 + $0x1a8] sm:$0xff] }
0x1001   :  { %v1778_v31 = vpop.xlane.xlu1 %1777 }
0x1002   :  { %v1779_v34 = vcvt.f32.s32 %v1778_v31  ;;  %v6373_v31 = vld [vmem:[#allocation10 + $0x128] sm:$0xff] }
0x1003   :  { %8469 = vst [vmem:[#allocation61_spill] sm:$0xff] %v6373_v31 }
0x1004   :  { %v1782_v28 = vadd.s32 %v1781_v32, %v1779_v34  ;;  %v6345_v32 = vld [vmem:[#allocation10 + $0x1a0] sm:$0xff] }
0x1005   :  { %v6377_v34 = vld [vmem:[#allocation10 + $0x120] sm:$0xff] }
0x1006   :  { %vm1783_vm13 = vcmp.eq.s32.totalorder %v5288_v3, %v1782_v28  ;;  %v6337_v28 = vld [vmem:[#allocation10 + $0x1c0] sm:$0xff]  ;;  %8470 = vst [vmem:[#allocation63_spill] sm:$0xff] %v6377_v34 }
0x1007   :  { %3144 = vmatmul.mubr.msk.f32.vlgmr.msra.gmra.mxu0 %vm1783_vm13, %v8209_v57  ;;  %3145 = vmatmul.mubr.msk.f32.vlgmr.msra.gmra.mxu1 %vm1783_vm13, %v8209_v57 }
0x1008   :  { %3448 = vmatpush3.msra.mxu0 %v6111_v59  ;;  %3479 = vmatprep.mubr.msk.f32.mxu0 %vm4311_vm1, %v8141_v6 }
0x1009   :  { %3449 = vmatprep.subr.mxu0 %v8141_v6  ;;  %2053 = vmatpush1.msra.mxu1 %v6329_v45 }
0x100a   :  { %3450 = vmatpush3.msra.mxu0 %v6118_v61  ;;  %2054 = vmatprep.subr.mxu1 %v6333_v29 }
0x100b   :  { %3451 = vmatprep.subr.mxu0 %v8141_v6  ;;  %2055 = vmatpush1.msra.mxu1 %v6337_v28 }
0x100c   :  { %3452 = vmatpush3.msra.mxu0 %v6124_v23  ;;  %2056 = vmatprep.subr.mxu1 %v6341_v30 }
0x100d   :  { %3453 = vmatprep.subr.mxu0 %v8141_v6  ;;  %2057 = vmatpush1.msra.mxu1 %v6345_v32 }
0x100e   :  { %3454 = vmatpush3.msra.mxu0 %v6130_v19  ;;  %2058 = vmatprep.subr.mxu1 %v6349_v4 }
0x100f   :  { %3455 = vmatprep.subr.mxu0 %v8141_v6  ;;  %2059 = vmatpush1.msra.mxu1 %v6353_v46 }
0x1010   :  { %3456 = vmatpush3.msra.mxu0 %v6136_v21  ;;  %2060 = vmatprep.subr.mxu1 %v6357_v49 }
0x1011   :  { %3457 = vmatprep.subr.mxu0 %v8141_v6  ;;  %2061 = vmatpush1.msra.mxu1 %v6361_v20 }
0x1012   :  { %3458 = vmatpush3.msra.mxu0 %v6142_v5  ;;  %2062 = vmatprep.subr.mxu1 %v6365_v43 }
0x1013   :  { %3459 = vmatprep.subr.mxu0 %v8141_v6  ;;  %2063 = vmatpush1.msra.mxu1 %v6369_v22  ;;  %v6385_v22 = vld [vmem:[#allocation10 + $0x100] sm:$0xff] }
0x1014   :  { %3460 = vmatpush3.msra.mxu0 %v6148_v62  ;;  %2064 = vmatprep.subr.mxu1 %v6373_v31  ;;  %8472 = vst [vmem:[#allocation67_spill] sm:$0xff] %v6385_v22  ;;  %v6389_v31 = vld [vmem:[#allocation10 + $0xe8] sm:$0xff] }
0x1015   :  { %3461 = vmatprep.subr.mxu0 %v8141_v6  ;;  %2065 = vmatpush1.msra.mxu1 %v6377_v34  ;;  %8473 = vst [vmem:[#allocation69_spill] sm:$0xff] %v6389_v31  ;;  %v6393_v34 = vld [vmem:[#allocation10 + $0xe0] sm:$0xff] }
0x1016   :  { %3462 = vmatpush3.msra.mxu0 %v6154_v17  ;;  %2066 = vmatprep.subr.mxu1 %v6381_v33  ;;  %8474 = vst [vmem:[#allocation71_spill] sm:$0xff] %v6393_v34  ;;  %v6397_v33 = vld [vmem:[#allocation10 + $0xc8] sm:$0xff] }
0x1017   :  { %3463 = vmatprep.subr.mxu0 %v8141_v6  ;;  %2067 = vmatpush1.msra.mxu1 %v6385_v22  ;;  %8475 = vst [vmem:[#allocation26_spill] sm:$0xff] %v6397_v33  ;;  %v6401_v22 = vld [vmem:[#allocation10 + $0xc0] sm:$0xff] }
0x1018   :  { %3464 = vmatpush3.msra.mxu0 %v6160_v53  ;;  %2068 = vmatprep.subr.mxu1 %v6389_v31  ;;  %8476 = vst [vmem:[#allocation27_spill] sm:$0xff] %v6401_v22  ;;  %v6405_v31 = vld [vmem:[#allocation10 + $0xa8] sm:$0xff] }
0x1019   :  { %3465 = vmatprep.subr.mxu0 %v8141_v6  ;;  %2069 = vmatpush1.msra.mxu1 %v6393_v34  ;;  %8477 = vst [vmem:[#allocation28_spill] sm:$0xff] %v6405_v31  ;;  %v6409_v34 = vld [vmem:[#allocation10 + $0xa0] sm:$0xff] }
0x101a   :  { %3466 = vmatpush3.msra.mxu0 %v6166_v1  ;;  %2070 = vmatprep.subr.mxu1 %v6397_v33  ;;  %8478 = vst [vmem:[#allocation29_spill] sm:$0xff] %v6409_v34  ;;  %v6413_v33 = vld [vmem:[#allocation10 + $0x88] sm:$0xff] }
0x101b   :  { %3467 = vmatprep.subr.mxu0 %v8141_v6  ;;  %2071 = vmatpush1.msra.mxu1 %v6401_v22  ;;  %8479 = vst [vmem:[#allocation30_spill] sm:$0xff] %v6413_v33  ;;  %v6417_v22 = vld [vmem:[#allocation10 + $0x80] sm:$0xff] }
0x101c   :  { %3468 = vmatpush3.msra.mxu0 %v6172_v7  ;;  %2072 = vmatprep.subr.mxu1 %v6405_v31  ;;  %8480 = vst [vmem:[#allocation31_spill] sm:$0xff] %v6417_v22  ;;  %v6421_v31 = vld [vmem:[#allocation10 + $0x68] sm:$0xff] }
0x101d   :  { %3469 = vmatprep.subr.mxu0 %v8141_v6  ;;  %2073 = vmatpush1.msra.mxu1 %v6409_v34  ;;  %8481 = vst [vmem:[#allocation32_spill] sm:$0xff] %v6421_v31  ;;  %v6425_v34 = vld [vmem:[#allocation10 + $0x60] sm:$0xff] }
0x101e   :  { %3470 = vmatpush3.msra.mxu0 %v6178_v9  ;;  %2074 = vmatprep.subr.mxu1 %v6413_v33  ;;  %v6429_v33 = vld [vmem:[#allocation10 + $0x48] sm:$0xff] }
0x101f   :  { %3471 = vmatprep.subr.mxu0 %v8141_v6  ;;  %2075 = vmatpush1.msra.mxu1 %v6417_v22  ;;  %8482 = vst [vmem:[#allocation33_spill] sm:$0xff] %v6429_v33  ;;  %v6433_v22 = vld [vmem:[#allocation10 + $0x40] sm:$0xff] }
0x1020   :  { %3472 = vmatpush3.msra.mxu0 %v6184_v11  ;;  %2076 = vmatprep.subr.mxu1 %v6421_v31  ;;  %8483 = vst [vmem:[#allocation34_spill] sm:$0xff] %v6433_v22  ;;  %v6437_v31 = vld [vmem:[#allocation10 + $0x28] sm:$0xff] }
0x1021   :  { %3473 = vmatprep.subr.mxu0 %v8141_v6  ;;  %2077 = vmatpush1.msra.mxu1 %v6425_v34  ;;  %8484 = vst [vmem:[#allocation35_spill] sm:$0xff] %v6437_v31 }
0x1022   :  { %3474 = vmatpush3.msra.mxu0 %v6190_v8  ;;  %2078 = vmatprep.subr.mxu1 %v6429_v33  ;;  %v6444_v33 = vld [vmem:[#allocation10 + $0x1f8] sm:$0xff] }
0x1023   :  { %3475 = vmatprep.subr.mxu0 %v8141_v6  ;;  %2079 = vmatpush1.msra.mxu1 %v6433_v22  ;;  %8485 = vst [vmem:[#allocation36_spill] sm:$0xff] %v6444_v33 }
0x1024   :  { %3476 = vmatpush3.msra.mxu0 %v6196_v10  ;;  %2080 = vmatprep.subr.mxu1 %v6437_v31 }
0x1025   :  { %3477 = vmatprep.subr.mxu0 %v8141_v6  ;;  %2081 = vmatpush1.msra.mxu1 %v8383_v55  ;;  %v8486_v55 = vld [vmem:[#allocation74_spill] sm:$0xff] }
0x1026   :  { %3478 = vmatpush3.msra.mxu0 %v6202_v58  ;;  %2082 = vmatprep.subr.mxu1 %v8385_v12  ;;  %v8487_v12 = vld [vmem:[#allocation76_spill] sm:$0xff] }
0x1027   :  { %2123 = vmatprep.subr.mxu0 %v6444_v33  ;;  %2083 = vmatpush1.msra.mxu1 %v8387_v63  ;;  %v8488_v33 = vld [vmem:[#allocation78_spill] sm:$0xff]  ;;  %v8489_v63 = vld [vmem:[#allocation80_spill] sm:$0xff] }
0x1028   :  { %2084 = vmatprep.subr.mxu1 %v8388_v14  ;;  %v8490_v14 = vld [vmem:[#allocation82_spill] sm:$0xff] }
0x1029   :  { %2085 = vmatpush2.msra.mxu1 %v8389_v0  ;;  %v8491_v0 = vld [vmem:[#allocation73_spill] sm:$0xff] }
0x102a   :  { %2086 = vmatprep.subr.mxu1 %v8390_v35  ;;  %v8492_v35 = vld [vmem:[#allocation75_spill] sm:$0xff] }
0x102b   :  { %2087 = vmatpush2.msra.mxu1 %v8391_v2  ;;  %v8493_v2 = vld [vmem:[#allocation77_spill] sm:$0xff] }
0x102c   :  { %2088 = vmatprep.subr.mxu1 %v8392_v16  ;;  %v8494_v16 = vld [vmem:[#allocation79_spill] sm:$0xff] }
0x102d   :  { %2089 = vmatpush2.msra.mxu1 %v8393_v37  ;;  %v8495_v37 = vld [vmem:[#allocation81_spill] sm:$0xff] }
0x102e   :  { %2090 = vmatprep.subr.mxu1 %v8394_v18  ;;  %v8496_v18 = vld [vmem:[#allocation83_spill] sm:$0xff] }
0x102f   :  { %2091 = vmatpush2.msra.mxu1 %v8486_v55  ;;  %v8497_v55 = vld [vmem:[#allocation84_spill] sm:$0xff] }
0x1030   :  { %2092 = vmatprep.subr.mxu1 %v8487_v12  ;;  %v8498_v12 = vld [vmem:[#allocation85_spill] sm:$0xff] }
0x1031   :  { %2093 = vmatpush2.msra.mxu1 %v8488_v33  ;;  %v8499_v33 = vld [vmem:[#allocation86_spill] sm:$0xff] }
0x1032   :  { %2094 = vmatprep.subr.mxu1 %v8489_v63  ;;  %v8500_v63 = vld [vmem:[#allocation87_spill] sm:$0xff] }
0x1033   :  { %2095 = vmatpush2.msra.mxu1 %v8490_v14  ;;  %v8501_v14 = vld [vmem:[#allocation88_spill] sm:$0xff] }
0x1034   :  { %2096 = vmatprep.subr.mxu1 %v8491_v0  ;;  %v8502_v0 = vld [vmem:[#allocation89_spill] sm:$0xff] }
0x1035   :  { %2097 = vmatpush2.msra.mxu1 %v8492_v35  ;;  %v8503_v35 = vld [vmem:[#allocation90_spill] sm:$0xff] }
0x1036   :  { %2098 = vmatprep.subr.mxu1 %v8493_v2  ;;  %v8504_v2 = vld [vmem:[#allocation91_spill] sm:$0xff] }
0x1037   :  { %2099 = vmatpush2.msra.mxu1 %v8494_v16  ;;  %v8505_v16 = vld [vmem:[#allocation92_spill] sm:$0xff] }
0x1038   :  { %2100 = vmatprep.subr.mxu1 %v8495_v37  ;;  %v8506_v37 = vld [vmem:[#allocation93_spill] sm:$0xff] }
0x1039   :  { %2101 = vmatpush2.msra.mxu1 %v8496_v18  ;;  %v8507_v18 = vld [vmem:[#allocation94_spill] sm:$0xff] }
0x103a   :  { %2102 = vmatprep.subr.mxu1 %v8497_v55  ;;  %v8508_v55 = vld [vmem:[#allocation95_spill] sm:$0xff] }
0x103b   :  { %2103 = vmatpush2.msra.mxu1 %v8498_v12  ;;  %v8509_v12 = vld [vmem:[#allocation96_spill] sm:$0xff] }
0x103c   :  { %2104 = vmatprep.subr.mxu1 %v8499_v33  ;;  %v8510_v33 = vld [vmem:[#allocation97_spill] sm:$0xff] }
0x103d   :  { %2105 = vmatpush2.msra.mxu1 %v8500_v63 }
0x103e   :  { %2106 = vmatprep.subr.mxu1 %v8501_v14 }
0x103f   :  { %2107 = vmatpush2.msra.mxu1 %v8502_v0 }
0x1040   :  { %2108 = vmatprep.subr.mxu1 %v8503_v35 }
0x1041   :  { %2109 = vmatpush2.msra.mxu1 %v8504_v2 }
0x1042   :  { %2110 = vmatprep.subr.mxu1 %v8505_v16 }
0x1043   :  { %2111 = vmatpush2.msra.mxu1 %v8506_v37 }
0x1044   :  { %2112 = vmatprep.subr.mxu1 %v8507_v18 }
0x1045   :  { %2113 = vmatpush2.msra.mxu1 %v8508_v55 }
0x1046   :  { %2114 = vmatprep.subr.mxu1 %v8509_v12 }
0x1047   :  { %2115 = vmatpush2.msra.mxu1 %v8510_v33 }
0x1048   :  { %3482 = vmatprep.subr.mxu1 %v8141_v6 }
0x10c7   :  { %v1856_v63 = vpop.f32.mrf.mxu0  ;;  %v1927_v2 = vpop.f32.mrf.mxu1 }
0x10c8   :  { %v3117_v14 = vmul.f32 -1.442695, %v1856_v63 }
0x10c9   :  { %v1858_v0 = vpop.f32.mrf.mxu0  ;;  %v1929_v16 = vpop.f32.mrf.mxu1 }
0x10ca   :  { %3731 = vpow2.f32 %v3117_v14  ;;  %v3118_v35 = vmul.f32 -1.442695, %v1858_v0  ;;  %v3119_v58 = vmul.f32 -1.442695, %v1929_v16 }
0x10cc   :  { %3733 = vpow2.f32 %v3118_v35 }
0x10cd   :  { %3735 = vpow2.f32 %v3119_v58 }
0x10d7   :  { %v3732_v37 = vpop.eup %3731 }
0x10d8   :  { %v1935_v31 = vadd.f32 1.0, %v3732_v37  ;;  %v6503_v37 = vld [vmem:[#allocation10 + $0x190] sm:$0xff] }
0x10d9   :  { %v3734_v18 = vpop.eup %3733 }
0x10da   :  { %3737 = vrcp.f32 %v1935_v31  ;;  %v1941_v55 = vadd.f32 1.0, %v3734_v18  ;;  %v3736_v12 = vpop.eup %3735  ;;  %v6485_v31 = vld [vmem:[#allocation10 + $0x1f0] sm:$0xff]  ;;  %v6506_v18 = vld [vmem:[#allocation10 + $0x178] sm:$0xff] }
0x10db   :  { %3739 = vtanh.f32 %v1927_v2  ;;  %v1948_v63 = vadd.f32 1.0, %v3736_v12  ;;  %v6488_v2 = vld [vmem:[#allocation10 + $0x1d8] sm:$0xff] }
0x10dc   :  { %3741 = vrcp.f32 %v1941_v55  ;;  %v6509_v55 = vld [vmem:[#allocation10 + $0x170] sm:$0xff]  ;;  %v6512_v12 = vld [vmem:[#allocation10 + $0x158] sm:$0xff] }
0x10dd   :  { %3743 = vrcp.f32 %v1948_v63  ;;  %v6518_v63 = vld [vmem:[#allocation10 + $0x138] sm:$0xff] }
0x10de   :  { %8512 = vst [vmem:[#allocation38_spill] sm:$0xff] %v6518_v63 }
0x10e7   :  { %v3738_v33 = vpop.eup %3737 }
0x10e8   :  { %v3740_v10 = vpop.eup %3739 }
0x10e9   :  { %v3742_v22 = vpop.eup %3741  ;;  %v1952_v8 = vmul.f32 %v3740_v10, %v3738_v33  ;;  %v6491_v10 = vld [vmem:[#allocation10 + $0x1d0] sm:$0xff] }
0x10ea   :  { %v1951_v14 = vmul.f32 %v3742_v22, %v6242_v44  ;;  %v3744_v35 = vpop.eup %3743  ;;  %v6497_v44 = vld [vmem:[#allocation10 + $0x1b0] sm:$0xff]  ;;  %v6500_v22 = vld [vmem:[#allocation10 + $0x198] sm:$0xff] }
0x10eb   :  { %v6515_v33 = vld [vmem:[#allocation10 + $0x150] sm:$0xff] }
0x10ec   :  { %v6482_v0 = vadd.f32 %v1952_v8, %v1951_v14  ;;  %v6494_v8 = vld [vmem:[#allocation10 + $0x1b8] sm:$0xff]  ;;  %8511 = vst [vmem:[#allocation37_spill] sm:$0xff] %v6515_v33  ;;  %v6521_v14 = vld [vmem:[#allocation10 + $0x130] sm:$0xff] }
0x10ed   :  { %8513 = vst [vmem:[#allocation39_spill] sm:$0xff] %v6521_v14 }
0x10ee   :  { %3745 = vtanh.f32 %v6482_v0 }
0x10fb   :  { %v3746_v16 = vpop.eup %3745 }
0x10fc   :  { %v1955_v58 = vmul.f32 %v3746_v16, %v3744_v35  ;;  %v6524_v35 = vld [vmem:[#allocation10 + $0x118] sm:$0xff]  ;;  %v6527_v16 = vld [vmem:[#allocation10 + $0x110] sm:$0xff] }
0x10fd   :  { %8514 = vst [vmem:[#allocation40_spill] sm:$0xff] %v6524_v35  ;;  %8515 = vst [vmem:[#allocation41_spill] sm:$0xff] %v6527_v16 }
0x10fe   :  { %3480 = vmatmul.mubr.f32.vlgmr.msra.gmra.mxu0 %v1955_v58  ;;  %2116 = vmatprep.mubr.f32.mxu1 %v1955_v58 }
0x10ff   :  { %2187 = vmatprep.mubr.f32.mxu0 %v1955_v58  ;;  %2124 = vmatpush1.msra.mxu0 %v6485_v31  ;;  %v6530_v58 = vld [vmem:[#allocation10 + $0xf8] sm:$0xff] }
0x1100   :  { %2125 = vmatprep.subr.mxu0 %v6488_v2  ;;  %8516 = vst [vmem:[#allocation42_spill] sm:$0xff] %v6530_v58 }
0x1101   :  { %2126 = vmatpush1.msra.mxu0 %v6491_v10 }
0x1102   :  { %2127 = vmatprep.subr.mxu0 %v6494_v8 }
0x1103   :  { %2128 = vmatpush1.msra.mxu0 %v6497_v44 }
0x1104   :  { %2129 = vmatprep.subr.mxu0 %v6500_v22 }
0x1105   :  { %2130 = vmatpush1.msra.mxu0 %v6503_v37 }
0x1106   :  { %2131 = vmatprep.subr.mxu0 %v6506_v18 }
0x1107   :  { %2132 = vmatpush1.msra.mxu0 %v6509_v55 }
0x1108   :  { %2133 = vmatprep.subr.mxu0 %v6512_v12 }
0x1109   :  { %2134 = vmatpush1.msra.mxu0 %v6515_v33  ;;  %v6533_v33 = vld [vmem:[#allocation10 + $0xf0] sm:$0xff] }
0x110a   :  { %2135 = vmatprep.subr.mxu0 %v6518_v63  ;;  %8517 = vst [vmem:[#allocation43_spill] sm:$0xff] %v6533_v33  ;;  %v6536_v63 = vld [vmem:[#allocation10 + $0xd8] sm:$0xff] }
0x110b   :  { %2136 = vmatpush1.msra.mxu0 %v6521_v14  ;;  %8518 = vst [vmem:[#allocation44_spill] sm:$0xff] %v6536_v63  ;;  %v6539_v14 = vld [vmem:[#allocation10 + $0xd0] sm:$0xff] }
0x110c   :  { %2137 = vmatprep.subr.mxu0 %v6524_v35  ;;  %8519 = vst [vmem:[#allocation45_spill] sm:$0xff] %v6539_v14  ;;  %v6542_v35 = vld [vmem:[#allocation10 + $0xb8] sm:$0xff] }
0x110d   :  { %2138 = vmatpush1.msra.mxu0 %v6527_v16  ;;  %8520 = vst [vmem:[#allocation46_spill] sm:$0xff] %v6542_v35  ;;  %v6545_v16 = vld [vmem:[#allocation10 + $0xb0] sm:$0xff] }
0x110e   :  { %2139 = vmatprep.subr.mxu0 %v6530_v58  ;;  %8521 = vst [vmem:[#allocation47_spill] sm:$0xff] %v6545_v16  ;;  %v6548_v58 = vld [vmem:[#allocation10 + $0x98] sm:$0xff] }
0x110f   :  { %2140 = vmatpush1.msra.mxu0 %v6533_v33  ;;  %8522 = vst [vmem:[#allocation49_spill] sm:$0xff] %v6548_v58  ;;  %v6551_v33 = vld [vmem:[#allocation10 + $0x90] sm:$0xff] }
0x1110   :  { %2141 = vmatprep.subr.mxu0 %v6536_v63  ;;  %8523 = vst [vmem:[#allocation98_spill] sm:$0xff] %v6551_v33  ;;  %v6554_v63 = vld [vmem:[#allocation10 + $0x78] sm:$0xff] }
0x1111   :  { %2142 = vmatpush1.msra.mxu0 %v6539_v14  ;;  %8524 = vst [vmem:[#allocation99_spill] sm:$0xff] %v6554_v63  ;;  %v6557_v14 = vld [vmem:[#allocation10 + $0x70] sm:$0xff] }
0x1112   :  { %2143 = vmatprep.subr.mxu0 %v6542_v35  ;;  %8525 = vst [vmem:[#allocation54_spill] sm:$0xff] %v6557_v14  ;;  %v6560_v35 = vld [vmem:[#allocation10 + $0x58] sm:$0xff] }
0x1113   :  { %2144 = vmatpush1.msra.mxu0 %v6545_v16  ;;  %8526 = vst [vmem:[#allocation56_spill] sm:$0xff] %v6560_v35  ;;  %v6563_v16 = vld [vmem:[#allocation10 + $0x50] sm:$0xff] }
0x1114   :  { %2145 = vmatprep.subr.mxu0 %v6548_v58  ;;  %8527 = vst [vmem:[#allocation58_spill] sm:$0xff] %v6563_v16  ;;  %v6566_v58 = vld [vmem:[#allocation10 + $0x38] sm:$0xff] }
0x1115   :  { %2146 = vmatpush1.msra.mxu0 %v6551_v33  ;;  %8528 = vst [vmem:[#allocation60_spill] sm:$0xff] %v6566_v58  ;;  %v6569_v33 = vld [vmem:[#allocation10 + $0x30] sm:$0xff] }
0x1116   :  { %2147 = vmatprep.subr.mxu0 %v6554_v63  ;;  %8529 = vst [vmem:[#allocation62_spill] sm:$0xff] %v6569_v33  ;;  %v6572_v63 = vld [vmem:[#allocation10 + $0x18] sm:$0xff] }
0x1117   :  { %2148 = vmatpush1.msra.mxu0 %v6557_v14  ;;  %8530 = vst [vmem:[#allocation64_spill] sm:$0xff] %v6572_v63  ;;  %v6575_v14 = vld [vmem:[#allocation10 + $0x10] sm:$0xff] }
0x1118   :  { %2149 = vmatprep.subr.mxu0 %v6560_v35  ;;  %8531 = vst [vmem:[#allocation66_spill] sm:$0xff] %v6575_v14  ;;  %v6578_v35 = vld [vmem:[#allocation10 + $0x3f8] sm:$0xff] }
0x1119   :  { %2150 = vmatpush1.msra.mxu0 %v6563_v16  ;;  %8532 = vst [vmem:[#allocation68_spill] sm:$0xff] %v6578_v35  ;;  %v6581_v16 = vld [vmem:[#allocation10 + $0x3f0] sm:$0xff] }
0x111a   :  { %2151 = vmatprep.subr.mxu0 %v6566_v58  ;;  %8533 = vst [vmem:[#allocation70_spill] sm:$0xff] %v6581_v16  ;;  %v6584_v58 = vld [vmem:[#allocation10 + $0x3d8] sm:$0xff] }
0x111b   :  { %2152 = vmatpush1.msra.mxu0 %v6569_v33  ;;  %8534 = vst [vmem:[#allocation72_spill] sm:$0xff] %v6584_v58  ;;  %v6587_v33 = vld [vmem:[#allocation10 + $0x3d0] sm:$0xff] }
0x111c   :  { %2153 = vmatprep.subr.mxu0 %v6572_v63  ;;  %8535 = vst [vmem:[#allocation18_spill] sm:$0xff] %v6587_v33  ;;  %v6590_v63 = vld [vmem:[#allocation10 + $0x3b8] sm:$0xff] }
0x111d   :  { %2154 = vmatpush1.msra.mxu0 %v6575_v14  ;;  %8536 = vst [vmem:[#allocation19_spill] sm:$0xff] %v6590_v63  ;;  %v6593_v14 = vld [vmem:[#allocation10 + $0x3b0] sm:$0xff] }
0x111e   :  { %2155 = vmatprep.subr.mxu0 %v6578_v35  ;;  %8537 = vst [vmem:[#allocation20_spill] sm:$0xff] %v6593_v14  ;;  %v6596_v35 = vld [vmem:[#allocation10 + $0x398] sm:$0xff] }
0x111f   :  { %2156 = vmatpush2.msra.mxu0 %v6581_v16  ;;  %8538 = vst [vmem:[#allocation21_spill] sm:$0xff] %v6596_v35  ;;  %v6599_v16 = vld [vmem:[#allocation10 + $0x390] sm:$0xff] }
0x1120   :  { %2157 = vmatprep.subr.mxu0 %v6584_v58  ;;  %8539 = vst [vmem:[#allocation22_spill] sm:$0xff] %v6599_v16  ;;  %v6602_v58 = vld [vmem:[#allocation10 + $0x378] sm:$0xff] }
0x1121   :  { %2158 = vmatpush2.msra.mxu0 %v6587_v33  ;;  %8540 = vst [vmem:[#allocation24_spill] sm:$0xff] %v6602_v58  ;;  %v6605_v33 = vld [vmem:[#allocation10 + $0x370] sm:$0xff] }
0x1122   :  { %2159 = vmatprep.subr.mxu0 %v6590_v63  ;;  %8541 = vst [vmem:[#allocation25_spill] sm:$0xff] %v6605_v33 }
0x1123   :  { %2160 = vmatpush2.msra.mxu0 %v6593_v14 }
0x1124   :  { %2161 = vmatprep.subr.mxu0 %v6596_v35 }
0x1125   :  { %2162 = vmatpush2.msra.mxu0 %v6599_v16 }
0x1126   :  { %2163 = vmatprep.subr.mxu0 %v6602_v58 }
0x1127   :  { %2164 = vmatpush2.msra.mxu0 %v6605_v33 }
0x1128   :  { %2165 = vmatprep.subr.mxu0 %v8443_v47  ;;  %v8542_v47 = vld [vmem:[#allocation101_spill] sm:$0xff] }
0x1129   :  { %2166 = vmatpush2.msra.mxu0 %v8444_v48  ;;  %v8543_v48 = vld [vmem:[#allocation102_spill] sm:$0xff] }
0x112a   :  { %2167 = vmatprep.subr.mxu0 %v8445_v40  ;;  %v8544_v40 = vld [vmem:[#allocation55_spill] sm:$0xff] }
0x112b   :  { %2168 = vmatpush2.msra.mxu0 %v8446_v38 }
0x112c   :  { %2169 = vmatprep.subr.mxu0 %v8447_v39  ;;  %v8545_v39 = vld [vmem:[#allocation23_spill] sm:$0xff] }
0x112d   :  { %2170 = vmatpush2.msra.mxu0 %v8448_v60 }
0x112e   :  { %2171 = vmatprep.subr.mxu0 %v8449_v41 }
0x112f   :  { %2172 = vmatpush2.msra.mxu0 %v8450_v56 }
0x1130   :  { %2173 = vmatprep.subr.mxu0 %v8451_v42 }
0x1131   :  { %2174 = vmatpush2.msra.mxu0 %v8452_v36 }
0x1132   :  { %2175 = vmatprep.subr.mxu0 %v8453_v13 }
0x1133   :  { %2176 = vmatpush2.msra.mxu0 %v8454_v50 }
0x1134   :  { %2177 = vmatprep.subr.mxu0 %v8455_v51 }
0x1135   :  { %2178 = vmatpush2.msra.mxu0 %v8456_v52 }
0x1136   :  { %2179 = vmatprep.subr.mxu0 %v8457_v15 }
0x1137   :  { %2180 = vmatpush2.msra.mxu0 %v8458_v54 }
0x1138   :  { %2181 = vmatprep.subr.mxu0 %v8459_v24 }
0x1139   :  { %2182 = vmatpush2.msra.mxu0 %v8460_v25 }
0x113a   :  { %2183 = vmatprep.subr.mxu0 %v8461_v26 }
0x113b   :  { %2184 = vmatpush2.msra.mxu0 %v8462_v27 }
0x113c   :  { %2185 = vmatprep.subr.mxu0 %v8542_v47  ;;  %v8554_v47 = vld [vmem:[#allocation26_spill] sm:$0xff] }
0x113d   :  { %2186 = vmatpush2.msra.mxu0 %v8543_v48  ;;  %v8556_v48 = vld [vmem:[#allocation28_spill] sm:$0xff] }
0x113e   :  { %2314 = vmatprep.subr.mxu0 %v8544_v40 }
0x11be   :  { %v2022_v38 = vpop.f32.mrf.mxu0 }
0x11bf   :  { %v6632_v60 = vadd.f32 %v8545_v39, %v2022_v38  ;;  %v8558_v38 = vld [vmem:[#allocation30_spill] sm:$0xff] }
0x11c0   :  { %v3481_v41 = vpop.f32.mrf.mxu0 }
0x11c1   :  { %8546 = vst [vmem:[#allocation100_spill] sm:$0xff] %v6632_v60  ;;  %2027 = vmax.xlane.f32.xlu0 %v6632_v60  ;;  %v8560_v41 = vld [vmem:[#allocation32_spill] sm:$0xff] }
0x124a   :  { %v2028_v56 = vpop.xlane.xlu0 %2027 }
0x124b   :  { %vm2029_vm14 = vcmp.eq.f32.partialorder %v6632_v60, %v2028_v56  ;;  %v8562_v56 = vld [vmem:[#allocation33_spill] sm:$0xff] }
0x124c   :  { %v2030_v42 = vsel %vm2029_vm14, %v5288_v3, 128  ;;  %v6738_v60 = vld [vmem:[#allocation10 + $0x360] sm:$0xff] }
0x124d   :  { %v2032_v36 = vshra.s32 %v2030_v42, 16  ;;  %v2031_v50 = vand.u32 65535, %v2030_v42  ;;  %v8564_v42 = vld [vmem:[#allocation103_spill] sm:$0xff]  ;;  %8580 = vst [vmem:[#allocation85_spill] sm:$0xff] %v6738_v60 }
0x124f   :  { %v2034_v13 = vcvt.s32.f32 %v2032_v36  ;;  %v2033_v52 = vcvt.s32.f32 %v2031_v50  ;;  %v8565_v36 = vld [vmem:[#allocation35_spill] sm:$0xff]  ;;  %v6704_v50 = vld [vmem:[#allocation10 + $0x8] sm:$0xff] }
0x1250   :  { %8568 = vst [vmem:[#allocation76_spill] sm:$0xff] %v6704_v50 }
0x1251   :  { %2035 = vmin.xlane.f32.xlu1 %v2034_v13 }
0x12da   :  { %v2036_v51 = vpop.xlane.xlu1 %2035 }
0x12db   :  { %vm2037_vm15 = vcmp.eq.f32.partialorder %v2034_v13, %v2036_v51  ;;  %v2042_v54 = vcvt.f32.s32 %v2036_v51  ;;  %v8567_v13 = vld [vmem:[#allocation53_spill] sm:$0xff]  ;;  %v8569_v51 = vld [vmem:[#allocation36_spill] sm:$0xff] }
0x12dc   :  { %v2038_v15 = vsel %vm2037_vm15, %v2033_v52, inf  ;;  %v6708_v52 = vld [vmem:[#allocation10] sm:$0xff] }
0x12dd   :  { %2039 = vmin.xlane.f32.xlu0 %v2038_v15  ;;  %v2043_v25 = vshll.u32 %v2042_v54, 16  ;;  %8570 = vst [vmem:[#allocation78_spill] sm:$0xff] %v6708_v52  ;;  %v6711_v15 = vld [vmem:[#allocation10 + $0x3e8] sm:$0xff]  ;;  %v6714_v54 = vld [vmem:[#allocation10 + $0x3e0] sm:$0xff] }
0x12de   :  { %8571 = vst [vmem:[#allocation80_spill] sm:$0xff] %v6711_v15  ;;  %8572 = vst [vmem:[#allocation82_spill] sm:$0xff] %v6714_v54 }
0x1366   :  { %v2040_v24 = vpop.xlane.xlu0 %2039 }
0x1367   :  { %v2041_v26 = vcvt.f32.s32 %v2040_v24  ;;  %v6717_v24 = vld [vmem:[#allocation10 + $0x3c8] sm:$0xff] }
0x1368   :  { %8573 = vst [vmem:[#allocation73_spill] sm:$0xff] %v6717_v24 }
0x1369   :  { %v2044_v27 = vadd.s32 %v2043_v25, %v2041_v26  ;;  %v6720_v25 = vld [vmem:[#allocation10 + $0x3c0] sm:$0xff]  ;;  %v6723_v26 = vld [vmem:[#allocation10 + $0x3a8] sm:$0xff] }
0x136a   :  { %8574 = vst [vmem:[#allocation75_spill] sm:$0xff] %v6720_v25  ;;  %8575 = vst [vmem:[#allocation77_spill] sm:$0xff] %v6723_v26 }
0x136b   :  { %vm2045_vm0 = vcmp.eq.s32.totalorder %v5288_v3, %v2044_v27  ;;  %v6726_v27 = vld [vmem:[#allocation10 + $0x3a0] sm:$0xff] }
0x136c   :  { %3146 = vmatmul.mubr.msk.f32.vlgmr.msra.gmra.mxu1 %vm2045_vm0, %v8209_v57  ;;  %3147 = vmatmul.mubr.msk.f32.vlgmr.msra.gmra.mxu0 %vm2045_vm0, %v8209_v57  ;;  %8576 = vst [vmem:[#allocation79_spill] sm:$0xff] %v6726_v27 }
0x136d   :  { %3483 = vmatpush3.msra.mxu1 %v6111_v59  ;;  %3514 = vmatprep.mubr.msk.f32.mxu1 %vm4311_vm1, %v8141_v6  ;;  %v8547_v59 = vld [vmem:[#allocation59_spill] sm:$0xff] }
0x136e   :  { %3484 = vmatprep.subr.mxu1 %v8141_v6  ;;  %2315 = vmatpush1.msra.mxu0 %v6329_v45 }
0x136f   :  { %3485 = vmatpush3.msra.mxu1 %v6118_v61  ;;  %2316 = vmatprep.subr.mxu0 %v6333_v29  ;;  %v8548_v61 = vld [vmem:[#allocation61_spill] sm:$0xff] }
0x1370   :  { %3486 = vmatprep.subr.mxu1 %v8141_v6  ;;  %2317 = vmatpush1.msra.mxu0 %v6337_v28 }
0x1371   :  { %3487 = vmatpush3.msra.mxu1 %v6124_v23  ;;  %2318 = vmatprep.subr.mxu0 %v6341_v30  ;;  %v8549_v23 = vld [vmem:[#allocation63_spill] sm:$0xff] }
0x1372   :  { %3488 = vmatprep.subr.mxu1 %v8141_v6  ;;  %2319 = vmatpush1.msra.mxu0 %v6345_v32 }
0x1373   :  { %3489 = vmatpush3.msra.mxu1 %v6130_v19  ;;  %2320 = vmatprep.subr.mxu0 %v6349_v4  ;;  %v8550_v19 = vld [vmem:[#allocation65_spill] sm:$0xff] }
0x1374   :  { %3490 = vmatprep.subr.mxu1 %v8141_v6  ;;  %2321 = vmatpush1.msra.mxu0 %v6353_v46 }
0x1375   :  { %3491 = vmatpush3.msra.mxu1 %v6136_v21  ;;  %2322 = vmatprep.subr.mxu0 %v6357_v49  ;;  %v8551_v21 = vld [vmem:[#allocation67_spill] sm:$0xff] }
0x1376   :  { %3492 = vmatprep.subr.mxu1 %v8141_v6  ;;  %2323 = vmatpush1.msra.mxu0 %v6361_v20 }
0x1377   :  { %3493 = vmatpush3.msra.mxu1 %v6142_v5  ;;  %2324 = vmatprep.subr.mxu0 %v6365_v43  ;;  %v8552_v5 = vld [vmem:[#allocation69_spill] sm:$0xff] }
0x1378   :  { %3494 = vmatprep.subr.mxu1 %v8141_v6  ;;  %2325 = vmatpush1.msra.mxu0 %v8547_v59 }
0x1379   :  { %3495 = vmatpush3.msra.mxu1 %v6148_v62  ;;  %2326 = vmatprep.subr.mxu0 %v8548_v61  ;;  %v8553_v62 = vld [vmem:[#allocation71_spill] sm:$0xff] }
0x137a   :  { %3496 = vmatprep.subr.mxu1 %v8141_v6  ;;  %2327 = vmatpush1.msra.mxu0 %v8549_v23 }
0x137b   :  { %3497 = vmatpush3.msra.mxu1 %v6154_v17  ;;  %2328 = vmatprep.subr.mxu0 %v8550_v19  ;;  %v8555_v17 = vld [vmem:[#allocation27_spill] sm:$0xff] }
0x137c   :  { %3498 = vmatprep.subr.mxu1 %v8141_v6  ;;  %2329 = vmatpush1.msra.mxu0 %v8551_v21 }
0x137d   :  { %3499 = vmatpush3.msra.mxu1 %v6160_v53  ;;  %2330 = vmatprep.subr.mxu0 %v8552_v5  ;;  %v8557_v53 = vld [vmem:[#allocation29_spill] sm:$0xff] }
0x137e   :  { %3500 = vmatprep.subr.mxu1 %v8141_v6  ;;  %2331 = vmatpush1.msra.mxu0 %v8553_v62 }
0x137f   :  { %3501 = vmatpush3.msra.mxu1 %v6166_v1  ;;  %2332 = vmatprep.subr.mxu0 %v8554_v47  ;;  %v8559_v1 = vld [vmem:[#allocation31_spill] sm:$0xff] }
0x1380   :  { %3502 = vmatprep.subr.mxu1 %v8141_v6  ;;  %2333 = vmatpush1.msra.mxu0 %v8555_v17 }
0x1381   :  { %3503 = vmatpush3.msra.mxu1 %v6172_v7  ;;  %2334 = vmatprep.subr.mxu0 %v8556_v48  ;;  %v8561_v7 = vld [vmem:[#allocation50_spill] sm:$0xff] }
0x1382   :  { %3504 = vmatprep.subr.mxu1 %v8141_v6  ;;  %2335 = vmatpush1.msra.mxu0 %v8557_v53 }
0x1383   :  { %3505 = vmatpush3.msra.mxu1 %v6178_v9  ;;  %2336 = vmatprep.subr.mxu0 %v8558_v38  ;;  %v8563_v9 = vld [vmem:[#allocation34_spill] sm:$0xff] }
0x1384   :  { %3506 = vmatprep.subr.mxu1 %v8141_v6  ;;  %2337 = vmatpush1.msra.mxu0 %v8559_v1 }
0x1385   :  { %3507 = vmatpush3.msra.mxu1 %v6184_v11  ;;  %2338 = vmatprep.subr.mxu0 %v8560_v41  ;;  %v6700_v11 = vld [vmem:[#allocation10 + $0x20] sm:$0xff] }
0x1386   :  { %3508 = vmatprep.subr.mxu1 %v8141_v6  ;;  %2339 = vmatpush1.msra.mxu0 %v6425_v34  ;;  %8566 = vst [vmem:[#allocation74_spill] sm:$0xff] %v6700_v11 }
0x1387   :  { %3509 = vmatpush3.msra.mxu1 %v8561_v7  ;;  %2340 = vmatprep.subr.mxu0 %v8562_v56  ;;  %v6729_v7 = vld [vmem:[#allocation10 + $0x388] sm:$0xff] }
0x1388   :  { %3510 = vmatprep.subr.mxu1 %v8141_v6  ;;  %2341 = vmatpush1.msra.mxu0 %v8563_v9  ;;  %8577 = vst [vmem:[#allocation81_spill] sm:$0xff] %v6729_v7 }
0x1389   :  { %3511 = vmatpush3.msra.mxu1 %v8564_v42  ;;  %2342 = vmatprep.subr.mxu0 %v8565_v36  ;;  %v6732_v42 = vld [vmem:[#allocation10 + $0x380] sm:$0xff] }
0x138a   :  { %3512 = vmatprep.subr.mxu1 %v8141_v6  ;;  %2343 = vmatpush1.msra.mxu0 %v6700_v11  ;;  %8578 = vst [vmem:[#allocation83_spill] sm:$0xff] %v6732_v42 }
0x138b   :  { %3513 = vmatpush3.msra.mxu1 %v8567_v13  ;;  %2344 = vmatprep.subr.mxu0 %v6704_v50  ;;  %v6735_v13 = vld [vmem:[#allocation10 + $0x368] sm:$0xff] }
0x138c   :  { %2385 = vmatprep.subr.mxu1 %v8569_v51  ;;  %2345 = vmatpush1.msra.mxu0 %v6708_v52  ;;  %8579 = vst [vmem:[#allocation84_spill] sm:$0xff] %v6735_v13 }
0x138d   :  { %2346 = vmatprep.subr.mxu0 %v6711_v15 }
0x138e   :  { %2347 = vmatpush2.msra.mxu0 %v6714_v54 }
0x138f   :  { %2348 = vmatprep.subr.mxu0 %v6717_v24 }
0x1390   :  { %2349 = vmatpush2.msra.mxu0 %v6720_v25 }
0x1391   :  { %2350 = vmatprep.subr.mxu0 %v6723_v26  ;;  %v6741_v26 = vld [vmem:[#allocation10 + $0x348] sm:$0xff] }
0x1392   :  { %2351 = vmatpush2.msra.mxu0 %v6726_v27  ;;  %8581 = vst [vmem:[#allocation86_spill] sm:$0xff] %v6741_v26  ;;  %v6744_v27 = vld [vmem:[#allocation10 + $0x340] sm:$0xff] }
0x1393   :  { %2352 = vmatprep.subr.mxu0 %v6729_v7  ;;  %8582 = vst [vmem:[#allocation87_spill] sm:$0xff] %v6744_v27  ;;  %v6747_v7 = vld [vmem:[#allocation10 + $0x328] sm:$0xff] }
0x1394   :  { %2353 = vmatpush2.msra.mxu0 %v6732_v42  ;;  %8583 = vst [vmem:[#allocation88_spill] sm:$0xff] %v6747_v7  ;;  %v6750_v42 = vld [vmem:[#allocation10 + $0x320] sm:$0xff] }
0x1395   :  { %2354 = vmatprep.subr.mxu0 %v6735_v13  ;;  %8584 = vst [vmem:[#allocation89_spill] sm:$0xff] %v6750_v42  ;;  %v6753_v13 = vld [vmem:[#allocation10 + $0x308] sm:$0xff] }
0x1396   :  { %2355 = vmatpush2.msra.mxu0 %v6738_v60  ;;  %8585 = vst [vmem:[#allocation90_spill] sm:$0xff] %v6753_v13  ;;  %v6756_v60 = vld [vmem:[#allocation10 + $0x300] sm:$0xff] }
0x1397   :  { %2356 = vmatprep.subr.mxu0 %v6741_v26  ;;  %8586 = vst [vmem:[#allocation91_spill] sm:$0xff] %v6756_v60  ;;  %v6759_v26 = vld [vmem:[#allocation10 + $0x2e8] sm:$0xff] }
0x1398   :  { %2357 = vmatpush2.msra.mxu0 %v6744_v27  ;;  %8587 = vst [vmem:[#allocation92_spill] sm:$0xff] %v6759_v26  ;;  %v6762_v27 = vld [vmem:[#allocation10 + $0x2e0] sm:$0xff] }
0x1399   :  { %2358 = vmatprep.subr.mxu0 %v6747_v7  ;;  %8588 = vst [vmem:[#allocation93_spill] sm:$0xff] %v6762_v27  ;;  %v6765_v7 = vld [vmem:[#allocation10 + $0x2c8] sm:$0xff] }
0x139a   :  { %2359 = vmatpush2.msra.mxu0 %v6750_v42  ;;  %8589 = vst [vmem:[#allocation94_spill] sm:$0xff] %v6765_v7  ;;  %v6768_v42 = vld [vmem:[#allocation10 + $0x2c0] sm:$0xff] }
0x139b   :  { %2360 = vmatprep.subr.mxu0 %v6753_v13  ;;  %8590 = vst [vmem:[#allocation95_spill] sm:$0xff] %v6768_v42  ;;  %v6771_v13 = vld [vmem:[#allocation10 + $0x2a8] sm:$0xff] }
0x139c   :  { %2361 = vmatpush2.msra.mxu0 %v6756_v60  ;;  %8591 = vst [vmem:[#allocation96_spill] sm:$0xff] %v6771_v13  ;;  %v6774_v60 = vld [vmem:[#allocation10 + $0x2a0] sm:$0xff] }
0x139d   :  { %2362 = vmatprep.subr.mxu0 %v6759_v26  ;;  %8592 = vst [vmem:[#allocation97_spill] sm:$0xff] %v6774_v60  ;;  %v6777_v26 = vld [vmem:[#allocation10 + $0x288] sm:$0xff] }
0x139e   :  { %2363 = vmatpush2.msra.mxu0 %v6762_v27  ;;  %8593 = vst [vmem:[#allocation101_spill] sm:$0xff] %v6777_v26  ;;  %v6780_v27 = vld [vmem:[#allocation10 + $0x280] sm:$0xff] }
0x139f   :  { %2364 = vmatprep.subr.mxu0 %v6765_v7  ;;  %8594 = vst [vmem:[#allocation102_spill] sm:$0xff] %v6780_v27  ;;  %v6783_v7 = vld [vmem:[#allocation10 + $0x268] sm:$0xff] }
0x13a0   :  { %2365 = vmatpush2.msra.mxu0 %v6768_v42  ;;  %8595 = vst [vmem:[#allocation55_spill] sm:$0xff] %v6783_v7  ;;  %v6786_v42 = vld [vmem:[#allocation10 + $0x260] sm:$0xff] }
0x13a1   :  { %2366 = vmatprep.subr.mxu0 %v6771_v13  ;;  %8596 = vst [vmem:[#allocation23_spill] sm:$0xff] %v6786_v42  ;;  %v6789_v13 = vld [vmem:[#allocation10 + $0x248] sm:$0xff] }
0x13a2   :  { %2367 = vmatpush2.msra.mxu0 %v6774_v60  ;;  %8597 = vst [vmem:[#allocation59_spill] sm:$0xff] %v6789_v13  ;;  %v6792_v60 = vld [vmem:[#allocation10 + $0x240] sm:$0xff] }
0x13a3   :  { %2368 = vmatprep.subr.mxu0 %v6777_v26  ;;  %8598 = vst [vmem:[#allocation61_spill] sm:$0xff] %v6792_v60  ;;  %v6795_v26 = vld [vmem:[#allocation10 + $0x228] sm:$0xff] }
0x13a4   :  { %2369 = vmatpush2.msra.mxu0 %v6780_v27  ;;  %8599 = vst [vmem:[#allocation63_spill] sm:$0xff] %v6795_v26  ;;  %v6798_v27 = vld [vmem:[#allocation10 + $0x220] sm:$0xff] }
0x13a5   :  { %2370 = vmatprep.subr.mxu0 %v6783_v7  ;;  %8600 = vst [vmem:[#allocation65_spill] sm:$0xff] %v6798_v27  ;;  %v6801_v7 = vld [vmem:[#allocation10 + $0x208] sm:$0xff] }
0x13a6   :  { %2371 = vmatpush2.msra.mxu0 %v6786_v42  ;;  %8601 = vst [vmem:[#allocation67_spill] sm:$0xff] %v6801_v7  ;;  %v6804_v42 = vld [vmem:[#allocation10 + $0x200] sm:$0xff] }
0x13a7   :  { %2372 = vmatprep.subr.mxu0 %v6789_v13  ;;  %8602 = vst [vmem:[#allocation69_spill] sm:$0xff] %v6804_v42 }
0x13a8   :  { %2373 = vmatpush2.msra.mxu0 %v6792_v60 }
0x13a9   :  { %2374 = vmatprep.subr.mxu0 %v6795_v26 }
0x13aa   :  { %2375 = vmatpush2.msra.mxu0 %v6798_v27 }
0x13ab   :  { %2376 = vmatprep.subr.mxu0 %v6801_v7 }
0x13ac   :  { %2377 = vmatpush2.msra.mxu0 %v6804_v42 }
0x13ad   :  { %3517 = vmatprep.subr.mxu0 %v8141_v6 }
0x142c   :  { %v2118_v13 = vpop.f32.mrf.mxu1  ;;  %v2189_v26 = vpop.f32.mrf.mxu0 }
0x142d   :  { %v3121_v60 = vmul.f32 -1.442695, %v2118_v13 }
0x142e   :  { %v2120_v25 = vpop.f32.mrf.mxu1  ;;  %v2191_v54 = vpop.f32.mrf.mxu0 }
0x142f   :  { %3747 = vpow2.f32 %v3121_v60  ;;  %v3122_v24 = vmul.f32 -1.442695, %v2120_v25  ;;  %v3123_v15 = vmul.f32 -1.442695, %v2191_v54 }
0x1431   :  { %3749 = vpow2.f32 %v3122_v24 }
0x1432   :  { %3751 = vpow2.f32 %v3123_v15 }
0x143c   :  { %v3748_v27 = vpop.eup %3747 }
0x143d   :  { %v2197_v52 = vadd.f32 1.0, %v3748_v27  ;;  %v8611_v27 = vld [vmem:[#allocation45_spill] sm:$0xff] }
0x143e   :  { %v3750_v51 = vpop.eup %3749 }
0x143f   :  { %3753 = vrcp.f32 %v2197_v52  ;;  %v2203_v7 = vadd.f32 1.0, %v3750_v51  ;;  %v3752_v42 = vpop.eup %3751  ;;  %v8608_v51 = vld [vmem:[#allocation42_spill] sm:$0xff]  ;;  %v8609_v52 = vld [vmem:[#allocation43_spill] sm:$0xff] }
0x1440   :  { %3755 = vtanh.f32 %v2189_v26  ;;  %v2210_v13 = vadd.f32 1.0, %v3752_v42  ;;  %v8610_v26 = vld [vmem:[#allocation44_spill] sm:$0xff]  ;;  %v8613_v42 = vld [vmem:[#allocation47_spill] sm:$0xff] }
0x1441   :  { %3757 = vrcp.f32 %v2203_v7  ;;  %v8612_v7 = vld [vmem:[#allocation46_spill] sm:$0xff] }
0x1442   :  { %3759 = vrcp.f32 %v2210_v13  ;;  %v8614_v13 = vld [vmem:[#allocation49_spill] sm:$0xff] }
0x144c   :  { %v3754_v50 = vpop.eup %3753 }
0x144d   :  { %v3756_v11 = vpop.eup %3755 }
0x144e   :  { %v3758_v36 = vpop.eup %3757  ;;  %v2214_v9 = vmul.f32 %v3756_v11, %v3754_v50  ;;  %v8606_v11 = vld [vmem:[#allocation40_spill] sm:$0xff]  ;;  %v8607_v50 = vld [vmem:[#allocation41_spill] sm:$0xff] }
0x144f   :  { %v2213_v60 = vmul.f32 %v3758_v36, %v6482_v0  ;;  %v3760_v54 = vpop.eup %3759  ;;  %v8603_v0 = vld [vmem:[#allocation37_spill] sm:$0xff]  ;;  %v8605_v36 = vld [vmem:[#allocation39_spill] sm:$0xff] }
0x1451   :  { %v6809_v24 = vadd.f32 %v2214_v9, %v2213_v60  ;;  %v8604_v9 = vld [vmem:[#allocation38_spill] sm:$0xff] }
0x1452   :  { %v8615_v60 = vld [vmem:[#allocation98_spill] sm:$0xff] }
0x1453   :  { %3761 = vtanh.f32 %v6809_v24 }
0x1460   :  { %v3762_v25 = vpop.eup %3761 }
0x1461   :  { %v2217_v15 = vmul.f32 %v3762_v25, %v3760_v54  ;;  %v8616_v54 = vld [vmem:[#allocation99_spill] sm:$0xff]  ;;  %v8617_v25 = vld [vmem:[#allocation54_spill] sm:$0xff] }
0x1463   :  { %3515 = vmatmul.mubr.f32.vlgmr.msra.gmra.mxu1 %v2217_v15  ;;  %2378 = vmatprep.mubr.f32.mxu0 %v2217_v15 }
0x1464   :  { %2449 = vmatprep.mubr.f32.mxu1 %v2217_v15  ;;  %2386 = vmatpush1.msra.mxu1 %v6485_v31  ;;  %v8618_v15 = vld [vmem:[#allocation56_spill] sm:$0xff] }
0x1465   :  { %2387 = vmatprep.subr.mxu1 %v6488_v2 }
0x1466   :  { %2388 = vmatpush1.msra.mxu1 %v6491_v10 }
0x1467   :  { %2389 = vmatprep.subr.mxu1 %v6494_v8 }
0x1468   :  { %2390 = vmatpush1.msra.mxu1 %v6497_v44 }
0x1469   :  { %2391 = vmatprep.subr.mxu1 %v6500_v22 }
0x146a   :  { %2392 = vmatpush1.msra.mxu1 %v6503_v37 }
0x146b   :  { %2393 = vmatprep.subr.mxu1 %v6506_v18 }
0x146c   :  { %2394 = vmatpush1.msra.mxu1 %v6509_v55 }
0x146d   :  { %2395 = vmatprep.subr.mxu1 %v6512_v12 }
0x146e   :  { %2396 = vmatpush1.msra.mxu1 %v8603_v0 }
0x146f   :  { %2397 = vmatprep.subr.mxu1 %v8604_v9 }
0x1470   :  { %2398 = vmatpush1.msra.mxu1 %v8605_v36 }
0x1471   :  { %2399 = vmatprep.subr.mxu1 %v8606_v11 }
0x1472   :  { %2400 = vmatpush1.msra.mxu1 %v8607_v50 }
0x1473   :  { %2401 = vmatprep.subr.mxu1 %v8608_v51  ;;  %v8619_v51 = vld [vmem:[#allocation58_spill] sm:$0xff] }
0x1474   :  { %2402 = vmatpush1.msra.mxu1 %v8609_v52  ;;  %v8620_v52 = vld [vmem:[#allocation60_spill] sm:$0xff] }
0x1475   :  { %2403 = vmatprep.subr.mxu1 %v8610_v26  ;;  %v8621_v26 = vld [vmem:[#allocation62_spill] sm:$0xff] }
0x1476   :  { %2404 = vmatpush1.msra.mxu1 %v8611_v27  ;;  %v8622_v27 = vld [vmem:[#allocation64_spill] sm:$0xff] }
0x1477   :  { %2405 = vmatprep.subr.mxu1 %v8612_v7  ;;  %v8623_v7 = vld [vmem:[#allocation66_spill] sm:$0xff] }
0x1478   :  { %2406 = vmatpush1.msra.mxu1 %v8613_v42  ;;  %v8624_v42 = vld [vmem:[#allocation68_spill] sm:$0xff] }
0x1479   :  { %2407 = vmatprep.subr.mxu1 %v8614_v13  ;;  %v8625_v13 = vld [vmem:[#allocation70_spill] sm:$0xff] }
0x147a   :  { %2408 = vmatpush1.msra.mxu1 %v8615_v60  ;;  %v8626_v60 = vld [vmem:[#allocation72_spill] sm:$0xff] }
0x147b   :  { %2409 = vmatprep.subr.mxu1 %v8616_v54  ;;  %v8627_v54 = vld [vmem:[#allocation18_spill] sm:$0xff] }
0x147c   :  { %2410 = vmatpush1.msra.mxu1 %v8617_v25 }
0x147d   :  { %2411 = vmatprep.subr.mxu1 %v8618_v15 }
0x147e   :  { %2412 = vmatpush1.msra.mxu1 %v8619_v51 }
0x147f   :  { %2413 = vmatprep.subr.mxu1 %v8620_v52 }
0x1480   :  { %2414 = vmatpush1.msra.mxu1 %v8621_v26 }
0x1481   :  { %2415 = vmatprep.subr.mxu1 %v8622_v27 }
0x1482   :  { %2416 = vmatpush1.msra.mxu1 %v8623_v7  ;;  %v6853_v7 = vld [vmem:[#allocation10 + $0x358] sm:$0xff] }
0x1483   :  { %2417 = vmatprep.subr.mxu1 %v8624_v42  ;;  %8628 = vst [vmem:[#allocation71_spill] sm:$0xff] %v6853_v7 }
0x1484   :  { %2418 = vmatpush2.msra.mxu1 %v8625_v13  ;;  %v6856_v13 = vld [vmem:[#allocation10 + $0x350] sm:$0xff] }
0x1485   :  { %2419 = vmatprep.subr.mxu1 %v8626_v60  ;;  %8629 = vst [vmem:[#allocation26_spill] sm:$0xff] %v6856_v13 }
0x1486   :  { %2420 = vmatpush2.msra.mxu1 %v8627_v54  ;;  %v6859_v54 = vld [vmem:[#allocation10 + $0x338] sm:$0xff] }
0x1487   :  { %2421 = vmatprep.subr.mxu1 %v6590_v63  ;;  %8630 = vst [vmem:[#allocation27_spill] sm:$0xff] %v6859_v54 }
0x1488   :  { %2422 = vmatpush2.msra.mxu1 %v6593_v14  ;;  %v6862_v14 = vld [vmem:[#allocation10 + $0x330] sm:$0xff] }
0x1489   :  { %2423 = vmatprep.subr.mxu1 %v6596_v35  ;;  %8631 = vst [vmem:[#allocation28_spill] sm:$0xff] %v6862_v14 }
0x148a   :  { %2424 = vmatpush2.msra.mxu1 %v6599_v16  ;;  %v6865_v16 = vld [vmem:[#allocation10 + $0x318] sm:$0xff] }
0x148b   :  { %2425 = vmatprep.subr.mxu1 %v6602_v58  ;;  %8632 = vst [vmem:[#allocation29_spill] sm:$0xff] %v6865_v16 }
0x148c   :  { %2426 = vmatpush2.msra.mxu1 %v6605_v33  ;;  %v6868_v33 = vld [vmem:[#allocation10 + $0x310] sm:$0xff] }
0x148d   :  { %2427 = vmatprep.subr.mxu1 %v6853_v7  ;;  %8633 = vst [vmem:[#allocation30_spill] sm:$0xff] %v6868_v33  ;;  %v6871_v7 = vld [vmem:[#allocation10 + $0x2f8] sm:$0xff] }
0x148e   :  { %2428 = vmatpush2.msra.mxu1 %v6856_v13  ;;  %8634 = vst [vmem:[#allocation31_spill] sm:$0xff] %v6871_v7  ;;  %v6874_v13 = vld [vmem:[#allocation10 + $0x2f0] sm:$0xff] }
0x148f   :  { %2429 = vmatprep.subr.mxu1 %v6859_v54  ;;  %8635 = vst [vmem:[#allocation32_spill] sm:$0xff] %v6874_v13  ;;  %v6877_v54 = vld [vmem:[#allocation10 + $0x2d8] sm:$0xff] }
0x1490   :  { %2430 = vmatpush2.msra.mxu1 %v6862_v14  ;;  %8636 = vst [vmem:[#allocation50_spill] sm:$0xff] %v6877_v54  ;;  %v6880_v14 = vld [vmem:[#allocation10 + $0x2d0] sm:$0xff] }
0x1491   :  { %2431 = vmatprep.subr.mxu1 %v6865_v16  ;;  %8637 = vst [vmem:[#allocation33_spill] sm:$0xff] %v6880_v14  ;;  %v6883_v16 = vld [vmem:[#allocation10 + $0x2b8] sm:$0xff] }
0x1492   :  { %2432 = vmatpush2.msra.mxu1 %v6868_v33  ;;  %8638 = vst [vmem:[#allocation103_spill] sm:$0xff] %v6883_v16  ;;  %v6886_v33 = vld [vmem:[#allocation10 + $0x2b0] sm:$0xff] }
0x1493   :  { %2433 = vmatprep.subr.mxu1 %v6871_v7  ;;  %8639 = vst [vmem:[#allocation53_spill] sm:$0xff] %v6886_v33  ;;  %v6889_v7 = vld [vmem:[#allocation10 + $0x298] sm:$0xff] }
0x1494   :  { %2434 = vmatpush2.msra.mxu1 %v6874_v13  ;;  %8640 = vst [vmem:[#allocation37_spill] sm:$0xff] %v6889_v7  ;;  %v6892_v13 = vld [vmem:[#allocation10 + $0x290] sm:$0xff] }
0x1495   :  { %2435 = vmatprep.subr.mxu1 %v6877_v54  ;;  %8641 = vst [vmem:[#allocation38_spill] sm:$0xff] %v6892_v13  ;;  %v6895_v54 = vld [vmem:[#allocation10 + $0x278] sm:$0xff] }
0x1496   :  { %2436 = vmatpush2.msra.mxu1 %v6880_v14  ;;  %8642 = vst [vmem:[#allocation39_spill] sm:$0xff] %v6895_v54  ;;  %v6898_v14 = vld [vmem:[#allocation10 + $0x270] sm:$0xff] }
0x1497   :  { %2437 = vmatprep.subr.mxu1 %v6883_v16  ;;  %8643 = vst [vmem:[#allocation40_spill] sm:$0xff] %v6898_v14  ;;  %v6901_v16 = vld [vmem:[#allocation10 + $0x258] sm:$0xff] }
0x1498   :  { %2438 = vmatpush2.msra.mxu1 %v6886_v33  ;;  %8644 = vst [vmem:[#allocation41_spill] sm:$0xff] %v6901_v16  ;;  %v6904_v33 = vld [vmem:[#allocation10 + $0x250] sm:$0xff] }
0x1499   :  { %2439 = vmatprep.subr.mxu1 %v6889_v7  ;;  %8645 = vst [vmem:[#allocation54_spill] sm:$0xff] %v6904_v33  ;;  %v6907_v7 = vld [vmem:[#allocation10 + $0x238] sm:$0xff] }
0x149a   :  { %2440 = vmatpush2.msra.mxu1 %v6892_v13  ;;  %8646 = vst [vmem:[#allocation56_spill] sm:$0xff] %v6907_v7  ;;  %v6910_v13 = vld [vmem:[#allocation10 + $0x230] sm:$0xff] }
0x149b   :  { %2441 = vmatprep.subr.mxu1 %v6895_v54  ;;  %8647 = vst [vmem:[#allocation58_spill] sm:$0xff] %v6910_v13  ;;  %v6913_v54 = vld [vmem:[#allocation10 + $0x218] sm:$0xff] }
0x149c   :  { %2442 = vmatpush2.msra.mxu1 %v6898_v14  ;;  %8648 = vst [vmem:[#allocation60_spill] sm:$0xff] %v6913_v54  ;;  %v6916_v14 = vld [vmem:[#allocation10 + $0x210] sm:$0xff] }
0x149d   :  { %2443 = vmatprep.subr.mxu1 %v6901_v16  ;;  %8649 = vst [vmem:[#allocation62_spill] sm:$0xff] %v6916_v14 }
0x149e   :  { %2444 = vmatpush2.msra.mxu1 %v6904_v33 }
0x149f   :  { %2445 = vmatprep.subr.mxu1 %v6907_v7 }
0x14a0   :  { %2446 = vmatpush2.msra.mxu1 %v6910_v13 }
0x14a1   :  { %2447 = vmatprep.subr.mxu1 %v6913_v54 }
0x14a2   :  { %2448 = vmatpush2.msra.mxu1 %v6916_v14 }
0x14a3   :  { %2576 = vmatprep.subr.mxu1 %v8544_v40 }
0x1523   :  { %v2284_v16 = vpop.f32.mrf.mxu1 }
0x1524   :  { %v6921_v33 = vadd.f32 %v8545_v39, %v2284_v16 }
0x1525   :  { %v3516_v58 = vpop.f32.mrf.mxu1 }
0x1526   :  { %8650 = vst [vmem:[#allocation104_spill] sm:$0xff] %v6921_v33  ;;  %2289 = vmax.xlane.f32.xlu1 %v6921_v33 }
0x15af   :  { %v2290_v7 = vpop.xlane.xlu1 %2289 }
0x15b0   :  { %vm2291_vm2 = vcmp.eq.f32.partialorder %v6921_v33, %v2290_v7  ;;  %v6929_v7 = vld [vmem:[#allocation12 + $0x78] sm:$0xff] }
0x15b1   :  { %v2292_v13 = vsel %vm2291_vm2, %v5288_v3, 128  ;;  %v8677_v33 = vld [vmem:[#allocation96_spill] sm:$0xff] }
0x15b2   :  { %v2294_v35 = vshra.s32 %v2292_v13, 16  ;;  %v2293_v63 = vand.u32 65535, %v2292_v13  ;;  %v8667_v13 = vld [vmem:[#allocation86_spill] sm:$0xff] }
0x15b4   :  { %v2296_v54 = vcvt.s32.f32 %v2294_v35  ;;  %v2295_v14 = vcvt.s32.f32 %v2293_v63  ;;  %v6936_v63 = vld [vmem:[#allocation12 + $0x70] sm:$0xff] }
0x15b5   :  { %v7008_v35 = vld [vmem:[#allocation12 + $0x10] sm:$0xff] }
0x15b6   :  { %2297 = vmin.xlane.f32.xlu0 %v2296_v54 }
0x163f   :  { %v2298_v60 = vpop.xlane.xlu0 %2297 }
0x1640   :  { %vm2299_vm3 = vcmp.eq.f32.partialorder %v2296_v54, %v2298_v60  ;;  %v2304_v42 = vcvt.f32.s32 %v2298_v60  ;;  %v8668_v60 = vld [vmem:[#allocation87_spill] sm:$0xff]  ;;  %v8669_v54 = vld [vmem:[#allocation88_spill] sm:$0xff] }
0x1641   :  { %v2300_v40 = vsel %vm2299_vm3, %v2295_v14, inf  ;;  %v6942_v14 = vld [vmem:[#allocation12 + $0x68] sm:$0xff] }
0x1642   :  { %2301 = vmin.xlane.f32.xlu1 %v2300_v40  ;;  %v2305_v39 = vshll.u32 %v2304_v42, 16  ;;  %v8666_v42 = vld [vmem:[#allocation85_spill] sm:$0xff] }
0x1643   :  { %v8670_v40 = vld [vmem:[#allocation89_spill] sm:$0xff] }
0x16cb   :  { %v2302_v16 = vpop.xlane.xlu1 %2301 }
0x16cc   :  { %v2303_v58 = vcvt.f32.s32 %v2302_v16  ;;  %v8671_v16 = vld [vmem:[#allocation90_spill] sm:$0xff] }
0x16ce   :  { %v2306_v27 = vadd.s32 %v2305_v39, %v2303_v58  ;;  %v8672_v39 = vld [vmem:[#allocation91_spill] sm:$0xff]  ;;  %v8673_v58 = vld [vmem:[#allocation92_spill] sm:$0xff] }
0x16d0   :  { %vm2307_vm4 = vcmp.eq.s32.totalorder %v5288_v3, %v2306_v27  ;;  %v8665_v27 = vld [vmem:[#allocation84_spill] sm:$0xff] }
0x16d1   :  { %3148 = vmatmul.mubr.msk.f32.vlgmr.msra.gmra.mxu0 %vm2307_vm4, %v8209_v57  ;;  %3149 = vmatmul.mubr.msk.f32.vlgmr.msra.gmra.mxu1 %vm2307_vm4, %v8209_v57 }
0x16d2   :  { %3518 = vmatpush3.msra.mxu0 %v6929_v7  ;;  %3549 = vmatprep.mubr.msk.f32.mxu0 %vm4311_vm1, %v8141_v6 }
0x16d3   :  { %3519 = vmatprep.subr.mxu0 %v8141_v6  ;;  %2577 = vmatpush1.msra.mxu1 %v6329_v45  ;;  %v6948_v45 = vld [vmem:[#allocation12 + $0x60] sm:$0xff] }
0x16d4   :  { %3520 = vmatpush3.msra.mxu0 %v6936_v63  ;;  %2578 = vmatprep.subr.mxu1 %v6333_v29  ;;  %v6954_v29 = vld [vmem:[#allocation12 + $0x58] sm:$0xff] }
0x16d5   :  { %3521 = vmatprep.subr.mxu0 %v8141_v6  ;;  %2579 = vmatpush1.msra.mxu1 %v6337_v28  ;;  %v6960_v28 = vld [vmem:[#allocation12 + $0x50] sm:$0xff] }
0x16d6   :  { %3522 = vmatpush3.msra.mxu0 %v6942_v14  ;;  %2580 = vmatprep.subr.mxu1 %v6341_v30  ;;  %v6966_v30 = vld [vmem:[#allocation12 + $0x48] sm:$0xff] }
0x16d7   :  { %3523 = vmatprep.subr.mxu0 %v8141_v6  ;;  %2581 = vmatpush1.msra.mxu1 %v6345_v32  ;;  %v6972_v32 = vld [vmem:[#allocation12 + $0x40] sm:$0xff] }
0x16d8   :  { %3524 = vmatpush3.msra.mxu0 %v6948_v45  ;;  %2582 = vmatprep.subr.mxu1 %v6349_v4  ;;  %v6978_v4 = vld [vmem:[#allocation12 + $0x38] sm:$0xff] }
0x16d9   :  { %3525 = vmatprep.subr.mxu0 %v8141_v6  ;;  %2583 = vmatpush1.msra.mxu1 %v6353_v46  ;;  %v6984_v46 = vld [vmem:[#allocation12 + $0x30] sm:$0xff] }
0x16da   :  { %3526 = vmatpush3.msra.mxu0 %v6954_v29  ;;  %2584 = vmatprep.subr.mxu1 %v6357_v49  ;;  %v6990_v49 = vld [vmem:[#allocation12 + $0x28] sm:$0xff] }
0x16db   :  { %3527 = vmatprep.subr.mxu0 %v8141_v6  ;;  %2585 = vmatpush1.msra.mxu1 %v6361_v20  ;;  %v6996_v20 = vld [vmem:[#allocation12 + $0x20] sm:$0xff] }
0x16dc   :  { %3528 = vmatpush3.msra.mxu0 %v6960_v28  ;;  %2586 = vmatprep.subr.mxu1 %v6365_v43  ;;  %v7002_v43 = vld [vmem:[#allocation12 + $0x18] sm:$0xff] }
0x16dd   :  { %3529 = vmatprep.subr.mxu0 %v8141_v6  ;;  %2587 = vmatpush1.msra.mxu1 %v8547_v59  ;;  %v8651_v59 = vld [vmem:[#allocation34_spill] sm:$0xff] }
0x16de   :  { %3530 = vmatpush3.msra.mxu0 %v6966_v30  ;;  %2588 = vmatprep.subr.mxu1 %v8548_v61  ;;  %v7014_v61 = vld [vmem:[#allocation12 + $0x8] sm:$0xff] }
0x16df   :  { %3531 = vmatprep.subr.mxu0 %v8141_v6  ;;  %2589 = vmatpush1.msra.mxu1 %v8549_v23  ;;  %v8652_v23 = vld [vmem:[#allocation35_spill] sm:$0xff] }
0x16e0   :  { %3532 = vmatpush3.msra.mxu0 %v6972_v32  ;;  %2590 = vmatprep.subr.mxu1 %v8550_v19  ;;  %v8653_v19 = vld [vmem:[#allocation74_spill] sm:$0xff] }
0x16e1   :  { %3533 = vmatprep.subr.mxu0 %v8141_v6  ;;  %2591 = vmatpush1.msra.mxu1 %v8551_v21  ;;  %v8654_v21 = vld [vmem:[#allocation76_spill] sm:$0xff] }
0x16e2   :  { %3534 = vmatpush3.msra.mxu0 %v6978_v4  ;;  %2592 = vmatprep.subr.mxu1 %v8552_v5  ;;  %v8655_v5 = vld [vmem:[#allocation36_spill] sm:$0xff] }
0x16e3   :  { %3535 = vmatprep.subr.mxu0 %v8141_v6  ;;  %2593 = vmatpush1.msra.mxu1 %v8553_v62  ;;  %v8656_v62 = vld [vmem:[#allocation78_spill] sm:$0xff] }
0x16e4   :  { %3536 = vmatpush3.msra.mxu0 %v6984_v46  ;;  %2594 = vmatprep.subr.mxu1 %v8554_v47  ;;  %v8657_v47 = vld [vmem:[#allocation80_spill] sm:$0xff] }
0x16e5   :  { %3537 = vmatprep.subr.mxu0 %v8141_v6  ;;  %2595 = vmatpush1.msra.mxu1 %v8555_v17  ;;  %v8658_v17 = vld [vmem:[#allocation82_spill] sm:$0xff] }
0x16e6   :  { %3538 = vmatpush3.msra.mxu0 %v6990_v49  ;;  %2596 = vmatprep.subr.mxu1 %v8556_v48  ;;  %v8659_v48 = vld [vmem:[#allocation73_spill] sm:$0xff] }
0x16e7   :  { %3539 = vmatprep.subr.mxu0 %v8141_v6  ;;  %2597 = vmatpush1.msra.mxu1 %v8557_v53  ;;  %v8660_v53 = vld [vmem:[#allocation75_spill] sm:$0xff] }
0x16e8   :  { %3540 = vmatpush3.msra.mxu0 %v6996_v20  ;;  %2598 = vmatprep.subr.mxu1 %v8558_v38  ;;  %v8661_v38 = vld [vmem:[#allocation77_spill] sm:$0xff] }
0x16e9   :  { %3541 = vmatprep.subr.mxu0 %v8141_v6  ;;  %2599 = vmatpush1.msra.mxu1 %v8559_v1  ;;  %v8662_v1 = vld [vmem:[#allocation79_spill] sm:$0xff] }
0x16ea   :  { %3542 = vmatpush3.msra.mxu0 %v7002_v43  ;;  %2600 = vmatprep.subr.mxu1 %v8560_v41  ;;  %v8663_v41 = vld [vmem:[#allocation81_spill] sm:$0xff] }
0x16eb   :  { %3543 = vmatprep.subr.mxu0 %v8141_v6  ;;  %2601 = vmatpush1.msra.mxu1 %v6425_v34  ;;  %v7020_v34 = vld [vmem:[#allocation12] sm:$0xff] }
0x16ec   :  { %3544 = vmatpush3.msra.mxu0 %v7008_v35  ;;  %2602 = vmatprep.subr.mxu1 %v8562_v56  ;;  %v8664_v56 = vld [vmem:[#allocation83_spill] sm:$0xff] }
0x16ed   :  { %3545 = vmatprep.subr.mxu0 %v8141_v6  ;;  %2603 = vmatpush1.msra.mxu1 %v8651_v59  ;;  %v8674_v59 = vld [vmem:[#allocation93_spill] sm:$0xff] }
0x16ee   :  { %3546 = vmatpush3.msra.mxu0 %v7014_v61  ;;  %2604 = vmatprep.subr.mxu1 %v8652_v23  ;;  %v8675_v23 = vld [vmem:[#allocation94_spill] sm:$0xff] }
0x16ef   :  { %3547 = vmatprep.subr.mxu0 %v8141_v6  ;;  %2605 = vmatpush1.msra.mxu1 %v8653_v19 }
0x16f0   :  { %3548 = vmatpush3.msra.mxu0 %v7020_v34  ;;  %2606 = vmatprep.subr.mxu1 %v8654_v21 }
0x16f1   :  { %2647 = vmatprep.subr.mxu0 %v8655_v5  ;;  %2607 = vmatpush1.msra.mxu1 %v8656_v62  ;;  %v8676_v5 = vld [vmem:[#allocation95_spill] sm:$0xff] }
0x16f2   :  { %2608 = vmatprep.subr.mxu1 %v8657_v47 }
0x16f3   :  { %2609 = vmatpush2.msra.mxu1 %v8658_v17 }
0x16f4   :  { %2610 = vmatprep.subr.mxu1 %v8659_v48 }
0x16f5   :  { %2611 = vmatpush2.msra.mxu1 %v8660_v53 }
0x16f6   :  { %2612 = vmatprep.subr.mxu1 %v8661_v38 }
0x16f7   :  { %2613 = vmatpush2.msra.mxu1 %v8662_v1 }
0x16f8   :  { %2614 = vmatprep.subr.mxu1 %v8663_v41 }
0x16f9   :  { %2615 = vmatpush2.msra.mxu1 %v8664_v56 }
0x16fa   :  { %2616 = vmatprep.subr.mxu1 %v8665_v27 }
0x16fb   :  { %2617 = vmatpush2.msra.mxu1 %v8666_v42 }
0x16fc   :  { %2618 = vmatprep.subr.mxu1 %v8667_v13  ;;  %v8678_v13 = vld [vmem:[#allocation97_spill] sm:$0xff] }
0x16fd   :  { %2619 = vmatpush2.msra.mxu1 %v8668_v60  ;;  %v8679_v60 = vld [vmem:[#allocation101_spill] sm:$0xff] }
0x16fe   :  { %2620 = vmatprep.subr.mxu1 %v8669_v54  ;;  %v8680_v54 = vld [vmem:[#allocation102_spill] sm:$0xff] }
0x16ff   :  { %2621 = vmatpush2.msra.mxu1 %v8670_v40  ;;  %v8681_v40 = vld [vmem:[#allocation55_spill] sm:$0xff] }
0x1700   :  { %2622 = vmatprep.subr.mxu1 %v8671_v16  ;;  %v8682_v16 = vld [vmem:[#allocation23_spill] sm:$0xff] }
0x1701   :  { %2623 = vmatpush2.msra.mxu1 %v8672_v39  ;;  %v8683_v39 = vld [vmem:[#allocation59_spill] sm:$0xff] }
0x1702   :  { %2624 = vmatprep.subr.mxu1 %v8673_v58  ;;  %v8684_v58 = vld [vmem:[#allocation61_spill] sm:$0xff] }
0x1703   :  { %2625 = vmatpush2.msra.mxu1 %v8674_v59  ;;  %v8685_v59 = vld [vmem:[#allocation63_spill] sm:$0xff] }
0x1704   :  { %2626 = vmatprep.subr.mxu1 %v8675_v23  ;;  %v8686_v23 = vld [vmem:[#allocation65_spill] sm:$0xff] }
0x1705   :  { %2627 = vmatpush2.msra.mxu1 %v8676_v5  ;;  %v8687_v5 = vld [vmem:[#allocation67_spill] sm:$0xff] }
0x1706   :  { %2628 = vmatprep.subr.mxu1 %v8677_v33  ;;  %v8688_v33 = vld [vmem:[#allocation69_spill] sm:$0xff] }
0x1707   :  { %2629 = vmatpush2.msra.mxu1 %v8678_v13 }
0x1708   :  { %2630 = vmatprep.subr.mxu1 %v8679_v60 }
0x1709   :  { %2631 = vmatpush2.msra.mxu1 %v8680_v54 }
0x170a   :  { %2632 = vmatprep.subr.mxu1 %v8681_v40 }
0x170b   :  { %2633 = vmatpush2.msra.mxu1 %v8682_v16 }
0x170c   :  { %2634 = vmatprep.subr.mxu1 %v8683_v39 }
0x170d   :  { %2635 = vmatpush2.msra.mxu1 %v8684_v58 }
0x170e   :  { %2636 = vmatprep.subr.mxu1 %v8685_v59 }
0x170f   :  { %2637 = vmatpush2.msra.mxu1 %v8686_v23 }
0x1710   :  { %2638 = vmatprep.subr.mxu1 %v8687_v5 }
0x1711   :  { %2639 = vmatpush2.msra.mxu1 %v8688_v33 }
0x1712   :  { %3552 = vmatprep.subr.mxu1 %v8141_v6 }
0x1791   :  { %v2380_v60 = vpop.f32.mrf.mxu0  ;;  %v2451_v16 = vpop.f32.mrf.mxu1 }
0x1792   :  { %v3125_v54 = vmul.f32 -1.442695, %v2380_v60 }
0x1793   :  { %v2382_v13 = vpop.f32.mrf.mxu0  ;;  %v2453_v39 = vpop.f32.mrf.mxu1 }
0x1794   :  { %3763 = vpow2.f32 %v3125_v54  ;;  %v3126_v40 = vmul.f32 -1.442695, %v2382_v13  ;;  %v3127_v42 = vmul.f32 -1.442695, %v2453_v39 }
0x1796   :  { %3765 = vpow2.f32 %v3126_v40 }
0x1797   :  { %3767 = vpow2.f32 %v3127_v42 }
0x17a1   :  { %v3764_v58 = vpop.eup %3763 }
0x17a2   :  { %v2459_v27 = vadd.f32 1.0, %v3764_v58  ;;  %v8716_v58 = vld [vmem:[#allocation31_spill] sm:$0xff] }
0x17a3   :  { %v3766_v59 = vpop.eup %3765 }
0x17a4   :  { %3769 = vrcp.f32 %v2459_v27  ;;  %v2465_v23 = vadd.f32 1.0, %v3766_v59  ;;  %v3768_v33 = vpop.eup %3767  ;;  %v8714_v27 = vld [vmem:[#allocation29_spill] sm:$0xff]  ;;  %v8717_v59 = vld [vmem:[#allocation32_spill] sm:$0xff] }
0x17a5   :  { %3771 = vtanh.f32 %v2451_v16  ;;  %v2472_v60 = vadd.f32 1.0, %v3768_v33  ;;  %v8699_v33 = vld [vmem:[#allocation66_spill] sm:$0xff] }
0x17a6   :  { %3773 = vrcp.f32 %v2465_v23  ;;  %v8715_v16 = vld [vmem:[#allocation30_spill] sm:$0xff] }
0x17a7   :  { %3775 = vrcp.f32 %v2472_v60  ;;  %v8718_v23 = vld [vmem:[#allocation50_spill] sm:$0xff]  ;;  %v8720_v60 = vld [vmem:[#allocation103_spill] sm:$0xff] }
0x17b1   :  { %v3770_v5 = vpop.eup %3769 }
0x17b2   :  { %v3772_v56 = vpop.eup %3771 }
0x17b3   :  { %v3774_v41 = vpop.eup %3773  ;;  %v2476_v1 = vmul.f32 %v3772_v56, %v3770_v5  ;;  %v8713_v56 = vld [vmem:[#allocation28_spill] sm:$0xff]  ;;  %v8719_v5 = vld [vmem:[#allocation33_spill] sm:$0xff] }
0x17b4   :  { %v2475_v13 = vmul.f32 %v3774_v41, %v6809_v24  ;;  %v3776_v40 = vpop.eup %3775  ;;  %v8700_v24 = vld [vmem:[#allocation68_spill] sm:$0xff]  ;;  %v8712_v41 = vld [vmem:[#allocation27_spill] sm:$0xff] }
0x17b6   :  { %v7060_v54 = vadd.f32 %v2476_v1, %v2475_v13  ;;  %v8711_v1 = vld [vmem:[#allocation26_spill] sm:$0xff]  ;;  %v8721_v13 = vld [vmem:[#allocation53_spill] sm:$0xff] }
0x17b8   :  { %3777 = vtanh.f32 %v7060_v54 }
0x17c5   :  { %v3778_v39 = vpop.eup %3777 }
0x17c6   :  { %v2479_v42 = vmul.f32 %v3778_v39, %v3776_v40  ;;  %v8722_v40 = vld [vmem:[#allocation37_spill] sm:$0xff]  ;;  %v8723_v39 = vld [vmem:[#allocation38_spill] sm:$0xff] }
0x17c8   :  { %3550 = vmatmul.mubr.f32.vlgmr.msra.gmra.mxu0 %v2479_v42  ;;  %2640 = vmatprep.mubr.f32.mxu1 %v2479_v42 }
0x17c9   :  { %2711 = vmatprep.mubr.f32.mxu0 %v2479_v42  ;;  %2648 = vmatpush1.msra.mxu0 %v6485_v31  ;;  %v8689_v31 = vld [vmem:[#allocation42_spill] sm:$0xff]  ;;  %v8724_v42 = vld [vmem:[#allocation39_spill] sm:$0xff] }
0x17ca   :  { %2649 = vmatprep.subr.mxu0 %v6488_v2  ;;  %v8690_v2 = vld [vmem:[#allocation43_spill] sm:$0xff] }
0x17cb   :  { %2650 = vmatpush1.msra.mxu0 %v6491_v10  ;;  %v8691_v10 = vld [vmem:[#allocation44_spill] sm:$0xff] }
0x17cc   :  { %2651 = vmatprep.subr.mxu0 %v6494_v8  ;;  %v8692_v8 = vld [vmem:[#allocation45_spill] sm:$0xff] }
0x17cd   :  { %2652 = vmatpush1.msra.mxu0 %v6497_v44  ;;  %v8693_v44 = vld [vmem:[#allocation46_spill] sm:$0xff] }
0x17ce   :  { %2653 = vmatprep.subr.mxu0 %v6500_v22  ;;  %v8694_v22 = vld [vmem:[#allocation47_spill] sm:$0xff] }
0x17cf   :  { %2654 = vmatpush1.msra.mxu0 %v6503_v37  ;;  %v8695_v37 = vld [vmem:[#allocation49_spill] sm:$0xff] }
0x17d0   :  { %2655 = vmatprep.subr.mxu0 %v6506_v18  ;;  %v8696_v18 = vld [vmem:[#allocation98_spill] sm:$0xff] }
0x17d1   :  { %2656 = vmatpush1.msra.mxu0 %v6509_v55  ;;  %v8697_v55 = vld [vmem:[#allocation99_spill] sm:$0xff] }
0x17d2   :  { %2657 = vmatprep.subr.mxu0 %v6512_v12  ;;  %v8698_v12 = vld [vmem:[#allocation64_spill] sm:$0xff] }
0x17d3   :  { %2658 = vmatpush1.msra.mxu0 %v8603_v0  ;;  %v8701_v0 = vld [vmem:[#allocation70_spill] sm:$0xff] }
0x17d4   :  { %2659 = vmatprep.subr.mxu0 %v8604_v9  ;;  %v8702_v9 = vld [vmem:[#allocation72_spill] sm:$0xff] }
0x17d5   :  { %2660 = vmatpush1.msra.mxu0 %v8605_v36  ;;  %v8703_v36 = vld [vmem:[#allocation18_spill] sm:$0xff] }
0x17d6   :  { %2661 = vmatprep.subr.mxu0 %v8606_v11  ;;  %v8704_v11 = vld [vmem:[#allocation19_spill] sm:$0xff] }
0x17d7   :  { %2662 = vmatpush1.msra.mxu0 %v8607_v50  ;;  %v8705_v50 = vld [vmem:[#allocation20_spill] sm:$0xff] }
0x17d8   :  { %2663 = vmatprep.subr.mxu0 %v8689_v31  ;;  %v8725_v31 = vld [vmem:[#allocation40_spill] sm:$0xff] }
0x17d9   :  { %2664 = vmatpush1.msra.mxu0 %v8690_v2  ;;  %v8726_v2 = vld [vmem:[#allocation41_spill] sm:$0xff] }
0x17da   :  { %2665 = vmatprep.subr.mxu0 %v8691_v10  ;;  %v8727_v10 = vld [vmem:[#allocation54_spill] sm:$0xff] }
0x17db   :  { %2666 = vmatpush1.msra.mxu0 %v8692_v8  ;;  %v8728_v8 = vld [vmem:[#allocation56_spill] sm:$0xff] }
0x17dc   :  { %2667 = vmatprep.subr.mxu0 %v8693_v44  ;;  %v8729_v44 = vld [vmem:[#allocation58_spill] sm:$0xff] }
0x17dd   :  { %2668 = vmatpush1.msra.mxu0 %v8694_v22  ;;  %v8730_v22 = vld [vmem:[#allocation60_spill] sm:$0xff] }
0x17de   :  { %2669 = vmatprep.subr.mxu0 %v8695_v37  ;;  %v8731_v37 = vld [vmem:[#allocation62_spill] sm:$0xff] }
0x17df   :  { %2670 = vmatpush1.msra.mxu0 %v8696_v18  ;;  %v4100_v18 = vld [vmem:[#allocation10 + $0x1e8] sm:$0xff] }
0x17e0   :  { %2671 = vmatprep.subr.mxu0 %v8697_v55 }
0x17e1   :  { %2672 = vmatpush1.msra.mxu0 %v8617_v25  ;;  %v8709_v25 = vld [vmem:[#allocation25_spill] sm:$0xff] }
0x17e2   :  { %2673 = vmatprep.subr.mxu0 %v8618_v15  ;;  %v8710_v15 = vld [vmem:[#allocation71_spill] sm:$0xff] }
0x17e3   :  { %2674 = vmatpush1.msra.mxu0 %v8619_v51  ;;  %v8706_v51 = vld [vmem:[#allocation21_spill] sm:$0xff] }
0x17e4   :  { %2675 = vmatprep.subr.mxu0 %v8620_v52  ;;  %v8707_v52 = vld [vmem:[#allocation22_spill] sm:$0xff] }
0x17e5   :  { %2676 = vmatpush1.msra.mxu0 %v8621_v26  ;;  %v8708_v26 = vld [vmem:[#allocation24_spill] sm:$0xff] }
0x17e6   :  { %2677 = vmatprep.subr.mxu0 %v8698_v12  ;;  %v7129_v12 = vld [vmem:[%s7295_s5] ss:$0 sm:$0xff]  ;;  %s4312_s5 = smov [#allocation13]  }
0x17e7   :  { %2678 = vmatpush1.msra.mxu0 %v8699_v33  ;;  %8732 = vst [vmem:[#allocation34_spill] sm:$0xff] %v7129_v12  ;;  %s3082_s27 = sshll.u32 %s4312_s5, 4  ;;  %s3083_s27 = int_to_ptr.vmem [resolvable:$true] %s3082_s27 }
0x17e8   :  { %2679 = vmatprep.subr.mxu0 %v8700_v24  ;;  %s4272_s28 = scalar_lea.vmem %s3083_s27, 128  ;;  %p4277_p12 = scmp.lt.s32.totalorder %s3083_s27, %s3083_s27 }
0x17e9   :  { %2680 = vmatpush2.msra.mxu0 %v8701_v0  ;;  %p4273_p11 = scmp.ne.s32.totalorder %s3083_s27, %s4272_s28  ;;  %p4278_p13 = scmp.lt.s32.totalorder %s4272_s28, %s4272_s28 }
0x17ea   :  { %2681 = vmatprep.subr.mxu0 %v8702_v9 }
0x17eb   :  { %2682 = vmatpush2.msra.mxu0 %v8703_v36  ;;  %p4279_p0 = por %p4278_p13, %p4277_p12 }
0x17ec   :  { %2683 = vmatprep.subr.mxu0 %v8704_v11 }
0x17ed   :  { %2684 = vmatpush2.msra.mxu0 %v8705_v50  ;;  %p4280_p1 = pnand %p4279_p0, %p4273_p11 }
0x17ee   :  { %2685 = vmatprep.subr.mxu0 %v8706_v51 }
0x17ef   :  { %2686 = vmatpush2.msra.mxu0 %v8707_v52 }
0x17f0   :  { %2687 = vmatprep.subr.mxu0 %v8708_v26 }
0x17f1   :  { %2688 = vmatpush2.msra.mxu0 %v8709_v25 }
0x17f2   :  { %2689 = vmatprep.subr.mxu0 %v8710_v15 }
0x17f3   :  { %2690 = vmatpush2.msra.mxu0 %v8711_v1 }
0x17f4   :  { %2691 = vmatprep.subr.mxu0 %v8712_v41 }
0x17f5   :  { %2692 = vmatpush2.msra.mxu0 %v8713_v56 }
0x17f6   :  { %2693 = vmatprep.subr.mxu0 %v8714_v27 }
0x17f7   :  { %2694 = vmatpush2.msra.mxu0 %v8715_v16 }
0x17f8   :  { %2695 = vmatprep.subr.mxu0 %v8716_v58 }
0x17f9   :  { %2696 = vmatpush2.msra.mxu0 %v8717_v59 }
0x17fa   :  { %2697 = vmatprep.subr.mxu0 %v8718_v23 }
0x17fb   :  { %2698 = vmatpush2.msra.mxu0 %v8719_v5 }
0x17fc   :  { %2699 = vmatprep.subr.mxu0 %v8720_v60 }
0x17fd   :  { %2700 = vmatpush2.msra.mxu0 %v8721_v13 }
0x17fe   :  { %2701 = vmatprep.subr.mxu0 %v8722_v40 }
0x17ff   :  { %2702 = vmatpush2.msra.mxu0 %v8723_v39 }
0x1800   :  { %2703 = vmatprep.subr.mxu0 %v8724_v42 }
0x1801   :  { %2704 = vmatpush2.msra.mxu0 %v8725_v31 }
0x1802   :  { %2705 = vmatprep.subr.mxu0 %v8726_v2 }
0x1803   :  { %2706 = vmatpush2.msra.mxu0 %v8727_v10 }
0x1804   :  { %2707 = vmatprep.subr.mxu0 %v8728_v8 }
0x1805   :  { %2708 = vmatpush2.msra.mxu0 %v8729_v44 }
0x1806   :  { %2709 = vmatprep.subr.mxu0 %v8730_v22 }
0x1807   :  { %2710 = vmatpush2.msra.mxu0 %v8731_v37 }
0x1808   :  { %2838 = vmatprep.subr.mxu0 %v4100_v18 }
0x1888   :  { %v2546_v55 = vpop.f32.mrf.mxu0 }
0x1889   :  { %v7132_v33 = vadd.f32 %v7129_v12, %v2546_v55 }
0x188a   :  { %v3551_v24 = vpop.f32.mrf.mxu0 }
0x188b   :  { %2551 = vmax.xlane.f32.xlu0 %v7132_v33 }
0x1914   :  { %v2552_v0 = vpop.xlane.xlu0 %2551 }
0x1915   :  { %vm2553_vm5 = vcmp.eq.f32.partialorder %v7132_v33, %v2552_v0  ;;  %v4102_v0 = vld [vmem:[#allocation10 + $0x1e0] sm:$0xff] }
0x1916   :  { %v2554_v9 = vsel %vm2553_vm5, %v5288_v3, 128 }
0x1917   :  { %v2556_v36 = vshra.s32 %v2554_v9, 16  ;;  %v2555_v50 = vand.u32 65535, %v2554_v9  ;;  %v4103_v9 = vld [vmem:[#allocation10 + $0x1c8] sm:$0xff] }
0x1919   :  { %v2558_v11 = vcvt.s32.f32 %v2556_v36  ;;  %v2557_v52 = vcvt.s32.f32 %v2555_v50  ;;  %v4105_v36 = vld [vmem:[#allocation10 + $0x1a8] sm:$0xff] }
0x191a   :  { %v4107_v50 = vld [vmem:[#allocation10 + $0x188] sm:$0xff] }
0x191b   :  { %2559 = vmin.xlane.f32.xlu1 %v2558_v11 }
0x19a4   :  { %v2560_v51 = vpop.xlane.xlu1 %2559 }
0x19a5   :  { %vm2561_vm6 = vcmp.eq.f32.partialorder %v2558_v11, %v2560_v51  ;;  %v2566_v25 = vcvt.f32.s32 %v2560_v51  ;;  %v4106_v11 = vld [vmem:[#allocation10 + $0x1a0] sm:$0xff] }
0x19a6   :  { %v2562_v26 = vsel %vm2561_vm6, %v2557_v52, inf  ;;  %v4108_v51 = vld [vmem:[#allocation10 + $0x180] sm:$0xff]  ;;  %v4109_v52 = vld [vmem:[#allocation10 + $0x168] sm:$0xff] }
0x19a7   :  { %2563 = vmin.xlane.f32.xlu0 %v2562_v26  ;;  %v2567_v55 = vshll.u32 %v2566_v25, 16  ;;  %v4110_v26 = vld [vmem:[#allocation10 + $0x160] sm:$0xff]  ;;  %v4111_v25 = vld [vmem:[#allocation10 + $0x148] sm:$0xff] }
0x1a30   :  { %v2564_v18 = vpop.xlane.xlu0 %2563 }
0x1a31   :  { %v2565_v24 = vcvt.f32.s32 %v2564_v18  ;;  %v4112_v18 = vld [vmem:[#allocation10 + $0x140] sm:$0xff] }
0x1a33   :  { %v2568_v12 = vadd.s32 %v2567_v55, %v2565_v24  ;;  %v4113_v55 = vld [vmem:[#allocation10 + $0x128] sm:$0xff]  ;;  %v4114_v24 = vld [vmem:[#allocation10 + $0x120] sm:$0xff] }
0x1a35   :  { %vm2569_vm7 = vcmp.eq.s32.totalorder %v5288_v3, %v2568_v12  ;;  %v4104_v12 = vld [vmem:[#allocation10 + $0x1c0] sm:$0xff] }
0x1a36   :  { %3150 = vmatmul.mubr.msk.f32.vlgmr.msra.gmra.mxu1 %vm2569_vm7, %v8209_v57  ;;  %3151 = vmatmul.mubr.msk.f32.vlgmr.msra.gmra.mxu0 %vm2569_vm7, %v8209_v57 }
0x1a37   :  { %3553 = vmatpush3.msra.mxu1 %v6929_v7  ;;  %3584 = vmatprep.mubr.msk.f32.mxu1 %vm4311_vm1, %v8141_v6 }
0x1a38   :  { %3554 = vmatprep.subr.mxu1 %v8141_v6  ;;  %2839 = vmatpush1.msra.mxu0 %v4102_v0  ;;  %v4115_v0 = vld [vmem:[#allocation10 + $0x108] sm:$0xff] }
0x1a39   :  { %3555 = vmatpush3.msra.mxu1 %v6936_v63  ;;  %2840 = vmatprep.subr.mxu0 %v4103_v9  ;;  %v4116_v9 = vld [vmem:[#allocation10 + $0x100] sm:$0xff] }
0x1a3a   :  { %3556 = vmatprep.subr.mxu1 %v8141_v6  ;;  %2841 = vmatpush1.msra.mxu0 %v4104_v12  ;;  %v4117_v12 = vld [vmem:[#allocation10 + $0xe8] sm:$0xff] }
0x1a3b   :  { %3557 = vmatpush3.msra.mxu1 %v6942_v14  ;;  %2842 = vmatprep.subr.mxu0 %v4105_v36  ;;  %v4118_v36 = vld [vmem:[#allocation10 + $0xe0] sm:$0xff] }
0x1a3c   :  { %3558 = vmatprep.subr.mxu1 %v8141_v6  ;;  %2843 = vmatpush1.msra.mxu0 %v4106_v11  ;;  %v4119_v11 = vld [vmem:[#allocation10 + $0xc8] sm:$0xff] }
0x1a3d   :  { %3559 = vmatpush3.msra.mxu1 %v6948_v45  ;;  %2844 = vmatprep.subr.mxu0 %v4107_v50  ;;  %v4120_v50 = vld [vmem:[#allocation10 + $0xc0] sm:$0xff] }
0x1a3e   :  { %3560 = vmatprep.subr.mxu1 %v8141_v6  ;;  %2845 = vmatpush1.msra.mxu0 %v4108_v51  ;;  %v4121_v51 = vld [vmem:[#allocation10 + $0xa8] sm:$0xff] }
0x1a3f   :  { %3561 = vmatpush3.msra.mxu1 %v6954_v29  ;;  %2846 = vmatprep.subr.mxu0 %v4109_v52  ;;  %v4122_v52 = vld [vmem:[#allocation10 + $0xa0] sm:$0xff] }
0x1a40   :  { %3562 = vmatprep.subr.mxu1 %v8141_v6  ;;  %2847 = vmatpush1.msra.mxu0 %v4110_v26  ;;  %v4123_v26 = vld [vmem:[#allocation10 + $0x88] sm:$0xff] }
0x1a41   :  { %3563 = vmatpush3.msra.mxu1 %v6960_v28  ;;  %2848 = vmatprep.subr.mxu0 %v4111_v25  ;;  %v4124_v25 = vld [vmem:[#allocation10 + $0x80] sm:$0xff] }
0x1a42   :  { %3564 = vmatprep.subr.mxu1 %v8141_v6  ;;  %2849 = vmatpush1.msra.mxu0 %v4112_v18  ;;  %v4125_v18 = vld [vmem:[#allocation10 + $0x68] sm:$0xff] }
0x1a43   :  { %3565 = vmatpush3.msra.mxu1 %v6966_v30  ;;  %2850 = vmatprep.subr.mxu0 %v4113_v55  ;;  %v4126_v55 = vld [vmem:[#allocation10 + $0x60] sm:$0xff] }
0x1a44   :  { %3566 = vmatprep.subr.mxu1 %v8141_v6  ;;  %2851 = vmatpush1.msra.mxu0 %v4114_v24  ;;  %v4127_v24 = vld [vmem:[#allocation10 + $0x48] sm:$0xff] }
0x1a45   :  { %3567 = vmatpush3.msra.mxu1 %v6972_v32  ;;  %2852 = vmatprep.subr.mxu0 %v4115_v0  ;;  %v4128_v0 = vld [vmem:[#allocation10 + $0x40] sm:$0xff] }
0x1a46   :  { %3568 = vmatprep.subr.mxu1 %v8141_v6  ;;  %2853 = vmatpush1.msra.mxu0 %v4116_v9  ;;  %v4129_v9 = vld [vmem:[#allocation10 + $0x28] sm:$0xff] }
0x1a47   :  { %3569 = vmatpush3.msra.mxu1 %v6978_v4  ;;  %2854 = vmatprep.subr.mxu0 %v4117_v12  ;;  %v4130_v12 = vld [vmem:[#allocation10 + $0x1f8] sm:$0xff] }
0x1a48   :  { %3570 = vmatprep.subr.mxu1 %v8141_v6  ;;  %2855 = vmatpush1.msra.mxu0 %v4118_v36  ;;  %v8733_v36 = vld [vmem:[#allocation79_spill] sm:$0xff] }
0x1a49   :  { %3571 = vmatpush3.msra.mxu1 %v6984_v46  ;;  %2856 = vmatprep.subr.mxu0 %v4119_v11  ;;  %v8735_v11 = vld [vmem:[#allocation83_spill] sm:$0xff] }
0x1a4a   :  { %3572 = vmatprep.subr.mxu1 %v8141_v6  ;;  %2857 = vmatpush1.msra.mxu0 %v4120_v50  ;;  %v8737_v50 = vld [vmem:[#allocation85_spill] sm:$0xff] }
0x1a4b   :  { %3573 = vmatpush3.msra.mxu1 %v6990_v49  ;;  %2858 = vmatprep.subr.mxu0 %v4121_v51  ;;  %v8744_v51 = vld [vmem:[#allocation92_spill] sm:$0xff] }
0x1a4c   :  { %3574 = vmatprep.subr.mxu1 %v8141_v6  ;;  %2859 = vmatpush1.msra.mxu0 %v4122_v52  ;;  %v8745_v52 = vld [vmem:[#allocation93_spill] sm:$0xff] }
0x1a4d   :  { %3575 = vmatpush3.msra.mxu1 %v6996_v20  ;;  %2860 = vmatprep.subr.mxu0 %v4123_v26  ;;  %v8746_v26 = vld [vmem:[#allocation94_spill] sm:$0xff] }
0x1a4e   :  { %3576 = vmatprep.subr.mxu1 %v8141_v6  ;;  %2861 = vmatpush1.msra.mxu0 %v4124_v25  ;;  %v8747_v25 = vld [vmem:[#allocation95_spill] sm:$0xff] }
0x1a4f   :  { %3577 = vmatpush3.msra.mxu1 %v7002_v43  ;;  %2862 = vmatprep.subr.mxu0 %v4125_v18  ;;  %v8748_v18 = vld [vmem:[#allocation96_spill] sm:$0xff] }
0x1a50   :  { %3578 = vmatprep.subr.mxu1 %v8141_v6  ;;  %2863 = vmatpush1.msra.mxu0 %v4126_v55  ;;  %v8749_v55 = vld [vmem:[#allocation97_spill] sm:$0xff] }
0x1a51   :  { %3579 = vmatpush3.msra.mxu1 %v7008_v35  ;;  %2864 = vmatprep.subr.mxu0 %v4127_v24  ;;  %v8750_v24 = vld [vmem:[#allocation101_spill] sm:$0xff] }
0x1a52   :  { %3580 = vmatprep.subr.mxu1 %v8141_v6  ;;  %2865 = vmatpush1.msra.mxu0 %v4128_v0  ;;  %v8751_v0 = vld [vmem:[#allocation102_spill] sm:$0xff] }
0x1a53   :  { %3581 = vmatpush3.msra.mxu1 %v7014_v61  ;;  %2866 = vmatprep.subr.mxu0 %v4129_v9  ;;  %v8752_v9 = vld [vmem:[#allocation55_spill] sm:$0xff] }
0x1a54   :  { %3582 = vmatprep.subr.mxu1 %v8141_v6  ;;  %2867 = vmatpush1.msra.mxu0 %v8653_v19  ;;  %v8734_v19 = vld [vmem:[#allocation81_spill] sm:$0xff] }
0x1a55   :  { %3583 = vmatpush3.msra.mxu1 %v7020_v34  ;;  %2868 = vmatprep.subr.mxu0 %v8654_v21  ;;  %v8736_v21 = vld [vmem:[#allocation84_spill] sm:$0xff] }
0x1a56   :  { %2909 = vmatprep.subr.mxu1 %v4130_v12  ;;  %2869 = vmatpush1.msra.mxu0 %v8656_v62  ;;  %v8738_v62 = vld [vmem:[#allocation86_spill] sm:$0xff]  ;;  %v8753_v12 = vld [vmem:[#allocation23_spill] sm:$0xff] }
0x1a57   :  { %2870 = vmatprep.subr.mxu0 %v8657_v47  ;;  %v8739_v47 = vld [vmem:[#allocation87_spill] sm:$0xff] }
0x1a58   :  { %2871 = vmatpush2.msra.mxu0 %v8658_v17  ;;  %v8740_v17 = vld [vmem:[#allocation88_spill] sm:$0xff] }
0x1a59   :  { %2872 = vmatprep.subr.mxu0 %v8659_v48  ;;  %v8741_v48 = vld [vmem:[#allocation89_spill] sm:$0xff] }
0x1a5a   :  { %2873 = vmatpush2.msra.mxu0 %v8660_v53  ;;  %v8742_v53 = vld [vmem:[#allocation90_spill] sm:$0xff] }
0x1a5b   :  { %2874 = vmatprep.subr.mxu0 %v8661_v38  ;;  %v8743_v38 = vld [vmem:[#allocation91_spill] sm:$0xff] }
0x1a5c   :  { %2875 = vmatpush2.msra.mxu0 %v8733_v36  ;;  %v8754_v36 = vld [vmem:[#allocation59_spill] sm:$0xff] }
0x1a5d   :  { %2876 = vmatprep.subr.mxu0 %v8734_v19  ;;  %v8755_v19 = vld [vmem:[#allocation61_spill] sm:$0xff] }
0x1a5e   :  { %2877 = vmatpush2.msra.mxu0 %v8735_v11  ;;  %v8756_v11 = vld [vmem:[#allocation63_spill] sm:$0xff] }
0x1a5f   :  { %2878 = vmatprep.subr.mxu0 %v8736_v21  ;;  %v8757_v21 = vld [vmem:[#allocation65_spill] sm:$0xff] }
0x1a60   :  { %2879 = vmatpush2.msra.mxu0 %v8737_v50  ;;  %v8758_v50 = vld [vmem:[#allocation67_spill] sm:$0xff] }
0x1a61   :  { %2880 = vmatprep.subr.mxu0 %v8738_v62  ;;  %v8759_v62 = vld [vmem:[#allocation69_spill] sm:$0xff] }
0x1a62   :  { %2881 = vmatpush2.msra.mxu0 %v8739_v47 }
0x1a63   :  { %2882 = vmatprep.subr.mxu0 %v8740_v17 }
0x1a64   :  { %2883 = vmatpush2.msra.mxu0 %v8741_v48 }
0x1a65   :  { %2884 = vmatprep.subr.mxu0 %v8742_v53 }
0x1a66   :  { %2885 = vmatpush2.msra.mxu0 %v8743_v38 }
0x1a67   :  { %2886 = vmatprep.subr.mxu0 %v8744_v51 }
0x1a68   :  { %2887 = vmatpush2.msra.mxu0 %v8745_v52 }
0x1a69   :  { %2888 = vmatprep.subr.mxu0 %v8746_v26 }
0x1a6a   :  { %2889 = vmatpush2.msra.mxu0 %v8747_v25 }
0x1a6b   :  { %2890 = vmatprep.subr.mxu0 %v8748_v18 }
0x1a6c   :  { %2891 = vmatpush2.msra.mxu0 %v8749_v55 }
0x1a6d   :  { %2892 = vmatprep.subr.mxu0 %v8750_v24 }
0x1a6e   :  { %2893 = vmatpush2.msra.mxu0 %v8751_v0 }
0x1a6f   :  { %2894 = vmatprep.subr.mxu0 %v8752_v9 }
0x1a70   :  { %2895 = vmatpush2.msra.mxu0 %v8753_v12 }
0x1a71   :  { %2896 = vmatprep.subr.mxu0 %v8754_v36 }
0x1a72   :  { %2897 = vmatpush2.msra.mxu0 %v8755_v19 }
0x1a73   :  { %2898 = vmatprep.subr.mxu0 %v8756_v11 }
0x1a74   :  { %2899 = vmatpush2.msra.mxu0 %v8757_v21 }
0x1a75   :  { %2900 = vmatprep.subr.mxu0 %v8758_v50 }
0x1a76   :  { %2901 = vmatpush2.msra.mxu0 %v8759_v62 }
0x1a77   :  { %3587 = vmatprep.subr.mxu0 %v8141_v6 }
0x1af6   :  { %v2642_v47 = vpop.f32.mrf.mxu1  ;;  %v2713_v38 = vpop.f32.mrf.mxu0 }
0x1af7   :  { %v3129_v17 = vmul.f32 -1.442695, %v2642_v47 }
0x1af8   :  { %v2644_v48 = vpop.f32.mrf.mxu1  ;;  %v2715_v51 = vpop.f32.mrf.mxu0 }
0x1af9   :  { %3779 = vpow2.f32 %v3129_v17  ;;  %v3130_v53 = vmul.f32 -1.442695, %v2644_v48  ;;  %v3131_v52 = vmul.f32 -1.442695, %v2715_v51  ;;  %v4131_v17 = vld [vmem:[#allocation10 + $0x1f0] sm:$0xff]  ;;  %v4132_v48 = vld [vmem:[#allocation10 + $0x1d8] sm:$0xff] }
0x1afa   :  { %v4136_v51 = vld [vmem:[#allocation10 + $0x198] sm:$0xff] }
0x1afb   :  { %3781 = vpow2.f32 %v3130_v53  ;;  %v4133_v53 = vld [vmem:[#allocation10 + $0x1d0] sm:$0xff] }
0x1afc   :  { %3783 = vpow2.f32 %v3131_v52  ;;  %v4137_v52 = vld [vmem:[#allocation10 + $0x190] sm:$0xff] }
0x1b06   :  { %v3780_v26 = vpop.eup %3779 }
0x1b07   :  { %v2721_v25 = vadd.f32 1.0, %v3780_v26  ;;  %v4138_v26 = vld [vmem:[#allocation10 + $0x178] sm:$0xff] }
0x1b08   :  { %v3782_v18 = vpop.eup %3781 }
0x1b09   :  { %3785 = vrcp.f32 %v2721_v25  ;;  %v2727_v55 = vadd.f32 1.0, %v3782_v18  ;;  %v3784_v24 = vpop.eup %3783  ;;  %v4139_v25 = vld [vmem:[#allocation10 + $0x170] sm:$0xff]  ;;  %v4140_v18 = vld [vmem:[#allocation10 + $0x158] sm:$0xff] }
0x1b0a   :  { %3787 = vtanh.f32 %v2713_v38  ;;  %v2734_v36 = vadd.f32 1.0, %v3784_v24  ;;  %v4134_v38 = vld [vmem:[#allocation10 + $0x1b8] sm:$0xff] }
0x1b0b   :  { %3789 = vrcp.f32 %v2727_v55  ;;  %v4141_v55 = vld [vmem:[#allocation10 + $0x150] sm:$0xff]  ;;  %v4142_v24 = vld [vmem:[#allocation10 + $0x138] sm:$0xff] }
0x1b0c   :  { %3791 = vrcp.f32 %v2734_v36  ;;  %v4146_v36 = vld [vmem:[#allocation10 + $0xf8] sm:$0xff] }
0x1b16   :  { %v3786_v0 = vpop.eup %3785 }
0x1b17   :  { %v3788_v9 = vpop.eup %3787 }
0x1b18   :  { %v3790_v12 = vpop.eup %3789  ;;  %v2738_v19 = vmul.f32 %v3788_v9, %v3786_v0  ;;  %v4143_v0 = vld [vmem:[#allocation10 + $0x130] sm:$0xff]  ;;  %v4144_v9 = vld [vmem:[#allocation10 + $0x118] sm:$0xff] }
0x1b19   :  { %v2737_v11 = vmul.f32 %v3790_v12, %v7060_v54  ;;  %v3792_v50 = vpop.eup %3791  ;;  %v4135_v54 = vld [vmem:[#allocation10 + $0x1b0] sm:$0xff] }
0x1b1a   :  { %v4145_v12 = vld [vmem:[#allocation10 + $0x110] sm:$0xff] }
0x1b1b   :  { %v7210_v21 = vadd.f32 %v2738_v19, %v2737_v11  ;;  %v4147_v19 = vld [vmem:[#allocation10 + $0xf0] sm:$0xff]  ;;  %v4148_v11 = vld [vmem:[#allocation10 + $0xd8] sm:$0xff] }
0x1b1d   :  { %3793 = vtanh.f32 %v7210_v21 }
0x1b2a   :  { %v3794_v62 = vpop.eup %3793 }
0x1b2b   :  { %v2741_v47 = vmul.f32 %v3794_v62, %v3792_v50  ;;  %v4149_v50 = vld [vmem:[#allocation10 + $0xd0] sm:$0xff]  ;;  %v4150_v62 = vld [vmem:[#allocation10 + $0xb8] sm:$0xff] }
0x1b2d   :  { %3585 = vmatmul.mubr.f32.vlgmr.msra.gmra.mxu1 %v2741_v47  ;;  %2902 = vmatprep.mubr.f32.mxu0 %v2741_v47 }
0x1b2e   :  { %2973 = vmatprep.mubr.f32.mxu1 %v2741_v47  ;;  %2910 = vmatpush1.msra.mxu1 %v4131_v17  ;;  %v4151_v47 = vld [vmem:[#allocation10 + $0xb0] sm:$0xff]  ;;  %v4152_v17 = vld [vmem:[#allocation10 + $0x98] sm:$0xff] }
0x1b2f   :  { %2911 = vmatprep.subr.mxu1 %v4132_v48  ;;  %v4153_v48 = vld [vmem:[#allocation10 + $0x90] sm:$0xff] }
0x1b30   :  { %2912 = vmatpush1.msra.mxu1 %v4133_v53  ;;  %v4154_v53 = vld [vmem:[#allocation10 + $0x78] sm:$0xff] }
0x1b31   :  { %2913 = vmatprep.subr.mxu1 %v4134_v38  ;;  %v4155_v38 = vld [vmem:[#allocation10 + $0x70] sm:$0xff] }
0x1b32   :  { %2914 = vmatpush1.msra.mxu1 %v4135_v54  ;;  %v4156_v54 = vld [vmem:[#allocation10 + $0x58] sm:$0xff] }
0x1b33   :  { %2915 = vmatprep.subr.mxu1 %v4136_v51  ;;  %v4157_v51 = vld [vmem:[#allocation10 + $0x50] sm:$0xff] }
0x1b34   :  { %2916 = vmatpush1.msra.mxu1 %v4137_v52  ;;  %v4158_v52 = vld [vmem:[#allocation10 + $0x38] sm:$0xff] }
0x1b35   :  { %2917 = vmatprep.subr.mxu1 %v4138_v26  ;;  %v4159_v26 = vld [vmem:[#allocation10 + $0x30] sm:$0xff] }
0x1b36   :  { %2918 = vmatpush1.msra.mxu1 %v4139_v25  ;;  %v4160_v25 = vld [vmem:[#allocation10 + $0x18] sm:$0xff] }
0x1b37   :  { %2919 = vmatprep.subr.mxu1 %v4140_v18  ;;  %v4161_v18 = vld [vmem:[#allocation10 + $0x10] sm:$0xff] }
0x1b38   :  { %2920 = vmatpush1.msra.mxu1 %v4141_v55  ;;  %v4162_v55 = vld [vmem:[#allocation10 + $0x3f8] sm:$0xff] }
0x1b39   :  { %2921 = vmatprep.subr.mxu1 %v4142_v24  ;;  %v4163_v24 = vld [vmem:[#allocation10 + $0x3f0] sm:$0xff] }
0x1b3a   :  { %2922 = vmatpush1.msra.mxu1 %v4143_v0  ;;  %v4164_v0 = vld [vmem:[#allocation10 + $0x3d8] sm:$0xff] }
0x1b3b   :  { %2923 = vmatprep.subr.mxu1 %v4144_v9  ;;  %v4165_v9 = vld [vmem:[#allocation10 + $0x3d0] sm:$0xff] }
0x1b3c   :  { %2924 = vmatpush1.msra.mxu1 %v4145_v12  ;;  %v4166_v12 = vld [vmem:[#allocation10 + $0x3b8] sm:$0xff] }
0x1b3d   :  { %2925 = vmatprep.subr.mxu1 %v4146_v36  ;;  %v4167_v36 = vld [vmem:[#allocation10 + $0x3b0] sm:$0xff] }
0x1b3e   :  { %2926 = vmatpush1.msra.mxu1 %v4147_v19  ;;  %v4168_v19 = vld [vmem:[#allocation10 + $0x398] sm:$0xff] }
0x1b3f   :  { %2927 = vmatprep.subr.mxu1 %v4148_v11  ;;  %v4169_v11 = vld [vmem:[#allocation10 + $0x390] sm:$0xff] }
0x1b40   :  { %2928 = vmatpush1.msra.mxu1 %v4149_v50  ;;  %v4170_v50 = vld [vmem:[#allocation10 + $0x378] sm:$0xff] }
0x1b41   :  { %2929 = vmatprep.subr.mxu1 %v4150_v62  ;;  %v4171_v62 = vld [vmem:[#allocation10 + $0x370] sm:$0xff] }
0x1b42   :  { %2930 = vmatpush1.msra.mxu1 %v4151_v47 }
0x1b43   :  { %2931 = vmatprep.subr.mxu1 %v4152_v17  ;;  %v8763_v17 = vld [vmem:[#allocation48_spill] sm:$0xff] }
0x1b44   :  { %2932 = vmatpush1.msra.mxu1 %v4153_v48 }
0x1b45   :  { %2933 = vmatprep.subr.mxu1 %v4154_v53  ;;  %v8764_v53 = vld [vmem:[#allocation57_spill] sm:$0xff] }
0x1b46   :  { %2934 = vmatpush1.msra.mxu1 %v4155_v38 }
0x1b47   :  { %2935 = vmatprep.subr.mxu1 %v4156_v54  ;;  %v8765_v54 = vld [vmem:[#allocation100_spill] sm:$0xff] }
0x1b48   :  { %2936 = vmatpush1.msra.mxu1 %v4157_v51 }
0x1b49   :  { %2937 = vmatprep.subr.mxu1 %v4158_v52  ;;  %v8766_v52 = vld [vmem:[#allocation104_spill] sm:$0xff] }
0x1b4a   :  { %2938 = vmatpush1.msra.mxu1 %v4159_v26 }
0x1b4b   :  { %2939 = vmatprep.subr.mxu1 %v4160_v25 }
0x1b4c   :  { %2940 = vmatpush1.msra.mxu1 %v4161_v18 }
0x1b4d   :  { %2941 = vmatprep.subr.mxu1 %v4162_v55 }
0x1b4e   :  { %2942 = vmatpush2.msra.mxu1 %v4163_v24 }
0x1b4f   :  { %2943 = vmatprep.subr.mxu1 %v4164_v0 }
0x1b50   :  { %2944 = vmatpush2.msra.mxu1 %v4165_v9 }
0x1b51   :  { %2945 = vmatprep.subr.mxu1 %v4166_v12 }
0x1b52   :  { %2946 = vmatpush2.msra.mxu1 %v4167_v36 }
0x1b53   :  { %2947 = vmatprep.subr.mxu1 %v4168_v19 }
0x1b54   :  { %2948 = vmatpush2.msra.mxu1 %v4169_v11 }
0x1b55   :  { %2949 = vmatprep.subr.mxu1 %v4170_v50 }
0x1b56   :  { %2950 = vmatpush2.msra.mxu1 %v4171_v62 }
0x1b57   :  { %2951 = vmatprep.subr.mxu1 %v8710_v15 }
0x1b58   :  { %2952 = vmatpush2.msra.mxu1 %v8711_v1  ;;  %v8760_v1 = vld [vmem:[#allocation34_spill] sm:$0xff] }
0x1b59   :  { %2953 = vmatprep.subr.mxu1 %v8712_v41 }
0x1b5a   :  { %2954 = vmatpush2.msra.mxu1 %v8713_v56 }
0x1b5b   :  { %2955 = vmatprep.subr.mxu1 %v8714_v27 }
0x1b5c   :  { %2956 = vmatpush2.msra.mxu1 %v8715_v16 }
0x1b5d   :  { %2957 = vmatprep.subr.mxu1 %v8716_v58 }
0x1b5e   :  { %2958 = vmatpush2.msra.mxu1 %v8717_v59 }
0x1b5f   :  { %2959 = vmatprep.subr.mxu1 %v8718_v23 }
0x1b60   :  { %2960 = vmatpush2.msra.mxu1 %v8719_v5 }
0x1b61   :  { %2961 = vmatprep.subr.mxu1 %v8720_v60 }
0x1b62   :  { %2962 = vmatpush2.msra.mxu1 %v8721_v13 }
0x1b63   :  { %2963 = vmatprep.subr.mxu1 %v8722_v40 }
0x1b64   :  { %2964 = vmatpush2.msra.mxu1 %v8723_v39 }
0x1b65   :  { %2965 = vmatprep.subr.mxu1 %v8724_v42 }
0x1b66   :  { %2966 = vmatpush2.msra.mxu1 %v8725_v31 }
0x1b67   :  { %2967 = vmatprep.subr.mxu1 %v8726_v2 }
0x1b68   :  { %2968 = vmatpush2.msra.mxu1 %v8727_v10 }
0x1b69   :  { %2969 = vmatprep.subr.mxu1 %v8728_v8 }
0x1b6a   :  { %2970 = vmatpush2.msra.mxu1 %v8729_v44 }
0x1b6b   :  { %2971 = vmatprep.subr.mxu1 %v8730_v22  ;;  %v8761_v22 = vld [vmem:[#allocation51_spill] sm:$0xff] }
0x1b6c   :  { %2972 = vmatpush2.msra.mxu1 %v8731_v37  ;;  %v8762_v37 = vld [vmem:[#allocation52_spill] sm:$0xff] }
0x1b6d   :  { %v1240_v47 = vmax.f32 %v8762_v37, %v8761_v22 }
0x1b6f   :  { %v1502_v48 = vmax.f32 %v1240_v47, %v8763_v17 }
0x1b71   :  { %v1764_v38 = vmax.f32 %v1502_v48, %v8764_v53 }
0x1b73   :  { %v2026_v51 = vmax.f32 %v1764_v38, %v8765_v54 }
0x1b75   :  { %v2288_v26 = vmax.f32 %v2026_v51, %v8766_v52 }
0x1bed   :  { %v2808_v15 = vpop.f32.mrf.mxu1 }
0x1bee   :  { %v7236_v41 = vadd.f32 %v8760_v1, %v2808_v15 }
0x1bef   :  { %v3586_v56 = vpop.f32.mrf.mxu1 }
0x1bf0   :  { %2813 = vmax.xlane.f32.xlu1 %v7236_v41 }
0x1c79   :  { %v2814_v27 = vpop.xlane.xlu1 %2813 }
0x1c7a   :  { %vm2815_vm8 = vcmp.eq.f32.partialorder %v7236_v41, %v2814_v27 }
0x1c7b   :  { %v2816_v16 = vsel %vm2815_vm8, %v5288_v3, 128 }
0x1c7c   :  { %v2818_v58 = vshra.s32 %v2816_v16, 16  ;;  %v2817_v23 = vand.u32 65535, %v2816_v16 }
0x1c7e   :  { %v2820_v59 = vcvt.s32.f32 %v2818_v58  ;;  %v2819_v60 = vcvt.s32.f32 %v2817_v23 }
0x1c80   :  { %2821 = vmin.xlane.f32.xlu0 %v2820_v59 }
0x1d09   :  { %v2822_v5 = vpop.xlane.xlu0 %2821 }
0x1d0a   :  { %vm2823_vm9 = vcmp.eq.f32.partialorder %v2820_v59, %v2822_v5  ;;  %v2828_v40 = vcvt.f32.s32 %v2822_v5 }
0x1d0b   :  { %v2824_v13 = vsel %vm2823_vm9, %v2819_v60, inf }
0x1d0c   :  { %2825 = vmin.xlane.f32.xlu1 %v2824_v13  ;;  %v2829_v42 = vshll.u32 %v2828_v40, 16 }
0x1d95   :  { %v2826_v39 = vpop.xlane.xlu1 %2825 }
0x1d96   :  { %v2827_v31 = vcvt.f32.s32 %v2826_v39 }
0x1d98   :  { %v2830_v2 = vadd.s32 %v2829_v42, %v2827_v31 }
0x1d9a   :  { %vm2831_vm10 = vcmp.eq.s32.totalorder %v5288_v3, %v2830_v2 }
0x1d9b   :  { %3152 = vmatmul.mubr.msk.f32.vlgmr.msra.gmra.mxu0 %vm2831_vm10, %v8209_v57  ;;  %3153 = vmatmul.mubr.msk.f32.vlgmr.msra.gmra.mxu1 %vm2831_vm10, %v8209_v57 }
0x1d9c   :  { %3588 = vmatpush3.msra.mxu0 %v6929_v7  ;;  %3619 = vmatprep.mubr.msk.f32.mxu0 %vm4311_vm1, %v8141_v6 }
0x1d9d   :  { %3589 = vmatprep.subr.mxu0 %v8141_v6 }
0x1d9e   :  { %3590 = vmatpush3.msra.mxu0 %v6936_v63 }
0x1d9f   :  { %3591 = vmatprep.subr.mxu0 %v8141_v6 }
0x1da0   :  { %3592 = vmatpush3.msra.mxu0 %v6942_v14 }
0x1da1   :  { %3593 = vmatprep.subr.mxu0 %v8141_v6 }
0x1da2   :  { %3594 = vmatpush3.msra.mxu0 %v6948_v45 }
0x1da3   :  { %3595 = vmatprep.subr.mxu0 %v8141_v6 }
0x1da4   :  { %3596 = vmatpush3.msra.mxu0 %v6954_v29 }
0x1da5   :  { %3597 = vmatprep.subr.mxu0 %v8141_v6 }
0x1da6   :  { %3598 = vmatpush3.msra.mxu0 %v6960_v28 }
0x1da7   :  { %3599 = vmatprep.subr.mxu0 %v8141_v6 }
0x1da8   :  { %3600 = vmatpush3.msra.mxu0 %v6966_v30 }
0x1da9   :  { %3601 = vmatprep.subr.mxu0 %v8141_v6 }
0x1daa   :  { %3602 = vmatpush3.msra.mxu0 %v6972_v32 }
0x1dab   :  { %3603 = vmatprep.subr.mxu0 %v8141_v6 }
0x1dac   :  { %3604 = vmatpush3.msra.mxu0 %v6978_v4 }
0x1dad   :  { %3605 = vmatprep.subr.mxu0 %v8141_v6 }
0x1dae   :  { %3606 = vmatpush3.msra.mxu0 %v6984_v46 }
0x1daf   :  { %3607 = vmatprep.subr.mxu0 %v8141_v6 }
0x1db0   :  { %3608 = vmatpush3.msra.mxu0 %v6990_v49 }
0x1db1   :  { %3609 = vmatprep.subr.mxu0 %v8141_v6 }
0x1db2   :  { %3610 = vmatpush3.msra.mxu0 %v6996_v20 }
0x1db3   :  { %3611 = vmatprep.subr.mxu0 %v8141_v6 }
0x1db4   :  { %3612 = vmatpush3.msra.mxu0 %v7002_v43 }
0x1db5   :  { %3613 = vmatprep.subr.mxu0 %v8141_v6 }
0x1db6   :  { %3614 = vmatpush3.msra.mxu0 %v7008_v35 }
0x1db7   :  { %3615 = vmatprep.subr.mxu0 %v8141_v6 }
0x1db8   :  { %3616 = vmatpush3.msra.mxu0 %v7014_v61 }
0x1db9   :  { %3617 = vmatprep.subr.mxu0 %v8141_v6 }
0x1dba   :  { %3618 = vmatpush3.msra.mxu0 %v7020_v34 }
0x1e5b   :  { %v2904_v3 = vpop.f32.mrf.mxu0  ;;  %v2975_v14 = vpop.f32.mrf.mxu1 }
0x1e5c   :  { %v3133_v57 = vmul.f32 -1.442695, %v2904_v3 }
0x1e5d   :  { %v2906_v7 = vpop.f32.mrf.mxu0  ;;  %v2977_v45 = vpop.f32.mrf.mxu1 }
0x1e5e   :  { %3795 = vpow2.f32 %v3133_v57  ;;  %v3134_v63 = vmul.f32 -1.442695, %v2906_v7  ;;  %v3135_v29 = vmul.f32 -1.442695, %v2977_v45 }
0x1e60   :  { %3797 = vpow2.f32 %v3134_v63 }
0x1e61   :  { %3799 = vpow2.f32 %v3135_v29 }
0x1e6b   :  { %v3796_v28 = vpop.eup %3795 }
0x1e6c   :  { %v2983_v30 = vadd.f32 1.0, %v3796_v28 }
0x1e6d   :  { %v3798_v32 = vpop.eup %3797 }
0x1e6e   :  { %3801 = vrcp.f32 %v2983_v30  ;;  %v2989_v4 = vadd.f32 1.0, %v3798_v32  ;;  %v3800_v6 = vpop.eup %3799 }
0x1e6f   :  { %3803 = vtanh.f32 %v2975_v14  ;;  %v2996_v43 = vadd.f32 1.0, %v3800_v6 }
0x1e70   :  { %3805 = vrcp.f32 %v2989_v4 }
0x1e71   :  { %3807 = vrcp.f32 %v2996_v43 }
0x1e7b   :  { %v3802_v46 = vpop.eup %3801 }
0x1e7c   :  { %v3804_v49 = vpop.eup %3803 }
0x1e7d   :  { %v3806_v20 = vpop.eup %3805  ;;  %v3000_v35 = vmul.f32 %v3804_v49, %v3802_v46 }
0x1e7e   :  { %v2999_v61 = vmul.f32 %v3806_v20, %v7210_v21  ;;  %v3808_v10 = vpop.eup %3807  ;;  %v2550_v21 = vmax.f32 %v2288_v26, %v7132_v33 }
0x1e80   :  { %v3001_v34 = vadd.f32 %v3000_v35, %v2999_v61  ;;  %v2812_v18 = vmax.f32 %v2550_v21, %v7236_v41 }
0x1e82   :  { %3809 = vtanh.f32 %v3001_v34 }
0x1e8f   :  { %v3810_v8 = vpop.eup %3809 }
0x1e90   :  { %v3003_v44 = vmul.f32 %v3810_v8, %v3808_v10 }
0x1e92   :  { %3620 = vmatmul.mubr.f32.vlgmr.msra.gmra.mxu0 %v3003_v44 }
0x1f52   :  { %v3070_v25 = vpop.f32.mrf.mxu0 }
0x1f53   :  { %v3071_v55 = vadd.f32 %v8760_v1, %v3070_v25 }
0x1f54   :  { %v3621_v24 = vpop.f32.mrf.mxu0 }
0x1f55   :  { %v3074_v0 = vmax.f32 %v2812_v18, %v3071_v55 }
0x1f57   :  { %3075 = vst [vmem:[#allocation13] sm:$0xff] %v3074_v0 }
0x1f58   :  { %4283 = shalt.err (!%p4280_p1)
}
0x1f59   :  { %3085 = dma.vmem_to_hbm [thread:$0]  %s3083_s27, 128, %s7296_s6, [#allocation6]  }
0x1f5a   :  { %4298 = dma.done.wait [#allocation6], 128  }
0x1f5b   :  { %4299 = vsyncadd [#allocation6], 4294967168 }
0x1f5c   :  { %3089 = vsyncpa [#allocation5], 1 }
0x1f5d   :  { %3090 = vsyncpa [#allocation8], 1 }
0x1f5e   :  { %3091 = vsyncpa [#allocation11], 1 }
0x1f5f   :  { %3092 = vsyncpa [#allocation6], 1 }

</bundles_post_ra>
